<compile_context>
chip_gen: v6e
topology: v6e:2x2x1
jax: 0.10.0
libtpu: 0.0.40
codegen_flags: <defaults>
</compile_context>

<pallas_src>
import functools

import jax
import jax.numpy as jnp
from jax import lax
from jax.experimental import pallas as pl
from jax.experimental.pallas import tpu as pltpu


# ---------------------------------------------------------------------------
# Pallas kernels
# ---------------------------------------------------------------------------

def _affine_relu(acc, scale, bias):
    return jnp.maximum(acc * scale + bias, 0.0)


def fused_branches_kernel(patches_ref, w5_ref, s5_ref, b5_ref,
                          wqkv_ref, bqkv_ref, gammas_ref,
                          sa_ref, sc_ref, *, ci, cq, tq):
    """Per-batch fused conv5a/conv5c + PAM + CAM.

    patches_ref : (1, S, 27*Cin) bf16   shared im2col patches of the input volume
    w5_ref      : (27*Cin, 2*ci) bf16   [conv5a | conv5c] weights
    s5_ref/b5_ref : (1, 2*ci) f32       folded BN scale / bias (both branches)
    wqkv_ref    : (ci, 2*cq+ci) bf16    [Wq | Wk | Wv] 1x1x1 projections
    bqkv_ref    : (1, 2*cq+ci) f32
    gammas_ref  : (2,) f32 in SMEM      [gamma_pam, gamma_cam]
    sa_ref/sc_ref : (1, S, ci) f32      PAM / CAM branch outputs (token layout)
    """
    patches = patches_ref[0]                                        # (S, K) bf16
    S = patches.shape[0]

    # conv5a & conv5c as one matmul (shared patch read), folded BN + ReLU.
    feats = jnp.dot(patches, w5_ref[...],
                    preferred_element_type=jnp.float32)             # (S, 2*ci) f32
    feats = _affine_relu(feats, s5_ref[...], b5_ref[...])
    feat1 = feats[:, :ci]                                           # PAM branch
    feat2 = feats[:, ci:]                                           # CAM branch

    # ---- PAM (position attention), query dimension tiled by tq ----
    qkv = jnp.dot(feat1.astype(jnp.bfloat16), wqkv_ref[...],
                  preferred_element_type=jnp.float32) + bqkv_ref[...]
    q = qkv[:, :cq].astype(jnp.bfloat16)                            # (S, cq)
    k = qkv[:, cq:2 * cq].astype(jnp.bfloat16)                      # (S, cq)
    v = qkv[:, 2 * cq:].astype(jnp.bfloat16)                        # (S, ci)
    gamma_pam = gammas_ref[0]
    for qb in range(S // tq):
        lo, hi = qb * tq, (qb + 1) * tq
        q_blk = q[lo:hi, :]                                         # (tq, cq)
        # energy[s, s'] = sum_c q[s, c] * k[s', c]
        energy = lax.dot_general(q_blk, k, (((1,), (1,)), ((), ())),
                                 preferred_element_type=jnp.float32)  # (tq, S)
        energy = energy - jnp.max(energy, axis=-1, keepdims=True)
        e = jnp.exp(energy)
        attn = e * pl.reciprocal(jnp.sum(e, axis=-1, keepdims=True), approx=True)
        out = jnp.dot(attn.astype(jnp.bfloat16), v,
                      preferred_element_type=jnp.float32)           # (tq, ci)
        sa_ref[0, lo:hi, :] = (gamma_pam * out + feat1[lo:hi, :]).astype(sa_ref.dtype)

    # ---- CAM (channel attention), all in token layout (no XLA transposes) ----
    f2b = feat2.astype(jnp.bfloat16)
    # energy[i, j] = sum_s feat2[s, i] * feat2[s, j]
    energy_c = lax.dot_general(f2b, f2b, (((0,), (0,)), ((), ())),
                               preferred_element_type=jnp.float32)  # (ci, ci)
    energy_new = jnp.max(energy_c, axis=-1, keepdims=True) - energy_c
    energy_new = energy_new - jnp.max(energy_new, axis=-1, keepdims=True)
    ec = jnp.exp(energy_new)
    attn_c = ec * pl.reciprocal(jnp.sum(ec, axis=-1, keepdims=True), approx=True)
    # out[s, i] = sum_j attn_c[i, j] * feat2[s, j]
    out_c = lax.dot_general(f2b, attn_c.astype(jnp.bfloat16),
                            (((1,), (1,)), ((), ())),
                            preferred_element_type=jnp.float32)     # (S, ci)
    gamma_cam = gammas_ref[1]
    sc_ref[0] = (gamma_cam * out_c + feat2).astype(sc_ref.dtype)


def fused_tail_kernel(p1_ref, p2_ref, w51_ref, s51_ref, b51_ref,
                      w52_ref, s52_ref, b52_ref, w8_ref, b8_ref, o_ref):
    """conv51 + conv52 + (sa_conv + sc_conv) + conv8 for one token block."""
    sa = _affine_relu(jnp.dot(p1_ref[...], w51_ref[...],
                              preferred_element_type=jnp.float32),
                      s51_ref[...], b51_ref[...])
    sc = _affine_relu(jnp.dot(p2_ref[...], w52_ref[...],
                              preferred_element_type=jnp.float32),
                      s52_ref[...], b52_ref[...])
    feat_sum = (sa + sc).astype(jnp.bfloat16)       # Dropout3d is identity (eval)
    out = jnp.dot(feat_sum, w8_ref[...],
                  preferred_element_type=jnp.float32) + b8_ref[...]
    o_ref[...] = jnp.maximum(out, 0.0).astype(o_ref.dtype)


# ---------------------------------------------------------------------------
# Pallas wrappers
# ---------------------------------------------------------------------------

_VMEM_LIMIT = 32 * 1024 * 1024   # > v5e's 16 MiB scoped default, <= physical on all gens


def _round_up(x, m):
    return ((x + m - 1) // m) * m


def fused_branches(patches, w5, s5, b5, wqkv, bqkv, gammas, *, ci, cq, tq=128):
    B, S, K = patches.shape
    nqkv = 2 * cq + ci
    tq = min(tq, S)
    if S % tq != 0:
        tq = S
    kernel = functools.partial(fused_branches_kernel, ci=ci, cq=cq, tq=tq)
    return pl.pallas_call(
        kernel,
        out_shape=(jax.ShapeDtypeStruct((B, S, ci), jnp.float32),
                   jax.ShapeDtypeStruct((B, S, ci), jnp.float32)),
        grid=(B,),
        in_specs=[
            pl.BlockSpec((1, S, K), lambda b: (b, 0, 0)),
            pl.BlockSpec((K, 2 * ci), lambda b: (0, 0)),
            pl.BlockSpec((1, 2 * ci), lambda b: (0, 0)),
            pl.BlockSpec((1, 2 * ci), lambda b: (0, 0)),
            pl.BlockSpec((ci, nqkv), lambda b: (0, 0)),
            pl.BlockSpec((1, nqkv), lambda b: (0, 0)),
            pl.BlockSpec(memory_space=pltpu.MemorySpace.SMEM),
        ],
        out_specs=(pl.BlockSpec((1, S, ci), lambda b: (b, 0, 0)),
                   pl.BlockSpec((1, S, ci), lambda b: (b, 0, 0))),
        compiler_params=pltpu.CompilerParams(
            dimension_semantics=("parallel",),
            vmem_limit_bytes=_VMEM_LIMIT),
    )(patches, w5, s5, b5, wqkv, bqkv, gammas)


def fused_tail(p1, p2, w51, s51, b51, w52, s52, b52, w8, b8, *, cout, tm=512):
    M, K = p1.shape
    ci = w51.shape[1]
    tm = min(tm, _round_up(M, 8))
    Mp = _round_up(M, tm)
    if Mp != M:
        pad = ((0, Mp - M), (0, 0))
        p1 = jnp.pad(p1, pad)
        p2 = jnp.pad(p2, pad)
    out = pl.pallas_call(
        fused_tail_kernel,
        out_shape=jax.ShapeDtypeStruct((Mp, cout), jnp.float32),
        grid=(Mp // tm,),
        in_specs=[
            pl.BlockSpec((tm, K), lambda i: (i, 0)),
            pl.BlockSpec((tm, K), lambda i: (i, 0)),
            pl.BlockSpec((K, ci), lambda i: (0, 0)),
            pl.BlockSpec((1, ci), lambda i: (0, 0)),
            pl.BlockSpec((1, ci), lambda i: (0, 0)),
            pl.BlockSpec((K, ci), lambda i: (0, 0)),
            pl.BlockSpec((1, ci), lambda i: (0, 0)),
            pl.BlockSpec((1, ci), lambda i: (0, 0)),
            pl.BlockSpec((ci, cout), lambda i: (0, 0)),
            pl.BlockSpec((1, cout), lambda i: (0, 0)),
        ],
        out_specs=pl.BlockSpec((tm, cout), lambda i: (i, 0)),
        compiler_params=pltpu.CompilerParams(
            dimension_semantics=("parallel",),
            vmem_limit_bytes=_VMEM_LIMIT),
    )(p1, p2, w51, s51, b51, w52, s52, b52, w8, b8)
    return out[:M]


# ---------------------------------------------------------------------------
# JAX glue (im2col in channels-last layout, weight packing, parameters)
# ---------------------------------------------------------------------------

def im2col_3x3x3_ndhwc(x):
    """(B, D, H, W, C) -> (B*D*H*W, 27*C); column order (kd, kh, kw, C)."""
    B, D, H, W, C = x.shape
    xp = jnp.pad(x, ((0, 0), (1, 1), (1, 1), (1, 1), (0, 0)))
    cols = [xp[:, kd:kd + D, kh:kh + H, kw:kw + W, :]
            for kd in range(3) for kh in range(3) for kw in range(3)]
    patches = jnp.concatenate(cols, axis=-1)               # (B, D, H, W, 27*C)
    return patches.reshape(B * D * H * W, 27 * C)


def conv3_w_to_mat(w):
    """(Cout, Cin, 3, 3, 3) -> (27*Cin, Cout), matching im2col column order."""
    cout = w.shape[0]
    return jnp.transpose(w, (2, 3, 4, 1, 0)).reshape(-1, cout)


def conv1_w_to_mat(w):
    """(Cout, Cin, 1, 1, 1) -> (Cin, Cout)."""
    cout, cin = w.shape[0], w.shape[1]
    return w.reshape(cout, cin).T


@jax.jit
def danet_head_forward(x, p):
    """x: (B, Cin, D, H, W) f32 -> sasc_output: (B, Cout, D, H, W) f32."""
    B, Cin, D, H, W = x.shape
    S = D * H * W
    ci = p["w5a"].shape[0]            # inter channels = Cin // 4
    cq = p["wq"].shape[0]             # PAM q/k dim = inter // 8
    cout = p["w8"].shape[0]

    # Single NCDHW -> NDHWC transpose; everything downstream is token layout.
    x_ndhwc = jnp.transpose(x, (0, 2, 3, 4, 1))
    patches_in = im2col_3x3x3_ndhwc(x_ndhwc).astype(jnp.bfloat16).reshape(B, S, 27 * Cin)

    # Pack conv5a|conv5c and q|k|v weights so each is one matmul.
    w5 = jnp.concatenate([conv3_w_to_mat(p["w5a"]),
                          conv3_w_to_mat(p["w5c"])], axis=1).astype(jnp.bfloat16)
    s5 = jnp.concatenate([p["bn5a"][0], p["bn5c"][0]]).reshape(1, 2 * ci)
    b5 = jnp.concatenate([p["bn5a"][1], p["bn5c"][1]]).reshape(1, 2 * ci)
    wqkv = jnp.concatenate([conv1_w_to_mat(p["wq"]),
                            conv1_w_to_mat(p["wk"]),
                            conv1_w_to_mat(p["wv"])], axis=1).astype(jnp.bfloat16)
    bqkv = jnp.concatenate([p["bq"], p["bk"], p["bv"]]).reshape(1, 2 * cq + ci)
    gammas = jnp.stack([p["gamma_pam"], p["gamma_cam"]]).astype(jnp.float32)

    # Kernel 1: conv5a/conv5c + PAM + CAM fused, per-batch.
    sa_feat, sc_feat = fused_branches(patches_in, w5, s5, b5, wqkv, bqkv, gammas,
                                      ci=ci, cq=cq)

    # im2col of the attention outputs (reshape token->NDHWC is free).
    p1 = im2col_3x3x3_ndhwc(sa_feat.reshape(B, D, H, W, ci)).astype(jnp.bfloat16)
    p2 = im2col_3x3x3_ndhwc(sc_feat.reshape(B, D, H, W, ci)).astype(jnp.bfloat16)

    # Kernel 2: conv51 + conv52 + sum + conv8 fused, per token block.
    # (conv6/conv7 are dead w.r.t. the returned sasc_output and are omitted.)
    sasc = fused_tail(
        p1, p2,
        conv3_w_to_mat(p["w51"]).astype(jnp.bfloat16),
        p["bn51"][0].reshape(1, ci), p["bn51"][1].reshape(1, ci),
        conv3_w_to_mat(p["w52"]).astype(jnp.bfloat16),
        p["bn52"][0].reshape(1, ci), p["bn52"][1].reshape(1, ci),
        conv1_w_to_mat(p["w8"]).astype(jnp.bfloat16),
        p["b8"].reshape(1, cout),
        cout=cout)

    # Single NDHWC -> NCDHW transpose on exit.
    return sasc.reshape(B, D, H, W, cout).transpose(0, 4, 1, 2, 3)


def init_params(key, in_ch, out_ch):
    inter = in_ch // 4
    cq = inter // 8
    keys = iter(jax.random.split(key, 48))

    def nrm(shape, scale=0.05):
        return scale * jax.random.normal(next(keys), shape, jnp.float32)

    def bn_fold(c, eps=1e-3):
        w = 1.0 + 0.1 * jax.random.normal(next(keys), (c,), jnp.float32)
        b = 0.1 * jax.random.normal(next(keys), (c,), jnp.float32)
        rm = 0.1 * jax.random.normal(next(keys), (c,), jnp.float32)
        rv = 1.0 + 0.1 * jnp.abs(jax.random.normal(next(keys), (c,), jnp.float32))
        scale = w / jnp.sqrt(rv + eps)
        bias = b - rm * scale
        return scale, bias

    p = {}
    p["w5a"] = nrm((inter, in_ch, 3, 3, 3)); p["bn5a"] = bn_fold(inter)
    p["w5c"] = nrm((inter, in_ch, 3, 3, 3)); p["bn5c"] = bn_fold(inter)
    p["wq"] = nrm((cq, inter, 1, 1, 1)); p["bq"] = nrm((cq,))
    p["wk"] = nrm((cq, inter, 1, 1, 1)); p["bk"] = nrm((cq,))
    p["wv"] = nrm((inter, inter, 1, 1, 1)); p["bv"] = nrm((inter,))
    p["gamma_pam"] = jnp.float32(0.1)   # PyTorch inits to 0; nonzero to exercise path
    p["gamma_cam"] = jnp.float32(0.1)
    p["w51"] = nrm((inter, inter, 3, 3, 3)); p["bn51"] = bn_fold(inter)
    p["w52"] = nrm((inter, inter, 3, 3, 3)); p["bn52"] = bn_fold(inter)
    p["w8"] = nrm((out_ch, inter, 1, 1, 1)); p["b8"] = nrm((out_ch,))
    # conv6/conv7 weights omitted: their outputs are not returned by forward().
    return p


if __name__ == "__main__":
    key = jax.random.PRNGKey(0)
    kx, kp = jax.random.split(key)

    # in_channels=64 -> inter_channels=16 -> PAM query/key dim = 2
    B, Cin, D, H, W = 2, 64, 4, 8, 8
    Cout = 4

    x = jax.random.normal(kx, (B, Cin, D, H, W), jnp.float32)
    params = init_params(kp, Cin, Cout)

    out = danet_head_forward(x, params)
    out = jax.block_until_ready(out)
    assert out.shape == (B, Cout, D, H, W), out.shape
    assert bool(jnp.all(jnp.isfinite(out)))
    print("KERNEL_OK")
</pallas_src>

<mosaic_0001>
module attributes {stable_mosaic.version = 11 : i64} {
  func.func @fused_branches_kernel(%arg0: i32, %arg1: memref<1x256x1728xbf16, #tpu.memory_space<vmem>>, %arg2: memref<1728x32xbf16, #tpu.memory_space<vmem>>, %arg3: memref<1x32xf32, #tpu.memory_space<vmem>>, %arg4: memref<1x32xf32, #tpu.memory_space<vmem>>, %arg5: memref<16x20xbf16, #tpu.memory_space<vmem>>, %arg6: memref<1x20xf32, #tpu.memory_space<vmem>>, %arg7: memref<2xf32, #tpu.memory_space<smem>>, %arg8: memref<1x256x16xf32, #tpu.memory_space<vmem>>, %arg9: memref<1x256x16xf32, #tpu.memory_space<vmem>>) attributes {dimension_semantics = [#tpu.dimension_semantics<parallel>], iteration_bounds = array<i64: 2>, scalar_prefetch = 0 : i64, scratch_operands = 0 : i64, tpu.core_type = #tpu.core_type<tc>, window_params = [{transform_indices = @transform_0, window_bounds = array<i64: 1, 256, 1728>}, {pipeline_mode = #tpu.pipeline_mode<synchronous>, transform_indices = @transform_1, window_bounds = array<i64: 1728, 32>}, {pipeline_mode = #tpu.pipeline_mode<synchronous>, transform_indices = @transform_2, window_bounds = array<i64: 1, 32>}, {pipeline_mode = #tpu.pipeline_mode<synchronous>, transform_indices = @transform_3, window_bounds = array<i64: 1, 32>}, {pipeline_mode = #tpu.pipeline_mode<synchronous>, transform_indices = @transform_4, window_bounds = array<i64: 16, 20>}, {pipeline_mode = #tpu.pipeline_mode<synchronous>, transform_indices = @transform_5, window_bounds = array<i64: 1, 20>}, {transform_indices = @transform_6, window_bounds = array<i64: 2>}, {transform_indices = @transform_7, window_bounds = array<i64: 1, 256, 16>}, {transform_indices = @transform_8, window_bounds = array<i64: 1, 256, 16>}]} {
    %c0 = arith.constant 0 : index
    %c0_0 = arith.constant 0 : index
    %c0_1 = arith.constant 0 : index
    %0 = vector.load %arg1[%c0, %c0_0, %c0_1] : memref<1x256x1728xbf16, #tpu.memory_space<vmem>>, vector<1x256x1728xbf16>
    %1 = vector.shape_cast %0 : vector<1x256x1728xbf16> to vector<256x1728xbf16>
    %c0_2 = arith.constant 0 : index
    %c0_3 = arith.constant 0 : index
    %2 = vector.load %arg2[%c0_2, %c0_3] : memref<1728x32xbf16, #tpu.memory_space<vmem>>, vector<1728x32xbf16>
    %cst = arith.constant dense<0.000000e+00> : vector<256x32xf32>
    %3 = tpu.matmul %1, %2, %cst {dimension_numbers = #tpu.dot_dimension_numbers<[1], [0], [0], [1], [0, 0, 1, 1], [], []>} : vector<256x1728xbf16>, vector<1728x32xbf16>, vector<256x32xf32> -> vector<256x32xf32>
    %c0_4 = arith.constant 0 : index
    %c0_5 = arith.constant 0 : index
    %4 = vector.load %arg3[%c0_4, %c0_5] : memref<1x32xf32, #tpu.memory_space<vmem>>, vector<1x32xf32>
    %c0_6 = arith.constant 0 : index
    %c0_7 = arith.constant 0 : index
    %5 = vector.load %arg4[%c0_6, %c0_7] : memref<1x32xf32, #tpu.memory_space<vmem>>, vector<1x32xf32>
    %6 = vector.broadcast %4 : vector<1x32xf32> to vector<256x32xf32>
    %7 = arith.mulf %3, %6 : vector<256x32xf32>
    %8 = vector.broadcast %5 : vector<1x32xf32> to vector<256x32xf32>
    %9 = arith.addf %7, %8 : vector<256x32xf32>
    %cst_8 = arith.constant 0.000000e+00 : f32
    %10 = vector.broadcast %cst_8 : f32 to vector<256x32xf32>
    %11 = arith.maximumf %9, %10 : vector<256x32xf32>
    %12 = vector.extract_strided_slice %11 {offsets = [0, 0], sizes = [256, 16], strides = [1, 1]} : vector<256x32xf32> to vector<256x16xf32>
    %13 = vector.extract_strided_slice %11 {offsets = [0, 16], sizes = [256, 16], strides = [1, 1]} : vector<256x32xf32> to vector<256x16xf32>
    %14 = arith.truncf %12 : vector<256x16xf32> to vector<256x16xbf16>
    %c0_9 = arith.constant 0 : index
    %c0_10 = arith.constant 0 : index
    %15 = vector.load %arg5[%c0_9, %c0_10] : memref<16x20xbf16, #tpu.memory_space<vmem>>, vector<16x20xbf16>
    %cst_11 = arith.constant dense<0.000000e+00> : vector<256x20xf32>
    %16 = tpu.matmul %14, %15, %cst_11 {dimension_numbers = #tpu.dot_dimension_numbers<[1], [0], [0], [1], [0, 0, 1, 1], [], []>} : vector<256x16xbf16>, vector<16x20xbf16>, vector<256x20xf32> -> vector<256x20xf32>
    %c0_12 = arith.constant 0 : index
    %c0_13 = arith.constant 0 : index
    %17 = vector.load %arg6[%c0_12, %c0_13] : memref<1x20xf32, #tpu.memory_space<vmem>>, vector<1x20xf32>
    %18 = vector.broadcast %17 : vector<1x20xf32> to vector<256x20xf32>
    %19 = arith.addf %16, %18 : vector<256x20xf32>
    %20 = vector.extract_strided_slice %19 {offsets = [0, 0], sizes = [256, 2], strides = [1, 1]} : vector<256x20xf32> to vector<256x2xf32>
    %21 = arith.truncf %20 : vector<256x2xf32> to vector<256x2xbf16>
    %22 = vector.extract_strided_slice %19 {offsets = [0, 2], sizes = [256, 2], strides = [1, 1]} : vector<256x20xf32> to vector<256x2xf32>
    %23 = arith.truncf %22 : vector<256x2xf32> to vector<256x2xbf16>
    %24 = vector.extract_strided_slice %19 {offsets = [0, 4], sizes = [256, 16], strides = [1, 1]} : vector<256x20xf32> to vector<256x16xf32>
    %25 = arith.truncf %24 : vector<256x16xf32> to vector<256x16xbf16>
    %c0_14 = arith.constant 0 : index
    %26 = memref.load %arg7[%c0_14] : memref<2xf32, #tpu.memory_space<smem>>
    %27 = vector.extract_strided_slice %21 {offsets = [0, 0], sizes = [128, 2], strides = [1, 1]} : vector<256x2xbf16> to vector<128x2xbf16>
    %cst_15 = arith.constant dense<0.000000e+00> : vector<128x256xf32>
    %28 = tpu.matmul %27, %23, %cst_15 {dimension_numbers = #tpu.dot_dimension_numbers<[1], [1], [0], [0], [0, 0, 1, 0], [], []>} : vector<128x2xbf16>, vector<256x2xbf16>, vector<128x256xf32> -> vector<128x256xf32>
    %cst_16 = arith.constant dense<0xFF800000> : vector<128xf32>
    %29 = vector.multi_reduction <maximumf>, %28, %cst_16 [1] : vector<128x256xf32> to vector<128xf32>
    %30 = vector.shape_cast %29 : vector<128xf32> to vector<128x1xf32>
    %31 = vector.broadcast %30 : vector<128x1xf32> to vector<128x256xf32>
    %32 = arith.subf %28, %31 : vector<128x256xf32>
    %33 = math.exp %32 : vector<128x256xf32>
    %cst_17 = arith.constant dense<0.000000e+00> : vector<128xf32>
    %34 = vector.multi_reduction <add>, %33, %cst_17 [1] : vector<128x256xf32> to vector<128xf32>
    %35 = vector.shape_cast %34 : vector<128xf32> to vector<128x1xf32>
    %36 = tpu.reciprocal %35 {approx = true} : vector<128x1xf32> -> vector<128x1xf32>
    %37 = vector.broadcast %36 : vector<128x1xf32> to vector<128x256xf32>
    %38 = arith.mulf %33, %37 : vector<128x256xf32>
    %39 = arith.truncf %38 : vector<128x256xf32> to vector<128x256xbf16>
    %cst_18 = arith.constant dense<0.000000e+00> : vector<128x16xf32>
    %40 = tpu.matmul %39, %25, %cst_18 {dimension_numbers = #tpu.dot_dimension_numbers<[1], [0], [0], [1], [0, 0, 1, 1], [], []>} : vector<128x256xbf16>, vector<256x16xbf16>, vector<128x16xf32> -> vector<128x16xf32>
    %41 = vector.broadcast %26 : f32 to vector<128x16xf32>
    %42 = arith.mulf %41, %40 : vector<128x16xf32>
    %43 = vector.extract_strided_slice %12 {offsets = [0, 0], sizes = [128, 16], strides = [1, 1]} : vector<256x16xf32> to vector<128x16xf32>
    %44 = arith.addf %42, %43 : vector<128x16xf32>
    %c0_19 = arith.constant 0 : index
    %c0_20 = arith.constant 0 : index
    %c0_21 = arith.constant 0 : index
    %45 = vector.load %arg8[%c0_19, %c0_20, %c0_21] : memref<1x256x16xf32, #tpu.memory_space<vmem>>, vector<1x128x16xf32>
    %46 = vector.shape_cast %45 : vector<1x128x16xf32> to vector<128x16xf32>
    %47 = vector.shape_cast %44 : vector<128x16xf32> to vector<1x128x16xf32>
    tpu.vector_store %arg8[%c0_19, %c0_20, %c0_21], %47 {strides = array<i32>} : memref<1x256x16xf32, #tpu.memory_space<vmem>>, vector<1x128x16xf32>,
    %48 = vector.extract_strided_slice %21 {offsets = [128, 0], sizes = [128, 2], strides = [1, 1]} : vector<256x2xbf16> to vector<128x2xbf16>
    %cst_22 = arith.constant dense<0.000000e+00> : vector<128x256xf32>
    %49 = tpu.matmul %48, %23, %cst_22 {dimension_numbers = #tpu.dot_dimension_numbers<[1], [1], [0], [0], [0, 0, 1, 0], [], []>} : vector<128x2xbf16>, vector<256x2xbf16>, vector<128x256xf32> -> vector<128x256xf32>
    %cst_23 = arith.constant dense<0xFF800000> : vector<128xf32>
    %50 = vector.multi_reduction <maximumf>, %49, %cst_23 [1] : vector<128x256xf32> to vector<128xf32>
    %51 = vector.shape_cast %50 : vector<128xf32> to vector<128x1xf32>
    %52 = vector.broadcast %51 : vector<128x1xf32> to vector<128x256xf32>
    %53 = arith.subf %49, %52 : vector<128x256xf32>
    %54 = math.exp %53 : vector<128x256xf32>
    %cst_24 = arith.constant dense<0.000000e+00> : vector<128xf32>
    %55 = vector.multi_reduction <add>, %54, %cst_24 [1] : vector<128x256xf32> to vector<128xf32>
    %56 = vector.shape_cast %55 : vector<128xf32> to vector<128x1xf32>
    %57 = tpu.reciprocal %56 {approx = true} : vector<128x1xf32> -> vector<128x1xf32>
    %58 = vector.broadcast %57 : vector<128x1xf32> to vector<128x256xf32>
    %59 = arith.mulf %54, %58 : vector<128x256xf32>
    %60 = arith.truncf %59 : vector<128x256xf32> to vector<128x256xbf16>
    %cst_25 = arith.constant dense<0.000000e+00> : vector<128x16xf32>
    %61 = tpu.matmul %60, %25, %cst_25 {dimension_numbers = #tpu.dot_dimension_numbers<[1], [0], [0], [1], [0, 0, 1, 1], [], []>} : vector<128x256xbf16>, vector<256x16xbf16>, vector<128x16xf32> -> vector<128x16xf32>
    %62 = vector.broadcast %26 : f32 to vector<128x16xf32>
    %63 = arith.mulf %62, %61 : vector<128x16xf32>
    %64 = vector.extract_strided_slice %12 {offsets = [128, 0], sizes = [128, 16], strides = [1, 1]} : vector<256x16xf32> to vector<128x16xf32>
    %65 = arith.addf %63, %64 : vector<128x16xf32>
    %c0_26 = arith.constant 0 : index
    %c128 = arith.constant 128 : index
    %c0_27 = arith.constant 0 : index
    %66 = vector.load %arg8[%c0_26, %c128, %c0_27] : memref<1x256x16xf32, #tpu.memory_space<vmem>>, vector<1x128x16xf32>
    %67 = vector.shape_cast %66 : vector<1x128x16xf32> to vector<128x16xf32>
    %68 = vector.shape_cast %65 : vector<128x16xf32> to vector<1x128x16xf32>
    tpu.vector_store %arg8[%c0_26, %c128, %c0_27], %68 {strides = array<i32>} : memref<1x256x16xf32, #tpu.memory_space<vmem>>, vector<1x128x16xf32>,
    %69 = arith.truncf %13 : vector<256x16xf32> to vector<256x16xbf16>
    %cst_28 = arith.constant dense<0.000000e+00> : vector<16x16xf32>
    %70 = tpu.matmul %69, %69, %cst_28 {dimension_numbers = #tpu.dot_dimension_numbers<[0], [0], [1], [1], [0, 1, 1, 1], [], []>} : vector<256x16xbf16>, vector<256x16xbf16>, vector<16x16xf32> -> vector<16x16xf32>
    %cst_29 = arith.constant dense<0xFF800000> : vector<16xf32>
    %71 = vector.multi_reduction <maximumf>, %70, %cst_29 [1] : vector<16x16xf32> to vector<16xf32>
    %72 = vector.shape_cast %71 : vector<16xf32> to vector<16x1xf32>
    %73 = vector.broadcast %72 : vector<16x1xf32> to vector<16x16xf32>
    %74 = arith.subf %73, %70 : vector<16x16xf32>
    %cst_30 = arith.constant dense<0xFF800000> : vector<16xf32>
    %75 = vector.multi_reduction <maximumf>, %74, %cst_30 [1] : vector<16x16xf32> to vector<16xf32>
    %76 = vector.shape_cast %75 : vector<16xf32> to vector<16x1xf32>
    %77 = vector.broadcast %76 : vector<16x1xf32> to vector<16x16xf32>
    %78 = arith.subf %74, %77 : vector<16x16xf32>
    %79 = math.exp %78 : vector<16x16xf32>
    %cst_31 = arith.constant dense<0.000000e+00> : vector<16xf32>
    %80 = vector.multi_reduction <add>, %79, %cst_31 [1] : vector<16x16xf32> to vector<16xf32>
    %81 = vector.shape_cast %80 : vector<16xf32> to vector<16x1xf32>
    %82 = tpu.reciprocal %81 {approx = true} : vector<16x1xf32> -> vector<16x1xf32>
    %83 = vector.broadcast %82 : vector<16x1xf32> to vector<16x16xf32>
    %84 = arith.mulf %79, %83 : vector<16x16xf32>
    %85 = arith.truncf %84 : vector<16x16xf32> to vector<16x16xbf16>
    %cst_32 = arith.constant dense<0.000000e+00> : vector<256x16xf32>
    %86 = tpu.matmul %69, %85, %cst_32 {dimension_numbers = #tpu.dot_dimension_numbers<[1], [1], [0], [0], [0, 0, 1, 0], [], []>} : vector<256x16xbf16>, vector<16x16xbf16>, vector<256x16xf32> -> vector<256x16xf32>
    %c1 = arith.constant 1 : index
    %87 = memref.load %arg7[%c1] : memref<2xf32, #tpu.memory_space<smem>>
    %88 = vector.broadcast %87 : f32 to vector<256x16xf32>
    %89 = arith.mulf %88, %86 : vector<256x16xf32>
    %90 = arith.addf %89, %13 : vector<256x16xf32>
    %c0_33 = arith.constant 0 : index
    %c0_34 = arith.constant 0 : index
    %c0_35 = arith.constant 0 : index
    %91 = vector.load %arg9[%c0_33, %c0_34, %c0_35] : memref<1x256x16xf32, #tpu.memory_space<vmem>>, vector<1x256x16xf32>
    %92 = vector.shape_cast %91 : vector<1x256x16xf32> to vector<256x16xf32>
    %93 = vector.shape_cast %90 : vector<256x16xf32> to vector<1x256x16xf32>
    tpu.vector_store %arg9[%c0_33, %c0_34, %c0_35], %93 {strides = array<i32>} : memref<1x256x16xf32, #tpu.memory_space<vmem>>, vector<1x256x16xf32>,
    return
  }
  func.func @transform_0(%arg0: i32) -> (i32, i32, i32) {
    %c0_i32 = arith.constant 0 : i32
    %c0_i32_0 = arith.constant 0 : i32
    %c0_i32_1 = arith.constant 0 : i32
    return %arg0, %c0_i32, %c0_i32_0 : i32, i32, i32
  }
  func.func @transform_1(%arg0: i32) -> (i32, i32) {
    %c0_i32 = arith.constant 0 : i32
    %c0_i32_0 = arith.constant 0 : i32
    %c0_i32_1 = arith.constant 0 : i32
    return %c0_i32, %c0_i32_0 : i32, i32
  }
  func.func @transform_2(%arg0: i32) -> (i32, i32) {
    %c0_i32 = arith.constant 0 : i32
    %c0_i32_0 = arith.constant 0 : i32
    %c0_i32_1 = arith.constant 0 : i32
    return %c0_i32, %c0_i32_0 : i32, i32
  }
  func.func @transform_3(%arg0: i32) -> (i32, i32) {
    %c0_i32 = arith.constant 0 : i32
    %c0_i32_0 = arith.constant 0 : i32
    %c0_i32_1 = arith.constant 0 : i32
    return %c0_i32, %c0_i32_0 : i32, i32
  }
  func.func @transform_4(%arg0: i32) -> (i32, i32) {
    %c0_i32 = arith.constant 0 : i32
    %c0_i32_0 = arith.constant 0 : i32
    %c0_i32_1 = arith.constant 0 : i32
    return %c0_i32, %c0_i32_0 : i32, i32
  }
  func.func @transform_5(%arg0: i32) -> (i32, i32) {
    %c0_i32 = arith.constant 0 : i32
    %c0_i32_0 = arith.constant 0 : i32
    %c0_i32_1 = arith.constant 0 : i32
    return %c0_i32, %c0_i32_0 : i32, i32
  }
  func.func @transform_6(%arg0: i32) -> i32 {
    %c0_i32 = arith.constant 0 : i32
    %c0_i32_0 = arith.constant 0 : i32
    return %c0_i32 : i32
  }
  func.func @transform_7(%arg0: i32) -> (i32, i32, i32) {
    %c0_i32 = arith.constant 0 : i32
    %c0_i32_0 = arith.constant 0 : i32
    %c0_i32_1 = arith.constant 0 : i32
    return %arg0, %c0_i32, %c0_i32_0 : i32, i32, i32
  }
  func.func @transform_8(%arg0: i32) -> (i32, i32, i32) {
    %c0_i32 = arith.constant 0 : i32
    %c0_i32_0 = arith.constant 0 : i32
    %c0_i32_1 = arith.constant 0 : i32
    return %arg0, %c0_i32, %c0_i32_0 : i32, i32, i32
  }
}

module attributes {stable_mosaic.version = 11 : i64} {
  func.func @fused_tail_kernel(%arg0: i32, %arg1: memref<512x432xbf16, #tpu.memory_space<vmem>>, %arg2: memref<512x432xbf16, #tpu.memory_space<vmem>>, %arg3: memref<432x16xbf16, #tpu.memory_space<vmem>>, %arg4: memref<1x16xf32, #tpu.memory_space<vmem>>, %arg5: memref<1x16xf32, #tpu.memory_space<vmem>>, %arg6: memref<432x16xbf16, #tpu.memory_space<vmem>>, %arg7: memref<1x16xf32, #tpu.memory_space<vmem>>, %arg8: memref<1x16xf32, #tpu.memory_space<vmem>>, %arg9: memref<16x4xbf16, #tpu.memory_space<vmem>>, %arg10: memref<1x4xf32, #tpu.memory_space<vmem>>, %arg11: memref<512x4xf32, #tpu.memory_space<vmem>>) attributes {dimension_semantics = [#tpu.dimension_semantics<parallel>], iteration_bounds = array<i64: 1>, scalar_prefetch = 0 : i64, scratch_operands = 0 : i64, tpu.core_type = #tpu.core_type<tc>, window_params = [{transform_indices = @transform_0, window_bounds = array<i64: 512, 432>}, {transform_indices = @transform_1, window_bounds = array<i64: 512, 432>}, {pipeline_mode = #tpu.pipeline_mode<synchronous>, transform_indices = @transform_2, window_bounds = array<i64: 432, 16>}, {pipeline_mode = #tpu.pipeline_mode<synchronous>, transform_indices = @transform_3, window_bounds = array<i64: 1, 16>}, {pipeline_mode = #tpu.pipeline_mode<synchronous>, transform_indices = @transform_4, window_bounds = array<i64: 1, 16>}, {pipeline_mode = #tpu.pipeline_mode<synchronous>, transform_indices = @transform_5, window_bounds = array<i64: 432, 16>}, {pipeline_mode = #tpu.pipeline_mode<synchronous>, transform_indices = @transform_6, window_bounds = array<i64: 1, 16>}, {pipeline_mode = #tpu.pipeline_mode<synchronous>, transform_indices = @transform_7, window_bounds = array<i64: 1, 16>}, {pipeline_mode = #tpu.pipeline_mode<synchronous>, transform_indices = @transform_8, window_bounds = array<i64: 16, 4>}, {pipeline_mode = #tpu.pipeline_mode<synchronous>, transform_indices = @transform_9, window_bounds = array<i64: 1, 4>}, {transform_indices = @transform_10, window_bounds = array<i64: 512, 4>}]} {
    %c0 = arith.constant 0 : index
    %c0_0 = arith.constant 0 : index
    %0 = vector.load %arg1[%c0, %c0_0] : memref<512x432xbf16, #tpu.memory_space<vmem>>, vector<512x432xbf16>
    %c0_1 = arith.constant 0 : index
    %c0_2 = arith.constant 0 : index
    %1 = vector.load %arg3[%c0_1, %c0_2] : memref<432x16xbf16, #tpu.memory_space<vmem>>, vector<432x16xbf16>
    %cst = arith.constant dense<0.000000e+00> : vector<512x16xf32>
    %2 = tpu.matmul %0, %1, %cst {dimension_numbers = #tpu.dot_dimension_numbers<[1], [0], [0], [1], [0, 0, 1, 1], [], []>} : vector<512x432xbf16>, vector<432x16xbf16>, vector<512x16xf32> -> vector<512x16xf32>
    %c0_3 = arith.constant 0 : index
    %c0_4 = arith.constant 0 : index
    %3 = vector.load %arg4[%c0_3, %c0_4] : memref<1x16xf32, #tpu.memory_space<vmem>>, vector<1x16xf32>
    %c0_5 = arith.constant 0 : index
    %c0_6 = arith.constant 0 : index
    %4 = vector.load %arg5[%c0_5, %c0_6] : memref<1x16xf32, #tpu.memory_space<vmem>>, vector<1x16xf32>
    %5 = vector.broadcast %3 : vector<1x16xf32> to vector<512x16xf32>
    %6 = arith.mulf %2, %5 : vector<512x16xf32>
    %7 = vector.broadcast %4 : vector<1x16xf32> to vector<512x16xf32>
    %8 = arith.addf %6, %7 : vector<512x16xf32>
    %cst_7 = arith.constant 0.000000e+00 : f32
    %9 = vector.broadcast %cst_7 : f32 to vector<512x16xf32>
    %10 = arith.maximumf %8, %9 : vector<512x16xf32>
    %c0_8 = arith.constant 0 : index
    %c0_9 = arith.constant 0 : index
    %11 = vector.load %arg2[%c0_8, %c0_9] : memref<512x432xbf16, #tpu.memory_space<vmem>>, vector<512x432xbf16>
    %c0_10 = arith.constant 0 : index
    %c0_11 = arith.constant 0 : index
    %12 = vector.load %arg6[%c0_10, %c0_11] : memref<432x16xbf16, #tpu.memory_space<vmem>>, vector<432x16xbf16>
    %cst_12 = arith.constant dense<0.000000e+00> : vector<512x16xf32>
    %13 = tpu.matmul %11, %12, %cst_12 {dimension_numbers = #tpu.dot_dimension_numbers<[1], [0], [0], [1], [0, 0, 1, 1], [], []>} : vector<512x432xbf16>, vector<432x16xbf16>, vector<512x16xf32> -> vector<512x16xf32>
    %c0_13 = arith.constant 0 : index
    %c0_14 = arith.constant 0 : index
    %14 = vector.load %arg7[%c0_13, %c0_14] : memref<1x16xf32, #tpu.memory_space<vmem>>, vector<1x16xf32>
    %c0_15 = arith.constant 0 : index
    %c0_16 = arith.constant 0 : index
    %15 = vector.load %arg8[%c0_15, %c0_16] : memref<1x16xf32, #tpu.memory_space<vmem>>, vector<1x16xf32>
    %16 = vector.broadcast %14 : vector<1x16xf32> to vector<512x16xf32>
    %17 = arith.mulf %13, %16 : vector<512x16xf32>
    %18 = vector.broadcast %15 : vector<1x16xf32> to vector<512x16xf32>
    %19 = arith.addf %17, %18 : vector<512x16xf32>
    %cst_17 = arith.constant 0.000000e+00 : f32
    %20 = vector.broadcast %cst_17 : f32 to vector<512x16xf32>
    %21 = arith.maximumf %19, %20 : vector<512x16xf32>
    %22 = arith.addf %10, %21 : vector<512x16xf32>
    %23 = arith.truncf %22 : vector<512x16xf32> to vector<512x16xbf16>
    %c0_18 = arith.constant 0 : index
    %c0_19 = arith.constant 0 : index
    %24 = vector.load %arg9[%c0_18, %c0_19] : memref<16x4xbf16, #tpu.memory_space<vmem>>, vector<16x4xbf16>
    %cst_20 = arith.constant dense<0.000000e+00> : vector<512x4xf32>
    %25 = tpu.matmul %23, %24, %cst_20 {dimension_numbers = #tpu.dot_dimension_numbers<[1], [0], [0], [1], [0, 0, 1, 1], [], []>} : vector<512x16xbf16>, vector<16x4xbf16>, vector<512x4xf32> -> vector<512x4xf32>
    %c0_21 = arith.constant 0 : index
    %c0_22 = arith.constant 0 : index
    %26 = vector.load %arg10[%c0_21, %c0_22] : memref<1x4xf32, #tpu.memory_space<vmem>>, vector<1x4xf32>
    %27 = vector.broadcast %26 : vector<1x4xf32> to vector<512x4xf32>
    %28 = arith.addf %25, %27 : vector<512x4xf32>
    %cst_23 = arith.constant 0.000000e+00 : f32
    %29 = vector.broadcast %cst_23 : f32 to vector<512x4xf32>
    %30 = arith.maximumf %28, %29 : vector<512x4xf32>
    %c0_24 = arith.constant 0 : index
    %c0_25 = arith.constant 0 : index
    %31 = vector.load %arg11[%c0_24, %c0_25] : memref<512x4xf32, #tpu.memory_space<vmem>>, vector<512x4xf32>
    tpu.vector_store %arg11[%c0_24, %c0_25], %30 {strides = array<i32>} : memref<512x4xf32, #tpu.memory_space<vmem>>, vector<512x4xf32>,
    return
  }
  func.func @transform_0(%arg0: i32) -> (i32, i32) {
    %c0_i32 = arith.constant 0 : i32
    %c0_i32_0 = arith.constant 0 : i32
    return %arg0, %c0_i32 : i32, i32
  }
  func.func @transform_1(%arg0: i32) -> (i32, i32) {
    %c0_i32 = arith.constant 0 : i32
    %c0_i32_0 = arith.constant 0 : i32
    return %arg0, %c0_i32 : i32, i32
  }
  func.func @transform_2(%arg0: i32) -> (i32, i32) {
    %c0_i32 = arith.constant 0 : i32
    %c0_i32_0 = arith.constant 0 : i32
    %c0_i32_1 = arith.constant 0 : i32
    return %c0_i32, %c0_i32_0 : i32, i32
  }
  func.func @transform_3(%arg0: i32) -> (i32, i32) {
    %c0_i32 = arith.constant 0 : i32
    %c0_i32_0 = arith.constant 0 : i32
    %c0_i32_1 = arith.constant 0 : i32
    return %c0_i32, %c0_i32_0 : i32, i32
  }
  func.func @transform_4(%arg0: i32) -> (i32, i32) {
    %c0_i32 = arith.constant 0 : i32
    %c0_i32_0 = arith.constant 0 : i32
    %c0_i32_1 = arith.constant 0 : i32
    return %c0_i32, %c0_i32_0 : i32, i32
  }
  func.func @transform_5(%arg0: i32) -> (i32, i32) {
    %c0_i32 = arith.constant 0 : i32
    %c0_i32_0 = arith.constant 0 : i32
    %c0_i32_1 = arith.constant 0 : i32
    return %c0_i32, %c0_i32_0 : i32, i32
  }
  func.func @transform_6(%arg0: i32) -> (i32, i32) {
    %c0_i32 = arith.constant 0 : i32
    %c0_i32_0 = arith.constant 0 : i32
    %c0_i32_1 = arith.constant 0 : i32
    return %c0_i32, %c0_i32_0 : i32, i32
  }
  func.func @transform_7(%arg0: i32) -> (i32, i32) {
    %c0_i32 = arith.constant 0 : i32
    %c0_i32_0 = arith.constant 0 : i32
    %c0_i32_1 = arith.constant 0 : i32
    return %c0_i32, %c0_i32_0 : i32, i32
  }
  func.func @transform_8(%arg0: i32) -> (i32, i32) {
    %c0_i32 = arith.constant 0 : i32
    %c0_i32_0 = arith.constant 0 : i32
    %c0_i32_1 = arith.constant 0 : i32
    return %c0_i32, %c0_i32_0 : i32, i32
  }
  func.func @transform_9(%arg0: i32) -> (i32, i32) {
    %c0_i32 = arith.constant 0 : i32
    %c0_i32_0 = arith.constant 0 : i32
    %c0_i32_1 = arith.constant 0 : i32
    return %c0_i32, %c0_i32_0 : i32, i32
  }
  func.func @transform_10(%arg0: i32) -> (i32, i32) {
    %c0_i32 = arith.constant 0 : i32
    %c0_i32_0 = arith.constant 0 : i32
    return %arg0, %c0_i32 : i32, i32
  }
}

</mosaic_0001>

<bundles_post_ra>
// kernel: danet_head_forward.2
= control target key start
LH: loop header
LB: loop body
LE: loop exit
PB: predicated region body
PF: predicated region fallthrough
CT: control target
= control target key end

     0   :  { %14 = vsyncpa [#allocation3], 0  ;;  %s8166_s27 = smov 0   ;;  %s10918_s0 = inlined_call_operand.vmem [shape: bf16[2,256,1728], index: 0, kind: input, shape index: {}]   ;;  %s10919_s1 = inlined_call_operand.vmem [shape: bf16[1728,32], index: 1, kind: input, shape index: {}]   ;;  %s10920_s2 = inlined_call_operand.vmem [shape: f32[1,32], index: 2, kind: input, shape index: {}]   ;;  %s10921_s3 = inlined_call_operand.vmem [shape: f32[1,32], index: 3, kind: input, shape index: {}]   ;;  %s10922_s4 = inlined_call_operand.vmem [shape: bf16[16,20], index: 4, kind: input, shape index: {}]   ;;  %s10923_s5 = inlined_call_operand.vmem [shape: f32[1,20], index: 5, kind: input, shape index: {}]   ;;  %s10924_s6 = inlined_call_operand.vmem [shape: f32[2], index: 6, kind: input, shape index: {}]   ;;  %s10925_s7 = inlined_call_operand.vmem [shape: f32[2,256,16], index: 7, kind: output, shape index: {0}]   ;;  %s10926_s8 = inlined_call_operand.vmem [shape: f32[2,256,16], index: 8, kind: output, shape index: {1}]  }
   0x1 LB: > { %s8172_s28 = sadd.s32 4294967295, %s8114_s27   ;;  %p6000_p0 = scmp.ge.s32.totalorder %s8114_s27, 1  ;;  %s8114_s27 = sphi %s8166_s27, %s20_s27  }
   0x2   : > { %p229_p1 = scmp.lt.s32.totalorder %s8114_s27, 3  ;;  %s257_s9 = sshll.u32 %s10924_s6, 4  ;;  %s258_s9 = int_to_ptr.vmem [resolvable:$true] %s257_s9 }
   0x3   : > { %p7429_p3 = scmp.eq.s32.totalorder %s8172_s28, 0  ;;  %s8089_s11 = scalar_lea.vmem %s258_s9, 16 }
   0x4   : > { %p8179_p2 = pnand %p6000_p0, %p229_p1  ;;  %p8090_p6 = scmp.ne.s32.totalorder %s258_s9, %s8089_s11 }
   0x5   : > { %p8097_p10 = scmp.lt.s32.totalorder %s258_s9, %s258_s9  ;;  %p8098_p11 = scmp.lt.s32.totalorder %s8089_s11, %s8089_s11 }
   0x6   : > { %p7425_p4 = pneg %p8179_p2 }
   0x7   : > { %p8099_p12 = por %p8098_p11, %p8097_p10 }
   0x8   : > { %p7426_p5 = pnand %p7429_p3, %p7425_p4 }
   0xa   : > { %p8091_p7 = pneg %p7426_p5 }
   0xc   : > { %p8092_p8 = pnand %p8091_p7, %p8090_p6 }
   0xe   : > { %p8093_p9 = pneg %p8092_p8 }
  0x10   : > { %p8100_p13 = pnand %p8099_p12, %p8093_p9 }
  0x12   : > { %8103 = shalt.err (!%p8100_p13)
}
  0x13   : > { %s8116_s12 = smov [#allocation2]   ;;  %278 = sbr.rel (%p8179_p2) target bundleno = 2207 (0x89f), region = 48 }
  0x14   : > { %7428 = dma.vmem_to_smem (!%p7426_p5), %s258_s9, 16, %s8116_s12, [#allocation3]  }
  0x18   : > { %8109 = dma.done.wait (%p7429_p3), [#allocation3], 16  }
  0x19   : > { %8111 = vsyncadd (%p7429_p3), [#allocation3], 4294967280 }
  0x1a   : > { %284 = sfence }
  0x1b   : > { %v7444_v0 = vld [vmem:[%s10919_s1 + $0x78] sm:$0xff]   ;;  %v7448_v4 = vld [vmem:[%s10919_s1 + $0x70] sm:$0xff]   ;;  %v7452_v8 = vld [vmem:[%s10919_s1 + $0x68] sm:$0xff]   ;;  %p318_p0 = scmp.lt.s32.totalorder %s8172_s28, 1  ;;  %vm2526_vm0 = vcmask 523264   ;;  %vm3843_vm1 = vcmask 130048  }
  0x1c   : > { %v7445_v1 = vld [vmem:[%s10919_s1 + $0xf8] sm:$0xff]   ;;  %6415 = vmatprep.subr.bf16.mxu0 %v7444_v0  ;;  %v7449_v5 = vld [vmem:[%s10919_s1 + $0xf0] sm:$0xff]   ;;  %v7453_v9 = vld [vmem:[%s10919_s1 + $0xe8] sm:$0xff]   ;;  %vm4118_vm2 = vcmask 15360   ;;  %s8118_s30 = smov 126   ;;  %s8119_s9 = smov 112  }
  0x1d   : > { %v7446_v2 = vld [vmem:[%s10919_s1 + $0x38] sm:$0xff]   ;;  %6527 = vmatprep.subr.bf16.mxu1 %v7445_v1  ;;  %v7450_v6 = vld [vmem:[%s10919_s1 + $0x30] sm:$0xff]   ;;  %v7454_v10 = vld [vmem:[%s10919_s1 + $0x28] sm:$0xff]   ;;  %s11282_s28 = smov (!%p318_p0, %s8172_s28), 1  ;;  %s8120_s10 = smov 124  }
  0x1e   : > { %v7447_v3 = vld [vmem:[%s10919_s1 + $0xb8] sm:$0xff]   ;;  %6416 = vmatpush3.bf16.msra.mxu0 %v7446_v2  ;;  %v7451_v7 = vld [vmem:[%s10919_s1 + $0xb0] sm:$0xff]   ;;  %v7455_v11 = vld [vmem:[%s10919_s1 + $0xa8] sm:$0xff]   ;;  %s7420_s25 = smul.u32 1792, %s11282_s28  ;;  %s4069_s11 = sld [smem:[#allocation2]] }
  0x1f   : > { %6528 = vmatpush3.bf16.msra.mxu1 %v7447_v3  ;;  %6417 = vmatprep.subr.bf16.mxu0 %v7448_v4  ;;  %v7456_v12 = vld [vmem:[%s10919_s1 + $0x60] sm:$0xff]   ;;  %v7460_v16 = vld [vmem:[%s10919_s1 + $0x58] sm:$0xff]   ;;  %v7464_v20 = vld [vmem:[%s10919_s1 + $0x50] sm:$0xff]   ;;  %s6413_s12 = sshll.u32 %s11282_s28, 8  ;;  %s6410_s17 = sld [smem:[#allocation2 + $0x1]] }
  0x20   : > { %6529 = vmatprep.subr.bf16.mxu1 %v7449_v5  ;;  %v7457_v13 = vld [vmem:[%s10919_s1 + $0xe0] sm:$0xff]   ;;  %v7461_v17 = vld [vmem:[%s10919_s1 + $0xd8] sm:$0xff]   ;;  %v7465_v21 = vld [vmem:[%s10919_s1 + $0xd0] sm:$0xff]   ;;  %s8292_s16 = scalar_lea.vmem %s10918_s0, %s7420_s25  ;;  %s10625_s15 = scalar_lea.vmem %s10925_s7, %s6413_s12 }
  0x21   : > { %v7458_v14 = vld [vmem:[%s10919_s1 + $0x20] sm:$0xff]   ;;  %v7462_v18 = vld [vmem:[%s10919_s1 + $0x18] sm:$0xff]   ;;  %v7466_v22 = vld [vmem:[%s10919_s1 + $0x10] sm:$0xff]   ;;  %s10726_s20 = scalar_lea.vmem %s10926_s8, %s6413_s12 }
  0x22   : > { %6418 = vmatpush3.bf16.msra.mxu0 %v7450_v6  ;;  %v7459_v15 = vld [vmem:[%s10919_s1 + $0xa0] sm:$0xff]   ;;  %v7463_v19 = vld [vmem:[%s10919_s1 + $0x98] sm:$0xff]   ;;  %v7467_v23 = vld [vmem:[%s10919_s1 + $0x90] sm:$0xff]  }
  0x23   : > { %6530 = vmatpush3.bf16.msra.mxu1 %v7451_v7  ;;  %6419 = vmatprep.subr.bf16.mxu0 %v7452_v8  ;;  %v7468_v24 = vld [vmem:[%s10919_s1 + $0x48] sm:$0xff]   ;;  %v7472_v28 = vld [vmem:[%s10919_s1 + $0x40] sm:$0xff]   ;;  %v7482_v36 = vld [vmem:[%s10919_s1 + $0x178] sm:$0xff]  }
  0x24   : > { %6531 = vmatprep.subr.bf16.mxu1 %v7453_v9  ;;  %v7469_v25 = vld [vmem:[%s10919_s1 + $0xc8] sm:$0xff]   ;;  %v7473_v29 = vld [vmem:[%s10919_s1 + $0xc0] sm:$0xff]   ;;  %v7483_v37 = vld [vmem:[%s10919_s1 + $0x138] sm:$0xff]  }
  0x25   : > { %v7470_v26 = vld [vmem:[%s10919_s1 + $0x8] sm:$0xff]   ;;  %v7474_v30 = vld [vmem:[%s10919_s1] sm:$0xff]   ;;  %v7486_v39 = vld [vmem:[%s8292_s16 + $0x7c] ss:$56 sps:$4 sm:$0xff]  }
  0x26   : > { %6420 = vmatpush3.bf16.msra.mxu0 %v7454_v10  ;;  %v7471_v27 = vld [vmem:[%s10919_s1 + $0x88] sm:$0xff]   ;;  %v7475_v31 = vld [vmem:[%s10919_s1 + $0x80] sm:$0xff]   ;;  %v7489_v41 = vld [vmem:[%s8292_s16 + $0x78] ss:$56 sps:$4 sm:$0xff]  }
  0x27   : > { %6532 = vmatpush3.bf16.msra.mxu1 %v7455_v11  ;;  %6421 = vmatprep.subr.bf16.mxu0 %v7456_v12  ;;  %v7476_v32 = vld [vmem:[%s8292_s16] ss:$56 sps:$4 sm:$0xff]   ;;  %v7478_v33 = vld [vmem:[%s8292_s16 + $0x4] ss:$56 sps:$4 sm:$0xff]   ;;  %v7484_v38 = vld [vmem:[%s8292_s16 + $0x74] ss:$56 sps:$4 sm:$0xff]  }
  0x28   : > { %6533 = vmatprep.subr.bf16.mxu1 %v7457_v13  ;;  %v7479_v34 = vld [vmem:[%s8292_s16 + $0x8] ss:$56 sps:$4 sm:$0xff]   ;;  %v7481_v35 = vld [vmem:[%s8292_s16 + $0xc] ss:$56 sps:$4 sm:$0xff]   ;;  %2607 = vmatprep.mubr.bf16.mxu0 %v7478_v33  ;;  %v7496_v44 = vld [vmem:[%s10919_s1 + $0x170] sm:$0xff]  }
  0x29   : > { %2768 = vmatprep.mubr.bf16.mxu1 %v7481_v35  ;;  %v7488_v40 = vld [vmem:[%s8292_s16 + $0x70] ss:$56 sps:$4 sm:$0xff]   ;;  %v7490_v42 = vld [vmem:[%s8292_s16 + $0xe4] ss:$56 sps:$4 sm:$0xff]   ;;  %v7494_v46 = vld [vmem:[%s8292_s16 + $0xe0] ss:$56 sps:$4 sm:$0xff]  }
  0x2a   : > { %6422 = vmatpush3.bf16.msra.mxu0 %v7458_v14  ;;  %v7492_v43 = vld [vmem:[%s8292_s16 + $0xec] ss:$56 sps:$4 sm:$0xff]   ;;  %v7497_v45 = vld [vmem:[%s10919_s1 + $0x130] sm:$0xff]   ;;  %v7495_v47 = vld [vmem:[%s8292_s16 + $0xe8] ss:$56 sps:$4 sm:$0xff]  }
  0x2b   : > { %6534 = vmatpush3.bf16.msra.mxu1 %v7459_v15  ;;  %6423 = vmatprep.subr.bf16.mxu0 %v7460_v16  ;;  %v7498_v48 = vld [vmem:[%s8292_s16 + $0x154] ss:$56 sps:$4 sm:$0xff]   ;;  %v7502_v52 = vld [vmem:[%s8292_s16 + $0x150] ss:$56 sps:$4 sm:$0xff]   ;;  %v7504_v54 = vld [vmem:[%s8292_s16 + $0x1c4] ss:$56 sps:$4 sm:$0xff]  }
  0x2c   : > { %6535 = vmatprep.subr.bf16.mxu1 %v7461_v17  ;;  %v7500_v49 = vld [vmem:[%s8292_s16 + $0x15c] ss:$56 sps:$4 sm:$0xff]   ;;  %v7510_v50 = vld [vmem:[%s10919_s1 + $0x168] sm:$0xff]   ;;  %v7503_v53 = vld [vmem:[%s8292_s16 + $0x158] ss:$56 sps:$4 sm:$0xff]  }
  0x2d   : > { %v7511_v51 = vld [vmem:[%s10919_s1 + $0x128] sm:$0xff]   ;;  %v7524_v56 = vld [vmem:[%s10919_s1 + $0x160] sm:$0xff]   ;;  %v7538_v61 = vld [vmem:[%s10919_s1 + $0x158] sm:$0xff]  }
  0x2e   : > { %6424 = vmatpush3.bf16.msra.mxu0 %v7462_v18  ;;  %v7506_v55 = vld [vmem:[%s8292_s16 + $0x1cc] ss:$56 sps:$4 sm:$0xff]   ;;  %v7508_v58 = vld [vmem:[%s8292_s16 + $0x1c0] ss:$56 sps:$4 sm:$0xff]   ;;  %v7514_v63 = vld [vmem:[%s8292_s16 + $0x23c] ss:$56 sps:$4 sm:$0xff]  }
  0x2f   : > { %6536 = vmatpush3.bf16.msra.mxu1 %v7463_v19  ;;  %6425 = vmatprep.subr.bf16.mxu0 %v7464_v20  ;;  %v7525_v57 = vld [vmem:[%s10919_s1 + $0x120] sm:$0xff]   ;;  %v7512_v60 = vld [vmem:[%s8292_s16 + $0x234] ss:$56 sps:$4 sm:$0xff]   ;;  %v7539_v62 = vld [vmem:[%s10919_s1 + $0x118] sm:$0xff]  }
  0x30   : > { %6537 = vmatprep.subr.bf16.mxu1 %v7465_v21  ;;  %v7509_v59 = vld [vmem:[%s8292_s16 + $0x1c8] ss:$56 sps:$4 sm:$0xff]   ;;  %v7517_v1 = vld [vmem:[%s8292_s16 + $0x238] ss:$56 sps:$4 sm:$0xff]   ;;  %v7518_v2 = vld [vmem:[%s8292_s16 + $0x2a4] ss:$56 sps:$4 sm:$0xff]  }
  0x31   : > { %v7516_v0 = vld [vmem:[%s8292_s16 + $0x230] ss:$56 sps:$4 sm:$0xff]   ;;  %v7520_v5 = vld [vmem:[%s8292_s16 + $0x2ac] ss:$56 sps:$4 sm:$0xff]   ;;  %v7522_v6 = vld [vmem:[%s8292_s16 + $0x2a0] ss:$56 sps:$4 sm:$0xff]  }
  0x32   : > { %6426 = vmatpush3.bf16.msra.mxu0 %v7466_v22  ;;  %v7552_v3 = vld [vmem:[%s10919_s1 + $0x150] sm:$0xff]   ;;  %v7523_v7 = vld [vmem:[%s8292_s16 + $0x2a8] ss:$56 sps:$4 sm:$0xff]   ;;  %v7568_v12 = vld [vmem:[%s10919_s1 + $0x1f8] sm:$0xff]  }
  0x33   : > { %6538 = vmatpush3.bf16.msra.mxu1 %v7467_v23  ;;  %6427 = vmatprep.subr.bf16.mxu0 %v7468_v24  ;;  %v7553_v4 = vld [vmem:[%s10919_s1 + $0x110] sm:$0xff]   ;;  %v7566_v9 = vld [vmem:[%s10919_s1 + $0x148] sm:$0xff]   ;;  %v7569_v13 = vld [vmem:[%s10919_s1 + $0x1b8] sm:$0xff]  }
  0x34   : > { %6539 = vmatprep.subr.bf16.mxu1 %v7469_v25  ;;  %v7526_v8 = vld [vmem:[%s8292_s16 + $0x314] ss:$56 sps:$4 sm:$0xff]   ;;  %v7530_v15 = vld [vmem:[%s8292_s16 + $0x310] ss:$56 sps:$4 sm:$0xff]   ;;  %v7532_v18 = vld [vmem:[%s8292_s16 + $0x384] ss:$56 sps:$4 sm:$0xff]  }
  0x35   : > { %v7528_v10 = vld [vmem:[%s8292_s16 + $0x31c] ss:$56 sps:$4 sm:$0xff]   ;;  %v7567_v11 = vld [vmem:[%s10919_s1 + $0x108] sm:$0xff]   ;;  %v7531_v17 = vld [vmem:[%s8292_s16 + $0x318] ss:$56 sps:$4 sm:$0xff]  }
  0x36   : > { %6428 = vmatpush3.bf16.msra.mxu0 %v7470_v26  ;;  %v7570_v14 = vld [vmem:[%s10919_s1 + $0x1f0] sm:$0xff]   ;;  %v7534_v19 = vld [vmem:[%s8292_s16 + $0x38c] ss:$56 sps:$4 sm:$0xff]   ;;  %v7536_v24 = vld [vmem:[%s8292_s16 + $0x380] ss:$56 sps:$4 sm:$0xff]  }
  0x37   : > { %6540 = vmatpush3.bf16.msra.mxu1 %v7471_v27  ;;  %6429 = vmatprep.subr.bf16.mxu0 %v7472_v28  ;;  %v7575_v16 = vld [vmem:[%s10919_s1 + $0x1b0] sm:$0xff]   ;;  %v7578_v20 = vld [vmem:[%s10919_s1 + $0x1e8] sm:$0xff]   ;;  %v7580_v22 = vld [vmem:[%s10919_s1 + $0x1e0] sm:$0xff]  }
  0x38   : > { %6541 = vmatprep.subr.bf16.mxu1 %v7473_v29  ;;  %v7579_v21 = vld [vmem:[%s10919_s1 + $0x1a8] sm:$0xff]   ;;  %v7585_v23 = vld [vmem:[%s10919_s1 + $0x1a0] sm:$0xff]   ;;  %v7542_v29 = vld [vmem:[%s8292_s16 + $0x3fc] ss:$56 sps:$4 sm:$0xff]  }
  0x39   : > { %v7588_v25 = vld [vmem:[%s10919_s1 + $0x140] sm:$0xff]   ;;  %v7540_v27 = vld [vmem:[%s8292_s16 + $0x3f4] ss:$56 sps:$4 sm:$0xff]   ;;  %v7545_v35 = vld [vmem:[%s8292_s16 + $0x3f8] ss:$56 sps:$4 sm:$0xff]  }
  0x3a   : > { %6430 = vmatpush3.bf16.msra.mxu0 %v7474_v30  ;;  %v7537_v26 = vld [vmem:[%s8292_s16 + $0x388] ss:$56 sps:$4 sm:$0xff]   ;;  %v7590_v30 = vld [vmem:[%s10919_s1 + $0x1d8] sm:$0xff]   ;;  %v7597_v33 = vld [vmem:[%s10919_s1 + $0x190] sm:$0xff]  }
  0x3b   : > { %6542 = vmatpush3.bf16.msra.mxu1 %v7475_v31  ;;  %6639 = vmatprep.subr.bf16.mxu0 %v7482_v36  ;;  %v7589_v28 = vld [vmem:[%s10919_s1 + $0x100] sm:$0xff]   ;;  %v7591_v31 = vld [vmem:[%s10919_s1 + $0x198] sm:$0xff]   ;;  %v7600_v36 = vld [vmem:[%s10919_s1 + $0x1c8] sm:$0xff]  }
  0x3c   : > { %6751 = vmatprep.subr.bf16.mxu1 %v7568_v12  ;;  %v7624_v12 = vld [vmem:[%s10919_s1 + $0x230] sm:$0xff]  }
  0x3d   : > { %2608 = vmatmul.mubr.bf16.vlgmr.msra.gmra.mxu0 %v7476_v32  ;;  %v7592_v32 = vld [vmem:[%s10919_s1 + $0x1d0] sm:$0xff]  }
  0x3e   : > { %2769 = vmatmul.mubr.bf16.vlgmr.msra.gmra.mxu1 %v7479_v34  ;;  %6640 = vmatpush3.bf16.msra.mxu0 %v7483_v37  ;;  %v7544_v34 = vld [vmem:[%s8292_s16 + $0x3f0] ss:$56 sps:$4 sm:$0xff]  }
  0x3f   : > { %2615 = vmatprep.mubr.bf16.mxu0 %v7484_v38  ;;  %2776 = vmatprep.mubr.bf16.mxu1 %v7486_v39  ;;  %v7601_v37 = vld [vmem:[%s10919_s1 + $0x188] sm:$0xff]   ;;  %v7546_v38 = vld [vmem:[%s8292_s16 + $0x464] ss:$56 sps:$4 sm:$0xff]  }
  0x40   : > { %6641 = vmatprep.subr.bf16.mxu0 %v7496_v44  ;;  %6752 = vmatpush3.bf16.msra.mxu1 %v7569_v13  ;;  %v7548_v39 = vld [vmem:[%s8292_s16 + $0x46c] ss:$56 sps:$4 sm:$0xff]   ;;  %v7551_v44 = vld [vmem:[%s8292_s16 + $0x468] ss:$56 sps:$4 sm:$0xff]  }
  0x41   : > { %6753 = vmatprep.subr.bf16.mxu1 %v7570_v14  ;;  %v7614_v13 = vld [vmem:[%s8292_s16 + $0x80] ss:$56 sps:$4 sm:$0xff]   ;;  %v7635_v14 = vld [vmem:[%s10919_s1 + $0x268] sm:$0xff]  }
  0x42   : > { %6642 = vmatpush3.bf16.msra.mxu0 %v7497_v45  ;;  %v7554_v45 = vld [vmem:[%s8292_s16 + $0x4d4] ss:$56 sps:$4 sm:$0xff]  }
  0x43   : > { %6643 = vmatprep.subr.bf16.mxu0 %v7510_v50  ;;  %v7562_v50 = vld [vmem:[%s8292_s16 + $0x54c] ss:$56 sps:$4 sm:$0xff]  }
  0x44   : > { %6754 = vmatpush3.bf16.msra.mxu1 %v7575_v16  ;;  %v7618_v16 = vld [vmem:[%s8292_s16 + $0xf4] ss:$56 sps:$4 sm:$0xff]  }
  0x45   : > { %2616 = vmatmul.mubr.bf16.gmra.mxu0 %v7488_v40  ;;  %6755 = vmatprep.subr.bf16.mxu1 %v7578_v20  ;;  %v7602_v40 = vld [vmem:[%s10919_s1 + $0x1c0] sm:$0xff]   ;;  %v7638_v20 = vld [vmem:[%s10919_s1 + $0x228] sm:$0xff]  }
  0x46   : > { %2777 = vmatmul.mubr.bf16.gmra.mxu1 %v7489_v41  ;;  %2623 = vmatprep.mubr.bf16.mxu0 %v7490_v42  ;;  %v7606_v41 = vld [vmem:[%s10919_s1 + $0x180] sm:$0xff]   ;;  %v7607_v42 = vld [vmem:[%s10919_s1 + $0x278] sm:$0xff]  }
  0x47   : > { %2784 = vmatprep.mubr.bf16.mxu1 %v7492_v43  ;;  %6644 = vmatpush3.bf16.msra.mxu0 %v7511_v51  ;;  %v7550_v43 = vld [vmem:[%s8292_s16 + $0x460] ss:$56 sps:$4 sm:$0xff]  }
  0x48   : > { %6645 = vmatprep.subr.bf16.mxu0 %v7524_v56  ;;  %6756 = vmatpush3.bf16.msra.mxu1 %v7579_v21  ;;  %v7564_v51 = vld [vmem:[%s8292_s16 + $0x540] ss:$56 sps:$4 sm:$0xff]  }
  0x49   : > { %6757 = vmatprep.subr.bf16.mxu1 %v7580_v22  ;;  %v7577_v56 = vld [vmem:[%s8292_s16 + $0x5b8] ss:$56 sps:$4 sm:$0xff]   ;;  %v7649_v21 = vld [vmem:[%s10919_s1 + $0x260] sm:$0xff]   ;;  %v7707_v22 = vld [vmem:[%s10919_s1 + $0x2a8] sm:$0xff]  }
  0x4b   : > { %6646 = vmatpush3.bf16.msra.mxu0 %v7525_v57  ;;  %v7581_v57 = vld [vmem:[%s8292_s16 + $0x624] ss:$56 sps:$4 sm:$0xff]  }
  0x4c   : > { %6647 = vmatprep.subr.bf16.mxu0 %v7538_v61  ;;  %6758 = vmatpush3.bf16.msra.mxu1 %v7585_v23  ;;  %v7593_v61 = vld [vmem:[%s8292_s16 + $0x694] ss:$56 sps:$4 sm:$0xff]   ;;  %v7708_v23 = vld [vmem:[%s10919_s1 + $0x2e0] sm:$0xff]  }
  0x4d   : > { %2624 = vmatmul.mubr.bf16.gmra.mxu0 %v7494_v46  ;;  %6759 = vmatprep.subr.bf16.mxu1 %v7590_v30  ;;  %v7556_v46 = vld [vmem:[%s8292_s16 + $0x4dc] ss:$56 sps:$4 sm:$0xff]   ;;  %v7629_v30 = vld [vmem:[%s8292_s16 + $0x16c] ss:$56 sps:$4 sm:$0xff]  }
  0x4e   : > { %2785 = vmatmul.mubr.bf16.gmra.mxu1 %v7495_v47  ;;  %2631 = vmatprep.mubr.bf16.mxu0 %v7498_v48  ;;  %v7558_v47 = vld [vmem:[%s8292_s16 + $0x4d0] ss:$56 sps:$4 sm:$0xff]  }
  0x4f   : > { %2792 = vmatprep.mubr.bf16.mxu1 %v7500_v49  ;;  %6648 = vmatpush3.bf16.msra.mxu0 %v7539_v62  ;;  %v7559_v48 = vld [vmem:[%s8292_s16 + $0x4d8] ss:$56 sps:$4 sm:$0xff]   ;;  %v7560_v49 = vld [vmem:[%s8292_s16 + $0x544] ss:$56 sps:$4 sm:$0xff]  }
  0x50   : > { %6649 = vmatprep.subr.bf16.mxu0 %v7552_v3  ;;  %6760 = vmatpush3.bf16.msra.mxu1 %v7591_v31  ;;  %v7595_v62 = vld [vmem:[%s8292_s16 + $0x69c] ss:$56 sps:$4 sm:$0xff]  }
  0x51   : > { %6761 = vmatprep.subr.bf16.mxu1 %v7592_v32  ;;  %v7696_v3 = vld [vmem:[%s10919_s1 + $0x2f8] sm:$0xff]  }
  0x52   : > { %v7718_v31 = vld [vmem:[%s10919_s1 + $0x2d8] sm:$0xff]  }
  0x53   : > { %6650 = vmatpush3.bf16.msra.mxu0 %v7553_v4  ;;  %v7603_v4 = vld [vmem:[%s8292_s16 + $0x10] ss:$56 sps:$4 sm:$0xff]   ;;  %v7666_v32 = vld [vmem:[%s10919_s1 + $0x218] sm:$0xff]  }
  0x54   : > { %6651 = vmatprep.subr.bf16.mxu0 %v7566_v9  ;;  %6762 = vmatpush3.bf16.msra.mxu1 %v7597_v33  ;;  %v7621_v9 = vld [vmem:[%s10919_s1 + $0x270] sm:$0xff]  }
  0x55   : > { %2632 = vmatmul.mubr.bf16.gmra.mxu0 %v7502_v52  ;;  %6763 = vmatprep.subr.bf16.mxu1 %v7600_v36  ;;  %v7565_v52 = vld [vmem:[%s8292_s16 + $0x548] ss:$56 sps:$4 sm:$0xff]   ;;  %v7677_v33 = vld [vmem:[%s10919_s1 + $0x250] sm:$0xff]  }
  0x56   : > { %2793 = vmatmul.mubr.bf16.gmra.mxu1 %v7503_v53  ;;  %2639 = vmatprep.mubr.bf16.mxu0 %v7504_v54  ;;  %v7571_v53 = vld [vmem:[%s8292_s16 + $0x5b4] ss:$56 sps:$4 sm:$0xff]   ;;  %v7628_v36 = vld [vmem:[%s8292_s16 + $0x160] ss:$56 sps:$4 sm:$0xff]  }
  0x57   : > { %2800 = vmatprep.mubr.bf16.mxu1 %v7506_v55  ;;  %6652 = vmatpush3.bf16.msra.mxu0 %v7567_v11  ;;  %v7573_v54 = vld [vmem:[%s8292_s16 + $0x5bc] ss:$56 sps:$4 sm:$0xff]   ;;  %v7576_v55 = vld [vmem:[%s8292_s16 + $0x5b0] ss:$56 sps:$4 sm:$0xff]  }
  0x58   : > { %6653 = vmatprep.subr.bf16.mxu0 %v7588_v25  ;;  %6764 = vmatpush3.bf16.msra.mxu1 %v7601_v37  ;;  %v7698_v11 = vld [vmem:[%s10919_s1 + $0x2f0] sm:$0xff]   ;;  %v7652_v25 = vld [vmem:[%s10919_s1 + $0x220] sm:$0xff]  }
  0x59   : > { %6765 = vmatprep.subr.bf16.mxu1 %v7602_v40  ;;  %v7680_v37 = vld [vmem:[%s10919_s1 + $0x210] sm:$0xff]   ;;  %v7691_v40 = vld [vmem:[%s10919_s1 + $0x248] sm:$0xff]  }
  0x5b   : > { %6654 = vmatpush3.bf16.msra.mxu0 %v7589_v28  ;;  %v7626_v28 = vld [vmem:[%s8292_s16 + $0x164] ss:$56 sps:$4 sm:$0xff]  }
  0x5c   : > { %6863 = vmatprep.subr.bf16.mxu0 %v7607_v42  ;;  %6766 = vmatpush3.bf16.msra.mxu1 %v7606_v41  ;;  %v7724_v41 = vld [vmem:[%s10919_s1 + $0x290] sm:$0xff]   ;;  %v7728_v42 = vld [vmem:[%s10919_s1 + $0x2c8] sm:$0xff]  }
  0x5d   : > { %2640 = vmatmul.mubr.bf16.gmra.mxu0 %v7508_v58  ;;  %v7583_v58 = vld [vmem:[%s8292_s16 + $0x62c] ss:$56 sps:$4 sm:$0xff]   ;;  %6975 = vmatprep.subr.bf16.mxu1 %v7696_v3  ;;  %v7662_v3 = vld [vmem:[%s8292_s16 + $0x390] ss:$56 sps:$4 sm:$0xff]  }
  0x5e   : > { %2801 = vmatmul.mubr.bf16.gmra.mxu1 %v7509_v59  ;;  %2647 = vmatprep.mubr.bf16.mxu0 %v7512_v60  ;;  %v7586_v59 = vld [vmem:[%s8292_s16 + $0x620] ss:$56 sps:$4 sm:$0xff]  }
  0x5f   : > { %2808 = vmatprep.mubr.bf16.mxu1 %v7514_v63  ;;  %v7587_v60 = vld [vmem:[%s8292_s16 + $0x628] ss:$56 sps:$4 sm:$0xff]  }
  0x60   : > { %v7598_v63 = vld [vmem:[%s8292_s16 + $0x690] ss:$56 sps:$4 sm:$0xff]  }
  0x65   : > { %2648 = vmatmul.mubr.bf16.gmra.mxu0 %v7516_v0  ;;  %v7599_v0 = vld [vmem:[%s8292_s16 + $0x698] ss:$56 sps:$4 sm:$0xff]  }
  0x66   : > { %2809 = vmatmul.mubr.bf16.gmra.mxu1 %v7517_v1  ;;  %2655 = vmatprep.mubr.bf16.mxu0 %v7518_v2  ;;  %v7605_v1 = vld [vmem:[%s8292_s16 + $0x14] ss:$56 sps:$4 sm:$0xff]  }
  0x67   : > { %2816 = vmatprep.mubr.bf16.mxu1 %v7520_v5  ;;  %v7610_v2 = vld [vmem:[%s8292_s16 + $0x1c] ss:$56 sps:$4 sm:$0xff]   ;;  %v7608_v5 = vld [vmem:[%s8292_s16 + $0x18] ss:$56 sps:$4 sm:$0xff]  }
  0x6d   : > { %2656 = vmatmul.mubr.bf16.gmra.mxu0 %v7522_v6  ;;  %v7611_v6 = vld [vmem:[%s10919_s1 + $0x238] sm:$0xff]  }
  0x6e   : > { %2817 = vmatmul.mubr.bf16.gmra.mxu1 %v7523_v7  ;;  %2663 = vmatprep.mubr.bf16.mxu0 %v7526_v8  ;;  %v7612_v7 = vld [vmem:[%s8292_s16 + $0x84] ss:$56 sps:$4 sm:$0xff]  }
  0x6f   : > { %2824 = vmatprep.mubr.bf16.mxu1 %v7528_v10  ;;  %v7615_v8 = vld [vmem:[%s8292_s16 + $0x8c] ss:$56 sps:$4 sm:$0xff]   ;;  %v7697_v10 = vld [vmem:[%s10919_s1 + $0x2b8] sm:$0xff]  }
  0x75   : > { %2664 = vmatmul.mubr.bf16.gmra.mxu0 %v7530_v15  ;;  %v7617_v15 = vld [vmem:[%s8292_s16 + $0x88] ss:$56 sps:$4 sm:$0xff]  }
  0x76   : > { %2825 = vmatmul.mubr.bf16.gmra.mxu1 %v7531_v17  ;;  %2671 = vmatprep.mubr.bf16.mxu0 %v7532_v18  ;;  %v7702_v17 = vld [vmem:[%s10919_s1 + $0x2b0] sm:$0xff]   ;;  %v7706_v18 = vld [vmem:[%s10919_s1 + $0x2e8] sm:$0xff]  }
  0x77   : > { %2832 = vmatprep.mubr.bf16.mxu1 %v7534_v19  ;;  %v7622_v19 = vld [vmem:[%s8292_s16 + $0xfc] ss:$56 sps:$4 sm:$0xff]  }
  0x7d   : > { %2672 = vmatmul.mubr.bf16.gmra.mxu0 %v7536_v24  ;;  %v7620_v24 = vld [vmem:[%s8292_s16 + $0xf0] ss:$56 sps:$4 sm:$0xff]  }
  0x7e   : > { %2833 = vmatmul.mubr.bf16.gmra.mxu1 %v7537_v26  ;;  %2679 = vmatprep.mubr.bf16.mxu0 %v7540_v27  ;;  %v7663_v26 = vld [vmem:[%s10919_s1 + $0x258] sm:$0xff]  }
  0x7f   : > { %2840 = vmatprep.mubr.bf16.mxu1 %v7542_v29  ;;  %v7625_v27 = vld [vmem:[%s8292_s16 + $0xf8] ss:$56 sps:$4 sm:$0xff]   ;;  %v7712_v29 = vld [vmem:[%s10919_s1 + $0x2a0] sm:$0xff]  }
  0x85   : > { %2680 = vmatmul.mubr.bf16.gmra.mxu0 %v7544_v34  ;;  %v7719_v34 = vld [vmem:[%s10919_s1 + $0x298] sm:$0xff]  }
  0x86   : > { %2841 = vmatmul.mubr.bf16.gmra.mxu1 %v7545_v35  ;;  %2687 = vmatprep.mubr.bf16.mxu0 %v7546_v38  ;;  %v7720_v35 = vld [vmem:[%s10919_s1 + $0x2d0] sm:$0xff]   ;;  %v7631_v38 = vld [vmem:[%s8292_s16 + $0x168] ss:$56 sps:$4 sm:$0xff]  }
  0x87   : > { %2848 = vmatprep.mubr.bf16.mxu1 %v7548_v39  ;;  %v7632_v39 = vld [vmem:[%s8292_s16 + $0x1d4] ss:$56 sps:$4 sm:$0xff]  }
  0x8d   : > { %2688 = vmatmul.mubr.bf16.gmra.mxu0 %v7550_v43  ;;  %v7636_v43 = vld [vmem:[%s8292_s16 + $0x1dc] ss:$56 sps:$4 sm:$0xff]  }
  0x8e   : > { %2849 = vmatmul.mubr.bf16.gmra.mxu1 %v7551_v44  ;;  %2695 = vmatprep.mubr.bf16.mxu0 %v7554_v45  ;;  %v7695_v44 = vld [vmem:[%s10919_s1 + $0x208] sm:$0xff]   ;;  %v7713_v45 = vld [vmem:[%s10919_s1 + $0x240] sm:$0xff]  }
  0x8f   : > { %2856 = vmatprep.mubr.bf16.mxu1 %v7556_v46  ;;  %v7729_v46 = vld [vmem:[%s10919_s1 + $0x288] sm:$0xff]  }
  0x95   : > { %2696 = vmatmul.mubr.bf16.gmra.mxu0 %v7558_v47  ;;  %v7730_v47 = vld [vmem:[%s10919_s1 + $0x2c0] sm:$0xff]  }
  0x96   : > { %2857 = vmatmul.mubr.bf16.gmra.mxu1 %v7559_v48  ;;  %2703 = vmatprep.mubr.bf16.mxu0 %v7560_v49  ;;  %v7634_v48 = vld [vmem:[%s8292_s16 + $0x1d0] ss:$56 sps:$4 sm:$0xff]   ;;  %v7717_v49 = vld [vmem:[%s10919_s1 + $0x200] sm:$0xff]  }
  0x97   : > { %2864 = vmatprep.mubr.bf16.mxu1 %v7562_v50  ;;  %v7734_v50 = vld [vmem:[%s10919_s1 + $0x280] sm:$0xff]  }
  0x9d   : > { %2704 = vmatmul.mubr.bf16.gmra.mxu0 %v7564_v51  ;;  %v7639_v51 = vld [vmem:[%s8292_s16 + $0x1d8] ss:$56 sps:$4 sm:$0xff]  }
  0x9e   : > { %2865 = vmatmul.mubr.bf16.gmra.mxu1 %v7565_v52  ;;  %2711 = vmatprep.mubr.bf16.mxu0 %v7571_v53  ;;  %v7640_v52 = vld [vmem:[%s8292_s16 + $0x244] ss:$56 sps:$4 sm:$0xff]  }
  0x9f   : > { %2872 = vmatprep.mubr.bf16.mxu1 %v7573_v54  ;;  %v7643_v53 = vld [vmem:[%s8292_s16 + $0x24c] ss:$56 sps:$4 sm:$0xff]   ;;  %v8117_v54 = vmov 0  }
  0xa5   : > { %2712 = vmatmul.mubr.bf16.gmra.mxu0 %v7576_v55  ;;  %v7642_v55 = vld [vmem:[%s8292_s16 + $0x240] ss:$56 sps:$4 sm:$0xff]  }
  0xa6   : > { %2873 = vmatmul.mubr.bf16.gmra.mxu1 %v7577_v56  ;;  %2719 = vmatprep.mubr.bf16.mxu0 %v7581_v57  ;;  %v7645_v56 = vld [vmem:[%s8292_s16 + $0x248] ss:$56 sps:$4 sm:$0xff]   ;;  %v7646_v57 = vld [vmem:[%s8292_s16 + $0x2b4] ss:$56 sps:$4 sm:$0xff]  }
  0xa7   : > { %2880 = vmatprep.mubr.bf16.mxu1 %v7583_v58  ;;  %v7650_v58 = vld [vmem:[%s8292_s16 + $0x2bc] ss:$56 sps:$4 sm:$0xff]  }
  0xad   : > { %2720 = vmatmul.mubr.bf16.gmra.mxu0 %v7586_v59  ;;  %v7648_v59 = vld [vmem:[%s8292_s16 + $0x2b0] ss:$56 sps:$4 sm:$0xff]  }
  0xae   : > { %2881 = vmatmul.mubr.bf16.gmra.mxu1 %v7587_v60  ;;  %2727 = vmatprep.mubr.bf16.mxu0 %v7593_v61  ;;  %v7653_v60 = vld [vmem:[%s8292_s16 + $0x2b8] ss:$56 sps:$4 sm:$0xff]   ;;  %v7654_v61 = vld [vmem:[%s8292_s16 + $0x324] ss:$56 sps:$4 sm:$0xff]  }
  0xaf   : > { %2888 = vmatprep.mubr.bf16.mxu1 %v7595_v62  ;;  %v7657_v62 = vld [vmem:[%s8292_s16 + $0x32c] ss:$56 sps:$4 sm:$0xff]  }
  0xb5   : > { %2728 = vmatmul.mubr.bf16.gmra.mxu0 %v7598_v63  ;;  %v7656_v63 = vld [vmem:[%s8292_s16 + $0x320] ss:$56 sps:$4 sm:$0xff]  }
  0xb6   : > { %2889 = vmatmul.mubr.bf16.gmra.mxu1 %v7599_v0  ;;  %2929 = vmatprep.mubr.bf16.mxu0 %v7605_v1  ;;  %v7659_v0 = vld [vmem:[%s8292_s16 + $0x328] ss:$56 sps:$4 sm:$0xff]   ;;  %v7660_v1 = vld [vmem:[%s8292_s16 + $0x394] ss:$56 sps:$4 sm:$0xff]  }
  0xb7   : > { %3090 = vmatprep.mubr.bf16.mxu1 %v7610_v2  ;;  %v7664_v2 = vld [vmem:[%s8292_s16 + $0x39c] ss:$56 sps:$4 sm:$0xff]  }
  0xbd   : > { %2930 = vmatmul.mubr.bf16.vlgmr.msra.gmra.mxu0 %v7603_v4  ;;  %v7667_v4 = vld [vmem:[%s8292_s16 + $0x398] ss:$56 sps:$4 sm:$0xff]  }
  0xbe   : > { %6864 = vmatpush3.bf16.msra.mxu0 %v7611_v6  ;;  %3091 = vmatmul.mubr.bf16.vlgmr.msra.gmra.mxu1 %v7608_v5  ;;  %v7668_v5 = vld [vmem:[%s8292_s16 + $0x404] ss:$56 sps:$4 sm:$0xff]  }
  0xbf   : > { %2937 = vmatprep.mubr.bf16.mxu0 %v7612_v7  ;;  %3098 = vmatprep.mubr.bf16.mxu1 %v7615_v8  ;;  %v7671_v6 = vld [vmem:[%s8292_s16 + $0x40c] ss:$56 sps:$4 sm:$0xff]  }
  0xc0   : > { %6865 = vmatprep.subr.bf16.mxu0 %v7621_v9  ;;  %6976 = vmatpush3.bf16.msra.mxu1 %v7697_v10  ;;  %v7670_v10 = vld [vmem:[%s8292_s16 + $0x400] ss:$56 sps:$4 sm:$0xff]  }
  0xc1   : > { %6977 = vmatprep.subr.bf16.mxu1 %v7698_v11 }
  0xc2   : > { %6866 = vmatpush3.bf16.msra.mxu0 %v7624_v12 }
  0xc3   : > { %6867 = vmatprep.subr.bf16.mxu0 %v7635_v14  ;;  %v7674_v14 = vld [vmem:[%s8292_s16 + $0x474] ss:$56 sps:$4 sm:$0xff]  }
  0xc4   : > { %6978 = vmatpush3.bf16.msra.mxu1 %v7702_v17 }
  0xc5   : > { %2938 = vmatmul.mubr.bf16.gmra.mxu0 %v7614_v13  ;;  %6979 = vmatprep.subr.bf16.mxu1 %v7706_v18  ;;  %v7673_v13 = vld [vmem:[%s8292_s16 + $0x408] ss:$56 sps:$4 sm:$0xff]  }
  0xc6   : > { %3099 = vmatmul.mubr.bf16.gmra.mxu1 %v7617_v15  ;;  %2945 = vmatprep.mubr.bf16.mxu0 %v7618_v16 }
  0xc7   : > { %3106 = vmatprep.mubr.bf16.mxu1 %v7622_v19  ;;  %6868 = vmatpush3.bf16.msra.mxu0 %v7638_v20  ;;  %v7678_v20 = vld [vmem:[%s8292_s16 + $0x47c] ss:$56 sps:$4 sm:$0xff]  }
  0xc8   : > { %6869 = vmatprep.subr.bf16.mxu0 %v7649_v21  ;;  %6980 = vmatpush3.bf16.msra.mxu1 %v7707_v22 }
  0xc9   : > { %6981 = vmatprep.subr.bf16.mxu1 %v7708_v23 }
  0xcb   : > { %6870 = vmatpush3.bf16.msra.mxu0 %v7652_v25 }
  0xcc   : > { %6871 = vmatprep.subr.bf16.mxu0 %v7663_v26  ;;  %6982 = vmatpush3.bf16.msra.mxu1 %v7712_v29 }
  0xcd   : > { %2946 = vmatmul.mubr.bf16.gmra.mxu0 %v7620_v24  ;;  %6983 = vmatprep.subr.bf16.mxu1 %v7718_v31 }
  0xce   : > { %3107 = vmatmul.mubr.bf16.gmra.mxu1 %v7625_v27  ;;  %2953 = vmatprep.mubr.bf16.mxu0 %v7626_v28 }
  0xcf   : > { %3114 = vmatprep.mubr.bf16.mxu1 %v7629_v30  ;;  %6872 = vmatpush3.bf16.msra.mxu0 %v7666_v32  ;;  %v7676_v32 = vld [vmem:[%s8292_s16 + $0x470] ss:$56 sps:$4 sm:$0xff]  }
  0xd0   : > { %6873 = vmatprep.subr.bf16.mxu0 %v7677_v33  ;;  %6984 = vmatpush3.bf16.msra.mxu1 %v7719_v34  ;;  %v7681_v34 = vld [vmem:[%s8292_s16 + $0x478] ss:$56 sps:$4 sm:$0xff]  }
  0xd1   : > { %6985 = vmatprep.subr.bf16.mxu1 %v7720_v35  ;;  %v7682_v35 = vld [vmem:[%s8292_s16 + $0x4e4] ss:$56 sps:$4 sm:$0xff]  }
  0xd3   : > { %6874 = vmatpush3.bf16.msra.mxu0 %v7680_v37 }
  0xd4   : > { %6875 = vmatprep.subr.bf16.mxu0 %v7691_v40  ;;  %6986 = vmatpush3.bf16.msra.mxu1 %v7724_v41 }
  0xd5   : > { %2954 = vmatmul.mubr.bf16.gmra.mxu0 %v7628_v36  ;;  %6987 = vmatprep.subr.bf16.mxu1 %v7728_v42 }
  0xd6   : > { %3115 = vmatmul.mubr.bf16.gmra.mxu1 %v7631_v38  ;;  %2961 = vmatprep.mubr.bf16.mxu0 %v7632_v39  ;;  %v7685_v38 = vld [vmem:[%s8292_s16 + $0x4ec] ss:$56 sps:$4 sm:$0xff]  }
  0xd7   : > { %3122 = vmatprep.mubr.bf16.mxu1 %v7636_v43  ;;  %6876 = vmatpush3.bf16.msra.mxu0 %v7695_v44 }
  0xd8   : > { %6877 = vmatprep.subr.bf16.mxu0 %v7713_v45  ;;  %6988 = vmatpush3.bf16.msra.mxu1 %v7729_v46 }
  0xd9   : > { %6989 = vmatprep.subr.bf16.mxu1 %v7730_v47 }
  0xdb   : > { %6878 = vmatpush3.bf16.msra.mxu0 %v7717_v49 }
  0xdc   : > { %6990 = vmatpush3.bf16.msra.mxu1 %v7734_v50  ;;  %3541 = vmatprep.subr.bf16.mxu0 %v8117_v54  ;;  %v7684_v50 = vld [vmem:[%s8292_s16 + $0x4e0] ss:$56 sps:$4 sm:$0xff]  }
  0xdd   : > { %2962 = vmatmul.mubr.bf16.gmra.mxu0 %v7634_v48 }
  0xde   : > { %3123 = vmatmul.mubr.bf16.gmra.mxu1 %v7639_v51  ;;  %2969 = vmatprep.mubr.bf16.mxu0 %v7640_v52  ;;  %v7687_v52 = vld [vmem:[%s8292_s16 + $0x4e8] ss:$56 sps:$4 sm:$0xff]  }
  0xdf   : > { %3130 = vmatprep.mubr.bf16.mxu1 %v7643_v53  ;;  %v7690_v53 = vld [vmem:[%s8292_s16 + $0x554] ss:$56 sps:$4 sm:$0xff]  }
  0xe5   : > { %2970 = vmatmul.mubr.bf16.gmra.mxu0 %v7642_v55 }
  0xe6   : > { %3131 = vmatmul.mubr.bf16.gmra.mxu1 %v7645_v56  ;;  %2977 = vmatprep.mubr.bf16.mxu0 %v7646_v57  ;;  %v7694_v57 = vld [vmem:[%s8292_s16 + $0x55c] ss:$56 sps:$4 sm:$0xff]  }
  0xe7   : > { %3138 = vmatprep.mubr.bf16.mxu1 %v7650_v58 }
  0xed   : > { %2978 = vmatmul.mubr.bf16.gmra.mxu0 %v7648_v59 }
  0xee   : > { %3139 = vmatmul.mubr.bf16.gmra.mxu1 %v7653_v60  ;;  %2985 = vmatprep.mubr.bf16.mxu0 %v7654_v61 }
  0xef   : > { %3146 = vmatprep.mubr.bf16.mxu1 %v7657_v62 }
  0xf5   : > { %2986 = vmatmul.mubr.bf16.gmra.mxu0 %v7656_v63 }
  0xf6   : > { %3147 = vmatmul.mubr.bf16.gmra.mxu1 %v7659_v0  ;;  %2993 = vmatprep.mubr.bf16.mxu0 %v7660_v1 }
  0xf7   : > { %3154 = vmatprep.mubr.bf16.mxu1 %v7664_v2 }
  0xfd   : > { %v6431_v7 = vpop.f32.mrf.mxu0  ;;  %2994 = vmatmul.mubr.bf16.gmra.mxu0 %v7662_v3 }
  0xfe   : > { %v6543_v8 = vpop.f32.mrf.mxu1  ;;  %3155 = vmatmul.mubr.bf16.gmra.mxu1 %v7667_v4  ;;  %3001 = vmatprep.mubr.bf16.mxu0 %v7668_v5  ;;  %v7688_v5 = vld [vmem:[%s8292_s16 + $0x550] ss:$56 sps:$4 sm:$0xff]  }
  0xff   : > { %v6432_v9 = vpop.f32.mrf.mxu0  ;;  %3162 = vmatprep.mubr.bf16.mxu1 %v7671_v6 }
 0x100   : > { %v6433_v11 = vadd.f32 %v6432_v9, %v6431_v7  ;;  %v6544_v12 = vpop.f32.mrf.mxu1  ;;  %v7692_v7 = vld [vmem:[%s8292_s16 + $0x558] ss:$56 sps:$4 sm:$0xff]  }
 0x101   : > { %v6545_v15 = vadd.f32 %v6544_v12, %v6543_v8  ;;  %v6434_v16 = vpop.f32.mrf.mxu0  ;;  %v7701_v8 = vld [vmem:[%s8292_s16 + $0x5c4] ss:$56 sps:$4 sm:$0xff]  }
 0x102   : > { %v6546_v17 = vpop.f32.mrf.mxu1 }
 0x103   : > { %v8598_v18 = vadd.f32 %v6545_v15, %v6433_v11  ;;  %v6435_v19 = vpop.f32.mrf.mxu0  ;;  %v7705_v11 = vld [vmem:[%s8292_s16 + $0x5cc] ss:$56 sps:$4 sm:$0xff]  }
 0x104   : > { %v6436_v21 = vadd.f32 %v6435_v19, %v6434_v16  ;;  %v6547_v22 = vpop.f32.mrf.mxu1 }
 0x105   : > { %v6548_v23 = vadd.f32 %v6547_v22, %v6546_v17  ;;  %v6437_v24 = vpop.f32.mrf.mxu0  ;;  %3002 = vmatmul.mubr.bf16.gmra.mxu0 %v7670_v10 }
 0x106   : > { %v6549_v25 = vpop.f32.mrf.mxu1  ;;  %3163 = vmatmul.mubr.bf16.gmra.mxu1 %v7673_v13  ;;  %3009 = vmatprep.mubr.bf16.mxu0 %v7674_v14 }
 0x107   : > { %v8601_v26 = vadd.f32 %v6548_v23, %v6436_v21  ;;  %v6438_v27 = vpop.f32.mrf.mxu0  ;;  %3170 = vmatprep.mubr.bf16.mxu1 %v7678_v20 }
 0x108   : > { %v6439_v28 = vadd.f32 %v6438_v27, %v6437_v24  ;;  %v6550_v29 = vpop.f32.mrf.mxu1  ;;  %v7699_v24 = vld [vmem:[%s8292_s16 + $0x5c0] ss:$56 sps:$4 sm:$0xff]  }
 0x109   : > { %v6551_v30 = vadd.f32 %v6550_v29, %v6549_v25  ;;  %v6440_v31 = vpop.f32.mrf.mxu0  ;;  %v7703_v27 = vld [vmem:[%s8292_s16 + $0x5c8] ss:$56 sps:$4 sm:$0xff]  }
 0x10a   : > { %v6552_v33 = vpop.f32.mrf.mxu1 }
 0x10b   : > { %v8606_v36 = vadd.f32 %v6551_v30, %v6439_v28  ;;  %v6441_v37 = vpop.f32.mrf.mxu0  ;;  %v7711_v28 = vld [vmem:[%s8292_s16 + $0x634] ss:$56 sps:$4 sm:$0xff]  }
 0x10c   : > { %v6442_v39 = vadd.f32 %v6441_v37, %v6440_v31  ;;  %v6553_v40 = vpop.f32.mrf.mxu1  ;;  %v7716_v31 = vld [vmem:[%s8292_s16 + $0x63c] ss:$56 sps:$4 sm:$0xff]  }
 0x10d   : > { %v6554_v41 = vadd.f32 %v6553_v40, %v6552_v33  ;;  %v6443_v42 = vpop.f32.mrf.mxu0  ;;  %3010 = vmatmul.mubr.bf16.gmra.mxu0 %v7676_v32 }
 0x10e   : > { %v6555_v43 = vpop.f32.mrf.mxu1  ;;  %3171 = vmatmul.mubr.bf16.gmra.mxu1 %v7681_v34  ;;  %3017 = vmatprep.mubr.bf16.mxu0 %v7682_v35 }
 0x10f   : > { %v8609_v44 = vadd.f32 %v6554_v41, %v6442_v39  ;;  %v6444_v45 = vpop.f32.mrf.mxu0  ;;  %3178 = vmatprep.mubr.bf16.mxu1 %v7685_v38 }
 0x110   : > { %v6445_v46 = vadd.f32 %v6444_v45, %v6443_v42  ;;  %v6556_v47 = vpop.f32.mrf.mxu1  ;;  %v7709_v45 = vld [vmem:[%s8292_s16 + $0x630] ss:$56 sps:$4 sm:$0xff]  }
 0x111   : > { %v6557_v48 = vadd.f32 %v6556_v47, %v6555_v43  ;;  %v6446_v49 = vpop.f32.mrf.mxu0  ;;  %v7714_v47 = vld [vmem:[%s8292_s16 + $0x638] ss:$56 sps:$4 sm:$0xff]  }
 0x112   : > { %v6558_v51 = vpop.f32.mrf.mxu1 }
 0x113   : > { %v8614_v55 = vadd.f32 %v6557_v48, %v6445_v46  ;;  %v6447_v56 = vpop.f32.mrf.mxu0  ;;  %v7723_v48 = vld [vmem:[%s8292_s16 + $0x6a4] ss:$56 sps:$4 sm:$0xff]  }
 0x114   : > { %v6448_v58 = vadd.f32 %v6447_v56, %v6446_v49  ;;  %v6559_v59 = vpop.f32.mrf.mxu1 }
 0x115   : > { %v6560_v60 = vadd.f32 %v6559_v59, %v6558_v51  ;;  %v6449_v61 = vpop.f32.mrf.mxu0  ;;  %3018 = vmatmul.mubr.bf16.gmra.mxu0 %v7684_v50  ;;  %v7727_v51 = vld [vmem:[%s8292_s16 + $0x6ac] ss:$56 sps:$4 sm:$0xff]  }
 0x116   : > { %v6561_v62 = vpop.f32.mrf.mxu1  ;;  %3179 = vmatmul.mubr.bf16.gmra.mxu1 %v7687_v52  ;;  %3025 = vmatprep.mubr.bf16.mxu0 %v7690_v53 }
 0x117   : > { %v8617_v63 = vadd.f32 %v6560_v60, %v6448_v58  ;;  %v6450_v0 = vpop.f32.mrf.mxu0  ;;  %3186 = vmatprep.mubr.bf16.mxu1 %v7694_v57 }
 0x118   : > { %v6451_v1 = vadd.f32 %v6450_v0, %v6449_v61  ;;  %v6562_v2 = vpop.f32.mrf.mxu1 }
 0x119   : > { %v6563_v3 = vadd.f32 %v6562_v2, %v6561_v62  ;;  %v6452_v4 = vpop.f32.mrf.mxu0  ;;  %v7721_v2 = vld [vmem:[%s8292_s16 + $0x6a0] ss:$56 sps:$4 sm:$0xff]  }
 0x11a   : > { %v6564_v6 = vpop.f32.mrf.mxu1 }
 0x11b   : > { %v8622_v9 = vadd.f32 %v6563_v3, %v6451_v1  ;;  %v6453_v10 = vpop.f32.mrf.mxu0 }
 0x11c   : > { %v6454_v12 = vadd.f32 %v6453_v10, %v6452_v4  ;;  %v6565_v13 = vpop.f32.mrf.mxu1  ;;  %v7725_v4 = vld [vmem:[%s8292_s16 + $0x6a8] ss:$56 sps:$4 sm:$0xff]  }
 0x11d   : > { %v6566_v14 = vadd.f32 %v6565_v13, %v6564_v6  ;;  %v6455_v15 = vpop.f32.mrf.mxu0  ;;  %3026 = vmatmul.mubr.bf16.gmra.mxu0 %v7688_v5  ;;  %v7733_v5 = vld [vmem:[%s8292_s16 + $0x24] ss:$56 sps:$4 sm:$0xff]  }
 0x11e   : > { %v6567_v16 = vpop.f32.mrf.mxu1  ;;  %3187 = vmatmul.mubr.bf16.gmra.mxu1 %v7692_v7  ;;  %3033 = vmatprep.mubr.bf16.mxu0 %v7701_v8  ;;  %v7737_v8 = vld [vmem:[%s8292_s16 + $0x2c] ss:$56 sps:$4 sm:$0xff]  }
 0x11f   : > { %v8625_v17 = vadd.f32 %v6566_v14, %v6454_v12  ;;  %v6456_v19 = vpop.f32.mrf.mxu0  ;;  %3194 = vmatprep.mubr.bf16.mxu1 %v7705_v11 }
 0x120   : > { %v6457_v20 = vadd.f32 %v6456_v19, %v6455_v15  ;;  %v6568_v21 = vpop.f32.mrf.mxu1 }
 0x121   : > { %v6569_v22 = vadd.f32 %v6568_v21, %v6567_v16  ;;  %v6458_v23 = vpop.f32.mrf.mxu0 }
 0x122   : > { %v6570_v25 = vpop.f32.mrf.mxu1 }
 0x123   : > { %v8630_v29 = vadd.f32 %v6569_v22, %v6457_v20  ;;  %v6459_v30 = vpop.f32.mrf.mxu0 }
 0x124   : > { %v6460_v32 = vadd.f32 %v6459_v30, %v6458_v23  ;;  %v6571_v33 = vpop.f32.mrf.mxu1  ;;  %v7731_v23 = vld [vmem:[%s8292_s16 + $0x20] ss:$56 sps:$4 sm:$0xff]  }
 0x125   : > { %v6572_v34 = vadd.f32 %v6571_v33, %v6570_v25  ;;  %v6461_v35 = vpop.f32.mrf.mxu0  ;;  %3034 = vmatmul.mubr.bf16.gmra.mxu0 %v7699_v24  ;;  %v7735_v25 = vld [vmem:[%s8292_s16 + $0x28] ss:$56 sps:$4 sm:$0xff]  }
 0x126   : > { %v6573_v37 = vpop.f32.mrf.mxu1  ;;  %3195 = vmatmul.mubr.bf16.gmra.mxu1 %v7703_v27  ;;  %3041 = vmatprep.mubr.bf16.mxu0 %v7711_v28  ;;  %v7738_v27 = vld [vmem:[%s10919_s1 + $0x338] sm:$0xff]  }
 0x127   : > { %v8633_v38 = vadd.f32 %v6572_v34, %v6460_v32  ;;  %v6462_v39 = vpop.f32.mrf.mxu0  ;;  %3202 = vmatprep.mubr.bf16.mxu1 %v7716_v31  ;;  %v7741_v31 = vld [vmem:[%s8292_s16 + $0x94] ss:$56 sps:$4 sm:$0xff]  }
 0x128   : > { %v6463_v40 = vadd.f32 %v6462_v39, %v6461_v35  ;;  %v6574_v41 = vpop.f32.mrf.mxu1  ;;  %v7744_v32 = vld [vmem:[%s8292_s16 + $0x9c] ss:$56 sps:$4 sm:$0xff]  }
 0x129   : > { %v6575_v42 = vadd.f32 %v6574_v41, %v6573_v37  ;;  %v6464_v43 = vpop.f32.mrf.mxu0 }
 0x12a   : > { %v6576_v46 = vpop.f32.mrf.mxu1 }
 0x12b   : > { %v8638_v49 = vadd.f32 %v6575_v42, %v6463_v40  ;;  %v6465_v50 = vpop.f32.mrf.mxu0  ;;  %v7745_v40 = vld [vmem:[%s10919_s1 + $0x330] sm:$0xff]  }
 0x12c   : > { %v6466_v52 = vadd.f32 %v6465_v50, %v6464_v43  ;;  %v6577_v53 = vpop.f32.mrf.mxu1 }
 0x12d   : > { %v6578_v56 = vadd.f32 %v6577_v53, %v6576_v46  ;;  %v6467_v57 = vpop.f32.mrf.mxu0  ;;  %3042 = vmatmul.mubr.bf16.gmra.mxu0 %v7709_v45 }
 0x12e   : > { %v6579_v58 = vpop.f32.mrf.mxu1  ;;  %3203 = vmatmul.mubr.bf16.gmra.mxu1 %v7714_v47  ;;  %3049 = vmatprep.mubr.bf16.mxu0 %v7723_v48  ;;  %v7739_v48 = vld [vmem:[%s8292_s16 + $0x90] ss:$56 sps:$4 sm:$0xff]  }
 0x12f   : > { %v8641_v59 = vadd.f32 %v6578_v56, %v6466_v52  ;;  %v6468_v60 = vpop.f32.mrf.mxu0  ;;  %3210 = vmatprep.mubr.bf16.mxu1 %v7727_v51  ;;  %v7742_v51 = vld [vmem:[%s8292_s16 + $0x98] ss:$56 sps:$4 sm:$0xff]   ;;  %v7748_v52 = vld [vmem:[%s8292_s16 + $0x104] ss:$56 sps:$4 sm:$0xff]  }
 0x130   : > { %v6469_v61 = vadd.f32 %v6468_v60, %v6467_v57  ;;  %v6580_v62 = vpop.f32.mrf.mxu1  ;;  %v7751_v57 = vld [vmem:[%s8292_s16 + $0x10c] ss:$56 sps:$4 sm:$0xff]  }
 0x131   : > { %v6581_v0 = vadd.f32 %v6580_v62, %v6579_v58  ;;  %v6470_v1 = vpop.f32.mrf.mxu0  ;;  %v7755_v58 = vld [vmem:[%s10919_s1 + $0x328] sm:$0xff]  }
 0x132   : > { %v6582_v3 = vpop.f32.mrf.mxu1 }
 0x133   : > { %v8646_v6 = vadd.f32 %v6581_v0, %v6469_v61  ;;  %v6471_v7 = vpop.f32.mrf.mxu0 }
 0x134   : > { %v6472_v10 = vadd.f32 %v6471_v7, %v6470_v1  ;;  %v6583_v11 = vpop.f32.mrf.mxu1 }
 0x135   : > { %v6584_v12 = vadd.f32 %v6583_v11, %v6582_v3  ;;  %v6473_v13 = vpop.f32.mrf.mxu0  ;;  %3050 = vmatmul.mubr.bf16.gmra.mxu0 %v7721_v2  ;;  %v7746_v11 = vld [vmem:[%s8292_s16 + $0x100] ss:$56 sps:$4 sm:$0xff]  }
 0x136   : > { %v6585_v14 = vpop.f32.mrf.mxu1  ;;  %3211 = vmatmul.mubr.bf16.gmra.mxu1 %v7725_v4  ;;  %3251 = vmatprep.mubr.bf16.mxu0 %v7733_v5  ;;  %v7765_v4 = vld [vmem:[%s10919_s1 + $0x320] sm:$0xff]  }
 0x137   : > { %v8649_v15 = vadd.f32 %v6584_v12, %v6472_v10  ;;  %v6474_v16 = vpop.f32.mrf.mxu0  ;;  %3412 = vmatprep.mubr.bf16.mxu1 %v7737_v8 }
 0x138   : > { %v6475_v19 = vadd.f32 %v6474_v16, %v6473_v13  ;;  %v6586_v20 = vpop.f32.mrf.mxu1  ;;  %v7749_v13 = vld [vmem:[%s8292_s16 + $0x108] ss:$56 sps:$4 sm:$0xff]  }
 0x139   : > { %v6587_v21 = vadd.f32 %v6586_v20, %v6585_v14  ;;  %v6476_v22 = vpop.f32.mrf.mxu0  ;;  %v7754_v14 = vld [vmem:[%s8292_s16 + $0x174] ss:$56 sps:$4 sm:$0xff]  }
 0x13a   : > { %v6588_v24 = vpop.f32.mrf.mxu1  ;;  %v7758_v20 = vld [vmem:[%s8292_s16 + $0x17c] ss:$56 sps:$4 sm:$0xff]  }
 0x13b   : > { %v8656_v28 = vadd.f32 %v6587_v21, %v6475_v19  ;;  %v6477_v30 = vpop.f32.mrf.mxu0  ;;  %v7772_v21 = vld [vmem:[%s10919_s1 + $0x318] sm:$0xff]  }
 0x13c   : > { %v6478_v33 = vadd.f32 %v6477_v30, %v6476_v22  ;;  %v6589_v34 = vpop.f32.mrf.mxu1 }
 0x13d   : > { %v6590_v35 = vadd.f32 %v6589_v34, %v6588_v24  ;;  %v6479_v37 = vpop.f32.mrf.mxu0  ;;  %3252 = vmatmul.mubr.bf16.vlgmr.msra.gmra.mxu0 %v7731_v23 }
 0x13e   : > { %v6591_v39 = vpop.f32.mrf.mxu1  ;;  %3542 = vmatpush1.bf16.msra.mxu0 %v7738_v27  ;;  %3413 = vmatmul.mubr.bf16.vlgmr.msra.gmra.mxu1 %v7735_v25 }
 0x13f   : > { %v8663_v41 = vadd.f32 %v6590_v35, %v6478_v33  ;;  %v6480_v42 = vpop.f32.mrf.mxu0  ;;  %3259 = vmatprep.mubr.bf16.mxu0 %v7741_v31  ;;  %3420 = vmatprep.mubr.bf16.mxu1 %v7744_v32  ;;  %v7782_v32 = vld [vmem:[%s10919_s1 + $0x310] sm:$0xff]  }
 0x140   : > { %v6481_v43 = vadd.f32 %v6480_v42, %v6479_v37  ;;  %v6592_v45 = vpop.f32.mrf.mxu1  ;;  %3543 = vmatprep.subr.bf16.mxu0 %v8117_v54  ;;  %v7756_v42 = vld [vmem:[%s8292_s16 + $0x178] ss:$56 sps:$4 sm:$0xff]  }
 0x141   : > { %v6593_v46 = vadd.f32 %v6592_v45, %v6591_v39  ;;  %v6482_v47 = vpop.f32.mrf.mxu0  ;;  %v7752_v39 = vld [vmem:[%s8292_s16 + $0x170] ss:$56 sps:$4 sm:$0xff]  }
 0x142   : > { %v6594_v50 = vpop.f32.mrf.mxu1  ;;  %3544 = vmatpush1.bf16.msra.mxu0 %v7745_v40 }
 0x143   : > { %v8669_v53 = vadd.f32 %v6593_v46, %v6481_v43  ;;  %v6483_v56 = vpop.f32.mrf.mxu0  ;;  %3545 = vmatprep.subr.bf16.mxu0 %v8117_v54  ;;  %v7761_v43 = vld [vmem:[%s8292_s16 + $0x1e4] ss:$56 sps:$4 sm:$0xff]  }
 0x144   : > { %v6484_v60 = vadd.f32 %v6483_v56, %v6482_v47  ;;  %v6595_v61 = vpop.f32.mrf.mxu1  ;;  %v7764_v47 = vld [vmem:[%s8292_s16 + $0x1ec] ss:$56 sps:$4 sm:$0xff]  }
 0x145   : > { %v6596_v62 = vadd.f32 %v6595_v61, %v6594_v50  ;;  %v6485_v0 = vpop.f32.mrf.mxu0  ;;  %3260 = vmatmul.mubr.bf16.gmra.mxu0 %v7739_v48  ;;  %v7792_v48 = vld [vmem:[%s10919_s1 + $0x308] sm:$0xff]   ;;  %v7799_v61 = vld [vmem:[%s10919_s1 + $0x300] sm:$0xff]  }
 0x146   : > { %v6597_v1 = vpop.f32.mrf.mxu1  ;;  %3421 = vmatmul.mubr.bf16.gmra.mxu1 %v7742_v51  ;;  %3267 = vmatprep.mubr.bf16.mxu0 %v7748_v52 }
 0x147   : > { %v8676_v2 = vadd.f32 %v6596_v62, %v6484_v60  ;;  %v6486_v3 = vpop.f32.mrf.mxu0  ;;  %3428 = vmatprep.mubr.bf16.mxu1 %v7751_v57  ;;  %3546 = vmatpush1.bf16.msra.mxu0 %v7755_v58 }
 0x148   : > { %v6487_v5 = vadd.f32 %v6486_v3, %v6485_v0  ;;  %v6598_v7 = vpop.f32.mrf.mxu1  ;;  %3547 = vmatprep.subr.bf16.mxu0 %v8117_v54 }
 0x149   : > { %v6599_v8 = vadd.f32 %v6598_v7, %v6597_v1  ;;  %v6488_v10 = vpop.f32.mrf.mxu0  ;;  %v7762_v7 = vld [vmem:[%s8292_s16 + $0x1e8] ss:$56 sps:$4 sm:$0xff]  }
 0x14a   : > { %v6600_v12 = vpop.f32.mrf.mxu1 }
 0x14b   : > { %v8685_v16 = vadd.f32 %v6599_v8, %v6487_v5  ;;  %v6489_v19 = vpop.f32.mrf.mxu0  ;;  %3548 = vmatpush1.bf16.msra.mxu0 %v7765_v4  ;;  %v7759_v4 = vld [vmem:[%s8292_s16 + $0x1e0] ss:$56 sps:$4 sm:$0xff]   ;;  %v7768_v8 = vld [vmem:[%s8292_s16 + $0x254] ss:$56 sps:$4 sm:$0xff]  }
 0x14c   : > { %v6490_v22 = vadd.f32 %v6489_v19, %v6488_v10  ;;  %v6601_v23 = vpop.f32.mrf.mxu1  ;;  %3549 = vmatprep.subr.bf16.mxu0 %v8117_v54 }
 0x14d   : > { %v6602_v24 = vadd.f32 %v6601_v23, %v6600_v12  ;;  %v6491_v25 = vpop.f32.mrf.mxu0  ;;  %3268 = vmatmul.mubr.bf16.gmra.mxu0 %v7746_v11  ;;  %v7771_v12 = vld [vmem:[%s8292_s16 + $0x25c] ss:$56 sps:$4 sm:$0xff]  }
 0x14e   : > { %v6603_v27 = vpop.f32.mrf.mxu1  ;;  %3429 = vmatmul.mubr.bf16.gmra.mxu1 %v7749_v13  ;;  %3275 = vmatprep.mubr.bf16.mxu0 %v7754_v14  ;;  %v7809_v13 = vld [vmem:[%s10919_s1 + $0x358] sm:$0xff]  }
 0x14f   : > { %v8692_v30 = vadd.f32 %v6602_v24, %v6490_v22  ;;  %v6492_v31 = vpop.f32.mrf.mxu0  ;;  %3436 = vmatprep.mubr.bf16.mxu1 %v7758_v20  ;;  %3550 = vmatpush1.bf16.msra.mxu0 %v7772_v21 }
 0x150   : > { %v6493_v33 = vadd.f32 %v6492_v31, %v6491_v25  ;;  %v6604_v34 = vpop.f32.mrf.mxu1  ;;  %3551 = vmatprep.subr.bf16.mxu0 %v8117_v54  ;;  %v7819_v25 = vld [vmem:[%s10919_s1 + $0x350] sm:$0xff]  }
 0x151   : > { %v6605_v35 = vadd.f32 %v6604_v34, %v6603_v27  ;;  %v6494_v37 = vpop.f32.mrf.mxu0  ;;  %v7766_v34 = vld [vmem:[%s8292_s16 + $0x250] ss:$56 sps:$4 sm:$0xff]  }
 0x152   : > { %v6606_v40 = vpop.f32.mrf.mxu1 }
 0x153   : > { %v8701_v45 = vadd.f32 %v6605_v35, %v6493_v33  ;;  %v6495_v46 = vpop.f32.mrf.mxu0  ;;  %3552 = vmatpush1.bf16.msra.mxu0 %v7782_v32 }
 0x154   : > { %v6496_v50 = vadd.f32 %v6495_v46, %v6494_v37  ;;  %v6607_v51 = vpop.f32.mrf.mxu1  ;;  %3553 = vmatprep.subr.bf16.mxu0 %v8117_v54  ;;  %v7769_v37 = vld [vmem:[%s8292_s16 + $0x258] ss:$56 sps:$4 sm:$0xff]   ;;  %v7826_v46 = vld [vmem:[%s10919_s1 + $0x348] sm:$0xff]  }
 0x155   : > { %v6608_v52 = vadd.f32 %v6607_v51, %v6606_v40  ;;  %v6497_v56 = vpop.f32.mrf.mxu0  ;;  %3276 = vmatmul.mubr.bf16.gmra.mxu0 %v7752_v39  ;;  %v7775_v39 = vld [vmem:[%s8292_s16 + $0x2c4] ss:$56 sps:$4 sm:$0xff]  }
 0x156   : > { %v6609_v57 = vpop.f32.mrf.mxu1  ;;  %3437 = vmatmul.mubr.bf16.gmra.mxu1 %v7756_v42  ;;  %3283 = vmatprep.mubr.bf16.mxu0 %v7761_v43  ;;  %v7778_v43 = vld [vmem:[%s8292_s16 + $0x2cc] ss:$56 sps:$4 sm:$0xff]  }
 0x157   : > { %v8708_v58 = vadd.f32 %v6608_v52, %v6496_v50  ;;  %v6498_v60 = vpop.f32.mrf.mxu0  ;;  %3444 = vmatprep.mubr.bf16.mxu1 %v7764_v47  ;;  %3554 = vmatpush1.bf16.msra.mxu0 %v7792_v48 }
 0x158   : > { %v6499_v62 = vadd.f32 %v6498_v60, %v6497_v56  ;;  %v6610_v0 = vpop.f32.mrf.mxu1  ;;  %3555 = vmatprep.subr.bf16.mxu0 %v8117_v54  ;;  %v7836_v60 = vld [vmem:[%s10919_s1 + $0x340] sm:$0xff]  }
 0x159   : > { %v6611_v1 = vadd.f32 %v6610_v0, %v6609_v57  ;;  %v6500_v3 = vpop.f32.mrf.mxu0 }
 0x15a   : > { %v6612_v5 = vpop.f32.mrf.mxu1 }
 0x15b   : > { %v8717_v10 = vadd.f32 %v6611_v1, %v6499_v62  ;;  %v6501_v11 = vpop.f32.mrf.mxu0  ;;  %3556 = vmatpush1.bf16.msra.mxu0 %v7799_v61 }
 0x15c   : > { %v6502_v14 = vadd.f32 %v6501_v11, %v6500_v3  ;;  %v6613_v19 = vpop.f32.mrf.mxu1  ;;  %3565 = vmatprep.subr.bf16.mxu0 %v8117_v54  ;;  %v7773_v3 = vld [vmem:[%s8292_s16 + $0x2c0] ss:$56 sps:$4 sm:$0xff]  }
 0x15d   : > { %v6614_v20 = vadd.f32 %v6613_v19, %v6612_v5  ;;  %v6503_v21 = vpop.f32.mrf.mxu0  ;;  %3284 = vmatmul.mubr.bf16.gmra.mxu0 %v7759_v4  ;;  %v7776_v5 = vld [vmem:[%s8292_s16 + $0x2c8] ss:$56 sps:$4 sm:$0xff]  }
 0x15e   : > { %v6615_v22 = vpop.f32.mrf.mxu1  ;;  %3445 = vmatmul.mubr.bf16.gmra.mxu1 %v7762_v7  ;;  %3291 = vmatprep.mubr.bf16.mxu0 %v7768_v8  ;;  %v7781_v7 = vld [vmem:[%s8292_s16 + $0x334] ss:$56 sps:$4 sm:$0xff]  }
 0x15f   : > { %v8724_v23 = vadd.f32 %v6614_v20, %v6502_v14  ;;  %v6504_v24 = vpop.f32.mrf.mxu0  ;;  %3452 = vmatprep.mubr.bf16.mxu1 %v7771_v12  ;;  %3566 = vmatpush2.bf16.msra.mxu0 %v7809_v13  ;;  %v7785_v12 = vld [vmem:[%s8292_s16 + $0x33c] ss:$56 sps:$4 sm:$0xff]  }
 0x160   : > { %v6505_v27 = vadd.f32 %v6504_v24, %v6503_v21  ;;  %v6616_v31 = vpop.f32.mrf.mxu1  ;;  %3567 = vmatprep.subr.bf16.mxu0 %v8117_v54 }
 0x161   : > { %v6617_v32 = vadd.f32 %v6616_v31, %v6615_v22  ;;  %v6506_v33 = vpop.f32.mrf.mxu0 }
 0x162   : > { %v6618_v35 = vpop.f32.mrf.mxu1 }
 0x163   : > { %v8733_v40 = vadd.f32 %v6617_v32, %v6505_v27  ;;  %v6507_v42 = vpop.f32.mrf.mxu0  ;;  %3568 = vmatpush2.bf16.msra.mxu0 %v7819_v25  ;;  %v7779_v32 = vld [vmem:[%s8292_s16 + $0x330] ss:$56 sps:$4 sm:$0xff]  }
 0x164   : > { %v6508_v47 = vadd.f32 %v6507_v42, %v6506_v33  ;;  %v6619_v48 = vpop.f32.mrf.mxu1  ;;  %3569 = vmatprep.subr.bf16.mxu0 %v8117_v54  ;;  %v7791_v42 = vld [vmem:[%s8292_s16 + $0x3ac] ss:$56 sps:$4 sm:$0xff]  }
 0x165   : > { %v6620_v50 = vadd.f32 %v6619_v48, %v6618_v35  ;;  %v6509_v51 = vpop.f32.mrf.mxu0  ;;  %3292 = vmatmul.mubr.bf16.gmra.mxu0 %v7766_v34  ;;  %v7783_v34 = vld [vmem:[%s8292_s16 + $0x338] ss:$56 sps:$4 sm:$0xff]   ;;  %v7788_v35 = vld [vmem:[%s8292_s16 + $0x3a4] ss:$56 sps:$4 sm:$0xff]  }
 0x166   : > { %v6621_v52 = vpop.f32.mrf.mxu1  ;;  %3453 = vmatmul.mubr.bf16.gmra.mxu1 %v7769_v37  ;;  %3299 = vmatprep.mubr.bf16.mxu0 %v7775_v39 }
 0x167   : > { %v8740_v56 = vadd.f32 %v6620_v50, %v6508_v47  ;;  %v6510_v57 = vpop.f32.mrf.mxu0  ;;  %3460 = vmatprep.mubr.bf16.mxu1 %v7778_v43  ;;  %3570 = vmatpush2.bf16.msra.mxu0 %v7826_v46 }
 0x168   : > { %v6511_v61 = vadd.f32 %v6510_v57, %v6509_v51  ;;  %v6622_v62 = vpop.f32.mrf.mxu1  ;;  %3571 = vmatprep.subr.bf16.mxu0 %v8117_v54 }
 0x169   : > { %v6623_v0 = vadd.f32 %v6622_v62, %v6621_v52  ;;  %v6512_v1 = vpop.f32.mrf.mxu0 }
 0x16a   : > { %v6624_v4 = vpop.f32.mrf.mxu1 }
 0x16b   : > { %v8749_v8 = vadd.f32 %v6623_v0, %v6511_v61  ;;  %v6513_v11 = vpop.f32.mrf.mxu0  ;;  %3572 = vmatpush2.bf16.msra.mxu0 %v7836_v60  ;;  %v7786_v0 = vld [vmem:[%s8292_s16 + $0x3a0] ss:$56 sps:$4 sm:$0xff]  }
 0x16c   : > { %v6514_v13 = vadd.f32 %v6513_v11, %v6512_v1  ;;  %v6625_v14 = vpop.f32.mrf.mxu1  ;;  %v7798_v11 = vld [vmem:[%s8292_s16 + $0x41c] ss:$56 sps:$4 sm:$0xff]  }
 0x16d   : > { %v6626_v19 = vadd.f32 %v6625_v14, %v6624_v4  ;;  %v6515_v20 = vpop.f32.mrf.mxu0  ;;  %3300 = vmatmul.mubr.bf16.gmra.mxu0 %v7773_v3  ;;  %v7789_v3 = vld [vmem:[%s8292_s16 + $0x3a8] ss:$56 sps:$4 sm:$0xff]   ;;  %v7795_v4 = vld [vmem:[%s8292_s16 + $0x414] ss:$56 sps:$4 sm:$0xff]  }
 0x16e   : > { %v6627_v54 = vpop.f32.mrf.mxu1  ;;  %3461 = vmatmul.mubr.bf16.gmra.mxu1 %v7776_v5  ;;  %3307 = vmatprep.mubr.bf16.mxu0 %v7781_v7 }
 0x16f   : > { %v8752_v21 = vadd.f32 %v6626_v19, %v6514_v13  ;;  %v6516_v22 = vpop.f32.mrf.mxu0  ;;  %3468 = vmatprep.mubr.bf16.mxu1 %v7785_v12 }
 0x170   : > { %v6517_v24 = vadd.f32 %v6516_v22, %v6515_v20  ;;  %v6628_v25 = vpop.f32.mrf.mxu1 }
 0x171   : > { %v6629_v27 = vadd.f32 %v6628_v25, %v6627_v54  ;;  %v6518_v31 = vpop.f32.mrf.mxu0 }
 0x172   : > { %v6630_v33 = vpop.f32.mrf.mxu1 }
 0x173   : > { %v8757_v37 = vadd.f32 %v6629_v27, %v6517_v24  ;;  %v6519_v39 = vpop.f32.mrf.mxu0 }
 0x174   : > { %v6520_v43 = vadd.f32 %v6519_v39, %v6518_v31  ;;  %v6631_v46 = vpop.f32.mrf.mxu1  ;;  %v7802_v39 = vld [vmem:[%s8292_s16 + $0x484] ss:$56 sps:$4 sm:$0xff]  }
 0x175   : > { %v6632_v47 = vadd.f32 %v6631_v46, %v6630_v33  ;;  %v6521_v48 = vpop.f32.mrf.mxu0  ;;  %3308 = vmatmul.mubr.bf16.gmra.mxu0 %v7779_v32  ;;  %v7793_v32 = vld [vmem:[%s8292_s16 + $0x410] ss:$56 sps:$4 sm:$0xff]  }
 0x176   : > { %v6633_v50 = vpop.f32.mrf.mxu1  ;;  %3469 = vmatmul.mubr.bf16.gmra.mxu1 %v7783_v34  ;;  %3315 = vmatprep.mubr.bf16.mxu0 %v7788_v35  ;;  %v7796_v35 = vld [vmem:[%s8292_s16 + $0x418] ss:$56 sps:$4 sm:$0xff]  }
 0x177   : > { %v8760_v51 = vadd.f32 %v6632_v47, %v6520_v43  ;;  %v6522_v52 = vpop.f32.mrf.mxu0  ;;  %3476 = vmatprep.mubr.bf16.mxu1 %v7791_v42  ;;  %v7805_v43 = vld [vmem:[%s8292_s16 + $0x48c] ss:$56 sps:$4 sm:$0xff]  }
 0x178   : > { %v6523_v57 = vadd.f32 %v6522_v52, %v6521_v48  ;;  %v6634_v60 = vpop.f32.mrf.mxu1 }
 0x179   : > { %v6635_v61 = vadd.f32 %v6634_v60, %v6633_v50  ;;  %v6524_v62 = vpop.f32.mrf.mxu0 }
 0x17a   : > { %v6636_v1 = vpop.f32.mrf.mxu1 }
 0x17b   : > { %v8765_v5 = vadd.f32 %v6635_v61, %v6523_v57  ;;  %v6525_v7 = vpop.f32.mrf.mxu0 }
 0x17c   : > { %v6526_v12 = vadd.f32 %v6525_v7, %v6524_v62  ;;  %v6637_v13 = vpop.f32.mrf.mxu1 }
 0x17d   : > { %v6638_v14 = vadd.f32 %v6637_v13, %v6636_v1  ;;  %v6655_v19 = vpop.f32.mrf.mxu0  ;;  %3316 = vmatmul.mubr.bf16.gmra.mxu0 %v7786_v0  ;;  %v7808_v13 = vld [vmem:[%s8292_s16 + $0x4f4] ss:$56 sps:$4 sm:$0xff]  }
 0x17e   : > { %v6767_v20 = vpop.f32.mrf.mxu1  ;;  %3477 = vmatmul.mubr.bf16.gmra.mxu1 %v7789_v3  ;;  %3323 = vmatprep.mubr.bf16.mxu0 %v7795_v4  ;;  %v7800_v4 = vld [vmem:[%s8292_s16 + $0x480] ss:$56 sps:$4 sm:$0xff]  }
 0x17f   : > { %v8768_v54 = vadd.f32 %v6638_v14, %v6526_v12  ;;  %v6656_v22 = vpop.f32.mrf.mxu0  ;;  %3484 = vmatprep.mubr.bf16.mxu1 %v7798_v11  ;;  %v7803_v12 = vld [vmem:[%s8292_s16 + $0x488] ss:$56 sps:$4 sm:$0xff]  }
 0x180   : > { %v6657_v24 = vadd.f32 %v6656_v22, %v6655_v19  ;;  %v6768_v25 = vpop.f32.mrf.mxu1 }
 0x181   : > { %v6658_v27 = vpop.f32.mrf.mxu0  ;;  %v6769_v31 = vadd.f32 %v6768_v25, %v6767_v20 }
 0x182   : > { %v2932_v33 = vadd.f32 %v6657_v24, %v8598_v18  ;;  %v6770_v34 = vpop.f32.mrf.mxu1 }
 0x183   : > { %v6659_v42 = vpop.f32.mrf.mxu0 }
 0x184   : > { %v8775_v46 = vadd.f32 %v6769_v31, %v2932_v33  ;;  %v6660_v47 = vadd.f32 %v6659_v42, %v6658_v27  ;;  %v6771_v48 = vpop.f32.mrf.mxu1  ;;  %v7806_v42 = vld [vmem:[%s8292_s16 + $0x4f0] ss:$56 sps:$4 sm:$0xff]  }
 0x185   : > { %v6661_v50 = vpop.f32.mrf.mxu0  ;;  %v6772_v52 = vadd.f32 %v6771_v48, %v6770_v34  ;;  %3324 = vmatmul.mubr.bf16.gmra.mxu0 %v7793_v32  ;;  %v7810_v48 = vld [vmem:[%s8292_s16 + $0x4f8] ss:$56 sps:$4 sm:$0xff]  }
 0x186   : > { %v2935_v57 = vadd.f32 %v6660_v47, %v8601_v26  ;;  %v6773_v60 = vpop.f32.mrf.mxu1  ;;  %3485 = vmatmul.mubr.bf16.gmra.mxu1 %v7796_v35  ;;  %3331 = vmatprep.mubr.bf16.mxu0 %v7802_v39  ;;  %v7812_v26 = vld [vmem:[%s8292_s16 + $0x4fc] ss:$56 sps:$4 sm:$0xff]  }
 0x187   : > { %v6662_v18 = vpop.f32.mrf.mxu0  ;;  %3492 = vmatprep.mubr.bf16.mxu1 %v7805_v43 }
 0x188   : > { %v8778_v61 = vadd.f32 %v6772_v52, %v2935_v57  ;;  %v6663_v62 = vadd.f32 %v6662_v18, %v6661_v50  ;;  %v6774_v0 = vpop.f32.mrf.mxu1  ;;  %v7815_v50 = vld [vmem:[%s8292_s16 + $0x564] ss:$56 sps:$4 sm:$0xff]  }
 0x189   : > { %v6664_v1 = vpop.f32.mrf.mxu0  ;;  %v6775_v3 = vadd.f32 %v6774_v0, %v6773_v60 }
 0x18a   : > { %v2940_v7 = vadd.f32 %v6663_v62, %v8606_v36  ;;  %v6776_v11 = vpop.f32.mrf.mxu1 }
 0x18b   : > { %v6665_v14 = vpop.f32.mrf.mxu0 }
 0x18c   : > { %v8785_v19 = vadd.f32 %v6775_v3, %v2940_v7  ;;  %v6666_v20 = vadd.f32 %v6665_v14, %v6664_v1  ;;  %v6777_v22 = vpop.f32.mrf.mxu1  ;;  %v7813_v14 = vld [vmem:[%s8292_s16 + $0x560] ss:$56 sps:$4 sm:$0xff]  }
 0x18d   : > { %v6667_v24 = vpop.f32.mrf.mxu0  ;;  %v6778_v25 = vadd.f32 %v6777_v22, %v6776_v11  ;;  %3332 = vmatmul.mubr.bf16.gmra.mxu0 %v7800_v4  ;;  %v7816_v22 = vld [vmem:[%s8292_s16 + $0x568] ss:$56 sps:$4 sm:$0xff]  }
 0x18e   : > { %v2943_v27 = vadd.f32 %v6666_v20, %v8609_v44  ;;  %v6779_v31 = vpop.f32.mrf.mxu1  ;;  %3493 = vmatmul.mubr.bf16.gmra.mxu1 %v7803_v12  ;;  %3339 = vmatprep.mubr.bf16.mxu0 %v7808_v13  ;;  %v7818_v44 = vld [vmem:[%s8292_s16 + $0x56c] ss:$56 sps:$4 sm:$0xff]  }
 0x18f   : > { %v6668_v36 = vpop.f32.mrf.mxu0  ;;  %3500 = vmatprep.mubr.bf16.mxu1 %v7812_v26 }
 0x190   : > { %v8788_v32 = vadd.f32 %v6778_v25, %v2943_v27  ;;  %v6669_v33 = vadd.f32 %v6668_v36, %v6667_v24  ;;  %v6780_v34 = vpop.f32.mrf.mxu1  ;;  %v7822_v24 = vld [vmem:[%s8292_s16 + $0x5d4] ss:$56 sps:$4 sm:$0xff]  }
 0x191   : > { %v6670_v35 = vpop.f32.mrf.mxu0  ;;  %v6781_v39 = vadd.f32 %v6780_v34, %v6779_v31 }
 0x192   : > { %v2948_v43 = vadd.f32 %v6669_v33, %v8614_v55  ;;  %v6782_v47 = vpop.f32.mrf.mxu1 }
 0x193   : > { %v6671_v52 = vpop.f32.mrf.mxu0 }
 0x194   : > { %v8795_v57 = vadd.f32 %v6781_v39, %v2948_v43  ;;  %v6672_v60 = vadd.f32 %v6671_v52, %v6670_v35  ;;  %v6783_v18 = vpop.f32.mrf.mxu1  ;;  %v7820_v52 = vld [vmem:[%s8292_s16 + $0x5d0] ss:$56 sps:$4 sm:$0xff]  }
 0x195   : > { %v6673_v62 = vpop.f32.mrf.mxu0  ;;  %v6784_v0 = vadd.f32 %v6783_v18, %v6782_v47  ;;  %3340 = vmatmul.mubr.bf16.gmra.mxu0 %v7806_v42  ;;  %v7823_v18 = vld [vmem:[%s8292_s16 + $0x5d8] ss:$56 sps:$4 sm:$0xff]  }
 0x196   : > { %v2951_v1 = vadd.f32 %v6672_v60, %v8617_v63  ;;  %v6785_v3 = vpop.f32.mrf.mxu1  ;;  %3501 = vmatmul.mubr.bf16.gmra.mxu1 %v7810_v48  ;;  %3347 = vmatprep.mubr.bf16.mxu0 %v7815_v50  ;;  %v7825_v63 = vld [vmem:[%s8292_s16 + $0x5dc] ss:$56 sps:$4 sm:$0xff]  }
 0x197   : > { %v6674_v55 = vpop.f32.mrf.mxu0  ;;  %3508 = vmatprep.mubr.bf16.mxu1 %v7818_v44 }
 0x198   : > { %v8798_v4 = vadd.f32 %v6784_v0, %v2951_v1  ;;  %v6675_v7 = vadd.f32 %v6674_v55, %v6673_v62  ;;  %v6786_v11 = vpop.f32.mrf.mxu1  ;;  %v7829_v62 = vld [vmem:[%s8292_s16 + $0x644] ss:$56 sps:$4 sm:$0xff]  }
 0x199   : > { %v6676_v12 = vpop.f32.mrf.mxu0  ;;  %v6787_v13 = vadd.f32 %v6786_v11, %v6785_v3 }
 0x19a   : > { %v2956_v26 = vadd.f32 %v6675_v7, %v8622_v9  ;;  %v6788_v20 = vpop.f32.mrf.mxu1 }
 0x19b   : > { %v6677_v25 = vpop.f32.mrf.mxu0 }
 0x19c   : > { %v8805_v27 = vadd.f32 %v6787_v13, %v2956_v26  ;;  %v6678_v31 = vadd.f32 %v6677_v25, %v6676_v12  ;;  %v6789_v36 = vpop.f32.mrf.mxu1  ;;  %v7827_v25 = vld [vmem:[%s8292_s16 + $0x640] ss:$56 sps:$4 sm:$0xff]  }
 0x19d   : > { %v6679_v33 = vpop.f32.mrf.mxu0  ;;  %v6790_v34 = vadd.f32 %v6789_v36, %v6788_v20  ;;  %3348 = vmatmul.mubr.bf16.gmra.mxu0 %v7813_v14  ;;  %v7830_v36 = vld [vmem:[%s8292_s16 + $0x648] ss:$56 sps:$4 sm:$0xff]  }
 0x19e   : > { %v2959_v35 = vadd.f32 %v6678_v31, %v8625_v17  ;;  %v6791_v39 = vpop.f32.mrf.mxu1  ;;  %3509 = vmatmul.mubr.bf16.gmra.mxu1 %v7816_v22  ;;  %3355 = vmatprep.mubr.bf16.mxu0 %v7822_v24  ;;  %v7832_v17 = vld [vmem:[%s8292_s16 + $0x64c] ss:$56 sps:$4 sm:$0xff]  }
 0x19f   : > { %v6680_v9 = vpop.f32.mrf.mxu0  ;;  %3516 = vmatprep.mubr.bf16.mxu1 %v7825_v63 }
 0x1a0   : > { %v8808_v42 = vadd.f32 %v6790_v34, %v2959_v35  ;;  %v6681_v43 = vadd.f32 %v6680_v9, %v6679_v33  ;;  %v6792_v47 = vpop.f32.mrf.mxu1  ;;  %v7835_v33 = vld [vmem:[%s8292_s16 + $0x6b4] ss:$56 sps:$4 sm:$0xff]  }
 0x1a1   : > { %v6682_v48 = vpop.f32.mrf.mxu0  ;;  %v6793_v50 = vadd.f32 %v6792_v47, %v6791_v39 }
 0x1a2   : > { %v2964_v44 = vadd.f32 %v6681_v43, %v8630_v29  ;;  %v6794_v60 = vpop.f32.mrf.mxu1 }
 0x1a3   : > { %v6683_v0 = vpop.f32.mrf.mxu0 }
 0x1a4   : > { %v8815_v1 = vadd.f32 %v6793_v50, %v2964_v44  ;;  %v6684_v3 = vadd.f32 %v6683_v0, %v6682_v48  ;;  %v6795_v55 = vpop.f32.mrf.mxu1  ;;  %v7833_v0 = vld [vmem:[%s8292_s16 + $0x6b0] ss:$56 sps:$4 sm:$0xff]  }
 0x1a5   : > { %v6685_v7 = vpop.f32.mrf.mxu0  ;;  %v6796_v11 = vadd.f32 %v6795_v55, %v6794_v60  ;;  %3356 = vmatmul.mubr.bf16.gmra.mxu0 %v7820_v52  ;;  %v7837_v55 = vld [vmem:[%s8292_s16 + $0x6b8] ss:$56 sps:$4 sm:$0xff]  }
 0x1a6   : > { %v2967_v12 = vadd.f32 %v6684_v3, %v8633_v38  ;;  %v6797_v13 = vpop.f32.mrf.mxu1  ;;  %3517 = vmatmul.mubr.bf16.gmra.mxu1 %v7823_v18  ;;  %3363 = vmatprep.mubr.bf16.mxu0 %v7829_v62  ;;  %v7839_v38 = vld [vmem:[%s8292_s16 + $0x6bc] ss:$56 sps:$4 sm:$0xff]  }
 0x1a7   : > { %v6686_v29 = vpop.f32.mrf.mxu0  ;;  %3524 = vmatprep.mubr.bf16.mxu1 %v7832_v17 }
 0x1a8   : > { %v8818_v14 = vadd.f32 %v6796_v11, %v2967_v12  ;;  %v6687_v26 = vadd.f32 %v6686_v29, %v6685_v7  ;;  %v6798_v20 = vpop.f32.mrf.mxu1  ;;  %v7842_v7 = vld [vmem:[%s8292_s16 + $0x34] ss:$56 sps:$4 sm:$0xff]  }
 0x1a9   : > { %v6688_v22 = vpop.f32.mrf.mxu0  ;;  %v6799_v24 = vadd.f32 %v6798_v20, %v6797_v13 }
 0x1aa   : > { %v2972_v63 = vadd.f32 %v6687_v26, %v8638_v49  ;;  %v6800_v31 = vpop.f32.mrf.mxu1 }
 0x1ab   : > { %v6689_v34 = vpop.f32.mrf.mxu0 }
 0x1ac   : > { %v8825_v35 = vadd.f32 %v6799_v24, %v2972_v63  ;;  %v6690_v39 = vadd.f32 %v6689_v34, %v6688_v22  ;;  %v6801_v9 = vpop.f32.mrf.mxu1 }
 0x1ad   : > { %v6691_v43 = vpop.f32.mrf.mxu0  ;;  %v6802_v47 = vadd.f32 %v6801_v9, %v6800_v31  ;;  %3364 = vmatmul.mubr.bf16.gmra.mxu0 %v7827_v25 }
 0x1ae   : > { %v2975_v48 = vadd.f32 %v6690_v39, %v8641_v59  ;;  %v6803_v50 = vpop.f32.mrf.mxu1  ;;  %3525 = vmatmul.mubr.bf16.gmra.mxu1 %v7830_v36  ;;  %3371 = vmatprep.mubr.bf16.mxu0 %v7835_v33  ;;  %v7840_v33 = vld [vmem:[%s8292_s16 + $0x30] ss:$56 sps:$4 sm:$0xff]   ;;  %v7843_v39 = vld [vmem:[%s8292_s16 + $0xa4] ss:$56 sps:$4 sm:$0xff]  }
 0x1af   : > { %v6692_v49 = vpop.f32.mrf.mxu0  ;;  %3532 = vmatprep.mubr.bf16.mxu1 %v7839_v38 }
 0x1b0   : > { %v8828_v52 = vadd.f32 %v6802_v47, %v2975_v48  ;;  %v6693_v44 = vadd.f32 %v6692_v49, %v6691_v43  ;;  %v6804_v60 = vpop.f32.mrf.mxu1 }
 0x1b1   : > { %v6694_v18 = vpop.f32.mrf.mxu0  ;;  %v6805_v62 = vadd.f32 %v6804_v60, %v6803_v50 }
 0x1b2   : > { %v2980_v17 = vadd.f32 %v6693_v44, %v8646_v6  ;;  %v6806_v3 = vpop.f32.mrf.mxu1 }
 0x1b3   : > { %v6695_v11 = vpop.f32.mrf.mxu0 }
 0x1b4   : > { %v8834_v59 = vadd.f32 %v6805_v62, %v2980_v17  ;;  %v6696_v12 = vadd.f32 %v6695_v11, %v6694_v18  ;;  %v6807_v13 = vpop.f32.mrf.mxu1  ;;  %v7846_v11 = vld [vmem:[%s8292_s16 + $0x114] ss:$56 sps:$4 sm:$0xff]  }
 0x1b5   : > { %v6697_v29 = vpop.f32.mrf.mxu0  ;;  %v6808_v26 = vadd.f32 %v6807_v13, %v6806_v3  ;;  %3372 = vmatmul.mubr.bf16.gmra.mxu0 %v7833_v0  ;;  %v7845_v3 = vld [vmem:[%s8292_s16 + $0xa0] ss:$56 sps:$4 sm:$0xff]  }
 0x1b6   : > { %v2983_v20 = vadd.f32 %v6696_v12, %v8649_v15  ;;  %v6809_v22 = vpop.f32.mrf.mxu1  ;;  %3533 = vmatmul.mubr.bf16.gmra.mxu1 %v7837_v55  ;;  %6342 = vmatprep.mubr.msk.bf16.mxu0 %vm2526_vm0, %v7842_v7 }
 0x1b7   : > { %v6698_v6 = vpop.f32.mrf.mxu0 }
 0x1b8   : > { %v8838_v24 = vadd.f32 %v6808_v26, %v2983_v20  ;;  %v6699_v25 = vadd.f32 %v6698_v6, %v6697_v29  ;;  %v6810_v63 = vpop.f32.mrf.mxu1 }
 0x1b9   : > { %v6700_v31 = vpop.f32.mrf.mxu0  ;;  %v6811_v36 = vadd.f32 %v6810_v63, %v6809_v22 }
 0x1ba   : > { %v2988_v34 = vadd.f32 %v6699_v25, %v8656_v28  ;;  %v6812_v38 = vpop.f32.mrf.mxu1 }
 0x1bb   : > { %v6701_v9 = vpop.f32.mrf.mxu0 }
 0x1bc   : > { %v8843_v43 = vadd.f32 %v6811_v36, %v2988_v34  ;;  %v6702_v15 = vadd.f32 %v6701_v9, %v6700_v31  ;;  %v6813_v47 = vpop.f32.mrf.mxu1  ;;  %v7848_v34 = vld [vmem:[%s8292_s16 + $0x110] ss:$56 sps:$4 sm:$0xff]   ;;  %v7849_v9 = vld [vmem:[%s8292_s16 + $0x184] ss:$56 sps:$4 sm:$0xff]  }
 0x1bd   : > { %v6703_v48 = vpop.f32.mrf.mxu0  ;;  %v6814_v50 = vadd.f32 %v6813_v47, %v6812_v38  ;;  %3574 = vmatmul.mubr.bf16.vlgmr.msra.gmra.mxu0 %v7840_v33 }
 0x1be   : > { %v2991_v49 = vadd.f32 %v6702_v15, %v8663_v41  ;;  %v6815_v44 = vpop.f32.mrf.mxu1  ;;  %6343 = vmatprep.mubr.msk.bf16.mxu0 %vm2526_vm0, %v7843_v39 }
 0x1bf   : > { %v6704_v60 = vpop.f32.mrf.mxu0 }
 0x1c0   : > { %v8847_v18 = vadd.f32 %v6814_v50, %v2991_v49  ;;  %v6705_v28 = vadd.f32 %v6704_v60, %v6703_v48  ;;  %v6816_v62 = vpop.f32.mrf.mxu1 }
 0x1c1   : > { %v6706_v0 = vpop.f32.mrf.mxu0  ;;  %v6817_v17 = vadd.f32 %v6816_v62, %v6815_v44 }
 0x1c2   : > { %v2996_v55 = vadd.f32 %v6705_v28, %v8669_v53  ;;  %v6818_v7 = vpop.f32.mrf.mxu1 }
 0x1c3   : > { %v6707_v12 = vpop.f32.mrf.mxu0 }
 0x1c4   : > { %v8852_v13 = vadd.f32 %v6817_v17, %v2996_v55  ;;  %v6708_v41 = vadd.f32 %v6707_v12, %v6706_v0  ;;  %v6819_v29 = vpop.f32.mrf.mxu1  ;;  %v7852_v12 = vld [vmem:[%s8292_s16 + $0x1f4] ss:$56 sps:$4 sm:$0xff]  }
 0x1c5   : > { %v6709_v26 = vpop.f32.mrf.mxu0  ;;  %v6820_v20 = vadd.f32 %v6819_v29, %v6818_v7  ;;  %3582 = vmatmul.mubr.bf16.gmra.mxu0 %v7845_v3  ;;  %v7851_v7 = vld [vmem:[%s8292_s16 + $0x180] ss:$56 sps:$4 sm:$0xff]  }
 0x1c6   : > { %v2999_v22 = vadd.f32 %v6708_v41, %v8676_v2  ;;  %v6821_v6 = vpop.f32.mrf.mxu1  ;;  %6344 = vmatprep.mubr.msk.bf16.mxu0 %vm2526_vm0, %v7846_v11 }
 0x1c7   : > { %v6710_v25 = vpop.f32.mrf.mxu0 }
 0x1c8   : > { %v8856_v63 = vadd.f32 %v6820_v20, %v2999_v22  ;;  %v6711_v53 = vadd.f32 %v6710_v25, %v6709_v26  ;;  %v6822_v31 = vpop.f32.mrf.mxu1 }
 0x1c9   : > { %v6712_v36 = vpop.f32.mrf.mxu0  ;;  %v6823_v33 = vadd.f32 %v6822_v31, %v6821_v6 }
 0x1ca   : > { %v3004_v38 = vadd.f32 %v6711_v53, %v8685_v16  ;;  %v6824_v39 = vpop.f32.mrf.mxu1  ;;  %v7888_v16 = vld [vmem:[%s10922_s4] sm:$0xff]  }
 0x1cb   : > { %v6713_v15 = vpop.f32.mrf.mxu0  ;;  %7335 = vmatprep.subr.bf16.mxu1 %v7888_v16 }
 0x1cc   : > { %v8861_v47 = vadd.f32 %v6823_v33, %v3004_v38  ;;  %v6714_v48 = vadd.f32 %v6713_v15, %v6712_v36  ;;  %v6825_v2 = vpop.f32.mrf.mxu1  ;;  %7336 = vmatpush3.bf16.msra.mxu1 %v7888_v16 }
 0x1cd   : > { %v6715_v50 = vpop.f32.mrf.mxu0  ;;  %v6826_v49 = vadd.f32 %v6825_v2, %v6824_v39  ;;  %3590 = vmatmul.mubr.bf16.gmra.mxu0 %v7848_v34  ;;  %v7854_v39 = vld [vmem:[%s8292_s16 + $0x1f0] ss:$56 sps:$4 sm:$0xff]  }
 0x1ce   : > { %v3007_v44 = vadd.f32 %v6714_v48, %v8692_v30  ;;  %v6827_v60 = vpop.f32.mrf.mxu1  ;;  %6345 = vmatprep.mubr.msk.bf16.mxu0 %vm2526_vm0, %v7849_v9  ;;  %v7855_v48 = vld [vmem:[%s8292_s16 + $0x264] ss:$56 sps:$4 sm:$0xff]  }
 0x1cf   : > { %v6716_v28 = vpop.f32.mrf.mxu0 }
 0x1d0   : > { %v8868_v62 = vadd.f32 %v6826_v49, %v3007_v44  ;;  %v6717_v0 = vadd.f32 %v6716_v28, %v6715_v50  ;;  %v6828_v17 = vpop.f32.mrf.mxu1 }
 0x1d1   : > { %v6718_v3 = vpop.f32.mrf.mxu0  ;;  %v6829_v55 = vadd.f32 %v6828_v17, %v6827_v60 }
 0x1d2   : > { %v3012_v11 = vadd.f32 %v6717_v0, %v8701_v45  ;;  %v6830_v30 = vpop.f32.mrf.mxu1 }
 0x1d3   : > { %v6719_v41 = vpop.f32.mrf.mxu0 }
 0x1d4   : > { %v8873_v29 = vadd.f32 %v6829_v55, %v3012_v11  ;;  %v6720_v26 = vadd.f32 %v6719_v41, %v6718_v3  ;;  %v6831_v20 = vpop.f32.mrf.mxu1  ;;  %v7857_v11 = vld [vmem:[%s8292_s16 + $0x260] ss:$56 sps:$4 sm:$0xff]   ;;  %v7858_v41 = vld [vmem:[%s8292_s16 + $0x2d4] ss:$56 sps:$4 sm:$0xff]  }
 0x1d5   : > { %v6721_v22 = vpop.f32.mrf.mxu0  ;;  %v6832_v6 = vadd.f32 %v6831_v20, %v6830_v30  ;;  %3598 = vmatmul.mubr.bf16.gmra.mxu0 %v7851_v7 }
 0x1d6   : > { %v3015_v25 = vadd.f32 %v6720_v26, %v8708_v58  ;;  %v6833_v53 = vpop.f32.mrf.mxu1  ;;  %6346 = vmatprep.mubr.msk.bf16.mxu0 %vm2526_vm0, %v7852_v12 }
 0x1d7   : > { %v6722_v31 = vpop.f32.mrf.mxu0 }
 0x1d8   : > { %v8877_v36 = vadd.f32 %v6832_v6, %v3015_v25  ;;  %v6723_v45 = vadd.f32 %v6722_v31, %v6721_v22  ;;  %v6834_v33 = vpop.f32.mrf.mxu1 }
 0x1d9   : > { %v6724_v34 = vpop.f32.mrf.mxu0  ;;  %v6835_v38 = vadd.f32 %v6834_v33, %v6833_v53 }
 0x1da   : > { %v3020_v9 = vadd.f32 %v6723_v45, %v8717_v10  ;;  %v6836_v15 = vpop.f32.mrf.mxu1 }
 0x1db   : > { %v6725_v2 = vpop.f32.mrf.mxu0 }
 0x1dc   : > { %v8882_v50 = vadd.f32 %v6835_v38, %v3020_v9  ;;  %v6726_v58 = vadd.f32 %v6725_v2, %v6724_v34  ;;  %v6837_v49 = vpop.f32.mrf.mxu1  ;;  %v7860_v9 = vld [vmem:[%s8292_s16 + $0x2d0] ss:$56 sps:$4 sm:$0xff]   ;;  %v7861_v2 = vld [vmem:[%s8292_s16 + $0x344] ss:$56 sps:$4 sm:$0xff]  }
 0x1dd   : > { %v6727_v44 = vpop.f32.mrf.mxu0  ;;  %v6838_v60 = vadd.f32 %v6837_v49, %v6836_v15  ;;  %3606 = vmatmul.mubr.bf16.gmra.mxu0 %v7854_v39 }
 0x1de   : > { %v3023_v16 = vadd.f32 %v6726_v58, %v8724_v23  ;;  %v6839_v28 = vpop.f32.mrf.mxu1  ;;  %6347 = vmatprep.mubr.msk.bf16.mxu0 %vm2526_vm0, %v7855_v48 }
 0x1df   : > { %v6728_v0 = vpop.f32.mrf.mxu0 }
 0x1e0   : > { %v8886_v17 = vadd.f32 %v6838_v60, %v3023_v16  ;;  %v6729_v10 = vadd.f32 %v6728_v0, %v6727_v44  ;;  %v6840_v3 = vpop.f32.mrf.mxu1 }
 0x1e1   : > { %v6730_v55 = vpop.f32.mrf.mxu0  ;;  %v6841_v7 = vadd.f32 %v6840_v3, %v6839_v28 }
 0x1e2   : > { %v3028_v30 = vadd.f32 %v6729_v10, %v8733_v40  ;;  %v6842_v12 = vpop.f32.mrf.mxu1 }
 0x1e3   : > { %v6731_v26 = vpop.f32.mrf.mxu0 }
 0x1e4   : > { %v8891_v20 = vadd.f32 %v6841_v7, %v3028_v30  ;;  %v6732_v23 = vadd.f32 %v6731_v26, %v6730_v55  ;;  %v6843_v22 = vpop.f32.mrf.mxu1  ;;  %v7863_v30 = vld [vmem:[%s8292_s16 + $0x340] ss:$56 sps:$4 sm:$0xff]   ;;  %v7864_v26 = vld [vmem:[%s8292_s16 + $0x3b4] ss:$56 sps:$4 sm:$0xff]  }
 0x1e5   : > { %v6733_v6 = vpop.f32.mrf.mxu0  ;;  %v6844_v25 = vadd.f32 %v6843_v22, %v6842_v12  ;;  %3614 = vmatmul.mubr.bf16.gmra.mxu0 %v7857_v11 }
 0x1e6   : > { %v3031_v53 = vadd.f32 %v6732_v23, %v8740_v56  ;;  %v6845_v31 = vpop.f32.mrf.mxu1  ;;  %6348 = vmatprep.mubr.msk.bf16.mxu0 %vm2526_vm0, %v7858_v41 }
 0x1e7   : > { %v6734_v45 = vpop.f32.mrf.mxu0 }
 0x1e8   : > { %v8895_v33 = vadd.f32 %v6844_v25, %v3031_v53  ;;  %v6735_v40 = vadd.f32 %v6734_v45, %v6733_v6  ;;  %v6846_v34 = vpop.f32.mrf.mxu1 }
 0x1e9   : > { %v6736_v38 = vpop.f32.mrf.mxu0  ;;  %v6847_v39 = vadd.f32 %v6846_v34, %v6845_v31 }
 0x1ea   : > { %v3036_v15 = vadd.f32 %v6735_v40, %v8749_v8  ;;  %v6848_v48 = vpop.f32.mrf.mxu1 }
 0x1eb   : > { %v6737_v58 = vpop.f32.mrf.mxu0 }
 0x1ec   : > { %v8900_v49 = vadd.f32 %v6847_v39, %v3036_v15  ;;  %v6738_v56 = vadd.f32 %v6737_v58, %v6736_v38  ;;  %v6849_v44 = vpop.f32.mrf.mxu1  ;;  %v7866_v15 = vld [vmem:[%s8292_s16 + $0x3b0] ss:$56 sps:$4 sm:$0xff]   ;;  %v7867_v58 = vld [vmem:[%s8292_s16 + $0x424] ss:$56 sps:$4 sm:$0xff]  }
 0x1ed   : > { %v6739_v60 = vpop.f32.mrf.mxu0  ;;  %v6850_v16 = vadd.f32 %v6849_v44, %v6848_v48  ;;  %3622 = vmatmul.mubr.bf16.gmra.mxu0 %v7860_v9 }
 0x1ee   : > { %v3039_v28 = vadd.f32 %v6738_v56, %v8752_v21  ;;  %v6851_v0 = vpop.f32.mrf.mxu1  ;;  %6349 = vmatprep.mubr.msk.bf16.mxu0 %vm2526_vm0, %v7861_v2 }
 0x1ef   : > { %v6740_v10 = vpop.f32.mrf.mxu0 }
 0x1f0   : > { %v8904_v3 = vadd.f32 %v6850_v16, %v3039_v28  ;;  %v6741_v8 = vadd.f32 %v6740_v10, %v6739_v60  ;;  %v6852_v55 = vpop.f32.mrf.mxu1 }
 0x1f1   : > { %v6742_v7 = vpop.f32.mrf.mxu0  ;;  %v6853_v11 = vadd.f32 %v6852_v55, %v6851_v0 }
 0x1f2   : > { %v3044_v12 = vadd.f32 %v6741_v8, %v8757_v37  ;;  %v6854_v41 = vpop.f32.mrf.mxu1 }
 0x1f3   : > { %v6743_v23 = vpop.f32.mrf.mxu0 }
 0x1f4   : > { %v8909_v22 = vadd.f32 %v6853_v11, %v3044_v12  ;;  %v6744_v21 = vadd.f32 %v6743_v23, %v6742_v7  ;;  %v6855_v6 = vpop.f32.mrf.mxu1 }
 0x1f5   : > { %v6745_v25 = vpop.f32.mrf.mxu0  ;;  %v6856_v53 = vadd.f32 %v6855_v6, %v6854_v41  ;;  %3630 = vmatmul.mubr.bf16.gmra.mxu0 %v7863_v30  ;;  %v7869_v30 = vld [vmem:[%s8292_s16 + $0x420] ss:$56 sps:$4 sm:$0xff]  }
 0x1f6   : > { %v3047_v31 = vadd.f32 %v6744_v21, %v8760_v51  ;;  %v6857_v45 = vpop.f32.mrf.mxu1  ;;  %6350 = vmatprep.mubr.msk.bf16.mxu0 %vm2526_vm0, %v7864_v26 }
 0x1f7   : > { %v6746_v40 = vpop.f32.mrf.mxu0 }
 0x1f8   : > { %v8913_v34 = vadd.f32 %v6856_v53, %v3047_v31  ;;  %v6747_v37 = vadd.f32 %v6746_v40, %v6745_v25  ;;  %v6858_v38 = vpop.f32.mrf.mxu1 }
 0x1f9   : > { %v6748_v39 = vpop.f32.mrf.mxu0  ;;  %v6859_v9 = vadd.f32 %v6858_v38, %v6857_v45 }
 0x1fa   : > { %v3052_v48 = vadd.f32 %v6747_v37, %v8765_v5  ;;  %v6860_v2 = vpop.f32.mrf.mxu1  ;;  %v7872_v37 = vld [vmem:[%s8292_s16 + $0x490] ss:$56 sps:$4 sm:$0xff]  }
 0x1fb   : > { %v6749_v56 = vpop.f32.mrf.mxu0 }
 0x1fc   : > { %v8918_v44 = vadd.f32 %v6859_v9, %v3052_v48  ;;  %v6750_v51 = vadd.f32 %v6749_v56, %v6748_v39  ;;  %v6861_v60 = vpop.f32.mrf.mxu1  ;;  %v7873_v39 = vld [vmem:[%s8292_s16 + $0x504] ss:$56 sps:$4 sm:$0xff]  }
 0x1fd   : > { %v6862_v16 = vadd.f32 %v6861_v60, %v6860_v2  ;;  %v6879_v28 = vpop.f32.mrf.mxu0  ;;  %3638 = vmatmul.mubr.bf16.gmra.mxu0 %v7866_v15 }
 0x1fe   : > { %v3055_v0 = vadd.f32 %v6750_v51, %v8768_v54  ;;  %v8921_v10 = vpop.f32.mrf.mxu1  ;;  %6351 = vmatprep.mubr.msk.bf16.mxu0 %vm2526_vm0, %v7867_v58  ;;  %v7870_v54 = vld [vmem:[%s8292_s16 + $0x494] ss:$56 sps:$4 sm:$0xff]  }
 0x1ff   : > { %v6880_v8 = vpop.f32.mrf.mxu0 }
 0x200   : > { %v8924_v5 = vadd.f32 %v6862_v16, %v3055_v0  ;;  %v6881_v55 = vadd.f32 %v6880_v8, %v6879_v28  ;;  %v8926_v7 = vpop.f32.mrf.mxu1  ;;  %v7876_v28 = vld [vmem:[%s8292_s16 + $0x574] ss:$56 sps:$4 sm:$0xff]  }
 0x201   : > { %v6882_v11 = vpop.f32.mrf.mxu0 }
 0x202   : > { %v8930_v12 = vadd.f32 %v6881_v55, %v8775_v46  ;;  %v8932_v41 = vpop.f32.mrf.mxu1 }
 0x203   : > { %v6883_v26 = vpop.f32.mrf.mxu0 }
 0x204   : > { %v6884_v23 = vadd.f32 %v6883_v26, %v6882_v11  ;;  %v8935_v21 = vpop.f32.mrf.mxu1 }
 0x205   : > { %v6885_v6 = vpop.f32.mrf.mxu0  ;;  %3646 = vmatmul.mubr.bf16.gmra.mxu0 %v7869_v30 }
 0x206   : > { %v8938_v25 = vadd.f32 %v6884_v23, %v8778_v61  ;;  %v8940_v53 = vpop.f32.mrf.mxu1  ;;  %6352 = vmatprep.mubr.msk.bf16.mxu0 %vm2526_vm0, %v7870_v54 }
 0x207   : > { %v6886_v31 = vpop.f32.mrf.mxu0 }
 0x208   : > { %v6887_v46 = vadd.f32 %v6886_v31, %v6885_v6  ;;  %v8943_v40 = vpop.f32.mrf.mxu1  ;;  %v7879_v31 = vld [vmem:[%s8292_s16 + $0x5e4] ss:$56 sps:$4 sm:$0xff]  }
 0x209   : > { %v6888_v45 = vpop.f32.mrf.mxu0 }
 0x20a   : > { %v8947_v38 = vadd.f32 %v6887_v46, %v8785_v19  ;;  %v8950_v61 = vpop.f32.mrf.mxu1  ;;  %v7875_v19 = vld [vmem:[%s8292_s16 + $0x500] ss:$56 sps:$4 sm:$0xff]  }
 0x20b   : > { %v6889_v9 = vpop.f32.mrf.mxu0 }
 0x20c   : > { %v6890_v15 = vadd.f32 %v6889_v9, %v6888_v45  ;;  %v8956_v51 = vpop.f32.mrf.mxu1 }
 0x20d   : > { %v6891_v48 = vpop.f32.mrf.mxu0  ;;  %3654 = vmatmul.mubr.bf16.gmra.mxu0 %v7872_v37 }
 0x20e   : > { %v8953_v2 = vadd.f32 %v6890_v15, %v8788_v32  ;;  %6353 = vmatprep.mubr.msk.bf16.mxu0 %vm2526_vm0, %v7873_v39  ;;  %v8963_v55 = vpop.f32.mrf.mxu1 }
 0x20f   : > { %v6892_v58 = vpop.f32.mrf.mxu0 }
 0x210   : > { %v6893_v56 = vadd.f32 %v6892_v58, %v6891_v48  ;;  %v8969_v26 = vpop.f32.mrf.mxu1 }
 0x211   : > { %v6894_v60 = vpop.f32.mrf.mxu0 }
 0x212   : > { %v8960_v16 = vadd.f32 %v6893_v56, %v8795_v57  ;;  %v7878_v57 = vld [vmem:[%s8292_s16 + $0x570] ss:$56 sps:$4 sm:$0xff]   ;;  %v8976_v37 = vpop.f32.mrf.mxu1 }
 0x213   : > { %v6895_v0 = vpop.f32.mrf.mxu0 }
 0x214   : > { %v6896_v8 = vadd.f32 %v6895_v0, %v6894_v60  ;;  %v8982_v48 = vpop.f32.mrf.mxu1  ;;  %v7882_v60 = vld [vmem:[%s8292_s16 + $0x654] ss:$56 sps:$4 sm:$0xff]  }
 0x215   : > { %v6897_v32 = vpop.f32.mrf.mxu0  ;;  %3662 = vmatmul.mubr.bf16.gmra.mxu0 %v7875_v19 }
 0x216   : > { %v8966_v11 = vadd.f32 %v6896_v8, %v8798_v4  ;;  %6354 = vmatprep.mubr.msk.bf16.mxu0 %vm2526_vm0, %v7876_v28  ;;  %v8989_v0 = vpop.f32.mrf.mxu1 }
 0x217   : > { %v6898_v30 = vpop.f32.mrf.mxu0 }
 0x218   : > { %v6899_v54 = vadd.f32 %v6898_v30, %v6897_v32 }
 0x219   : > { %v6900_v23 = vpop.f32.mrf.mxu0 }
 0x21a   : > { %v8973_v6 = vadd.f32 %v6899_v54, %v8805_v27  ;;  %v7881_v27 = vld [vmem:[%s8292_s16 + $0x5e0] ss:$56 sps:$4 sm:$0xff]   ;;  %v8995_v54 = vpop.f32.mrf.mxu1 }
 0x21b   : > { %v6901_v46 = vpop.f32.mrf.mxu0 }
 0x21c   : > { %v6902_v45 = vadd.f32 %v6901_v46, %v6900_v23 }
 0x21d   : > { %v6903_v4 = vpop.f32.mrf.mxu0  ;;  %3670 = vmatmul.mubr.bf16.gmra.mxu0 %v7878_v57 }
 0x21e   : > { %v8979_v39 = vadd.f32 %v6902_v45, %v8808_v42  ;;  %6355 = vmatprep.mubr.msk.bf16.mxu0 %vm2526_vm0, %v7879_v31  ;;  %v7885_v31 = vld [vmem:[%s8292_s16 + $0x6c4] ss:$56 sps:$4 sm:$0xff]  }
 0x21f   : > { %v6904_v9 = vpop.f32.mrf.mxu0 }
 0x220   : > { %v6905_v15 = vadd.f32 %v6904_v9, %v6903_v4  ;;  %v9002_v4 = vpop.f32.mrf.mxu1 }
 0x221   : > { %v6906_v58 = vpop.f32.mrf.mxu0 }
 0x222   : > { %v8986_v56 = vadd.f32 %v6905_v15, %v8815_v1  ;;  %v7884_v1 = vld [vmem:[%s8292_s16 + $0x650] ss:$56 sps:$4 sm:$0xff]  }
 0x223   : > { %v6907_v19 = vpop.f32.mrf.mxu0 }
 0x224   : > { %v6908_v28 = vadd.f32 %v6907_v19, %v6906_v58  ;;  %v7887_v19 = vld [vmem:[%s8292_s16 + $0x6c0] ss:$56 sps:$4 sm:$0xff]  }
 0x225   : > { %v6909_v42 = vpop.f32.mrf.mxu0  ;;  %3678 = vmatmul.mubr.bf16.gmra.mxu0 %v7881_v27  ;;  %v9008_v27 = vpop.f32.mrf.mxu1 }
 0x226   : > { %v8992_v8 = vadd.f32 %v6908_v28, %v8818_v14  ;;  %6356 = vmatprep.mubr.msk.bf16.mxu0 %vm2526_vm0, %v7882_v60 }
 0x227   : > { %v6910_v32 = vpop.f32.mrf.mxu0 }
 0x228   : > { %v6911_v30 = vadd.f32 %v6910_v32, %v6909_v42  ;;  %v9014_v32 = vpop.f32.mrf.mxu1 }
 0x229   : > { %v6912_v23 = vpop.f32.mrf.mxu0 }
 0x22a   : > { %v8999_v57 = vadd.f32 %v6911_v30, %v8825_v35 }
 0x22b   : > { %v6913_v46 = vpop.f32.mrf.mxu0 }
 0x22c   : > { %v6914_v45 = vadd.f32 %v6913_v46, %v6912_v23 }
 0x22d   : > { %v6915_v9 = vpop.f32.mrf.mxu0  ;;  %3686 = vmatmul.mubr.bf16.gmra.mxu0 %v7884_v1 }
 0x22e   : > { %v9005_v14 = vadd.f32 %v6914_v45, %v8828_v52  ;;  %6357 = vmatprep.mubr.msk.bf16.mxu0 %vm2526_vm0, %v7885_v31  ;;  %v9019_v31 = vpop.f32.mrf.mxu1 }
 0x22f   : > { %v6916_v15 = vpop.f32.mrf.mxu0 }
 0x230   : > { %v6917_v58 = vadd.f32 %v6916_v15, %v6915_v9  ;;  %v9024_v15 = vpop.f32.mrf.mxu1 }
 0x231   : > { %v6918_v60 = vpop.f32.mrf.mxu0 }
 0x232   : > { %v9012_v35 = vadd.f32 %v6917_v58, %v8834_v59 }
 0x233   : > { %v6919_v28 = vpop.f32.mrf.mxu0 }
 0x234   : > { %v6920_v42 = vadd.f32 %v6919_v28, %v6918_v60 }
 0x235   : > { %v6921_v30 = vpop.f32.mrf.mxu0  ;;  %3694 = vmatmul.mubr.bf16.gmra.mxu0 %v7887_v19 }
 0x236   : > { %v9017_v52 = vadd.f32 %v6920_v42, %v8838_v24  ;;  %v9029_v24 = vpop.f32.mrf.mxu1 }
 0x237   : > { %v6922_v23 = vpop.f32.mrf.mxu0 }
 0x238   : > { %11052 = vst [vmem:[#allocation5_spill] sm:$0xff] %v9017_v52  ;;  %v6923_v1 = vadd.f32 %v6922_v23, %v6921_v30 }
 0x239   : > { %v6924_v46 = vpop.f32.mrf.mxu0 }
 0x23a   : > { %v9022_v45 = vadd.f32 %v6923_v1, %v8843_v43  ;;  %v9034_v43 = vpop.f32.mrf.mxu1 }
 0x23b   : > { %v6925_v9 = vpop.f32.mrf.mxu0 }
 0x23c   : > { %11053 = vst [vmem:[#allocation6_spill] sm:$0xff] %v9022_v45  ;;  %v6926_v59 = vadd.f32 %v6925_v9, %v6924_v46 }
 0x23d   : > { %v6927_v58 = vpop.f32.mrf.mxu0 }
 0x23e   : > { %v9027_v60 = vadd.f32 %v6926_v59, %v8847_v18  ;;  %v9039_v18 = vpop.f32.mrf.mxu1 }
 0x23f   : > { %v6928_v19 = vpop.f32.mrf.mxu0 }
 0x240   : > { %11054 = vst [vmem:[#allocation7_spill] sm:$0xff] %v9027_v60  ;;  %v6929_v28 = vadd.f32 %v6928_v19, %v6927_v58 }
 0x241   : > { %v6930_v42 = vpop.f32.mrf.mxu0 }
 0x242   : > { %v9032_v30 = vadd.f32 %v6929_v28, %v8852_v13  ;;  %v9044_v13 = vpop.f32.mrf.mxu1 }
 0x243   : > { %v6931_v23 = vpop.f32.mrf.mxu0 }
 0x244   : > { %11055 = vst [vmem:[#allocation8_spill] sm:$0xff] %v9032_v30  ;;  %v6932_v52 = vadd.f32 %v6931_v23, %v6930_v42 }
 0x245   : > { %v6933_v1 = vpop.f32.mrf.mxu0 }
 0x246   : > { %v9037_v46 = vadd.f32 %v6932_v52, %v8856_v63  ;;  %v9049_v63 = vpop.f32.mrf.mxu1 }
 0x247   : > { %v6934_v9 = vpop.f32.mrf.mxu0 }
 0x248   : > { %11056 = vst [vmem:[#allocation9_spill] sm:$0xff] %v9037_v46  ;;  %v6935_v45 = vadd.f32 %v6934_v9, %v6933_v1 }
 0x249   : > { %v6936_v59 = vpop.f32.mrf.mxu0 }
 0x24a   : > { %v9042_v58 = vadd.f32 %v6935_v45, %v8861_v47  ;;  %v9054_v47 = vpop.f32.mrf.mxu1 }
 0x24b   : > { %v6937_v19 = vpop.f32.mrf.mxu0 }
 0x24c   : > { %11057 = vst [vmem:[#allocation10_spill] sm:$0xff] %v9042_v58  ;;  %v6938_v60 = vadd.f32 %v6937_v19, %v6936_v59 }
 0x24d   : > { %v6939_v28 = vpop.f32.mrf.mxu0 }
 0x24e   : > { %v9047_v42 = vadd.f32 %v6938_v60, %v8868_v62  ;;  %v9059_v62 = vpop.f32.mrf.mxu1 }
 0x24f   : > { %v6940_v23 = vpop.f32.mrf.mxu0 }
 0x250   : > { %11058 = vst [vmem:[#allocation11_spill] sm:$0xff] %v9047_v42  ;;  %v6941_v30 = vadd.f32 %v6940_v23, %v6939_v28 }
 0x251   : > { %v6942_v52 = vpop.f32.mrf.mxu0 }
 0x252   : > { %v9052_v1 = vadd.f32 %v6941_v30, %v8873_v29  ;;  %v9064_v29 = vpop.f32.mrf.mxu1 }
 0x253   : > { %v6943_v9 = vpop.f32.mrf.mxu0 }
 0x254   : > { %11059 = vst [vmem:[#allocation12_spill] sm:$0xff] %v9052_v1  ;;  %v6944_v46 = vadd.f32 %v6943_v9, %v6942_v52 }
 0x255   : > { %v6945_v45 = vpop.f32.mrf.mxu0 }
 0x256   : > { %v9057_v59 = vadd.f32 %v6944_v46, %v8877_v36  ;;  %v9069_v36 = vpop.f32.mrf.mxu1 }
 0x257   : > { %v6946_v19 = vpop.f32.mrf.mxu0 }
 0x258   : > { %11060 = vst [vmem:[#allocation13_spill] sm:$0xff] %v9057_v59  ;;  %v6947_v58 = vadd.f32 %v6946_v19, %v6945_v45 }
 0x259   : > { %v6948_v60 = vpop.f32.mrf.mxu0 }
 0x25a   : > { %v9062_v28 = vadd.f32 %v6947_v58, %v8882_v50  ;;  %v9074_v50 = vpop.f32.mrf.mxu1 }
 0x25b   : > { %v6949_v23 = vpop.f32.mrf.mxu0 }
 0x25c   : > { %11061 = vst [vmem:[#allocation14_spill] sm:$0xff] %v9062_v28  ;;  %v6950_v42 = vadd.f32 %v6949_v23, %v6948_v60 }
 0x25d   : > { %v6951_v30 = vpop.f32.mrf.mxu0 }
 0x25e   : > { %v9067_v52 = vadd.f32 %v6950_v42, %v8886_v17  ;;  %v9079_v17 = vpop.f32.mrf.mxu1 }
 0x25f   : > { %v6952_v9 = vpop.f32.mrf.mxu0 }
 0x260   : > { %11062 = vst [vmem:[#allocation15_spill] sm:$0xff] %v9067_v52  ;;  %v6953_v1 = vadd.f32 %v6952_v9, %v6951_v30 }
 0x261   : > { %v6954_v46 = vpop.f32.mrf.mxu0 }
 0x262   : > { %v9072_v45 = vadd.f32 %v6953_v1, %v8891_v20  ;;  %v9084_v20 = vpop.f32.mrf.mxu1 }
 0x263   : > { %v6955_v19 = vpop.f32.mrf.mxu0 }
 0x264   : > { %11063 = vst [vmem:[#allocation16_spill] sm:$0xff] %v9072_v45  ;;  %v6956_v59 = vadd.f32 %v6955_v19, %v6954_v46 }
 0x265   : > { %v6957_v58 = vpop.f32.mrf.mxu0 }
 0x266   : > { %v9077_v60 = vadd.f32 %v6956_v59, %v8895_v33  ;;  %v9089_v33 = vpop.f32.mrf.mxu1 }
 0x267   : > { %v6958_v23 = vpop.f32.mrf.mxu0 }
 0x268   : > { %11064 = vst [vmem:[#allocation17_spill] sm:$0xff] %v9077_v60  ;;  %v6959_v28 = vadd.f32 %v6958_v23, %v6957_v58 }
 0x269   : > { %v6960_v42 = vpop.f32.mrf.mxu0 }
 0x26a   : > { %v9082_v30 = vadd.f32 %v6959_v28, %v8900_v49  ;;  %v9094_v49 = vpop.f32.mrf.mxu1 }
 0x26b   : > { %v6961_v9 = vpop.f32.mrf.mxu0 }
 0x26c   : > { %v6962_v52 = vadd.f32 %v6961_v9, %v6960_v42 }
 0x26d   : > { %v6963_v1 = vpop.f32.mrf.mxu0 }
 0x26e   : > { %v9087_v46 = vadd.f32 %v6962_v52, %v8904_v3  ;;  %v6993_v3 = vadd.f32 %v8926_v7, %v8921_v10  ;;  %v9114_v10 = vld [vmem:[%s10920_s2] ss:$0 sm:$0xff] }
 0x26f   : > { %v6964_v19 = vpop.f32.mrf.mxu0 }
 0x270   : > { %11065 = vst [vmem:[#allocation18_spill] sm:$0xff] %v9087_v46  ;;  %v6965_v45 = vadd.f32 %v6964_v19, %v6963_v1  ;;  %v9101_v1 = vpop.f32.mrf.mxu1 }
 0x271   : > { %v6966_v59 = vpop.f32.mrf.mxu0 }
 0x272   : > { %v9092_v58 = vadd.f32 %v6965_v45, %v8909_v22  ;;  %v6996_v45 = vadd.f32 %v8935_v21, %v8932_v41 }
 0x273   : > { %v6967_v23 = vpop.f32.mrf.mxu0 }
 0x274   : > { %v6968_v60 = vadd.f32 %v6967_v23, %v6966_v59  ;;  %v3415_v23 = vadd.f32 %v6993_v3, %v8930_v12  ;;  %v3418_v12 = vadd.f32 %v6996_v45, %v8938_v25  ;;  %v9128_v3 = vld [vmem:[%s10921_s3] ss:$0 sm:$0xff] }
 0x275   : > { %v6969_v28 = vpop.f32.mrf.mxu0 }
 0x276   : > { %v9097_v42 = vadd.f32 %v6968_v60, %v8913_v34  ;;  %v9109_v34 = vpop.f32.mrf.mxu1 }
 0x277   : > { %v6970_v9 = vpop.f32.mrf.mxu0 }
 0x278   : > { %v6971_v52 = vadd.f32 %v6970_v9, %v6969_v28  ;;  %v6999_v9 = vadd.f32 %v8943_v40, %v8940_v53  ;;  %v9123_v21 = vpop.f32.mrf.mxu1 }
 0x279   : > { %v6972_v19 = vpop.f32.mrf.mxu0 }
 0x27a   : > { %v9104_v46 = vadd.f32 %v6971_v52, %v8918_v44  ;;  %v3423_v40 = vadd.f32 %v6999_v9, %v8947_v38  ;;  %v9135_v25 = vpop.f32.mrf.mxu1 }
 0x27b   : > { %v6973_v22 = vpop.f32.mrf.mxu0 }
 0x27c   : > { %v6974_v59 = vadd.f32 %v6973_v22, %v6972_v19 }
 0x27d   : > { %v3575_v60 = vpop.f32.mrf.mxu0 }
 0x27e   : > { %v9117_v7 = vadd.f32 %v6974_v59, %v8924_v5  ;;  %v3576_v44 = vadd.f32 %v3575_v60, %v3415_v23  ;;  %v7002_v5 = vadd.f32 %v8956_v51, %v8950_v61 }
 0x27f   : > { %v3577_v28 = vpop.f32.mrf.mxu0 }
 0x280   : > { %v3710_v41 = vmul.f32 %v9114_v10, %v3576_v44  ;;  %v3426_v28 = vadd.f32 %v7002_v5, %v8953_v2  ;;  %v7008_v2 = vadd.f32 %v8982_v48, %v8976_v37  ;;  %v7011_v37 = vadd.f32 %v8995_v54, %v8989_v0 }
 0x281   : > { %v3578_v52 = vpop.f32.mrf.mxu0 }
 0x282   : > { %v3579_v19 = vadd.f32 %v3578_v52, %v3418_v12  ;;  %v3748_v59 = vadd.f32 %v9128_v3, %v3710_v41  ;;  %v7005_v12 = vadd.f32 %v8969_v26, %v8963_v55  ;;  %v9146_v52 = vpop.f32.mrf.mxu1 }
 0x283   : > { %v3580_v22 = vpop.f32.mrf.mxu0 }
 0x284   : > { %v3711_v53 = vmul.f32 %v9114_v10, %v3579_v19  ;;  %v9141_v61 = vmax.f32 %v3748_v59, 0.0  ;;  %v3431_v22 = vadd.f32 %v7005_v12, %v8960_v16  ;;  %v9159_v59 = vpop.f32.mrf.mxu1 }
 0x285   : > { %v3583_v45 = vpop.f32.mrf.mxu0 }
 0x286   : > { %v3749_v23 = vadd.f32 %v9128_v3, %v3711_v53  ;;  %v3584_v60 = vadd.f32 %v3583_v45, %v3423_v40  ;;  %11066 = vst [vmem:[#allocation19_spill] sm:$0xff] %v9141_v61 }
 0x287   : > { %v3585_v44 = vpop.f32.mrf.mxu0 }
 0x288   : > { %v9143_v51 = vmax.f32 %v3749_v23, 0.0  ;;  %v3712_v41 = vmul.f32 %v9114_v10, %v3584_v60  ;;  %v3434_v60 = vadd.f32 %v7008_v2, %v8966_v11  ;;  %v7014_v11 = vadd.f32 %v9008_v27, %v9002_v4 }
 0x289   : > { %v3586_v38 = vpop.f32.mrf.mxu0  ;;  %v3439_v2 = vadd.f32 %v7011_v37, %v8973_v6  ;;  %v7017_v4 = vadd.f32 %v9019_v31, %v9014_v32 }
 0x28a   : > { %11067 = vst [vmem:[#allocation20_spill] sm:$0xff] %v9143_v51  ;;  %v3587_v9 = vadd.f32 %v3586_v38, %v3426_v28  ;;  %v9150_v19 = vpack.c.bf16 %v9143_v51, %v9141_v61  ;;  %v3750_v55 = vadd.f32 %v9128_v3, %v3712_v41  ;;  %v9170_v41 = vpop.f32.mrf.mxu1 }
 0x28b   : > { %v3588_v5 = vpop.f32.mrf.mxu0 }
 0x28c   : > { %v3713_v26 = vmul.f32 %v9114_v10, %v3587_v9  ;;  %7337 = vmatprep.mubr.msk.bf16.mxu1 %vm3843_vm1, %v9150_v19  ;;  %v9165_v48 = vmax.f32 %v3750_v55, 0.0  ;;  %v9183_v5 = vpop.f32.mrf.mxu1 }
 0x28d   : > { %v3591_v53 = vpop.f32.mrf.mxu0 }
 0x28e   : > { %v3751_v40 = vadd.f32 %v9128_v3, %v3713_v26  ;;  %v3592_v45 = vadd.f32 %v3591_v53, %v3431_v22  ;;  %11068 = vst [vmem:[#allocation21_spill] sm:$0xff] %v9165_v48 }
 0x28f   : > { %v3593_v23 = vpop.f32.mrf.mxu0 }
 0x290   : > { %v9167_v44 = vmax.f32 %v3751_v40, 0.0  ;;  %v3714_v28 = vmul.f32 %v9114_v10, %v3592_v45  ;;  %v3442_v40 = vadd.f32 %v7014_v11, %v8979_v39  ;;  %v7020_v39 = vadd.f32 %v9029_v24, %v9024_v15 }
 0x291   : > { %v3594_v16 = vpop.f32.mrf.mxu0  ;;  %v7023_v15 = vadd.f32 %v9039_v18, %v9034_v43 }
 0x292   : > { %11069 = vst [vmem:[#allocation22_spill] sm:$0xff] %v9167_v44  ;;  %v9174_v12 = vpack.c.bf16 %v9167_v44, %v9165_v48  ;;  %v3595_v38 = vadd.f32 %v3594_v16, %v3434_v60  ;;  %v3752_v0 = vadd.f32 %v9128_v3, %v3714_v28  ;;  %v9194_v60 = vpop.f32.mrf.mxu1 }
 0x293   : > { %v3596_v9 = vpop.f32.mrf.mxu0 }
 0x294   : > { %v3715_v54 = vmul.f32 %v9114_v10, %v3595_v38  ;;  %7338 = vmatmul.mubr.msk.bf16.vlgmr.msra.gmra.mxu1 %vm3843_vm1, %v9174_v12  ;;  %v9189_v27 = vmax.f32 %v3752_v0, 0.0  ;;  %v3447_v38 = vadd.f32 %v7017_v4, %v8986_v56  ;;  %v9207_v11 = vpop.f32.mrf.mxu1 }
 0x295   : > { %v3599_v55 = vpop.f32.mrf.mxu0 }
 0x296   : > { %v3753_v26 = vadd.f32 %v9128_v3, %v3715_v54  ;;  %v3600_v22 = vadd.f32 %v3599_v55, %v3439_v2  ;;  %11070 = vst [vmem:[#allocation23_spill] sm:$0xff] %v9189_v27  ;;  %v3450_v55 = vadd.f32 %v7020_v39, %v8992_v8  ;;  %v7026_v8 = vadd.f32 %v9049_v63, %v9044_v13 }
 0x297   : > { %v3601_v53 = vpop.f32.mrf.mxu0  ;;  %v7029_v13 = vadd.f32 %v9059_v62, %v9054_v47 }
 0x298   : > { %v9191_v45 = vmax.f32 %v3753_v26, 0.0  ;;  %v3716_v23 = vmul.f32 %v9114_v10, %v3600_v22  ;;  %v9218_v53 = vpop.f32.mrf.mxu1 }
 0x299   : > { %v3602_v6 = vpop.f32.mrf.mxu0 }
 0x29a   : > { %11071 = vst [vmem:[#allocation24_spill] sm:$0xff] %v9191_v45  ;;  %v3603_v37 = vadd.f32 %v3602_v6, %v3442_v40  ;;  %v9198_v28 = vpack.c.bf16 %v9191_v45, %v9189_v27  ;;  %v3754_v32 = vadd.f32 %v9128_v3, %v3716_v23  ;;  %v3455_v6 = vadd.f32 %v7023_v15, %v8999_v57 }
 0x29b   : > { %v3604_v16 = vpop.f32.mrf.mxu0 }
 0x29c   : > { %v3717_v31 = vmul.f32 %v9114_v10, %v3603_v37  ;;  %7341 = vmatprep.mubr.msk.bf16.mxu1 %vm3843_vm1, %v9198_v28  ;;  %v9213_v24 = vmax.f32 %v3754_v32, 0.0  ;;  %v9231_v37 = vpop.f32.mrf.mxu1 }
 0x29d   : > { %v3607_v9 = vpop.f32.mrf.mxu0 }
 0x29e   : > { %v3755_v0 = vadd.f32 %v9128_v3, %v3717_v31  ;;  %v3608_v54 = vadd.f32 %v3607_v9, %v3447_v38  ;;  %11072 = vst [vmem:[#allocation25_spill] sm:$0xff] %v9213_v24  ;;  %v3458_v38 = vadd.f32 %v7026_v8, %v9005_v14  ;;  %v7032_v14 = vadd.f32 %v9069_v36, %v9064_v29 }
 0x29f   : > { %v3609_v2 = vpop.f32.mrf.mxu0  ;;  %v7035_v29 = vadd.f32 %v9079_v17, %v9074_v50 }
 0x2a0   : > { %v9215_v26 = vmax.f32 %v3755_v0, 0.0  ;;  %v3718_v22 = vmul.f32 %v9114_v10, %v3608_v54  ;;  %v9242_v54 = vpop.f32.mrf.mxu1 }
 0x2a1   : > { %v3610_v56 = vpop.f32.mrf.mxu0 }
 0x2a2   : > { %11073 = vst [vmem:[#allocation26_spill] sm:$0xff] %v9215_v26  ;;  %v9222_v40 = vpack.c.bf16 %v9215_v26, %v9213_v24  ;;  %v3611_v4 = vadd.f32 %v3610_v56, %v3450_v55  ;;  %v3756_v43 = vadd.f32 %v9128_v3, %v3718_v22  ;;  %v3463_v22 = vadd.f32 %v7029_v13, %v9012_v35  ;;  %v9255_v56 = vpop.f32.mrf.mxu1 }
 0x2a3   : > { %v3612_v23 = vpop.f32.mrf.mxu0  ;;  %v7038_v13 = vadd.f32 %v9089_v33, %v9084_v20  ;;  %v7041_v20 = vadd.f32 %v9101_v1, %v9094_v49 }
 0x2a4   : > { %v3719_v18 = vmul.f32 %v9114_v10, %v3611_v4  ;;  %7342 = vmatmul.mubr.msk.bf16.gmra.mxu1 %vm3843_vm1, %v9222_v40  ;;  %v9237_v63 = vmax.f32 %v3756_v43, 0.0 }
 0x2a5   : > { %v3615_v39 = vpop.f32.mrf.mxu0 }
 0x2a6   : > { %v3757_v16 = vadd.f32 %v9128_v3, %v3719_v18  ;;  %v3616_v32 = vadd.f32 %v3615_v39, %v3455_v6  ;;  %11074 = vst [vmem:[#allocation27_spill] sm:$0xff] %v9237_v63  ;;  %v11076_v18 = vld [vmem:[#allocation5_spill] sm:$0xff] }
 0x2a7   : > { %v3617_v31 = vpop.f32.mrf.mxu0  ;;  %v3466_v6 = vadd.f32 %v7032_v14, %v11076_v18 }
 0x2a8   : > { %v9239_v9 = vmax.f32 %v3757_v16, 0.0  ;;  %v3720_v0 = vmul.f32 %v9114_v10, %v3616_v32  ;;  %v9266_v32 = vpop.f32.mrf.mxu1 }
 0x2a9   : > { %v3618_v57 = vpop.f32.mrf.mxu0 }
 0x2aa   : > { %11075 = vst [vmem:[#allocation28_spill] sm:$0xff] %v9239_v9  ;;  %v3619_v2 = vadd.f32 %v3618_v57, %v3458_v38  ;;  %v9246_v55 = vpack.c.bf16 %v9239_v9, %v9237_v63  ;;  %v3758_v47 = vadd.f32 %v9128_v3, %v3720_v0  ;;  %v11079_v57 = vld [vmem:[#allocation6_spill] sm:$0xff]  ;;  %v9279_v14 = vpop.f32.mrf.mxu1 }
 0x2ab   : > { %v3620_v15 = vpop.f32.mrf.mxu0 }
 0x2ac   : > { %v3721_v62 = vmul.f32 %v9114_v10, %v3619_v2  ;;  %7345 = vmatprep.mubr.msk.bf16.mxu1 %vm3843_vm1, %v9246_v55  ;;  %v9261_v36 = vmax.f32 %v3758_v47, 0.0  ;;  %v3471_v2 = vadd.f32 %v7035_v29, %v11079_v57  ;;  %v9290_v18 = vpop.f32.mrf.mxu1 }
 0x2ad   : > { %v3623_v4 = vpop.f32.mrf.mxu0 }
 0x2ae   : > { %v3759_v8 = vadd.f32 %v9128_v3, %v3721_v62  ;;  %v3624_v23 = vadd.f32 %v3623_v4, %v3463_v22  ;;  %11077 = vst [vmem:[#allocation5_spill] sm:$0xff] %v9261_v36  ;;  %v11080_v4 = vld [vmem:[#allocation7_spill] sm:$0xff] }
 0x2af   : > { %v3625_v43 = vpop.f32.mrf.mxu0 }
 0x2b0   : > { %v9263_v39 = vmax.f32 %v3759_v8, 0.0  ;;  %v3722_v16 = vmul.f32 %v9114_v10, %v3624_v23  ;;  %v3474_v8 = vadd.f32 %v7038_v13, %v11080_v4  ;;  %v11083_v13 = vld [vmem:[#allocation8_spill] sm:$0xff] }
 0x2b1   : > { %v3626_v35 = vpop.f32.mrf.mxu0 }
 0x2b2   : > { %11078 = vst [vmem:[#allocation29_spill] sm:$0xff] %v9263_v39  ;;  %v9270_v31 = vpack.c.bf16 %v9263_v39, %v9261_v36  ;;  %v3627_v38 = vadd.f32 %v3626_v35, %v3466_v6  ;;  %v3760_v50 = vadd.f32 %v9128_v3, %v3722_v16  ;;  %v7044_v35 = vadd.f32 %v9123_v21, %v9109_v34 }
 0x2b3   : > { %v3628_v0 = vpop.f32.mrf.mxu0  ;;  %v7047_v34 = vadd.f32 %v9146_v52, %v9135_v25 }
 0x2b4   : > { %v3723_v17 = vmul.f32 %v9114_v10, %v3627_v38  ;;  %7346 = vmatmul.mubr.msk.bf16.gmra.mxu1 %vm3843_vm1, %v9270_v31  ;;  %v9285_v33 = vmax.f32 %v3760_v50, 0.0  ;;  %v3479_v0 = vadd.f32 %v7041_v20, %v11083_v13  ;;  %v9303_v50 = vpop.f32.mrf.mxu1 }
 0x2b5   : > { %v3631_v15 = vpop.f32.mrf.mxu0 }
 0x2b6   : > { %v3761_v47 = vadd.f32 %v9128_v3, %v3723_v17  ;;  %v3632_v62 = vadd.f32 %v3631_v15, %v3471_v2  ;;  %11081 = vst [vmem:[#allocation6_spill] sm:$0xff] %v9285_v33 }
 0x2b7   : > { %v3633_v22 = vpop.f32.mrf.mxu0 }
 0x2b8   : > { %v9287_v23 = vmax.f32 %v3761_v47, 0.0  ;;  %v3724_v43 = vmul.f32 %v9114_v10, %v3632_v62  ;;  %v11084_v47 = vld [vmem:[#allocation9_spill] sm:$0xff] }
 0x2b9   : > { %v3634_v6 = vpop.f32.mrf.mxu0  ;;  %v3482_v62 = vadd.f32 %v7044_v35, %v11084_v47 }
 0x2ba   : > { %11082 = vst [vmem:[#allocation7_spill] sm:$0xff] %v9287_v23  ;;  %v3635_v29 = vadd.f32 %v3634_v6, %v3474_v8  ;;  %v9294_v16 = vpack.c.bf16 %v9287_v23, %v9285_v33  ;;  %v3762_v49 = vadd.f32 %v9128_v3, %v3724_v43  ;;  %v9314_v8 = vpop.f32.mrf.mxu1 }
 0x2bb   : > { %v3636_v38 = vpop.f32.mrf.mxu0 }
 0x2bc   : > { %v3725_v1 = vmul.f32 %v9114_v10, %v3635_v29  ;;  %7349 = vmatprep.mubr.msk.bf16.mxu1 %vm3843_vm1, %v9294_v16  ;;  %v9309_v21 = vmax.f32 %v3762_v49, 0.0  ;;  %v7050_v29 = vadd.f32 %v9170_v41, %v9159_v59  ;;  %v11087_v38 = vld [vmem:[#allocation10_spill] sm:$0xff]  ;;  %v7053_v59 = vadd.f32 %v9194_v60, %v9183_v5  ;;  %v11091_v60 = vld [vmem:[#allocation12_spill] sm:$0xff] }
 0x2bd   : > { %v3639_v17 = vpop.f32.mrf.mxu0  ;;  %v3487_v49 = vadd.f32 %v7047_v34, %v11087_v38 }
 0x2be   : > { %v3763_v57 = vadd.f32 %v9128_v3, %v3725_v1  ;;  %v3640_v2 = vadd.f32 %v3639_v17, %v3479_v0  ;;  %11085 = vst [vmem:[#allocation8_spill] sm:$0xff] %v9309_v21  ;;  %v9327_v1 = vpop.f32.mrf.mxu1 }
 0x2bf   : > { %v3641_v15 = vpop.f32.mrf.mxu0 }
 0x2c0   : > { %v9311_v22 = vmax.f32 %v3763_v57, 0.0  ;;  %v3726_v4 = vmul.f32 %v9114_v10, %v3640_v2  ;;  %v11088_v2 = vld [vmem:[#allocation11_spill] sm:$0xff] }
 0x2c1   : > { %v3642_v20 = vpop.f32.mrf.mxu0  ;;  %v3490_v15 = vadd.f32 %v7050_v29, %v11088_v2 }
 0x2c2   : > { %11086 = vst [vmem:[#allocation9_spill] sm:$0xff] %v9311_v22  ;;  %v9318_v43 = vpack.c.bf16 %v9311_v22, %v9309_v21  ;;  %v3643_v6 = vadd.f32 %v3642_v20, %v3482_v62  ;;  %v3764_v25 = vadd.f32 %v9128_v3, %v3726_v4  ;;  %v7070_v4 = vpop.f32.mrf.mxu1 }
 0x2c3   : > { %v3644_v35 = vpop.f32.mrf.mxu0 }
 0x2c4   : > { %v3727_v52 = vmul.f32 %v9114_v10, %v3643_v6  ;;  %7350 = vmatmul.mubr.msk.bf16.gmra.mxu1 %vm3843_vm1, %v9318_v43  ;;  %v9333_v41 = vmax.f32 %v3764_v25, 0.0  ;;  %v7056_v35 = vadd.f32 %v9218_v53, %v9207_v11  ;;  %v3495_v25 = vadd.f32 %v7053_v59, %v11091_v60  ;;  %v7072_v38 = vpop.f32.mrf.mxu1 }
 0x2c5   : > { %v3647_v13 = vpop.f32.mrf.mxu0  ;;  %v7059_v11 = vadd.f32 %v9242_v54, %v9231_v37  ;;  %v11095_v54 = vld [vmem:[#allocation14_spill] sm:$0xff] }
 0x2c6   : > { %v3765_v0 = vadd.f32 %v9128_v3, %v3727_v52  ;;  %v3648_v17 = vadd.f32 %v3647_v13, %v3487_v49  ;;  %11089 = vst [vmem:[#allocation10_spill] sm:$0xff] %v9333_v41 }
 0x2c7   : > { %v3649_v57 = vpop.f32.mrf.mxu0 }
 0x2c8   : > { %v9335_v47 = vmax.f32 %v3765_v0, 0.0  ;;  %v3728_v62 = vmul.f32 %v9114_v10, %v3648_v17  ;;  %v11092_v57 = vld [vmem:[#allocation13_spill] sm:$0xff] }
 0x2c9   : > { %v3650_v34 = vpop.f32.mrf.mxu0  ;;  %v3498_v2 = vadd.f32 %v7056_v35, %v11092_v57  ;;  %v11096_v57 = vld [vmem:[#allocation15_spill] sm:$0xff] }
 0x2ca   : > { %11090 = vst [vmem:[#allocation11_spill] sm:$0xff] %v9335_v47  ;;  %v3651_v20 = vadd.f32 %v3650_v34, %v3490_v15  ;;  %v9340_v6 = vpack.c.bf16 %v9335_v47, %v9333_v41  ;;  %v3766_v52 = vadd.f32 %v9128_v3, %v3728_v62  ;;  %v7073_v34 = vpop.f32.mrf.mxu1 }
 0x2cb   : > { %v3652_v29 = vpop.f32.mrf.mxu0 }
 0x2cc   : > { %v3729_v5 = vmul.f32 %v9114_v10, %v3651_v20  ;;  %7353 = vmatprep.mubr.msk.bf16.mxu1 %vm3843_vm1, %v9340_v6  ;;  %v9353_v53 = vmax.f32 %v3766_v52, 0.0  ;;  %v3503_v52 = vadd.f32 %v7059_v11, %v11095_v54 }
 0x2cd   : > { %v3655_v49 = vpop.f32.mrf.mxu0 }
 0x2ce   : > { %v3767_v13 = vadd.f32 %v9128_v3, %v3729_v5  ;;  %v3656_v0 = vadd.f32 %v3655_v49, %v3495_v25  ;;  %11093 = vst [vmem:[#allocation12_spill] sm:$0xff] %v9353_v53  ;;  %v7062_v5 = vadd.f32 %v9266_v32, %v9255_v56  ;;  %v7075_v25 = vpop.f32.mrf.mxu1  ;;  %v7065_v56 = vadd.f32 %v9290_v18, %v9279_v14  ;;  %v11099_v18 = vld [vmem:[#allocation16_spill] sm:$0xff] }
 0x2cf   : > { %v3657_v17 = vpop.f32.mrf.mxu0 }
 0x2d0   : > { %v9355_v15 = vmax.f32 %v3767_v13, 0.0  ;;  %v3730_v62 = vmul.f32 %v9114_v10, %v3656_v0 }
 0x2d1   : > { %v3658_v20 = vpop.f32.mrf.mxu0 }
 0x2d2   : > { %11094 = vst [vmem:[#allocation13_spill] sm:$0xff] %v9355_v15  ;;  %v9360_v59 = vpack.c.bf16 %v9355_v15, %v9353_v53  ;;  %v3659_v29 = vadd.f32 %v3658_v20, %v3498_v2  ;;  %v3768_v60 = vadd.f32 %v9128_v3, %v3730_v62  ;;  %v3506_v2 = vadd.f32 %v7062_v5, %v11096_v57 }
 0x2d3   : > { %v3660_v35 = vpop.f32.mrf.mxu0 }
 0x2d4   : > { %v3731_v37 = vmul.f32 %v9114_v10, %v3659_v29  ;;  %7354 = vmatmul.mubr.msk.bf16.gmra.mxu1 %vm3843_vm1, %v9360_v59  ;;  %v9373_v32 = vmax.f32 %v3768_v60, 0.0  ;;  %v7076_v29 = vpop.f32.mrf.mxu1  ;;  %v3511_v60 = vadd.f32 %v7065_v56, %v11099_v18 }
 0x2d5   : > { %v3663_v49 = vpop.f32.mrf.mxu0 }
 0x2d6   : > { %v3769_v13 = vadd.f32 %v9128_v3, %v3731_v37  ;;  %v3664_v0 = vadd.f32 %v3663_v49, %v3503_v52  ;;  %11097 = vst [vmem:[#allocation14_spill] sm:$0xff] %v9373_v32  ;;  %v7068_v37 = vadd.f32 %v9314_v8, %v9303_v50  ;;  %v7078_v49 = vpop.f32.mrf.mxu1  ;;  %v7071_v50 = vadd.f32 %v7070_v4, %v9327_v1 }
 0x2d7   : > { %v3665_v17 = vpop.f32.mrf.mxu0 }
 0x2d8   : > { %v9375_v62 = vmax.f32 %v3769_v13, 0.0  ;;  %v3732_v20 = vmul.f32 %v9114_v10, %v3664_v0  ;;  %v3519_v1 = vadd.f32 %v7071_v50, %v9082_v30 }
 0x2d9   : > { %v3666_v35 = vpop.f32.mrf.mxu0 }
 0x2da   : > { %11098 = vst [vmem:[#allocation15_spill] sm:$0xff] %v9375_v62  ;;  %v3667_v11 = vadd.f32 %v3666_v35, %v3506_v2  ;;  %v9380_v54 = vpack.c.bf16 %v9375_v62, %v9373_v32  ;;  %v3770_v52 = vadd.f32 %v9128_v3, %v3732_v20  ;;  %v11100_v2 = vld [vmem:[#allocation17_spill] sm:$0xff] }
 0x2db   : > { %v3668_v5 = vpop.f32.mrf.mxu0  ;;  %v3514_v35 = vadd.f32 %v7068_v37, %v11100_v2  ;;  %v11103_v2 = vld [vmem:[#allocation18_spill] sm:$0xff] }
 0x2dc   : > { %v3733_v14 = vmul.f32 %v9114_v10, %v3667_v11  ;;  %7357 = vmatprep.mubr.msk.bf16.mxu1 %vm3843_vm1, %v9380_v54  ;;  %v9392_v8 = vmax.f32 %v3770_v52, 0.0  ;;  %v7079_v5 = vpop.f32.mrf.mxu1 }
 0x2dd   : > { %v3671_v13 = vpop.f32.mrf.mxu0  ;;  %v7080_v50 = vadd.f32 %v7079_v5, %v7078_v49 }
 0x2de   : > { %v3771_v0 = vadd.f32 %v9128_v3, %v3733_v14  ;;  %v3672_v17 = vadd.f32 %v3671_v13, %v3511_v60  ;;  %11101 = vst [vmem:[#allocation16_spill] sm:$0xff] %v9392_v8  ;;  %v7074_v14 = vadd.f32 %v7073_v34, %v7072_v38  ;;  %v7081_v4 = vpop.f32.mrf.mxu1 }
 0x2df   : > { %v3673_v57 = vpop.f32.mrf.mxu0 }
 0x2e0   : > { %v9394_v20 = vmax.f32 %v3771_v0, 0.0  ;;  %v3734_v11 = vmul.f32 %v9114_v10, %v3672_v17 }
 0x2e1   : > { %v3674_v32 = vpop.f32.mrf.mxu0 }
 0x2e2   : > { %11102 = vst [vmem:[#allocation17_spill] sm:$0xff] %v9394_v20  ;;  %v9399_v56 = vpack.c.bf16 %v9394_v20, %v9392_v8  ;;  %v3675_v18 = vadd.f32 %v3674_v32, %v3514_v35  ;;  %v3772_v13 = vadd.f32 %v9128_v3, %v3734_v11  ;;  %v3522_v8 = vadd.f32 %v7074_v14, %v11103_v2  ;;  %v7082_v11 = vpop.f32.mrf.mxu1 }
 0x2e3   : > { %v3676_v60 = vpop.f32.mrf.mxu0  ;;  %v7077_v32 = vadd.f32 %v7076_v29, %v7075_v25 }
 0x2e4   : > { %v3735_v37 = vmul.f32 %v9114_v10, %v3675_v18  ;;  %7358 = vmatmul.mubr.msk.bf16.gmra.mxu1 %vm3843_vm1, %v9399_v56  ;;  %v9408_v38 = vmax.f32 %v3772_v13, 0.0  ;;  %v7084_v29 = vpop.f32.mrf.mxu1 }
 0x2e5   : > { %v3679_v52 = vpop.f32.mrf.mxu0  ;;  %v3527_v25 = vadd.f32 %v7077_v32, %v9092_v58 }
 0x2e6   : > { %v3773_v0 = vadd.f32 %v9128_v3, %v3735_v37  ;;  %v3680_v17 = vadd.f32 %v3679_v52, %v3519_v1  ;;  %11104 = vst [vmem:[#allocation18_spill] sm:$0xff] %v9408_v38 }
 0x2e7   : > { %v3681_v57 = vpop.f32.mrf.mxu0 }
 0x2e8   : > { %v9410_v34 = vmax.f32 %v3773_v0, 0.0  ;;  %v3736_v35 = vmul.f32 %v9114_v10, %v3680_v17  ;;  %v3530_v17 = vadd.f32 %v7080_v50, %v9097_v42  ;;  %v7083_v57 = vadd.f32 %v7082_v11, %v7081_v4 }
 0x2e9   : > { %v3682_v18 = vpop.f32.mrf.mxu0 }
 0x2ea   : > { %11105 = vst [vmem:[#allocation30_spill] sm:$0xff] %v9410_v34  ;;  %v3683_v60 = vadd.f32 %v3682_v18, %v3522_v8  ;;  %v9415_v30 = vpack.c.bf16 %v9410_v34, %v9408_v38  ;;  %v3774_v1 = vadd.f32 %v9128_v3, %v3736_v35  ;;  %v7085_v35 = vpop.f32.mrf.mxu1  ;;  %v3535_v4 = vadd.f32 %v7083_v57, %v9104_v46 }
 0x2eb   : > { %v3684_v37 = vpop.f32.mrf.mxu0 }
 0x2ec   : > { %v3737_v14 = vmul.f32 %v9114_v10, %v3683_v60  ;;  %7361 = vmatprep.mubr.msk.bf16.mxu1 %vm3843_vm1, %v9415_v30  ;;  %v9424_v49 = vmax.f32 %v3774_v1, 0.0  ;;  %v7086_v37 = vadd.f32 %v7085_v35, %v7084_v29 }
 0x2ed   : > { %v3687_v13 = vpop.f32.mrf.mxu0 }
 0x2ee   : > { %v3775_v52 = vadd.f32 %v9128_v3, %v3737_v14  ;;  %v3688_v8 = vadd.f32 %v3687_v13, %v3527_v25  ;;  %11106 = vst [vmem:[#allocation31_spill] sm:$0xff] %v9424_v49 }
 0x2ef   : > { %v3689_v0 = vpop.f32.mrf.mxu0 }
 0x2f0   : > { %v9426_v5 = vmax.f32 %v3775_v52, 0.0  ;;  %v3738_v2 = vmul.f32 %v9114_v10, %v3688_v8  ;;  %v3538_v8 = vadd.f32 %v7086_v37, %v9117_v7 }
 0x2f1   : > { %v3690_v18 = vpop.f32.mrf.mxu0 }
 0x2f2   : > { %11107 = vst [vmem:[#allocation32_spill] sm:$0xff] %v9426_v5  ;;  %v9431_v58 = vpack.c.bf16 %v9426_v5, %v9424_v49  ;;  %v3691_v32 = vadd.f32 %v3690_v18, %v3530_v17  ;;  %v3776_v14 = vadd.f32 %v9128_v3, %v3738_v2 }
 0x2f3   : > { %v3692_v60 = vpop.f32.mrf.mxu0 }
 0x2f4   : > { %v3739_v42 = vmul.f32 %v9114_v10, %v3691_v32  ;;  %7362 = vmatmul.mubr.msk.bf16.gmra.mxu1 %vm3843_vm1, %v9431_v58  ;;  %v9439_v13 = vmax.f32 %v3776_v14, 0.0 }
 0x2f5   : > { %v3695_v11 = vpop.f32.mrf.mxu0 }
 0x2f6   : > { %v3777_v50 = vadd.f32 %v9128_v3, %v3739_v42  ;;  %v3696_v1 = vadd.f32 %v3695_v11, %v3535_v4  ;;  %11108 = vst [vmem:[#allocation33_spill] sm:$0xff] %v9439_v13 }
 0x2f7   : > { %v3697_v25 = vpop.f32.mrf.mxu0 }
 0x2f8   : > { %v9441_v52 = vmax.f32 %v3777_v50, 0.0  ;;  %v3740_v29 = vmul.f32 %v9114_v10, %v3696_v1 }
 0x2f9   : > { %v3698_v0 = vpop.f32.mrf.mxu0 }
 0x2fa   : > { %11109 = vst [vmem:[#allocation34_spill] sm:$0xff] %v9441_v52  ;;  %v3699_v17 = vadd.f32 %v3698_v0, %v3538_v8  ;;  %v9447_v2 = vpack.c.bf16 %v9441_v52, %v9439_v13  ;;  %v3778_v57 = vadd.f32 %v9128_v3, %v3740_v29 }
 0x2fb   : > { %v3700_v46 = vpop.f32.mrf.mxu0 }
 0x2fc   : > { %v3741_v35 = vmul.f32 %v9114_v10, %v3699_v17  ;;  %7365 = vmatprep.mubr.msk.bf16.mxu1 %vm3843_vm1, %v9447_v2  ;;  %v9454_v32 = vmax.f32 %v3778_v57, 0.0  ;;  %v9467_v10 = vld [vmem:[%s10923_s5] ss:$0 sm:$0xff] }
 0x2fe   : > { %v3779_v18 = vadd.f32 %v9128_v3, %v3741_v35  ;;  %11110 = vst [vmem:[#allocation35_spill] sm:$0xff] %v9454_v32 }
 0x300   : > { %v9456_v60 = vmax.f32 %v3779_v18, 0.0 }
 0x302   : > { %11111 = vst [vmem:[#allocation36_spill] sm:$0xff] %v9456_v60  ;;  %v9460_v7 = vpack.c.bf16 %v9456_v60, %v9454_v32 }
 0x304   : > { %7366 = vmatmul.mubr.msk.bf16.gmra.mxu1 %vm3843_vm1, %v9460_v7 }
 0x354   : > { %v7339_v37 = vpop.f32.mrf.mxu1 }
 0x355   : > { %v3935_v3 = vadd.f32 %v7339_v37, %v9467_v10 }
 0x356   : > { %v3926_v14 = vpop.f32.mrf.mxu1 }
 0x357   : > { %v3927_v50 = vadd.f32 %v9467_v10, %v3926_v14 }
 0x358   : > { %v7340_v42 = vpop.f32.mrf.mxu1 }
 0x359   : > { %v3938_v4 = vadd.f32 %v7340_v42, %v9467_v10 }
 0x35a   : > { %v3929_v11 = vpop.f32.mrf.mxu1 }
 0x35b   : > { %v9472_v1 = vpack.c.bf16 %v3938_v4, %v3935_v3  ;;  %v3930_v25 = vadd.f32 %v9467_v10, %v3929_v11 }
 0x35d   : > { %v9475_v29 = vpack.c.bf16 %v3930_v25, %v3927_v50 }
 0x35f   : > { %7120 = vmatprep.mubr.msk.bf16.mxu1 %vm4118_vm2, %v9475_v29 }
 0x364   : > { %v7343_v8 = vpop.f32.mrf.mxu1 }
 0x365   : > { %v3951_v46 = vadd.f32 %v7343_v8, %v9467_v10 }
 0x366   : > { %v9479_v0 = vpop.f32.mrf.mxu1 }
 0x368   : > { %v7344_v17 = vpop.f32.mrf.mxu1 }
 0x369   : > { %v3954_v57 = vadd.f32 %v7344_v17, %v9467_v10 }
 0x36a   : > { %v3945_v18 = vpop.f32.mrf.mxu1 }
 0x36b   : > { %v9483_v35 = vpack.c.bf16 %v3954_v57, %v3951_v46 }
 0x374   : > { %v7347_v37 = vpop.f32.mrf.mxu1 }
 0x375   : > { %v3967_v3 = vadd.f32 %v7347_v37, %v9467_v10 }
 0x376   : > { %v3958_v14 = vpop.f32.mrf.mxu1 }
 0x378   : > { %v7348_v42 = vpop.f32.mrf.mxu1 }
 0x379   : > { %v3970_v4 = vadd.f32 %v7348_v42, %v9467_v10 }
 0x37a   : > { %v3961_v50 = vpop.f32.mrf.mxu1 }
 0x37b   : > { %v9487_v11 = vpack.c.bf16 %v3970_v4, %v3967_v3  ;;  %v3962_v33 = vadd.f32 %v9467_v10, %v3961_v50 }
 0x384   : > { %v7351_v25 = vpop.f32.mrf.mxu1 }
 0x385   : > { %v3983_v8 = vadd.f32 %v7351_v25, %v9467_v10 }
 0x386   : > { %v3974_v32 = vpop.f32.mrf.mxu1 }
 0x387   : > { %v3975_v57 = vadd.f32 %v9467_v10, %v3974_v32 }
 0x388   : > { %v7352_v60 = vpop.f32.mrf.mxu1 }
 0x389   : > { %v3986_v17 = vadd.f32 %v7352_v60, %v9467_v10 }
 0x38a   : > { %v3977_v46 = vpop.f32.mrf.mxu1 }
 0x38b   : > { %v9492_v13 = vpack.c.bf16 %v3986_v17, %v3983_v8  ;;  %v3978_v52 = vadd.f32 %v9467_v10, %v3977_v46 }
 0x38d   : > { %v9495_v37 = vpack.c.bf16 %v3978_v52, %v3975_v57  ;;  %4100 = vrot.lane.b32.xlu0 %v9492_v13, %s8118_s30 }
 0x38f   : > { %4098 = vrot.lane.b32.xlu1 %v9495_v37, %s8118_s30 }
 0x394   : > { %v7355_v42 = vpop.f32.mrf.mxu1 }
 0x396   : > { %v3990_v3 = vpop.f32.mrf.mxu1 }
 0x398   : > { %v7356_v4 = vpop.f32.mrf.mxu1 }
 0x39a   : > { %v3993_v60 = vpop.f32.mrf.mxu1 }
 0x3a4   : > { %v7359_v25 = vpop.f32.mrf.mxu1 }
 0x3a6   : > { %v4006_v49 = vpop.f32.mrf.mxu1 }
 0x3a8   : > { %v7360_v32 = vpop.f32.mrf.mxu1 }
 0x3aa   : > { %v4009_v8 = vpop.f32.mrf.mxu1 }
 0x3ab   : > { %v4010_v50 = vadd.f32 %v9467_v10, %v4009_v8 }
 0x3b4   : > { %v7363_v17 = vpop.f32.mrf.mxu1 }
 0x3b6   : > { %v4022_v5 = vpop.f32.mrf.mxu1 }
 0x3b8   : > { %v7364_v46 = vpop.f32.mrf.mxu1 }
 0x3b9   : > { %v4034_v21 = vadd.f32 %v7364_v46, %v9467_v10  ;;  %v3994_v46 = vadd.f32 %v9467_v10, %v3993_v60 }
 0x3ba   : > { %v4025_v52 = vpop.f32.mrf.mxu1 }
 0x3c4   : > { %v7367_v57 = vpop.f32.mrf.mxu1 }
 0x3c5   : > { %v4047_v20 = vadd.f32 %v7367_v57, %v9467_v10  ;;  %v4031_v57 = vadd.f32 %v7363_v17, %v9467_v10  ;;  %v4007_v17 = vadd.f32 %v9467_v10, %v4006_v49  ;;  %v3991_v49 = vadd.f32 %v9467_v10, %v3990_v3 }
 0x3c6   : > { %v4038_v38 = vpop.f32.mrf.mxu1 }
 0x3c7   : > { %v4039_v15 = vadd.f32 %v9467_v10, %v4038_v38  ;;  %v3959_v38 = vadd.f32 %v9467_v10, %v3958_v14  ;;  %v4015_v14 = vadd.f32 %v7359_v25, %v9467_v10  ;;  %v9549_v25 = vpack.c.bf16 %v4010_v50, %v4007_v17 }
 0x3c8   : > { %v7368_v34 = vpop.f32.mrf.mxu1 }
 0x3c9   : > { %v4050_v62 = vadd.f32 %v7368_v34, %v9467_v10 }
 0x3ca   : > { %v4041_v53 = vpop.f32.mrf.mxu1 }
 0x3cb   : > { %v9504_v41 = vpack.c.bf16 %v4050_v62, %v4047_v20  ;;  %v4042_v47 = vadd.f32 %v9467_v10, %v4041_v53  ;;  %v9517_v62 = vpack.c.bf16 %v4034_v21, %v4031_v57  ;;  %v4026_v53 = vadd.f32 %v9467_v10, %v4025_v52 }
 0x3cc   : > { %v4018_v20 = vadd.f32 %v7360_v32, %v9467_v10  ;;  %v3946_v21 = vadd.f32 %v9467_v10, %v3945_v18  ;;  %v4002_v18 = vadd.f32 %v7356_v4, %v9467_v10  ;;  %v9564_v4 = vpack.c.bf16 %v3994_v46, %v3991_v49 }
 0x3cd   : > { %v9508_v22 = vpack.c.bf16 %v4042_v47, %v4039_v15  ;;  %4116 = vrot.lane.b32.xlu0 %v9504_v41, %s8118_s30  ;;  %v9522_v47 = vpack.c.bf16 %v3962_v33, %v3959_v38  ;;  %v4023_v15 = vadd.f32 %v9467_v10, %v4022_v5  ;;  %v3943_v33 = vadd.f32 %v9467_v10, %v9479_v0 }
 0x3ce   : > { %v9538_v5 = vpack.c.bf16 %v4018_v20, %v4015_v14  ;;  %v3999_v0 = vadd.f32 %v7355_v42, %v9467_v10 }
 0x3cf   : > { %4114 = vrot.lane.b32.xlu1 %v9508_v22, %s8118_s30  ;;  %v9528_v34 = vpack.c.bf16 %v4026_v53, %v4023_v15  ;;  %v9543_v32 = vpack.c.bf16 %v3946_v21, %v3943_v33 }
 0x3d0   : > { %v9556_v8 = vpack.c.bf16 %v4002_v18, %v3999_v0 }
 0x3d1   : > { %4096 = vrot.lane.b32.xlu0 %v9487_v11, %s8118_s30 }
 0x3d3   : > { %4112 = vrot.lane.b32.xlu1 %v9517_v62, %s8118_s30 }
 0x3d5   : > { %4094 = vrot.lane.b32.xlu0 %v9522_v47, %s8118_s30 }
 0x3d7   : > { %4110 = vrot.lane.b32.xlu1 %v9528_v34, %s8118_s30 }
 0x3d9   : > { %4092 = vrot.lane.b32.xlu0 %v9483_v35, %s8118_s30 }
 0x3db   : > { %4108 = vrot.lane.b32.xlu1 %v9538_v5, %s8118_s30 }
 0x3dd   : > { %4090 = vrot.lane.b32.xlu0 %v9543_v32, %s8118_s30 }
 0x3df   : > { %4106 = vrot.lane.b32.xlu1 %v9549_v25, %s8118_s30 }
 0x3e1   : > { %4088 = vrot.lane.b32.xlu0 %v9472_v1, %s8118_s30 }
 0x3e3   : > { %4104 = vrot.lane.b32.xlu1 %v9556_v8, %s8118_s30 }
 0x3e5   : > { %4086 = vrot.lane.b32.xlu0 %v9475_v29, %s8118_s30 }
 0x3e7   : > { %4102 = vrot.lane.b32.xlu1 %v9564_v4, %s8118_s30 }
 0x3e9   : > { %5324 = vrot.lane.b32.xlu0 %v9340_v6, %s8119_s9 }
 0x3eb   : > { %5308 = vrot.lane.b32.xlu1 %v9150_v19, %s8119_s9 }
 0x3ed   : > { %5326 = vrot.lane.b32.xlu0 %v9360_v59, %s8119_s9 }
 0x3ef   : > { %5310 = vrot.lane.b32.xlu1 %v9174_v12, %s8119_s9 }
 0x3f1   : > { %5328 = vrot.lane.b32.xlu0 %v9380_v54, %s8119_s9 }
 0x3f3   : > { %5312 = vrot.lane.b32.xlu1 %v9198_v28, %s8119_s9 }
 0x3f5   : > { %5330 = vrot.lane.b32.xlu0 %v9399_v56, %s8119_s9 }
 0x3f7   : > { %5314 = vrot.lane.b32.xlu1 %v9222_v40, %s8119_s9 }
 0x3f9   : > { %5332 = vrot.lane.b32.xlu0 %v9415_v30, %s8119_s9 }
 0x3fb   : > { %5316 = vrot.lane.b32.xlu1 %v9246_v55, %s8119_s9 }
 0x3fd   : > { %5334 = vrot.lane.b32.xlu0 %v9431_v58, %s8119_s9 }
 0x3ff   : > { %5318 = vrot.lane.b32.xlu1 %v9270_v31, %s8119_s9  ;;  %v4101_v19 = vpop.permute.xlu0 %4100 }
 0x400   : > { %v9605_v40 = vsel %vm4118_vm2, %v4101_v19, 0 }
 0x401   : > { %5336 = vrot.lane.b32.xlu0 %v9447_v2, %s8119_s9  ;;  %v4099_v12 = vpop.permute.xlu1 %4098 }
 0x402   : > { %v9617_v6 = vsel %vm4118_vm2, %v4099_v12, 0 }
 0x403   : > { %5320 = vrot.lane.b32.xlu1 %v9294_v16, %s8119_s9 }
 0x405   : > { %5338 = vrot.lane.b32.xlu0 %v9460_v7, %s8119_s9 }
 0x407   : > { %5322 = vrot.lane.b32.xlu1 %v9318_v43, %s8119_s9 }
 0x43f   : > { %v9602_v28 = vpop.permute.xlu0 %4116 }
 0x440   : > { %7403 = vmatprep.subr.msk.bf16.mxu1 %vm4118_vm2, %v9602_v28 }
 0x441   : > { %7105 = vmatpush3.bf16.xpose.msra.mxu1 %v9605_v40  ;;  %v9610_v55 = vpop.permute.xlu1 %4114 }
 0x442   : > { %7404 = vmatprep.subr.msk.bf16.mxu1 %vm4118_vm2, %v9610_v55 }
 0x443   : > { %v4097_v31 = vpop.permute.xlu0 %4096 }
 0x444   : > { %v9627_v58 = vsel %vm4118_vm2, %v4097_v31, 0 }
 0x445   : > { %v9614_v16 = vpop.permute.xlu1 %4112 }
 0x447   : > { %v4095_v43 = vpop.permute.xlu0 %4094 }
 0x448   : > { %v9637_v3 = vsel %vm4118_vm2, %v4095_v43, 0 }
 0x449   : > { %7107 = vmatpush3.bf16.xpose.msra.mxu1 %v9617_v6  ;;  %v9620_v59 = vpop.permute.xlu1 %4110 }
 0x44a   : > { %7405 = vmatprep.subr.msk.bf16.mxu1 %vm4118_vm2, %v9614_v16 }
 0x44b   : > { %v4093_v54 = vpop.permute.xlu0 %4092 }
 0x44c   : > { %v9653_v53 = vsel %vm4118_vm2, %v4093_v54, 0 }
 0x44d   : > { %v9624_v56 = vpop.permute.xlu1 %4108 }
 0x44f   : > { %v4091_v30 = vpop.permute.xlu0 %4090 }
 0x450   : > { %v4150_v33 = vsel %vm4118_vm2, %v4091_v30, 0 }
 0x451   : > { %7109 = vmatpush3.bf16.xpose.msra.mxu1 %v9627_v58  ;;  %v9630_v2 = vpop.permute.xlu1 %4106 }
 0x452   : > { %7406 = vmatprep.subr.msk.bf16.mxu1 %vm4118_vm2, %v9620_v59 }
 0x453   : > { %v4089_v7 = vpop.permute.xlu0 %4088 }
 0x454   : > { %v4147_v46 = vsel %vm4118_vm2, %v4089_v7, 0 }
 0x455   : > { %v9634_v10 = vpop.permute.xlu1 %4104 }
 0x457   : > { %v4087_v42 = vpop.permute.xlu0 %4086 }
 0x458   : > { %v4144_v43 = vsel %vm4118_vm2, %v4087_v42, 0 }
 0x459   : > { %v9639_v60 = vpop.permute.xlu1 %4102  ;;  %7111 = vmatpush3.bf16.xpose.msra.mxu1 %v9637_v3 }
 0x45a   : > { %7407 = vmatprep.subr.msk.bf16.mxu1 %vm4118_vm2, %v9624_v56 }
 0x45b   : > { %v9644_v52 = vpop.permute.xlu0 %5324 }
 0x45c   : > { %11112 = vst [vmem:[#allocation37_spill] sm:$0xff] %v9644_v52  ;;  %5372 = vxpose.xlu0.c.b16.start [1/8] (narrow) %v9644_v52, 16 }
 0x45d   : > { %v9647_v57 = vpop.permute.xlu1 %5308 }
 0x45e   : > { %5356 = vxpose.xlu1.c.b16.start [1/8] (narrow) %v9647_v57, 16 }
 0x45f   : > { %v9650_v38 = vpop.permute.xlu0 %5326 }
 0x460   : > { %11113 = vst [vmem:[#allocation38_spill] sm:$0xff] %v9650_v38  ;;  %5373 = vxpose.xlu0.c.b16.cont [2/8] (narrow) %v9650_v38, 16 }
 0x461   : > { %v9656_v15 = vpop.permute.xlu1 %5310  ;;  %7113 = vmatpush3.bf16.xpose.msra.mxu1 %v9653_v53 }
 0x462   : > { %11114 = vst [vmem:[#allocation39_spill] sm:$0xff] %v9656_v15  ;;  %5357 = vxpose.xlu1.c.b16.cont [2/8] (narrow) %v9656_v15, 16  ;;  %7408 = vmatprep.subr.msk.bf16.mxu1 %vm4118_vm2, %v9630_v2 }
 0x463   : > { %v9662_v20 = vpop.permute.xlu0 %5328 }
 0x464   : > { %11115 = vst [vmem:[#allocation40_spill] sm:$0xff] %v9662_v20  ;;  %5374 = vxpose.xlu0.c.b16.cont [3/8] (narrow) %v9662_v20, 16 }
 0x465   : > { %v9665_v21 = vpop.permute.xlu1 %5312 }
 0x466   : > { %11116 = vst [vmem:[#allocation41_spill] sm:$0xff] %v9665_v21  ;;  %5358 = vxpose.xlu1.c.b16.cont [3/8] (narrow) %v9665_v21, 16 }
 0x467   : > { %v9668_v14 = vpop.permute.xlu0 %5330 }
 0x468   : > { %11117 = vst [vmem:[#allocation42_spill] sm:$0xff] %v9668_v14  ;;  %5375 = vxpose.xlu0.c.b16.cont [4/8] (narrow) %v9668_v14, 16 }
 0x469   : > { %v9672_v50 = vpop.permute.xlu1 %5314  ;;  %7115 = vmatpush3.bf16.xpose.msra.mxu1 %v4150_v33 }
 0x46a   : > { %11118 = vst [vmem:[#allocation43_spill] sm:$0xff] %v9672_v50  ;;  %5359 = vxpose.xlu1.c.b16.cont [4/8] (narrow) %v9672_v50, 16  ;;  %7409 = vmatprep.subr.msk.bf16.mxu1 %vm4118_vm2, %v9634_v10 }
 0x46b   : > { %v9677_v17 = vpop.permute.xlu0 %5332 }
 0x46c   : > { %11119 = vst [vmem:[#allocation44_spill] sm:$0xff] %v9677_v17  ;;  %5376 = vxpose.xlu0.c.b16.cont [5/8] (narrow) %v9677_v17, 16 }
 0x46d   : > { %v9680_v18 = vpop.permute.xlu1 %5316 }
 0x46e   : > { %11120 = vst [vmem:[#allocation45_spill] sm:$0xff] %v9680_v18  ;;  %5360 = vxpose.xlu1.c.b16.cont [5/8] (narrow) %v9680_v18, 16 }
 0x46f   : > { %v9683_v0 = vpop.permute.xlu0 %5334 }
 0x470   : > { %11121 = vst [vmem:[#allocation46_spill] sm:$0xff] %v9683_v0  ;;  %5377 = vxpose.xlu0.c.b16.cont [6/8] (narrow) %v9683_v0, 16 }
 0x471   : > { %v9687_v49 = vpop.permute.xlu1 %5318  ;;  %7117 = vmatpush3.bf16.xpose.msra.mxu1 %v4147_v46 }
 0x472   : > { %11122 = vst [vmem:[#allocation47_spill] sm:$0xff] %v9687_v49  ;;  %5361 = vxpose.xlu1.c.b16.cont [6/8] (narrow) %v9687_v49, 16  ;;  %7410 = vmatprep.subr.msk.bf16.mxu1 %vm4118_vm2, %v9639_v60 }
 0x473   : > { %v9692_v19 = vpop.permute.xlu0 %5336 }
 0x474   : > { %11123 = vst [vmem:[#allocation48_spill] sm:$0xff] %v9692_v19  ;;  %5378 = vxpose.xlu0.c.b16.cont [7/8] (narrow) %v9692_v19, 16 }
 0x475   : > { %v9695_v12 = vpop.permute.xlu1 %5320 }
 0x476   : > { %11124 = vst [vmem:[#allocation49_spill] sm:$0xff] %v9695_v12  ;;  %5362 = vxpose.xlu1.c.b16.cont [7/8] (narrow) %v9695_v12, 16 }
 0x477   : > { %v9698_v31 = vpop.permute.xlu0 %5338 }
 0x478   : > { %11125 = vst [vmem:[#allocation50_spill] sm:$0xff] %v9698_v31  ;;  %5379 = vxpose.xlu0.c.b16.end [8/8] (narrow) %v9698_v31, 16 }
 0x479   : > { %v9702_v54 = vpop.permute.xlu1 %5322  ;;  %7119 = vmatpush3.bf16.xpose.msra.mxu1 %v4144_v43 }
 0x47a   : > { %11126 = vst [vmem:[#allocation51_spill] sm:$0xff] %v9702_v54  ;;  %5363 = vxpose.xlu1.c.b16.end [8/8] (narrow) %v9702_v54, 16  ;;  %7411 = vmatprep.subr.msk.bf16.mxu1 %vm4118_vm2, %v9602_v28 }
 0x47e   : > { %4590 = vrot.lane.b32.xlu1 %v9504_v41, %s8120_s10 }
 0x480   : > { %7121 = vmatmul.mubr.msk.bf16.vlgmr.msra.gmra.mxu1 %vm4118_vm2, %v9475_v29 }
 0x481   : > { %4574 = vrot.lane.b32.xlu0 %v9492_v13, %s8120_s10  ;;  %7122 = vmatprep.mubr.msk.bf16.mxu1 %vm4118_vm2, %v9472_v1 }
 0x482   : > { %7201 = vmatpush3.bf16.xpose.msra.mxu1 %v9605_v40  ;;  %4572 = vrot.lane.b32.xlu1 %v9495_v37, %s8120_s10 }
 0x483   : > { %7412 = vmatprep.subr.msk.bf16.mxu1 %vm4118_vm2, %v9610_v55 }
 0x485   : > { %4570 = vrot.lane.b32.xlu0 %v9487_v11, %s8120_s10 }
 0x486   : > { %4586 = vrot.lane.b32.xlu1 %v9517_v62, %s8120_s10 }
 0x488   : > { %7123 = vmatmul.mubr.msk.bf16.gmra.mxu1 %vm4118_vm2, %v9472_v1 }
 0x489   : > { %7124 = vmatprep.mubr.msk.bf16.mxu1 %vm4118_vm2, %v9543_v32 }
 0x48a   : > { %7203 = vmatpush3.bf16.xpose.msra.mxu1 %v9617_v6  ;;  %4584 = vrot.lane.b32.xlu1 %v9528_v34, %s8120_s10 }
 0x48b   : > { %7413 = vmatprep.subr.msk.bf16.mxu1 %vm4118_vm2, %v9614_v16 }
 0x48e   : > { %4588 = vrot.lane.b32.xlu1 %v9508_v22, %s8120_s10 }
 0x490   : > { %7125 = vmatmul.mubr.msk.bf16.gmra.mxu1 %vm4118_vm2, %v9543_v32 }
 0x491   : > { %7126 = vmatprep.mubr.msk.bf16.mxu1 %vm4118_vm2, %v9483_v35 }
 0x492   : > { %7205 = vmatpush3.bf16.xpose.msra.mxu1 %v9627_v58 }
 0x493   : > { %7414 = vmatprep.subr.msk.bf16.mxu1 %vm4118_vm2, %v9620_v59 }
 0x498   : > { %7127 = vmatmul.mubr.msk.bf16.gmra.mxu1 %vm4118_vm2, %v9483_v35 }
 0x499   : > { %7128 = vmatprep.mubr.msk.bf16.mxu1 %vm4118_vm2, %v9522_v47 }
 0x49a   : > { %7207 = vmatpush3.bf16.xpose.msra.mxu1 %v9637_v3 }
 0x49b   : > { %7415 = vmatprep.subr.msk.bf16.mxu1 %vm4118_vm2, %v9624_v56 }
 0x4a0   : > { %7129 = vmatmul.mubr.msk.bf16.gmra.mxu1 %vm4118_vm2, %v9522_v47 }
 0x4a1   : > { %7130 = vmatprep.mubr.msk.bf16.mxu1 %vm4118_vm2, %v9487_v11 }
 0x4a2   : > { %7209 = vmatpush3.bf16.xpose.msra.mxu1 %v9653_v53 }
 0x4a3   : > { %7416 = vmatprep.subr.msk.bf16.mxu1 %vm4118_vm2, %v9630_v2 }
 0x4a8   : > { %7131 = vmatmul.mubr.msk.bf16.gmra.mxu1 %vm4118_vm2, %v9487_v11 }
 0x4a9   : > { %7132 = vmatprep.mubr.msk.bf16.mxu1 %vm4118_vm2, %v9495_v37 }
 0x4aa   : > { %7211 = vmatpush3.bf16.xpose.msra.mxu1 %v4150_v33 }
 0x4ab   : > { %7417 = vmatprep.subr.msk.bf16.mxu1 %vm4118_vm2, %v9634_v10 }
 0x4b0   : > { %7133 = vmatmul.mubr.msk.bf16.gmra.mxu1 %vm4118_vm2, %v9495_v37 }
 0x4b1   : > { %7134 = vmatprep.mubr.msk.bf16.mxu1 %vm4118_vm2, %v9492_v13 }
 0x4b2   : > { %7213 = vmatpush3.bf16.xpose.msra.mxu1 %v4147_v46 }
 0x4b3   : > { %7418 = vmatprep.subr.msk.bf16.mxu1 %vm4118_vm2, %v9639_v60 }
 0x4b8   : > { %7135 = vmatmul.mubr.msk.bf16.gmra.mxu1 %vm4118_vm2, %v9492_v13 }
 0x4b9   : > { %7216 = vmatprep.mubr.msk.bf16.mxu1 %vm4118_vm2, %v9564_v4 }
 0x4ba   : > { %7215 = vmatpush3.bf16.xpose.msra.mxu1 %v4144_v43 }
 0x4bb   : > { %7296 = vmatprep.subr.bf16.mxu1 %v9698_v31 }
 0x4be   : > { %v5380_v11 = vpop.trf.xlu0 }
 0x4c0   : > { %v5364_v13 = vpop.trf.xlu1 }
 0x4c1   : > { %7217 = vmatmul.mubr.msk.bf16.vlgmr.msra.gmra.mxu1 %vm4118_vm2, %v9564_v4 }
 0x4c2   : > { %7218 = vmatprep.mubr.msk.bf16.mxu1 %vm4118_vm2, %v9556_v8  ;;  %7297 = vmatpush3.bf16.msra.mxu1 %v9702_v54 }
 0x4c3   : > { %7298 = vmatprep.subr.bf16.mxu1 %v9692_v19 }
 0x4c6   : > { %7299 = vmatpush3.bf16.msra.mxu1 %v9695_v12 }
 0x4c7   : > { %7300 = vmatprep.subr.bf16.mxu1 %v9683_v0 }
 0x4c9   : > { %7219 = vmatmul.mubr.msk.bf16.gmra.mxu1 %vm4118_vm2, %v9556_v8 }
 0x4ca   : > { %7220 = vmatprep.mubr.msk.bf16.mxu1 %vm4118_vm2, %v9549_v25  ;;  %7301 = vmatpush3.bf16.msra.mxu1 %v9687_v49 }
 0x4cb   : > { %7302 = vmatprep.subr.bf16.mxu1 %v9677_v17 }
 0x4ce   : > { %7303 = vmatpush3.bf16.msra.mxu1 %v9680_v18 }
 0x4cf   : > { %7304 = vmatprep.subr.bf16.mxu1 %v9668_v14 }
 0x4d1   : > { %7221 = vmatmul.mubr.msk.bf16.gmra.mxu1 %vm4118_vm2, %v9549_v25 }
 0x4d2   : > { %7222 = vmatprep.mubr.msk.bf16.mxu1 %vm4118_vm2, %v9538_v5  ;;  %7305 = vmatpush3.bf16.msra.mxu1 %v9672_v50 }
 0x4d3   : > { %7306 = vmatprep.subr.bf16.mxu1 %v9662_v20 }
 0x4d6   : > { %7307 = vmatpush3.bf16.msra.mxu1 %v9665_v21 }
 0x4d7   : > { %7308 = vmatprep.subr.bf16.mxu1 %v9650_v38 }
 0x4d9   : > { %7223 = vmatmul.mubr.msk.bf16.gmra.mxu1 %vm4118_vm2, %v9538_v5 }
 0x4da   : > { %7224 = vmatprep.mubr.msk.bf16.mxu1 %vm4118_vm2, %v9528_v34  ;;  %7309 = vmatpush3.bf16.msra.mxu1 %v9656_v15 }
 0x4db   : > { %7310 = vmatprep.subr.bf16.mxu1 %v9644_v52 }
 0x4de   : > { %7311 = vmatpush3.bf16.msra.mxu1 %v9647_v57 }
 0x4e1   : > { %7225 = vmatmul.mubr.msk.bf16.gmra.mxu1 %vm4118_vm2, %v9528_v34 }
 0x4e2   : > { %7226 = vmatprep.mubr.msk.bf16.mxu1 %vm4118_vm2, %v9517_v62 }
 0x4e9   : > { %7227 = vmatmul.mubr.msk.bf16.gmra.mxu1 %vm4118_vm2, %v9517_v62 }
 0x4ea   : > { %7228 = vmatprep.mubr.msk.bf16.mxu1 %vm4118_vm2, %v9508_v22 }
 0x4f0   : > { %v9812_v37 = vpop.permute.xlu1 %4590 }
 0x4f1   : > { %11127 = vst [vmem:[#allocation52_spill] sm:$0xff] %v9812_v37  ;;  %7229 = vmatmul.mubr.msk.bf16.gmra.mxu1 %vm4118_vm2, %v9508_v22  ;;  %7136 = vmatprep.subr.bf16.mxu0 %v9812_v37 }
 0x4f2   : > { %7230 = vmatprep.mubr.msk.bf16.mxu1 %vm4118_vm2, %v9504_v41 }
 0x4f3   : > { %v9819_v34 = vpop.permute.xlu0 %4574 }
 0x4f4   : > { %11128 = vst [vmem:[#allocation53_spill] sm:$0xff] %v9819_v34  ;;  %v9821_v28 = vpop.permute.xlu1 %4572  ;;  %7137 = vmatpush3.bf16.msra.mxu0 %v9819_v34 }
 0x4f5   : > { %11129 = vst [vmem:[#allocation54_spill] sm:$0xff] %v9821_v28 }
 0x4f7   : > { %v9837_v55 = vpop.permute.xlu0 %4570 }
 0x4f8   : > { %v9824_v62 = vpop.permute.xlu1 %4586  ;;  %11133 = vst [vmem:[#allocation58_spill] sm:$0xff] %v9837_v55 }
 0x4f9   : > { %11130 = vst [vmem:[#allocation55_spill] sm:$0xff] %v9824_v62  ;;  %7231 = vmatmul.mubr.msk.bf16.gmra.mxu1 %vm4118_vm2, %v9504_v41 }
 0x4fa   : > { %5420 = vmatprep.mubr.bf16.mxu1 %v5380_v11 }
 0x4fc   : > { %v9828_v40 = vpop.permute.xlu1 %4584 }
 0x4fd   : > { %11131 = vst [vmem:[#allocation56_spill] sm:$0xff] %v9828_v40 }
 0x500   : > { %v9830_v22 = vpop.permute.xlu1 %4588 }
 0x501   : > { %11132 = vst [vmem:[#allocation57_spill] sm:$0xff] %v9830_v22  ;;  %5421 = vmatmul.mubr.bf16.vlgmr.msra.gmra.mxu1 %v5364_v13  ;;  %7138 = vmatprep.subr.bf16.mxu0 %v9830_v22 }
 0x502   : > { %7371 = vmatprep.mubr.msk.bf16.mxu1 %vm3843_vm1, %v9647_v57  ;;  %7139 = vmatpush3.bf16.msra.mxu0 %v9821_v28 }
 0x503   : > { %7140 = vmatprep.subr.bf16.mxu0 %v9824_v62 }
 0x506   : > { %7141 = vmatpush3.bf16.msra.mxu0 %v9837_v55 }
 0x507   : > { %7142 = vmatprep.subr.bf16.mxu0 %v9828_v40 }
 0x540   : > { %v9841_v41 = vpop.f32.mrf.mxu1 }
 0x542   : > { %v9843_v16 = vpop.f32.mrf.mxu1 }
 0x543   : > { %v4304_v6 = vmax.f32 %v9841_v41, %v9843_v16 }
 0x544   : > { %v9847_v59 = vpop.f32.mrf.mxu1 }
 0x545   : > { %4305 = vmax.xlane.f32.xlu0 %v4304_v6 }
 0x546   : > { %v9849_v56 = vpop.f32.mrf.mxu1 }
 0x547   : > { %v4307_v30 = vmax.f32 %v9847_v59, %v9849_v56 }
 0x548   : > { %v9853_v58 = vpop.f32.mrf.mxu1 }
 0x549   : > { %4308 = vmax.xlane.f32.xlu0 %v4307_v30 }
 0x54a   : > { %v9855_v2 = vpop.f32.mrf.mxu1 }
 0x54b   : > { %v4310_v7 = vmax.f32 %v9853_v58, %v9855_v2 }
 0x54c   : > { %v9859_v10 = vpop.f32.mrf.mxu1 }
 0x54d   : > { %4311 = vmax.xlane.f32.xlu1 %v4310_v7 }
 0x54e   : > { %v9861_v42 = vpop.f32.mrf.mxu1 }
 0x54f   : > { %v4313_v3 = vmax.f32 %v9859_v10, %v9861_v42 }
 0x550   : > { %v9865_v60 = vpop.f32.mrf.mxu1 }
 0x551   : > { %4314 = vmax.xlane.f32.xlu0 %v4313_v3 }
 0x552   : > { %v9867_v57 = vpop.f32.mrf.mxu1 }
 0x553   : > { %v4316_v53 = vmax.f32 %v9865_v60, %v9867_v57 }
 0x554   : > { %v9871_v33 = vpop.f32.mrf.mxu1 }
 0x555   : > { %4317 = vmax.xlane.f32.xlu1 %v4316_v53 }
 0x556   : > { %v9873_v46 = vpop.f32.mrf.mxu1 }
 0x557   : > { %v4319_v43 = vmax.f32 %v9871_v33, %v9873_v46 }
 0x558   : > { %v9877_v13 = vpop.f32.mrf.mxu1 }
 0x559   : > { %4320 = vmax.xlane.f32.xlu0 %v4319_v43 }
 0x55a   : > { %v9879_v11 = vpop.f32.mrf.mxu1 }
 0x55b   : > { %v4322_v6 = vmax.f32 %v9877_v13, %v9879_v11 }
 0x55c   : > { %v9883_v30 = vpop.f32.mrf.mxu1 }
 0x55d   : > { %4323 = vmax.xlane.f32.xlu1 %v4322_v6 }
 0x55e   : > { %v9885_v7 = vpop.f32.mrf.mxu1 }
 0x55f   : > { %v4325_v3 = vmax.f32 %v9883_v30, %v9885_v7 }
 0x560   : > { %v9889_v53 = vpop.f32.mrf.mxu1 }
 0x561   : > { %4326 = vmax.xlane.f32.xlu0 %v4325_v3 }
 0x562   : > { %v9891_v31 = vpop.f32.mrf.mxu1 }
 0x563   : > { %v4328_v43 = vmax.f32 %v9889_v53, %v9891_v31 }
 0x564   : > { %v9895_v19 = vpop.f32.mrf.mxu1 }
 0x565   : > { %4329 = vmax.xlane.f32.xlu1 %v4328_v43 }
 0x566   : > { %v9897_v0 = vpop.f32.mrf.mxu1 }
 0x567   : > { %v4331_v6 = vmax.f32 %v9895_v19, %v9897_v0 }
 0x568   : > { %v9901_v17 = vpop.f32.mrf.mxu1 }
 0x569   : > { %4332 = vmax.xlane.f32.xlu0 %v4331_v6 }
 0x56a   : > { %v9903_v14 = vpop.f32.mrf.mxu1 }
 0x56b   : > { %v4334_v3 = vmax.f32 %v9901_v17, %v9903_v14 }
 0x56c   : > { %v9907_v20 = vpop.f32.mrf.mxu1 }
 0x56d   : > { %4335 = vmax.xlane.f32.xlu1 %v4334_v3 }
 0x56e   : > { %v9909_v38 = vpop.f32.mrf.mxu1 }
 0x56f   : > { %v4337_v43 = vmax.f32 %v9907_v20, %v9909_v38 }
 0x570   : > { %v9913_v52 = vpop.f32.mrf.mxu1 }
 0x571   : > { %4338 = vmax.xlane.f32.xlu0 %v4337_v43 }
 0x572   : > { %v9915_v54 = vpop.f32.mrf.mxu1 }
 0x573   : > { %v4340_v6 = vmax.f32 %v9913_v52, %v9915_v54 }
 0x574   : > { %v9919_v12 = vpop.f32.mrf.mxu1 }
 0x575   : > { %4341 = vmax.xlane.f32.xlu1 %v4340_v6 }
 0x576   : > { %v9921_v49 = vpop.f32.mrf.mxu1 }
 0x577   : > { %v4343_v3 = vmax.f32 %v9919_v12, %v9921_v49 }
 0x578   : > { %v9925_v18 = vpop.f32.mrf.mxu1 }
 0x579   : > { %4344 = vmax.xlane.f32.xlu0 %v4343_v3 }
 0x57a   : > { %v9927_v50 = vpop.f32.mrf.mxu1 }
 0x57b   : > { %v4346_v43 = vmax.f32 %v9925_v18, %v9927_v50 }
 0x57c   : > { %v9931_v21 = vpop.f32.mrf.mxu1 }
 0x57d   : > { %4347 = vmax.xlane.f32.xlu1 %v4346_v43 }
 0x57e   : > { %v9933_v15 = vpop.f32.mrf.mxu1 }
 0x57f   : > { %v4349_v6 = vmax.f32 %v9931_v21, %v9933_v15 }
 0x581   : > { %v9937_v23 = vpop.f32.mrf.mxu1  ;;  %4350 = vmax.xlane.f32.xlu0 %v4349_v6 }
 0x582   : > { %11134 = vst [vmem:[#allocation59_spill] sm:$0xff] %v9937_v23 }
 0x583   : > { %v9939_v36 = vpop.f32.mrf.mxu1 }
 0x584   : > { %11135 = vst [vmem:[#allocation60_spill] sm:$0xff] %v9939_v36  ;;  %v4891_v3 = vmax.f32 %v9937_v23, %v9939_v36 }
 0x585   : > { %v9943_v39 = vpop.f32.mrf.mxu1 }
 0x586   : > { %11136 = vst [vmem:[#allocation61_spill] sm:$0xff] %v9943_v39  ;;  %4892 = vmax.xlane.f32.xlu1 %v4891_v3 }
 0x587   : > { %v9945_v63 = vpop.f32.mrf.mxu1 }
 0x588   : > { %11137 = vst [vmem:[#allocation62_spill] sm:$0xff] %v9945_v63  ;;  %v4894_v43 = vmax.f32 %v9943_v39, %v9945_v63 }
 0x589   : > { %v9949_v9 = vpop.f32.mrf.mxu1 }
 0x58a   : > { %11138 = vst [vmem:[#allocation63_spill] sm:$0xff] %v9949_v9  ;;  %4895 = vmax.xlane.f32.xlu0 %v4894_v43 }
 0x58b   : > { %v9951_v24 = vpop.f32.mrf.mxu1 }
 0x58c   : > { %11139 = vst [vmem:[#allocation64_spill] sm:$0xff] %v9951_v24  ;;  %v4897_v6 = vmax.f32 %v9949_v9, %v9951_v24 }
 0x58d   : > { %v9955_v26 = vpop.f32.mrf.mxu1 }
 0x58e   : > { %11140 = vst [vmem:[#allocation65_spill] sm:$0xff] %v9955_v26  ;;  %4898 = vmax.xlane.f32.xlu1 %v4897_v6 }
 0x58f   : > { %v9957_v27 = vpop.f32.mrf.mxu1 }
 0x590   : > { %11141 = vst [vmem:[#allocation66_spill] sm:$0xff] %v9957_v27  ;;  %v4900_v3 = vmax.f32 %v9955_v26, %v9957_v27 }
 0x591   : > { %v9961_v45 = vpop.f32.mrf.mxu1 }
 0x592   : > { %11142 = vst [vmem:[#allocation67_spill] sm:$0xff] %v9961_v45  ;;  %4901 = vmax.xlane.f32.xlu0 %v4900_v3 }
 0x593   : > { %v9963_v51 = vpop.f32.mrf.mxu1 }
 0x594   : > { %11143 = vst [vmem:[#allocation68_spill] sm:$0xff] %v9963_v51  ;;  %v4903_v43 = vmax.f32 %v9961_v45, %v9963_v51 }
 0x595   : > { %v9967_v44 = vpop.f32.mrf.mxu1 }
 0x596   : > { %11144 = vst [vmem:[#allocation69_spill] sm:$0xff] %v9967_v44  ;;  %4904 = vmax.xlane.f32.xlu1 %v4903_v43 }
 0x597   : > { %v9969_v48 = vpop.f32.mrf.mxu1 }
 0x598   : > { %11145 = vst [vmem:[#allocation70_spill] sm:$0xff] %v9969_v48  ;;  %v4906_v6 = vmax.f32 %v9967_v44, %v9969_v48 }
 0x599   : > { %v9973_v61 = vpop.f32.mrf.mxu1 }
 0x59a   : > { %11146 = vst [vmem:[#allocation71_spill] sm:$0xff] %v9973_v61  ;;  %4907 = vmax.xlane.f32.xlu0 %v4906_v6 }
 0x59b   : > { %v9975_v40 = vpop.f32.mrf.mxu1 }
 0x59c   : > { %11147 = vst [vmem:[#allocation72_spill] sm:$0xff] %v9975_v40  ;;  %v4909_v3 = vmax.f32 %v9973_v61, %v9975_v40 }
 0x59d   : > { %v9979_v55 = vpop.f32.mrf.mxu1 }
 0x59e   : > { %11148 = vst [vmem:[#allocation73_spill] sm:$0xff] %v9979_v55  ;;  %4910 = vmax.xlane.f32.xlu1 %v4909_v3 }
 0x59f   : > { %v9981_v62 = vpop.f32.mrf.mxu1 }
 0x5a0   : > { %11149 = vst [vmem:[#allocation74_spill] sm:$0xff] %v9981_v62  ;;  %v4912_v43 = vmax.f32 %v9979_v55, %v9981_v62 }
 0x5a1   : > { %v9985_v28 = vpop.f32.mrf.mxu1 }
 0x5a2   : > { %11150 = vst [vmem:[#allocation75_spill] sm:$0xff] %v9985_v28  ;;  %4913 = vmax.xlane.f32.xlu0 %v4912_v43 }
 0x5a3   : > { %v9987_v22 = vpop.f32.mrf.mxu1 }
 0x5a4   : > { %11151 = vst [vmem:[#allocation76_spill] sm:$0xff] %v9987_v22  ;;  %v4915_v6 = vmax.f32 %v9985_v28, %v9987_v22 }
 0x5a5   : > { %v9991_v34 = vpop.f32.mrf.mxu1 }
 0x5a6   : > { %11152 = vst [vmem:[#allocation77_spill] sm:$0xff] %v9991_v34  ;;  %4916 = vmax.xlane.f32.xlu1 %v4915_v6 }
 0x5a7   : > { %v9993_v37 = vpop.f32.mrf.mxu1 }
 0x5a8   : > { %11153 = vst [vmem:[#allocation78_spill] sm:$0xff] %v9993_v37  ;;  %v4918_v3 = vmax.f32 %v9991_v34, %v9993_v37 }
 0x5a9   : > { %v9997_v40 = vpop.f32.mrf.mxu1 }
 0x5aa   : > { %4919 = vmax.xlane.f32.xlu0 %v4918_v3 }
 0x5ab   : > { %v9999_v62 = vpop.f32.mrf.mxu1 }
 0x5ad   : > { %v10001_v55 = vpop.f32.mrf.mxu1 }
 0x5ae   : > { %11154 = vst [vmem:[#allocation79_spill] sm:$0xff] %v10001_v55 }
 0x5af   : > { %v10003_v43 = vpop.f32.mrf.mxu1 }
 0x5b0   : > { %11155 = vst [vmem:[#allocation80_spill] sm:$0xff] %v10003_v43  ;;  %v4924_v63 = vmax.f32 %v10001_v55, %v10003_v43 }
 0x5b1   : > { %v10005_v61 = vpop.f32.mrf.mxu1 }
 0x5b3   : > { %v10007_v22 = vpop.f32.mrf.mxu1 }
 0x5b5   : > { %v10009_v28 = vpop.f32.mrf.mxu1 }
 0x5b6   : > { %11156 = vst [vmem:[#allocation81_spill] sm:$0xff] %v10009_v28 }
 0x5b7   : > { %v10011_v6 = vpop.f32.mrf.mxu1 }
 0x5b8   : > { %11157 = vst [vmem:[#allocation82_spill] sm:$0xff] %v10011_v6 }
 0x5b9   : > { %v10013_v48 = vpop.f32.mrf.mxu1 }
 0x5bb   : > { %v10015_v37 = vpop.f32.mrf.mxu1 }
 0x5bd   : > { %v10017_v34 = vpop.f32.mrf.mxu1 }
 0x5be   : > { %11158 = vst [vmem:[#allocation83_spill] sm:$0xff] %v10017_v34 }
 0x5bf   : > { %v10019_v3 = vpop.f32.mrf.mxu1 }
 0x5c1   : > { %v7312_v44 = vpop.f32.mrf.mxu1 }
 0x5c3   : > { %v7313_v51 = vpop.f32.mrf.mxu1 }
 0x5c4   : > { %v10021_v45 = vadd.f32 %v7313_v51, %v7312_v44 }
 0x5c5   : > { %v7315_v27 = vpop.f32.mrf.mxu1 }
 0x5c6   : > { %v5429_v26 = vsel %vm3843_vm1, %v10021_v45, -inf }
 0x5c7   : > { %v7316_v24 = vpop.f32.mrf.mxu1  ;;  %5430 = vmax.xlane.f32.xlu0 %v5429_v26 }
 0x5c8   : > { %v10025_v9 = vadd.f32 %v7316_v24, %v7315_v27 }
 0x5ca   : > { %v5432_v39 = vsel %vm3843_vm1, %v10025_v9, -inf }
 0x5cb   : > { %5433 = vmax.xlane.f32.xlu1 %v5432_v39  ;;  %4925 = vmax.xlane.f32.xlu0 %v4924_v63 }
 0x5ce   : > { %v4306_v51 = vpop.xlane.xlu0 %4305 }
 0x5cf   : > { %v4352_v44 = vsub.f32 %v9841_v41, %v4306_v51  ;;  %v4353_v27 = vsub.f32 %v9843_v16, %v4306_v51 }
 0x5d1   : > { %v4384_v26 = vmul.f32 1.442695, %v4352_v44  ;;  %v4386_v55 = vmul.f32 1.442695, %v4353_v27 }
 0x5d2   : > { %v4309_v24 = vpop.xlane.xlu0 %4308 }
 0x5d3   : > { %v4354_v43 = vsub.f32 %v9847_v59, %v4309_v24  ;;  %v4355_v36 = vsub.f32 %v9849_v56, %v4309_v24  ;;  %7889 = vpow2.f32 %v4384_v26 }
 0x5d4   : > { %7891 = vpow2.f32 %v4386_v55 }
 0x5d5   : > { %v4388_v63 = vmul.f32 1.442695, %v4354_v43  ;;  %v4390_v23 = vmul.f32 1.442695, %v4355_v36 }
 0x5d6   : > { %v4312_v39 = vpop.xlane.xlu1 %4311 }
 0x5d7   : > { %7893 = vpow2.f32 %v4388_v63 }
 0x5d8   : > { %7895 = vpow2.f32 %v4390_v23  ;;  %v4921_v23 = vmax.f32 %v9997_v40, %v9999_v62 }
 0x5da   : > { %v4315_v34 = vpop.xlane.xlu0 %4314 }
 0x5db   : > { %v4358_v16 = vsub.f32 %v9859_v10, %v4315_v34  ;;  %v4359_v59 = vsub.f32 %v9861_v42, %v4315_v34 }
 0x5dc   : > { %4568 = vrot.lane.b32.xlu1 %v9522_v47, %s8120_s10  ;;  %v4356_v47 = vsub.f32 %v9853_v58, %v4312_v39 }
 0x5dd   : > { %v4396_v56 = vmul.f32 1.442695, %v4358_v16  ;;  %v4398_v58 = vmul.f32 1.442695, %v4359_v59 }
 0x5de   : > { %v4392_v41 = vmul.f32 1.442695, %v4356_v47  ;;  %v4318_v44 = vpop.xlane.xlu1 %4317 }
 0x5df   : > { %v4360_v43 = vsub.f32 %v9865_v60, %v4318_v44  ;;  %v4361_v36 = vsub.f32 %v9867_v57, %v4318_v44  ;;  %v4930_v60 = vmax.f32 %v10009_v28, %v10011_v6 }
 0x5e0   : > { %7897 = vpow2.f32 %v4392_v41  ;;  %v10048_v10 = vpop.eup %7889 }
 0x5e1   : > { %4566 = vrot.lane.b32.xlu0 %v9483_v35, %s8120_s10  ;;  %v4357_v35 = vsub.f32 %v9855_v2, %v4312_v39  ;;  %v4400_v2 = vmul.f32 1.442695, %v4360_v43  ;;  %v4402_v34 = vmul.f32 1.442695, %v4361_v36  ;;  %v10053_v24 = vpop.eup %7891 }
 0x5e2   : > { %v4321_v55 = vpop.xlane.xlu0 %4320  ;;  %v4448_v39 = vadd.f32 %v10053_v24, %v10048_v10 }
 0x5e3   : > { %v4394_v51 = vmul.f32 1.442695, %v4357_v35  ;;  %v4362_v27 = vsub.f32 %v9871_v33, %v4321_v55  ;;  %v4363_v42 = vsub.f32 %v9873_v46, %v4321_v55 }
 0x5e4   : > { %v10055_v26 = vpop.eup %7893 }
 0x5e5   : > { %7899 = vpow2.f32 %v4394_v51  ;;  %v4404_v57 = vmul.f32 1.442695, %v4362_v27  ;;  %v4406_v33 = vmul.f32 1.442695, %v4363_v42  ;;  %v10059_v63 = vpop.eup %7895 }
 0x5e6   : > { %7901 = vpow2.f32 %v4396_v56  ;;  %v4451_v47 = vadd.f32 %v10059_v63, %v10055_v26 }
 0x5e7   : > { %7903 = vpow2.f32 %v4398_v58 }
 0x5e8   : > { %7905 = vpow2.f32 %v4400_v2 }
 0x5e9   : > { %7907 = vpow2.f32 %v4402_v34 }
 0x5ea   : > { %7909 = vpow2.f32 %v4404_v57  ;;  %v4327_v2 = vpop.xlane.xlu0 %4326 }
 0x5eb   : > { %7911 = vpow2.f32 %v4406_v33  ;;  %v4927_v33 = vmax.f32 %v10005_v61, %v10007_v22 }
 0x5ed   : > { %v10061_v46 = vpop.eup %7897 }
 0x5ee   : > { %11159 = vst [vmem:[#allocation84_spill] sm:$0xff] %v10061_v46 }
 0x5f2   : > { %v10065_v35 = vpop.eup %7899  ;;  %v10093_v27 = vpop.xlane.xlu0 %4332 }
 0x5f3   : > { %v10067_v41 = vpop.eup %7901  ;;  %v4454_v16 = vadd.f32 %v10065_v35, %v10061_v46 }
 0x5f4   : > { %11160 = vst [vmem:[#allocation85_spill] sm:$0xff] %v10067_v41  ;;  %v10071_v51 = vpop.eup %7903 }
 0x5f5   : > { %v10073_v59 = vpop.eup %7905  ;;  %v4457_v44 = vadd.f32 %v10071_v51, %v10067_v41 }
 0x5f6   : > { %11161 = vst [vmem:[#allocation86_spill] sm:$0xff] %v10073_v59  ;;  %v10077_v56 = vpop.eup %7907 }
 0x5f7   : > { %11162 = vst [vmem:[#allocation87_spill] sm:$0xff] %v10077_v56  ;;  %v10081_v43 = vpop.eup %7909  ;;  %v4460_v58 = vadd.f32 %v10077_v56, %v10073_v59  ;;  %v4366_v56 = vsub.f32 %v9883_v30, %v4327_v2 }
 0x5f8   : > { %11163 = vst [vmem:[#allocation88_spill] sm:$0xff] %v10081_v43  ;;  %v10085_v36 = vpop.eup %7911 }
 0x5f9   : > { %11164 = vst [vmem:[#allocation89_spill] sm:$0xff] %v10085_v36  ;;  %v4463_v55 = vadd.f32 %v10085_v36, %v10081_v43  ;;  %v4367_v36 = vsub.f32 %v9885_v7, %v4327_v2  ;;  %v4412_v6 = vmul.f32 1.442695, %v4366_v56 }
 0x5fa   : > { %v10095_v34 = vpop.xlane.xlu0 %4338 }
 0x600   : > { %4922 = vmax.xlane.f32.xlu1 %v4921_v23  ;;  %4931 = vmax.xlane.f32.xlu0 %v4930_v60 }
 0x602   : > { %v10099_v60 = vpop.xlane.xlu0 %4344 }
 0x604   : > { %4449 = vadd.xlane.f32.xlu0 %v4448_v39 }
 0x608   : > { %4452 = vadd.xlane.f32.xlu0 %v4451_v47 }
 0x60c   : > { %4455 = vadd.xlane.f32.xlu0 %v4454_v16 }
 0x610   : > { %4458 = vadd.xlane.f32.xlu0 %v4457_v44 }
 0x611   : > { %4582 = vrot.lane.b32.xlu1 %v9538_v5, %s8120_s10  ;;  %v4324_v5 = vpop.xlane.xlu1 %4323 }
 0x612   : > { %v4364_v44 = vsub.f32 %v9877_v13, %v4324_v5  ;;  %v4414_v13 = vmul.f32 1.442695, %v4367_v36 }
 0x614   : > { %4461 = vadd.xlane.f32.xlu0 %v4460_v58  ;;  %v4365_v58 = vsub.f32 %v9879_v11, %v4324_v5  ;;  %v4408_v43 = vmul.f32 1.442695, %v4364_v44 }
 0x615   : > { %4580 = vrot.lane.b32.xlu1 %v9549_v25, %s8120_s10  ;;  %v4330_v23 = vpop.xlane.xlu1 %4329  ;;  %v10103_v25 = vpop.xlane.xlu0 %4350 }
 0x616   : > { %v4410_v46 = vmul.f32 1.442695, %v4365_v58  ;;  %7913 = vpow2.f32 %v4408_v43 }
 0x618   : > { %4464 = vadd.xlane.f32.xlu0 %v4463_v55  ;;  %7915 = vpow2.f32 %v4410_v46 }
 0x619   : > { %4564 = vrot.lane.b32.xlu1 %v9543_v32, %s8120_s10  ;;  %v10097_v42 = vpop.xlane.xlu1 %4335  ;;  %v10109_v32 = vpop.xlane.xlu0 %4895  ;;  %7917 = vpow2.f32 %v4412_v6 }
 0x61a   : > { %7919 = vpow2.f32 %v4414_v13 }
 0x61d   : > { %v10101_v57 = vpop.xlane.xlu1 %4341  ;;  %v10113_v16 = vpop.xlane.xlu0 %4901 }
 0x621   : > { %v10107_v39 = vpop.xlane.xlu1 %4347 }
 0x623   : > { %v10119_v59 = vpop.xlane.xlu0 %4907  ;;  %v10141_v56 = vpop.eup %7913 }
 0x625   : > { %v10111_v47 = vpop.xlane.xlu1 %4892  ;;  %v10143_v43 = vpop.eup %7915 }
 0x626   : > { %v4466_v58 = vadd.f32 %v10143_v43, %v10141_v56 }
 0x629   : > { %v10117_v55 = vpop.xlane.xlu1 %4898 }
 0x62d   : > { %v10123_v41 = vpop.xlane.xlu1 %4904 }
 0x631   : > { %v10127_v28 = vpop.xlane.xlu1 %4910 }
 0x635   : > { %v10131_v5 = vpop.xlane.xlu1 %4916 }
 0x63d   : > { %4928 = vmax.xlane.f32.xlu1 %v4927_v33  ;;  %v10125_v33 = vpop.xlane.xlu0 %4913 }
 0x641   : > { %v10129_v11 = vpop.xlane.xlu0 %4919 }
 0x650   : > { %v5431_v30 = vpop.xlane.xlu0 %5430 }
 0x651   : > { %v10134_v44 = vsub.f32 %v5431_v30, %v10021_v45  ;;  %v10150_v45 = vpop.eup %7917  ;;  %v4368_v30 = vsub.f32 %v9889_v53, %v4330_v23 }
 0x652   : > { %v10154_v13 = vpop.eup %7919 }
 0x653   : > { %v5437_v7 = vsel %vm3843_vm1, %v10134_v44, -inf }
 0x654   : > { %v5434_v2 = vpop.xlane.xlu1 %5433  ;;  %5438 = vmax.xlane.f32.xlu1 %v5437_v7  ;;  %v4369_v7 = vsub.f32 %v9891_v31, %v4330_v23  ;;  %v4374_v31 = vsub.f32 %v9907_v20, %v10095_v34 }
 0x655   : > { %v10139_v46 = vsub.f32 %v5434_v2, %v10025_v9  ;;  %v4469_v9 = vadd.f32 %v10154_v13, %v10150_v45  ;;  %v4370_v2 = vsub.f32 %v9895_v19, %v10093_v27  ;;  %v4375_v19 = vsub.f32 %v9909_v38, %v10095_v34 }
 0x656   : > { %v4428_v23 = vmul.f32 1.442695, %v4374_v31  ;;  %v4379_v38 = vsub.f32 %v9921_v49, %v10099_v60  ;;  %v4383_v49 = vsub.f32 %v9933_v15, %v10103_v25  ;;  %v4933_v15 = vmax.f32 %v10013_v48, %v10015_v37 }
 0x657   : > { %v5440_v6 = vsel %vm3843_vm1, %v10139_v46, -inf  ;;  %v4430_v20 = vmul.f32 1.442695, %v4375_v19 }
 0x658   : > { %v10147_v36 = vpop.permute.xlu1 %4568  ;;  %5441 = vmax.xlane.f32.xlu0 %v5440_v6  ;;  %v4371_v6 = vsub.f32 %v9897_v0, %v10093_v27  ;;  %v4376_v27 = vsub.f32 %v9913_v52, %v10101_v57  ;;  %v4380_v52 = vsub.f32 %v9925_v18, %v10107_v39 }
 0x659   : > { %7143 = vmatpush3.bf16.msra.mxu0 %v10147_v36 }
 0x65a   : > { %v4422_v53 = vmul.f32 1.442695, %v4371_v6  ;;  %v4440_v18 = vmul.f32 1.442695, %v4380_v52 }
 0x65c   : > { %4467 = vadd.xlane.f32.xlu0 %v4466_v58  ;;  %v4418_v58 = vmul.f32 1.442695, %v4369_v7 }
 0x660   : > { %4470 = vadd.xlane.f32.xlu0 %v4469_v9  ;;  %v10176_v9 = vpop.xlane.xlu0 %4925 }
 0x664   : > { %v10190_v34 = vpop.permute.xlu0 %4566 }
 0x665   : > { %4578 = vrot.lane.b32.xlu1 %v9556_v8, %s8120_s10  ;;  %v4416_v8 = vmul.f32 1.442695, %v4368_v30  ;;  %v4432_v30 = vmul.f32 1.442695, %v4376_v27 }
 0x667   : > { %7921 = vpow2.f32 %v4416_v8 }
 0x668   : > { %7923 = vpow2.f32 %v4418_v58 }
 0x669   : > { %4576 = vrot.lane.b32.xlu1 %v9564_v4, %s8120_s10  ;;  %v4372_v4 = vsub.f32 %v9901_v17, %v10097_v42 }
 0x66b   : > { %v4424_v0 = vmul.f32 1.442695, %v4372_v4 }
 0x66d   : > { %4560 = vrot.lane.b32.xlu1 %v9475_v29, %s8120_s10  ;;  %v4373_v29 = vsub.f32 %v9903_v14, %v10097_v42  ;;  %v4377_v14 = vsub.f32 %v9915_v54, %v10101_v57  ;;  %v4378_v42 = vsub.f32 %v9919_v12, %v10099_v60  ;;  %v4381_v54 = vsub.f32 %v9927_v50, %v10107_v39 }
 0x66e   : > { %v4382_v12 = vsub.f32 %v9931_v21, %v10103_v25  ;;  %v4446_v39 = vmul.f32 1.442695, %v4383_v49 }
 0x66f   : > { %v4426_v17 = vmul.f32 1.442695, %v4373_v29  ;;  %v4434_v7 = vmul.f32 1.442695, %v4377_v14  ;;  %v4436_v57 = vmul.f32 1.442695, %v4378_v42 }
 0x670   : > { %v4442_v8 = vmul.f32 1.442695, %v4381_v54  ;;  %v4444_v50 = vmul.f32 1.442695, %v4382_v12 }
 0x674   : > { %v10207_v58 = vpop.eup %7921 }
 0x675   : > { %v10212_v25 = vpop.eup %7923 }
 0x676   : > { %4562 = vrot.lane.b32.xlu0 %v9472_v1, %s8120_s10  ;;  %v4420_v1 = vmul.f32 1.442695, %v4370_v2  ;;  %v4438_v2 = vmul.f32 1.442695, %v4379_v38 }
 0x678   : > { %7925 = vpow2.f32 %v4420_v1 }
 0x679   : > { %7927 = vpow2.f32 %v4422_v53 }
 0x67a   : > { %7929 = vpow2.f32 %v4424_v0  ;;  %v11165_v0 = vld [vmem:[#allocation83_spill] sm:$0xff] }
 0x67b   : > { %7931 = vpow2.f32 %v4426_v17  ;;  %v4936_v27 = vmax.f32 %v11165_v0, %v10019_v3  ;;  %v4472_v17 = vadd.f32 %v10212_v25, %v10207_v58 }
 0x67c   : > { %7933 = vpow2.f32 %v4428_v23 }
 0x67d   : > { %7935 = vpow2.f32 %v4430_v20 }
 0x67e   : > { %7937 = vpow2.f32 %v4432_v30 }
 0x67f   : > { %7939 = vpow2.f32 %v4434_v7 }
 0x680   : > { %7941 = vpow2.f32 %v4436_v57 }
 0x681   : > { %7943 = vpow2.f32 %v4438_v2 }
 0x682   : > { %7945 = vpow2.f32 %v4440_v18 }
 0x683   : > { %7947 = vpow2.f32 %v4442_v8 }
 0x684   : > { %7949 = vpow2.f32 %v4444_v50 }
 0x685   : > { %v10214_v29 = vpop.eup %7925  ;;  %7951 = vpow2.f32 %v4446_v39 }
 0x686   : > { %v10218_v53 = vpop.eup %7927 }
 0x687   : > { %v10221_v19 = vpop.eup %7929  ;;  %v4475_v30 = vadd.f32 %v10218_v53, %v10214_v29 }
 0x688   : > { %v10227_v14 = vpop.eup %7931 }
 0x689   : > { %v10200_v60 = vpop.xlane.xlu1 %4922  ;;  %v10202_v6 = vpop.xlane.xlu0 %4931  ;;  %v4478_v52 = vadd.f32 %v10227_v14, %v10221_v19 }
 0x68a   : > { %v10229_v23 = vpop.eup %7933 }
 0x68b   : > { %v10233_v20 = vpop.eup %7935 }
 0x68c   : > { %v10236_v38 = vpop.eup %7937  ;;  %v4481_v2 = vadd.f32 %v10233_v20, %v10229_v23 }
 0x68d   : > { %v10204_v4 = vpop.permute.xlu1 %4582  ;;  %v4450_v21 = vpop.xlane.xlu0 %4449  ;;  %11166 = vst [vmem:[#allocation83_spill] sm:$0xff] %v10236_v38 }
 0x68e   : > { %7144 = vmatprep.subr.bf16.mxu0 %v10204_v4  ;;  %7953 = vrcp.f32 %v4450_v21  ;;  %v10242_v7 = vpop.eup %7939 }
 0x68f   : > { %7145 = vmatpush3.bf16.msra.mxu0 %v10190_v34  ;;  %11167 = vst [vmem:[#allocation90_spill] sm:$0xff] %v10242_v7  ;;  %v10244_v54 = vpop.eup %7941  ;;  %v4484_v49 = vadd.f32 %v10242_v7, %v10236_v38 }
 0x690   : > { %11168 = vst [vmem:[#allocation91_spill] sm:$0xff] %v10244_v54  ;;  %v10246_v57 = vpop.eup %7943 }
 0x691   : > { %v10216_v1 = vpop.permute.xlu1 %4580  ;;  %4934 = vmax.xlane.f32.xlu1 %v4933_v15  ;;  %v4453_v31 = vpop.xlane.xlu0 %4452  ;;  %v4487_v21 = vadd.f32 %v10246_v57, %v10244_v54 }
 0x692   : > { %7146 = vmatprep.subr.bf16.mxu0 %v10216_v1  ;;  %7955 = vrcp.f32 %v4453_v31  ;;  %v10248_v12 = vpop.eup %7945 }
 0x693   : > { %11169 = vst [vmem:[#allocation92_spill] sm:$0xff] %v10248_v12  ;;  %v10254_v18 = vpop.eup %7947 }
 0x694   : > { %11170 = vst [vmem:[#allocation93_spill] sm:$0xff] %v10254_v18  ;;  %v10256_v8 = vpop.eup %7949  ;;  %v4490_v15 = vadd.f32 %v10254_v18, %v10248_v12 }
 0x695   : > { %v10231_v42 = vpop.permute.xlu1 %4564  ;;  %4937 = vmax.xlane.f32.xlu0 %v4936_v27  ;;  %4473 = vadd.xlane.f32.xlu1 %v4472_v17  ;;  %11171 = vst [vmem:[#allocation94_spill] sm:$0xff] %v10256_v8  ;;  %v10258_v50 = vpop.eup %7951 }
 0x696   : > { %7147 = vmatpush3.bf16.msra.mxu0 %v10231_v42  ;;  %11172 = vst [vmem:[#allocation95_spill] sm:$0xff] %v10258_v50  ;;  %v4493_v12 = vadd.f32 %v10258_v50, %v10256_v8 }
 0x699   : > { %4476 = vadd.xlane.f32.xlu0 %v4475_v30  ;;  %4479 = vadd.xlane.f32.xlu1 %v4478_v52 }
 0x69b   : > { %v7954_v39 = vpop.eup %7953 }
 0x69c   : > { %v10265_v27 = vmul.f32 %v7954_v39, %v10048_v10  ;;  %v4513_v30 = vmul.f32 %v7954_v39, %v10053_v24  ;;  %v4456_v10 = vpop.xlane.xlu0 %4455  ;;  %v11175_v24 = vld [vmem:[#allocation61_spill] sm:$0xff]  ;;  %v11176_v39 = vld [vmem:[#allocation62_spill] sm:$0xff] }
 0x69d   : > { %4482 = vadd.xlane.f32.xlu0 %v4481_v2  ;;  %4485 = vadd.xlane.f32.xlu1 %v4484_v49 }
 0x69f   : > { %v7956_v31 = vpop.eup %7955 }
 0x6a0   : > { %v10268_v17 = vmul.f32 %v7956_v31, %v10055_v26  ;;  %v4515_v52 = vmul.f32 %v7956_v31, %v10059_v63  ;;  %v4459_v18 = vpop.xlane.xlu0 %4458  ;;  %v11173_v26 = vld [vmem:[#allocation59_spill] sm:$0xff]  ;;  %v4941_v63 = vsub.f32 %v11175_v24, %v10109_v32  ;;  %v4942_v31 = vsub.f32 %v11176_v39, %v10109_v32 }
 0x6a1   : > { %4488 = vadd.xlane.f32.xlu0 %v4487_v21  ;;  %4491 = vadd.xlane.f32.xlu1 %v4490_v15  ;;  %v4939_v38 = vsub.f32 %v11173_v26, %v10111_v47  ;;  %v11174_v21 = vld [vmem:[#allocation60_spill] sm:$0xff]  ;;  %v11179_v26 = vld [vmem:[#allocation65_spill] sm:$0xff] }
 0x6a2   : > { %v4545_v49 = vpack.c.bf16 %v4515_v52, %v4513_v30  ;;  %v4940_v15 = vsub.f32 %v11174_v21, %v10111_v47  ;;  %v11177_v52 = vld [vmem:[#allocation63_spill] sm:$0xff]  ;;  %v4975_v54 = vmul.f32 1.442695, %v4941_v63  ;;  %v4945_v7 = vsub.f32 %v11179_v26, %v10113_v16 }
 0x6a3   : > { %v4971_v30 = vmul.f32 1.442695, %v4939_v38  ;;  %v4943_v2 = vsub.f32 %v11177_v52, %v10117_v55  ;;  %v4977_v47 = vmul.f32 1.442695, %v4942_v31  ;;  %v11180_v38 = vld [vmem:[#allocation66_spill] sm:$0xff] }
 0x6a4   : > { %4640 = vmatprep.mubr.bf16.mxu0 %v4545_v49  ;;  %v4973_v49 = vmul.f32 1.442695, %v4940_v15  ;;  %v4462_v50 = vpop.xlane.xlu0 %4461  ;;  %v4946_v39 = vsub.f32 %v11180_v38, %v10113_v16  ;;  %v4983_v15 = vmul.f32 1.442695, %v4945_v7  ;;  %v11184_v38 = vld [vmem:[#allocation70_spill] sm:$0xff] }
 0x6a5   : > { %4494 = vadd.xlane.f32.xlu0 %v4493_v12  ;;  %v11178_v12 = vld [vmem:[#allocation64_spill] sm:$0xff]  ;;  %7957 = vpow2.f32 %v4971_v30  ;;  %v4979_v24 = vmul.f32 1.442695, %v4943_v2 }
 0x6a6   : > { %v4944_v8 = vsub.f32 %v11178_v12, %v10117_v55  ;;  %7959 = vpow2.f32 %v4973_v49  ;;  %v11181_v55 = vld [vmem:[#allocation67_spill] sm:$0xff]  ;;  %v11182_v30 = vld [vmem:[#allocation68_spill] sm:$0xff] }
 0x6a7   : > { %7961 = vpow2.f32 %v4975_v54  ;;  %v4947_v52 = vsub.f32 %v11181_v55, %v10123_v41  ;;  %v4948_v2 = vsub.f32 %v11182_v30, %v10123_v41  ;;  %v11183_v54 = vld [vmem:[#allocation69_spill] sm:$0xff] }
 0x6a8   : > { %v4981_v32 = vmul.f32 1.442695, %v4944_v8  ;;  %7963 = vpow2.f32 %v4977_v47  ;;  %v4465_v63 = vpop.xlane.xlu0 %4464  ;;  %v4985_v8 = vmul.f32 1.442695, %v4946_v39  ;;  %v4949_v49 = vsub.f32 %v11183_v54, %v10119_v59  ;;  %v11185_v39 = vld [vmem:[#allocation71_spill] sm:$0xff] }
 0x6a9   : > { %7965 = vpow2.f32 %v4979_v24  ;;  %v4987_v7 = vmul.f32 1.442695, %v4947_v52  ;;  %v4950_v24 = vsub.f32 %v11184_v38, %v10119_v59  ;;  %v4989_v41 = vmul.f32 1.442695, %v4948_v2  ;;  %v11187_v59 = vld [vmem:[#allocation73_spill] sm:$0xff] }
 0x6aa   : > { %7967 = vpow2.f32 %v4981_v32  ;;  %v4991_v32 = vmul.f32 1.442695, %v4949_v49  ;;  %v4953_v30 = vsub.f32 %v11187_v59, %v10125_v33  ;;  %v11189_v49 = vld [vmem:[#allocation75_spill] sm:$0xff] }
 0x6ab   : > { %7969 = vpow2.f32 %v4983_v15  ;;  %v4951_v15 = vsub.f32 %v11185_v39, %v10127_v28 }
 0x6ac   : > { %7971 = vrcp.f32 %v4459_v18  ;;  %v11186_v18 = vld [vmem:[#allocation72_spill] sm:$0xff] }
 0x6ad   : > { %v4952_v52 = vsub.f32 %v11186_v18, %v10127_v28  ;;  %v4995_v54 = vmul.f32 1.442695, %v4951_v15 }
 0x6c6   : > { %v10290_v21 = vpop.xlane.xlu1 %4928 }
 0x6dd   : > { %v5439_v12 = vpop.xlane.xlu1 %5438 }
 0x6de   : > { %v5443_v31 = vsub.f32 %v10134_v44, %v5439_v12 }
 0x6e0   : > { %v5445_v16 = vmul.f32 1.442695, %v5443_v31  ;;  %v4993_v31 = vmul.f32 1.442695, %v4950_v24  ;;  %v4999_v24 = vmul.f32 1.442695, %v4953_v30 }
 0x6e1   : > { %v10301_v26 = vpop.permute.xlu1 %4578  ;;  %v5442_v47 = vpop.xlane.xlu0 %5441 }
 0x6e2   : > { %7973 = vpow2.f32 %v5445_v16  ;;  %v5444_v44 = vsub.f32 %v10139_v46, %v5442_v47  ;;  %7148 = vmatprep.subr.bf16.mxu0 %v10301_v26  ;;  %v10313_v46 = vpop.eup %7957  ;;  %v4955_v16 = vsub.f32 %v11189_v49, %v10131_v5 }
 0x6e3   : > { %7975 = vrcp.f32 %v4456_v10  ;;  %v11188_v10 = vld [vmem:[#allocation74_spill] sm:$0xff] }
 0x6e4   : > { %7977 = vpow2.f32 %v4985_v8  ;;  %v5447_v55 = vmul.f32 1.442695, %v5444_v44  ;;  %v4954_v2 = vsub.f32 %v11188_v10, %v10125_v33  ;;  %v10317_v8 = vpop.eup %7959  ;;  %v11190_v44 = vld [vmem:[#allocation76_spill] sm:$0xff]  ;;  %v4959_v10 = vsub.f32 %v9997_v40, %v10200_v60 }
 0x6e5   : > { %7979 = vpow2.f32 %v4987_v7  ;;  %v4468_v12 = vpop.xlane.xlu0 %4467  ;;  %v10321_v28 = vpop.eup %7961  ;;  %v4997_v7 = vmul.f32 1.442695, %v4952_v52 }
 0x6e6   : > { %7981 = vpow2.f32 %v5447_v55  ;;  %v10323_v38 = vpop.eup %7963  ;;  %v5001_v39 = vmul.f32 1.442695, %v4954_v2  ;;  %v5003_v55 = vmul.f32 1.442695, %v4955_v16  ;;  %v11193_v16 = vld [vmem:[#allocation79_spill] sm:$0xff] }
 0x6e7   : > { %7983 = vpow2.f32 %v4989_v41  ;;  %v4956_v41 = vsub.f32 %v11190_v44, %v10131_v5  ;;  %v10327_v33 = vpop.eup %7965 }
 0x6e8   : > { %7985 = vpow2.f32 %v4991_v32  ;;  %v10329_v32 = vpop.permute.xlu1 %4576  ;;  %v10331_v15 = vpop.eup %7967 }
 0x6e9   : > { %7987 = vrcp.f32 %v4465_v63  ;;  %v4471_v47 = vpop.xlane.xlu0 %4470  ;;  %v11191_v63 = vld [vmem:[#allocation77_spill] sm:$0xff]  ;;  %v10335_v52 = vpop.eup %7969 }
 0x6ea   : > { %7989 = vpow2.f32 %v4993_v31  ;;  %v4957_v18 = vsub.f32 %v11191_v63, %v10129_v11  ;;  %v11192_v31 = vld [vmem:[#allocation78_spill] sm:$0xff]  ;;  %v7972_v30 = vpop.eup %7971 }
 0x6eb   : > { %7991 = vrcp.f32 %v4462_v50  ;;  %v4958_v59 = vsub.f32 %v11192_v31, %v10129_v11  ;;  %v5005_v50 = vmul.f32 1.442695, %v4956_v41  ;;  %v11194_v41 = vld [vmem:[#allocation80_spill] sm:$0xff]  ;;  %v5035_v31 = vadd.f32 %v10317_v8, %v10313_v46 }
 0x6ec   : > { %7993 = vpow2.f32 %v4995_v54  ;;  %v4960_v54 = vsub.f32 %v9999_v62, %v10200_v60  ;;  %v5007_v11 = vmul.f32 1.442695, %v4957_v18  ;;  %v10357_v63 = vpop.permute.xlu1 %4560  ;;  %v4519_v62 = vmul.f32 %v7972_v30, %v10071_v51  ;;  %v11195_v51 = vld [vmem:[#allocation52_spill] sm:$0xff] }
 0x6ed   : > { %7995 = vpow2.f32 %v4997_v7  ;;  %v10339_v5 = vpop.permute.xlu0 %4562  ;;  %v4961_v7 = vsub.f32 %v11193_v16, %v10176_v9  ;;  %v5009_v44 = vmul.f32 1.442695, %v4958_v59  ;;  %v4963_v18 = vsub.f32 %v10005_v61, %v10290_v21 }
 0x6ee   : > { %7997 = vpow2.f32 %v4999_v24  ;;  %7149 = vmatpush3.bf16.msra.mxu0 %v10339_v5 }
 0x6ef   : > { %v10344_v2 = vpop.eup %7973  ;;  %7999 = vpow2.f32 %v5001_v39  ;;  %7150 = vmatprep.subr.bf16.mxu0 %v10329_v32  ;;  %v4962_v39 = vsub.f32 %v11194_v41, %v10176_v9  ;;  %v5013_v9 = vmul.f32 1.442695, %v4960_v54  ;;  %v5015_v61 = vmul.f32 1.442695, %v4961_v7 }
 0x6f0   : > { %v7976_v49 = vpop.eup %7975  ;;  %8001 = vpow2.f32 %v5003_v55  ;;  %v5449_v24 = vsel %vm3843_vm1, %v10344_v2, 0.0  ;;  %v5011_v55 = vmul.f32 1.442695, %v4959_v10  ;;  %v5038_v7 = vadd.f32 %v10323_v38, %v10321_v28 }
 0x6f1   : > { %v10353_v40 = vpop.eup %7977  ;;  %8003 = vrcp.f32 %v4471_v47  ;;  %5450 = vadd.xlane.f32.xlu1 %v5449_v24  ;;  %v4964_v47 = vsub.f32 %v10007_v22, %v10290_v21  ;;  %v5017_v41 = vmul.f32 1.442695, %v4962_v39  ;;  %v11196_v21 = vld [vmem:[#allocation81_spill] sm:$0xff] }
 0x6f2   : > { %v10360_v60 = vpop.eup %7979  ;;  %8005 = vpow2.f32 %v5005_v50  ;;  %7151 = vmatpush3.bf16.msra.mxu0 %v10357_v63  ;;  %v4517_v50 = vmul.f32 %v7976_v49, %v10065_v35  ;;  %v5019_v35 = vmul.f32 1.442695, %v4963_v18  ;;  %v5041_v18 = vadd.f32 %v10331_v15, %v10327_v33 }
 0x6f3   : > { %v10367_v59 = vpop.eup %7981  ;;  %8007 = vrcp.f32 %v4468_v12  ;;  %7232 = vmatprep.subr.bf16.mxu0 %v11195_v51  ;;  %v4965_v12 = vsub.f32 %v11196_v21, %v10202_v6  ;;  %v5044_v21 = vadd.f32 %v10353_v40, %v10335_v52 }
 0x6f4   : > { %v10373_v10 = vpop.eup %7983  ;;  %8009 = vpow2.f32 %v5007_v11  ;;  %v5452_v16 = vsel %vm3843_vm1, %v10367_v59, 0.0  ;;  %v4547_v54 = vpack.c.bf16 %v4519_v62, %v4517_v50  ;;  %v11197_v11 = vpack.c.bf16 %v10268_v17, %v10265_v27  ;;  %v11200_v27 = vld [vmem:[#allocation57_spill] sm:$0xff] }
 0x6f5   : > { %v10377_v24 = vpop.eup %7985  ;;  %8011 = vpow2.f32 %v5009_v44  ;;  %5036 = vadd.xlane.f32.xlu1 %v5035_v31  ;;  %5453 = vadd.xlane.f32.xlu0 %v5452_v16  ;;  %v11198_v44 = vld [vmem:[#allocation82_spill] sm:$0xff]  ;;  %v5021_v62 = vmul.f32 1.442695, %v4964_v47  ;;  %v11201_v17 = vld [vmem:[#allocation85_spill] sm:$0xff] }
 0x6f6   : > { %v7988_v22 = vpop.eup %7987  ;;  %8013 = vpow2.f32 %v5011_v55  ;;  %4641 = vmatmul.mubr.bf16.vlgmr.msra.gmra.mxu0 %v11197_v11  ;;  %v4966_v39 = vsub.f32 %v11198_v44, %v10202_v6  ;;  %v11199_v55 = vld [vmem:[#allocation53_spill] sm:$0xff]  ;;  %v4518_v50 = vmul.f32 %v7972_v30, %v11201_v17  ;;  %v11203_v11 = vld [vmem:[#allocation84_spill] sm:$0xff]  ;;  %v11204_v30 = vld [vmem:[#allocation54_spill] sm:$0xff] }
 0x6f7   : > { %v10386_v51 = vpop.eup %7989  ;;  %8015 = vpow2.f32 %v5013_v9  ;;  %4648 = vmatprep.mubr.bf16.mxu0 %v4547_v54  ;;  %7233 = vmatpush3.bf16.msra.mxu0 %v11199_v55  ;;  %v11202_v9 = vld [vmem:[#allocation89_spill] sm:$0xff]  ;;  %v5023_v54 = vmul.f32 1.442695, %v4965_v12  ;;  %v11206_v12 = vld [vmem:[#allocation55_spill] sm:$0xff] }
 0x6f8   : > { %v7992_v31 = vpop.eup %7991  ;;  %8017 = vpow2.f32 %v5015_v61  ;;  %7234 = vmatprep.subr.bf16.mxu0 %v11200_v27  ;;  %v4523_v6 = vmul.f32 %v7988_v22, %v11202_v9  ;;  %v4516_v61 = vmul.f32 %v7976_v49, %v11203_v11  ;;  %v5025_v55 = vmul.f32 1.442695, %v4966_v39 }
 0x6f9   : > { %v10395_v16 = vpop.eup %7993  ;;  %8019 = vpow2.f32 %v5017_v41  ;;  %5042 = vadd.xlane.f32.xlu1 %v5041_v18  ;;  %5039 = vadd.xlane.f32.xlu0 %v5038_v7  ;;  %v5047_v41 = vadd.f32 %v10373_v10, %v10360_v60  ;;  %v11205_v7 = vld [vmem:[#allocation87_spill] sm:$0xff] }
 0x6fa   : > { %v10398_v47 = vpop.eup %7995  ;;  %8021 = vpow2.f32 %v5019_v35  ;;  %v4521_v18 = vmul.f32 %v7992_v31, %v11205_v7  ;;  %v4546_v35 = vpack.c.bf16 %v4518_v50, %v4516_v61  ;;  %v5050_v50 = vadd.f32 %v10386_v51, %v10377_v24  ;;  %v11210_v7 = vld [vmem:[#allocation86_spill] sm:$0xff] }
 0x6fb   : > { %v10403_v44 = vpop.eup %7997  ;;  %8023 = vpow2.f32 %v5021_v62  ;;  %7235 = vmatpush3.bf16.msra.mxu0 %v11204_v30  ;;  %v11207_v62 = vld [vmem:[#allocation58_spill] sm:$0xff]  ;;  %v5053_v11 = vadd.f32 %v10398_v47, %v10395_v16  ;;  %v11208_v30 = vld [vmem:[#allocation56_spill] sm:$0xff] }
 0x6fc   : > { %v10409_v27 = vpop.eup %7999  ;;  %7236 = vmatprep.subr.bf16.mxu0 %v11206_v12  ;;  %v4549_v49 = vpack.c.bf16 %v4523_v6, %v4521_v18  ;;  %8025 = vpow2.f32 %v5023_v54  ;;  %v4520_v18 = vmul.f32 %v7992_v31, %v11210_v7 }
 0x6fd   : > { %v10412_v17 = vpop.eup %8001  ;;  %5048 = vadd.xlane.f32.xlu1 %v5047_v41  ;;  %5045 = vadd.xlane.f32.xlu0 %v5044_v21  ;;  %8027 = vpow2.f32 %v5025_v55  ;;  %v11209_v21 = vld [vmem:[#allocation88_spill] sm:$0xff] }
 0x6fe   : > { %v8004_v9 = vpop.eup %8003  ;;  %4649 = vmatmul.mubr.bf16.gmra.mxu0 %v4546_v35  ;;  %v4522_v6 = vmul.f32 %v7988_v22, %v11209_v21  ;;  %v5056_v22 = vadd.f32 %v10409_v27, %v10403_v44 }
 0x6ff   : > { %v10414_v39 = vpop.eup %8005  ;;  %4656 = vmatprep.mubr.bf16.mxu0 %v4549_v49  ;;  %7237 = vmatpush3.bf16.msra.mxu0 %v11207_v62  ;;  %v4527_v54 = vmul.f32 %v8004_v9, %v10154_v13  ;;  %v4526_v21 = vmul.f32 %v8004_v9, %v10150_v45 }
 0x700   : > { %v8008_v61 = vpop.eup %8007  ;;  %7238 = vmatprep.subr.bf16.mxu0 %v11208_v30  ;;  %v5059_v35 = vadd.f32 %v10414_v39, %v10412_v17  ;;  %v4548_v13 = vpack.c.bf16 %v4522_v6, %v4520_v18 }
 0x701   : > { %v10423_v41 = vpop.eup %8009  ;;  %5054 = vadd.xlane.f32.xlu1 %v5053_v11  ;;  %5051 = vadd.xlane.f32.xlu0 %v5050_v50  ;;  %v4525_v49 = vmul.f32 %v8008_v61, %v10143_v43  ;;  %v4524_v6 = vmul.f32 %v8008_v61, %v10141_v56 }
 0x702   : > { %v10426_v55 = vpop.eup %8011 }
 0x703   : > { %v10429_v12 = vpop.eup %8013  ;;  %7239 = vmatpush3.bf16.msra.mxu0 %v10147_v36  ;;  %v4551_v31 = vpack.c.bf16 %v4527_v54, %v4525_v49 }
 0x704   : > { %v10437_v62 = vpop.eup %8015  ;;  %7240 = vmatprep.subr.bf16.mxu0 %v10204_v4  ;;  %v5062_v4 = vadd.f32 %v10426_v55, %v10423_v41 }
 0x705   : > { %v10440_v11 = vpop.eup %8017  ;;  %5060 = vadd.xlane.f32.xlu1 %v5059_v35  ;;  %5057 = vadd.xlane.f32.xlu0 %v5056_v22  ;;  %v5065_v43 = vadd.f32 %v10437_v62, %v10429_v12 }
 0x706   : > { %v10442_v50 = vpop.eup %8019  ;;  %4657 = vmatmul.mubr.bf16.gmra.mxu0 %v4548_v13 }
 0x707   : > { %v10444_v36 = vpop.eup %8021  ;;  %4664 = vmatprep.mubr.bf16.mxu0 %v4551_v31  ;;  %7241 = vmatpush3.bf16.msra.mxu0 %v10190_v34  ;;  %v5068_v7 = vadd.f32 %v10442_v50, %v10440_v11 }
 0x708   : > { %v10451_v30 = vpop.eup %8023  ;;  %7242 = vmatprep.subr.bf16.mxu0 %v10216_v1  ;;  %v4550_v1 = vpack.c.bf16 %v4526_v21, %v4524_v6 }
 0x709   : > { %5066 = vadd.xlane.f32.xlu1 %v5065_v43  ;;  %5063 = vadd.xlane.f32.xlu0 %v5062_v4  ;;  %v10456_v54 = vpop.eup %8025  ;;  %v5071_v34 = vadd.f32 %v10451_v30, %v10444_v36 }
 0x70a   : > { %v10463_v18 = vpop.eup %8027 }
 0x70b   : > { %7243 = vmatpush3.bf16.msra.mxu0 %v10231_v42  ;;  %v5074_v56 = vadd.f32 %v10463_v18, %v10456_v54 }
 0x70c   : > { %7244 = vmatprep.subr.bf16.mxu0 %v10301_v26 }
 0x70d   : > { %5072 = vadd.xlane.f32.xlu1 %v5071_v34  ;;  %5069 = vadd.xlane.f32.xlu0 %v5068_v7 }
 0x70e   : > { %4665 = vmatmul.mubr.bf16.gmra.mxu0 %v4550_v1 }
 0x70f   : > { %7245 = vmatpush3.bf16.msra.mxu0 %v10339_v5 }
 0x710   : > { %7246 = vmatprep.subr.bf16.mxu0 %v10329_v32 }
 0x711   : > { %5075 = vadd.xlane.f32.xlu0 %v5074_v56 }
 0x713   : > { %7247 = vmatpush3.bf16.msra.mxu0 %v10357_v63 }
 0x71a   : > { %v4935_v45 = vpop.xlane.xlu1 %4934 }
 0x71b   : > { %v4967_v42 = vsub.f32 %v10013_v48, %v4935_v45  ;;  %v4968_v9 = vsub.f32 %v10015_v37, %v4935_v45 }
 0x71d   : > { %v5027_v26 = vmul.f32 1.442695, %v4967_v42  ;;  %v5029_v61 = vmul.f32 1.442695, %v4968_v9 }
 0x71e   : > { %v4474_v35 = vpop.xlane.xlu1 %4473  ;;  %v4938_v22 = vpop.xlane.xlu0 %4937 }
 0x71f   : > { %8029 = vpow2.f32 %v5027_v26  ;;  %v4969_v5 = vsub.f32 %v11165_v0, %v4938_v22  ;;  %v4970_v49 = vsub.f32 %v10019_v3, %v4938_v22 }
 0x720   : > { %8031 = vpow2.f32 %v5029_v61 }
 0x721   : > { %v5031_v13 = vmul.f32 1.442695, %v4969_v5  ;;  %v5033_v32 = vmul.f32 1.442695, %v4970_v49  ;;  %8033 = vrcp.f32 %v4474_v35 }
 0x722   : > { %v4480_v31 = vpop.xlane.xlu1 %4479  ;;  %v4477_v63 = vpop.xlane.xlu0 %4476 }
 0x723   : > { %8035 = vpow2.f32 %v5031_v13 }
 0x724   : > { %8037 = vpow2.f32 %v5033_v32 }
 0x725   : > { %8039 = vrcp.f32 %v4480_v31 }
 0x726   : > { %8041 = vrcp.f32 %v4477_v63  ;;  %v4483_v48 = vpop.xlane.xlu0 %4482  ;;  %v4486_v43 = vpop.xlane.xlu1 %4485 }
 0x727   : > { %8043 = vrcp.f32 %v4483_v48  ;;  %v11211_v48 = vld [vmem:[#allocation90_spill] sm:$0xff] }
 0x72a   : > { %v4489_v37 = vpop.xlane.xlu0 %4488  ;;  %v4492_v56 = vpop.xlane.xlu1 %4491 }
 0x72b   : > { %8045 = vrcp.f32 %v4489_v37 }
 0x72c   : > { %v10475_v4 = vpop.eup %8029  ;;  %8047 = vrcp.f32 %v4486_v43 }
 0x72d   : > { %v10477_v0 = vpop.eup %8031 }
 0x72e   : > { %v5077_v3 = vadd.f32 %v10477_v0, %v10475_v4  ;;  %v8034_v21 = vpop.eup %8033  ;;  %v4495_v34 = vpop.xlane.xlu0 %4494 }
 0x72f   : > { %8049 = vrcp.f32 %v4495_v34  ;;  %v4529_v9 = vmul.f32 %v8034_v21, %v10212_v25  ;;  %v4528_v61 = vmul.f32 %v8034_v21, %v10207_v58  ;;  %v11213_v34 = vld [vmem:[#allocation91_spill] sm:$0xff] }
 0x730   : > { %v10481_v6 = vpop.eup %8035  ;;  %5078 = vadd.xlane.f32.xlu1 %v5077_v3  ;;  %8051 = vrcp.f32 %v4492_v56 }
 0x731   : > { %v10483_v7 = vpop.eup %8037 }
 0x732   : > { %v8040_v1 = vpop.eup %8039  ;;  %v5080_v45 = vadd.f32 %v10483_v7, %v10481_v6 }
 0x733   : > { %v8042_v42 = vpop.eup %8041  ;;  %v4533_v13 = vmul.f32 %v8040_v1, %v10227_v14  ;;  %v11212_v14 = vld [vmem:[#allocation19_spill] sm:$0xff] }
 0x734   : > { %5081 = vadd.xlane.f32.xlu0 %v5080_v45  ;;  %v4531_v26 = vmul.f32 %v8042_v42, %v10218_v53  ;;  %v4530_v35 = vmul.f32 %v8042_v42, %v10214_v29  ;;  %v8044_v22 = vpop.eup %8043  ;;  %v4532_v29 = vmul.f32 %v8040_v1, %v10221_v19  ;;  %v11214_v45 = vld [vmem:[#allocation95_spill] sm:$0xff]  ;;  %v11217_v1 = vld [vmem:[#allocation93_spill] sm:$0xff] }
 0x735   : > { %v4535_v32 = vmul.f32 %v8044_v22, %v10233_v20  ;;  %v4534_v53 = vmul.f32 %v8044_v22, %v10229_v23  ;;  %v11215_v23 = vld [vmem:[#allocation21_spill] sm:$0xff]  ;;  %v11219_v22 = vld [vmem:[#allocation20_spill] sm:$0xff] }
 0x736   : > { %v4553_v5 = vpack.c.bf16 %v4531_v26, %v4529_v9  ;;  %v4552_v49 = vpack.c.bf16 %v4530_v35, %v4528_v61  ;;  %v11218_v35 = vld [vmem:[#allocation22_spill] sm:$0xff] }
 0x737   : > { %v4555_v31 = vpack.c.bf16 %v4535_v32, %v4533_v13  ;;  %v4554_v43 = vpack.c.bf16 %v4534_v53, %v4532_v29  ;;  %v11221_v13 = vld [vmem:[#allocation24_spill] sm:$0xff]  ;;  %v11224_v53 = vld [vmem:[#allocation26_spill] sm:$0xff] }
 0x738   : > { %4672 = vmatprep.mubr.bf16.mxu0 %v4553_v5  ;;  %v8046_v63 = vpop.eup %8045  ;;  %v11220_v5 = vld [vmem:[#allocation94_spill] sm:$0xff]  ;;  %v11222_v32 = vld [vmem:[#allocation92_spill] sm:$0xff] }
 0x739   : > { %4673 = vmatmul.mubr.bf16.gmra.mxu0 %v4552_v49  ;;  %v8048_v25 = vpop.eup %8047  ;;  %v4539_v58 = vmul.f32 %v8046_v63, %v10246_v57  ;;  %v4538_v56 = vmul.f32 %v8046_v63, %v11213_v34  ;;  %v11216_v57 = vld [vmem:[#allocation83_spill] sm:$0xff]  ;;  %v11226_v29 = vld [vmem:[#allocation28_spill] sm:$0xff] }
 0x73a   : > { %4680 = vmatprep.mubr.bf16.mxu0 %v4555_v31  ;;  %v4537_v37 = vmul.f32 %v8048_v25, %v11211_v48  ;;  %v4536_v19 = vmul.f32 %v8048_v25, %v11216_v57  ;;  %v11223_v63 = vld [vmem:[#allocation23_spill] sm:$0xff]  ;;  %v11233_v34 = vld [vmem:[#allocation8_spill] sm:$0xff] }
 0x73b   : > { %v11227_v48 = vld [vmem:[#allocation27_spill] sm:$0xff]  ;;  %v11237_v57 = vld [vmem:[#allocation12_spill] sm:$0xff] }
 0x73c   : > { %v8050_v3 = vpop.eup %8049  ;;  %v4557_v21 = vpack.c.bf16 %v4539_v58, %v4537_v37  ;;  %v4556_v26 = vpack.c.bf16 %v4538_v56, %v4536_v19  ;;  %v11225_v58 = vld [vmem:[#allocation25_spill] sm:$0xff]  ;;  %v11234_v56 = vld [vmem:[#allocation11_spill] sm:$0xff] }
 0x73d   : > { %v8052_v20 = vpop.eup %8051  ;;  %v4543_v42 = vmul.f32 %v8050_v3, %v11214_v45  ;;  %v4542_v49 = vmul.f32 %v8050_v3, %v11220_v5  ;;  %v11228_v37 = vld [vmem:[#allocation29_spill] sm:$0xff]  ;;  %v11230_v3 = vld [vmem:[#allocation7_spill] sm:$0xff]  ;;  %v11235_v45 = vld [vmem:[#allocation10_spill] sm:$0xff] }
 0x73e   : > { %v4541_v9 = vmul.f32 %v8052_v20, %v11217_v1  ;;  %v4540_v31 = vmul.f32 %v8052_v20, %v11222_v32  ;;  %v11232_v20 = vld [vmem:[#allocation9_spill] sm:$0xff]  ;;  %v11238_v19 = vld [vmem:[#allocation15_spill] sm:$0xff]  ;;  %v11239_v1 = vld [vmem:[#allocation14_spill] sm:$0xff] }
 0x73f   : > { %v11243_v5 = vld [vmem:[#allocation18_spill] sm:$0xff]  ;;  %v11245_v32 = vld [vmem:[#allocation31_spill] sm:$0xff] }
 0x740   : > { %v4559_v61 = vpack.c.bf16 %v4543_v42, %v4541_v9  ;;  %v4558_v25 = vpack.c.bf16 %v4542_v49, %v4540_v31  ;;  %v11236_v42 = vld [vmem:[#allocation13_spill] sm:$0xff]  ;;  %v11244_v49 = vld [vmem:[#allocation32_spill] sm:$0xff] }
 0x741   : > { %4681 = vmatmul.mubr.bf16.gmra.mxu0 %v4554_v43  ;;  %5738 = vrot.lane.b32.xlu1 %v11212_v14, %s8119_s9  ;;  %v11229_v43 = vld [vmem:[#allocation5_spill] sm:$0xff] }
 0x742   : > { %4688 = vmatprep.mubr.bf16.mxu0 %v4557_v21  ;;  %v11231_v21 = vld [vmem:[#allocation6_spill] sm:$0xff]  ;;  %v11240_v9 = vld [vmem:[#allocation17_spill] sm:$0xff] }
 0x745   : > { %5742 = vrot.lane.b32.xlu1 %v11215_v23, %s8119_s9 }
 0x749   : > { %4689 = vmatmul.mubr.bf16.gmra.mxu0 %v4556_v26  ;;  %5744 = vrot.lane.b32.xlu1 %v11218_v35, %s8119_s9  ;;  %v11241_v26 = vld [vmem:[#allocation16_spill] sm:$0xff] }
 0x74a   : > { %4696 = vmatprep.mubr.bf16.mxu0 %v4559_v61  ;;  %5740 = vrot.lane.b32.xlu0 %v11219_v22, %s8119_s9  ;;  %v11242_v61 = vld [vmem:[#allocation30_spill] sm:$0xff] }
 0x74d   : > { %5748 = vrot.lane.b32.xlu1 %v11221_v13, %s8119_s9 }
 0x74e   : > { %5746 = vrot.lane.b32.xlu0 %v11223_v63, %s8119_s9 }
 0x751   : > { %4697 = vmatmul.mubr.bf16.gmra.mxu0 %v4558_v25  ;;  %5752 = vrot.lane.b32.xlu1 %v11224_v53, %s8119_s9  ;;  %v11246_v25 = vld [vmem:[#allocation34_spill] sm:$0xff] }
 0x752   : > { %5750 = vrot.lane.b32.xlu0 %v11225_v58, %s8119_s9 }
 0x755   : > { %5756 = vrot.lane.b32.xlu1 %v11226_v29, %s8119_s9 }
 0x756   : > { %5754 = vrot.lane.b32.xlu0 %v11227_v48, %s8119_s9 }
 0x759   : > { %5760 = vrot.lane.b32.xlu1 %v11228_v37, %s8119_s9 }
 0x75a   : > { %5758 = vrot.lane.b32.xlu0 %v11229_v43, %s8119_s9 }
 0x75d   : > { %5764 = vrot.lane.b32.xlu1 %v11230_v3, %s8119_s9 }
 0x75e   : > { %5762 = vrot.lane.b32.xlu0 %v11231_v21, %s8119_s9 }
 0x761   : > { %5768 = vrot.lane.b32.xlu1 %v11232_v20, %s8119_s9 }
 0x762   : > { %5766 = vrot.lane.b32.xlu0 %v11233_v34, %s8119_s9 }
 0x765   : > { %5772 = vrot.lane.b32.xlu1 %v11234_v56, %s8119_s9 }
 0x766   : > { %5770 = vrot.lane.b32.xlu0 %v11235_v45, %s8119_s9 }
 0x769   : > { %5776 = vrot.lane.b32.xlu1 %v11236_v42, %s8119_s9 }
 0x76a   : > { %5774 = vrot.lane.b32.xlu0 %v11237_v57, %s8119_s9 }
 0x76d   : > { %5780 = vrot.lane.b32.xlu1 %v11238_v19, %s8119_s9 }
 0x76e   : > { %5778 = vrot.lane.b32.xlu0 %v11239_v1, %s8119_s9 }
 0x771   : > { %5784 = vrot.lane.b32.xlu1 %v11240_v9, %s8119_s9  ;;  %v11247_v9 = vld [vmem:[#allocation33_spill] sm:$0xff] }
 0x772   : > { %5782 = vrot.lane.b32.xlu0 %v11241_v26, %s8119_s9 }
 0x775   : > { %5788 = vrot.lane.b32.xlu1 %v11242_v61, %s8119_s9  ;;  %v11248_v61 = vld [vmem:[#allocation36_spill] sm:$0xff] }
 0x776   : > { %5786 = vrot.lane.b32.xlu0 %v11243_v5, %s8119_s9 }
 0x779   : > { %5792 = vrot.lane.b32.xlu1 %v11244_v49, %s8119_s9  ;;  %v11249_v49 = vld [vmem:[#allocation35_spill] sm:$0xff] }
 0x77a   : > { %5790 = vrot.lane.b32.xlu0 %v11245_v32, %s8119_s9  ;;  %v5451_v31 = vpop.xlane.xlu1 %5450 }
 0x77b   : > { %8053 = vrcp.f32 %v5451_v31 }
 0x77d   : > { %5796 = vrot.lane.b32.xlu1 %v11246_v25, %s8119_s9 }
 0x77e   : > { %5794 = vrot.lane.b32.xlu0 %v11247_v9, %s8119_s9  ;;  %v5037_v26 = vpop.xlane.xlu1 %5036  ;;  %v5454_v19 = vpop.xlane.xlu0 %5453 }
 0x77f   : > { %8055 = vrcp.f32 %v5454_v19 }
 0x780   : > { %8057 = vrcp.f32 %v5037_v26 }
 0x781   : > { %5800 = vrot.lane.b32.xlu1 %v11248_v61, %s8119_s9 }
 0x782   : > { %5798 = vrot.lane.b32.xlu0 %v11249_v49, %s8119_s9  ;;  %v5043_v5 = vpop.xlane.xlu1 %5042  ;;  %v5040_v32 = vpop.xlane.xlu0 %5039 }
 0x783   : > { %8059 = vrcp.f32 %v5040_v32 }
 0x784   : > { %8061 = vrcp.f32 %v5043_v5 }
 0x786   : > { %v5046_v1 = vpop.xlane.xlu0 %5045  ;;  %v5049_v25 = vpop.xlane.xlu1 %5048 }
 0x787   : > { %8063 = vrcp.f32 %v5046_v1 }
 0x788   : > { %v8054_v42 = vpop.eup %8053  ;;  %8065 = vrcp.f32 %v5049_v25 }
 0x789   : > { %v5457_v26 = vmul.f32 %v8054_v42, %v10344_v2 }
 0x78a   : > { %v5052_v31 = vpop.xlane.xlu0 %5051  ;;  %v5055_v32 = vpop.xlane.xlu1 %5054 }
 0x78b   : > { %8067 = vrcp.f32 %v5052_v31 }
 0x78c   : > { %v8056_v9 = vpop.eup %8055 }
 0x78d   : > { %v8058_v19 = vpop.eup %8057  ;;  %v5458_v61 = vmul.f32 %v8056_v9, %v10367_v59 }
 0x78e   : > { %v5058_v57 = vpop.xlane.xlu0 %5057  ;;  %v5099_v45 = vmul.f32 %v8058_v19, %v10313_v46  ;;  %v5100_v5 = vmul.f32 %v8058_v19, %v10317_v8 }
 0x78f   : > { %v5459_v56 = vpack.c.bf16 %v5458_v61, %v5457_v26  ;;  %8069 = vrcp.f32 %v5058_v57  ;;  %v5061_v26 = vpop.xlane.xlu1 %5060 }
 0x790   : > { %v8060_v49 = vpop.eup %8059  ;;  %8071 = vrcp.f32 %v5055_v32 }
 0x791   : > { %v5101_v1 = vmul.f32 %v8060_v49, %v10321_v28  ;;  %7419 = vmatprep.subr.msk.bf16.mxu1 %vm3843_vm1, %v5459_v56  ;;  %v5509_v25 = vsel %vm3843_vm1, %v5459_v56, 0  ;;  %v5102_v31 = vmul.f32 %v8060_v49, %v10323_v38  ;;  %v8062_v2 = vpop.eup %8061  ;;  %v11250_v38 = vld [vmem:[#allocation39_spill] sm:$0xff]  ;;  %v11251_v49 = vld [vmem:[#allocation41_spill] sm:$0xff] }
 0x792   : > { %7370 = vmatpush3.bf16.xpose.msra.mxu1 %v5509_v25  ;;  %v5104_v46 = vmul.f32 %v8062_v2, %v10331_v15  ;;  %v5064_v61 = vpop.xlane.xlu0 %5063  ;;  %v5103_v15 = vmul.f32 %v8062_v2, %v10327_v33  ;;  %v11253_v33 = vld [vmem:[#allocation45_spill] sm:$0xff] }
 0x793   : > { %v5131_v59 = vpack.c.bf16 %v5101_v1, %v5099_v45  ;;  %v5132_v42 = vpack.c.bf16 %v5102_v31, %v5100_v5  ;;  %8073 = vrcp.f32 %v5064_v61  ;;  %v5067_v31 = vpop.xlane.xlu1 %5066 }
 0x794   : > { %v8064_v9 = vpop.eup %8063  ;;  %8075 = vrcp.f32 %v5061_v26 }
 0x795   : > { %5179 = vmatprep.mubr.bf16.mxu0 %v5132_v42  ;;  %v5106_v8 = vmul.f32 %v8064_v9, %v10353_v40  ;;  %v8066_v28 = vpop.eup %8065  ;;  %v5105_v56 = vmul.f32 %v8064_v9, %v10335_v52 }
 0x796   : > { %5180 = vmatmul.mubr.bf16.vlgmr.msra.gmra.mxu0 %v5131_v59  ;;  %v5108_v40 = vmul.f32 %v8066_v28, %v10373_v10  ;;  %v5070_v25 = vpop.xlane.xlu0 %5069  ;;  %v5107_v10 = vmul.f32 %v8066_v28, %v10360_v60  ;;  %v11255_v60 = vld [vmem:[#allocation49_spill] sm:$0xff] }
 0x797   : > { %v5134_v57 = vpack.c.bf16 %v5106_v8, %v5104_v46  ;;  %v5133_v32 = vpack.c.bf16 %v5105_v56, %v5103_v15  ;;  %8077 = vrcp.f32 %v5070_v25  ;;  %v11256_v15 = vld [vmem:[#allocation51_spill] sm:$0xff] }
 0x798   : > { %v8068_v19 = vpop.eup %8067  ;;  %8079 = vrcp.f32 %v5067_v31 }
 0x799   : > { %5187 = vmatprep.mubr.bf16.mxu0 %v5134_v57  ;;  %7372 = vmatmul.mubr.msk.bf16.vlgmr.msra.gmra.mxu1 %vm3843_vm1, %v11250_v38  ;;  %v5110_v45 = vmul.f32 %v8068_v19, %v10386_v51  ;;  %v5109_v59 = vmul.f32 %v8068_v19, %v10377_v24  ;;  %v11252_v51 = vld [vmem:[#allocation43_spill] sm:$0xff]  ;;  %v5073_v57 = vpop.xlane.xlu1 %5072 }
 0x79a   : > { %7375 = vmatprep.mubr.msk.bf16.mxu1 %vm3843_vm1, %v11251_v49  ;;  %v5076_v61 = vpop.xlane.xlu0 %5075 }
 0x79b   : > { %v5136_v5 = vpack.c.bf16 %v5110_v45, %v5108_v40  ;;  %v5135_v9 = vpack.c.bf16 %v5109_v59, %v5107_v10  ;;  %8081 = vrcp.f32 %v5076_v61  ;;  %v11257_v40 = vld [vmem:[#allocation37_spill] sm:$0xff]  ;;  %v11259_v10 = vld [vmem:[#allocation40_spill] sm:$0xff] }
 0x79c   : > { %v8070_v1 = vpop.eup %8069  ;;  %8083 = vrcp.f32 %v5073_v57 }
 0x79d   : > { %v8072_v52 = vpop.eup %8071  ;;  %v5114_v42 = vmul.f32 %v8070_v1, %v10409_v27  ;;  %v5113_v19 = vmul.f32 %v8070_v1, %v10403_v44  ;;  %v11254_v27 = vld [vmem:[#allocation47_spill] sm:$0xff] }
 0x79e   : > { %5188 = vmatmul.mubr.bf16.gmra.mxu0 %v5133_v32  ;;  %v5112_v2 = vmul.f32 %v8072_v52, %v10398_v47  ;;  %v5111_v47 = vmul.f32 %v8072_v52, %v10395_v16 }
 0x79f   : > { %5195 = vmatprep.mubr.bf16.mxu0 %v5136_v5 }
 0x7a0   : > { %v5138_v46 = vpack.c.bf16 %v5114_v42, %v5112_v2  ;;  %v8074_v8 = vpop.eup %8073  ;;  %v5137_v56 = vpack.c.bf16 %v5113_v19, %v5111_v47 }
 0x7a1   : > { %7376 = vmatmul.mubr.msk.bf16.gmra.mxu1 %vm3843_vm1, %v11252_v51  ;;  %v8076_v24 = vpop.eup %8075  ;;  %v5118_v26 = vmul.f32 %v8074_v8, %v10426_v55  ;;  %v5117_v49 = vmul.f32 %v8074_v8, %v10423_v41  ;;  %v10609_v41 = vstv %s4069_s11 }
 0x7a2   : > { %7379 = vmatprep.mubr.msk.bf16.mxu1 %vm3843_vm1, %v11253_v33  ;;  %v5116_v28 = vmul.f32 %v8076_v24, %v10414_v39  ;;  %v5115_v16 = vmul.f32 %v8076_v24, %v10412_v17  ;;  %v11258_v17 = vld [vmem:[#allocation38_spill] sm:$0xff] }
 0x7a4   : > { %v5140_v38 = vpack.c.bf16 %v5118_v26, %v5116_v28  ;;  %v8078_v45 = vpop.eup %8077  ;;  %v5139_v32 = vpack.c.bf16 %v5117_v49, %v5115_v16  ;;  %v11261_v28 = vld [vmem:[#allocation44_spill] sm:$0xff] }
 0x7a5   : > { %v8080_v44 = vpop.eup %8079  ;;  %v5122_v55 = vmul.f32 %v8078_v45, %v10442_v50  ;;  %v5121_v51 = vmul.f32 %v8078_v45, %v10440_v11 }
 0x7a6   : > { %5196 = vmatmul.mubr.bf16.gmra.mxu0 %v5135_v9  ;;  %v5120_v39 = vmul.f32 %v8080_v44, %v10437_v62  ;;  %v5119_v2 = vmul.f32 %v8080_v44, %v10429_v12 }
 0x7a7   : > { %5203 = vmatprep.mubr.bf16.mxu0 %v5138_v46 }
 0x7a8   : > { %v5142_v1 = vpack.c.bf16 %v5122_v55, %v5120_v39  ;;  %v8082_v25 = vpop.eup %8081  ;;  %v5141_v61 = vpack.c.bf16 %v5121_v51, %v5119_v2 }
 0x7a9   : > { %7380 = vmatmul.mubr.msk.bf16.gmra.mxu1 %vm3843_vm1, %v11254_v27  ;;  %v8084_v31 = vpop.eup %8083  ;;  %v5126_v62 = vmul.f32 %v8082_v25, %v10463_v18 }
 0x7aa   : > { %7383 = vmatprep.mubr.msk.bf16.mxu1 %vm3843_vm1, %v11255_v60  ;;  %v5124_v9 = vmul.f32 %v8084_v31, %v10451_v30  ;;  %v11260_v60 = vld [vmem:[#allocation42_spill] sm:$0xff] }
 0x7ac   : > { %v5144_v12 = vpack.c.bf16 %v5126_v62, %v5124_v9 }
 0x7ae   : > { %5204 = vmatmul.mubr.bf16.gmra.mxu0 %v5137_v56  ;;  %v5123_v56 = vmul.f32 %v8084_v31, %v10444_v36 }
 0x7af   : > { %5211 = vmatprep.mubr.bf16.mxu0 %v5140_v38 }
 0x7b1   : > { %7384 = vmatmul.mubr.msk.bf16.gmra.mxu1 %vm3843_vm1, %v11256_v15 }
 0x7b2   : > { %7387 = vmatprep.mubr.msk.bf16.mxu1 %vm3843_vm1, %v11257_v40 }
 0x7b6   : > { %v7152_v5 = vpop.f32.mrf.mxu0  ;;  %5212 = vmatmul.mubr.bf16.gmra.mxu0 %v5139_v32  ;;  %v11262_v32 = vld [vmem:[#allocation46_spill] sm:$0xff] }
 0x7b7   : > { %5219 = vmatprep.mubr.bf16.mxu0 %v5142_v1 }
 0x7b8   : > { %v7153_v52 = vpop.f32.mrf.mxu0 }
 0x7b9   : > { %v7154_v50 = vadd.f32 %v7153_v52, %v7152_v5  ;;  %v5079_v59 = vpop.xlane.xlu1 %5078  ;;  %7388 = vmatmul.mubr.msk.bf16.gmra.mxu1 %vm3843_vm1, %v11258_v17  ;;  %v11263_v5 = vld [vmem:[#allocation48_spill] sm:$0xff] }
 0x7ba   : > { %v7155_v42 = vpop.f32.mrf.mxu0  ;;  %7391 = vmatprep.mubr.msk.bf16.mxu1 %vm3843_vm1, %v11259_v10  ;;  %8085 = vrcp.f32 %v5079_v59 }
 0x7bb   : > { %v4706_v33 = vmul.f32 %v7154_v50, %v10609_v41 }
 0x7bc   : > { %v7156_v11 = vpop.f32.mrf.mxu0 }
 0x7bd   : > { %v4722_v18 = vadd.f32 %v4706_v33, %v11212_v14  ;;  %v7157_v46 = vadd.f32 %v7156_v11, %v7155_v42  ;;  %v5082_v8 = vpop.xlane.xlu0 %5081  ;;  %v5125_v14 = vmul.f32 %v8082_v25, %v10456_v54 }
 0x7be   : > { %8087 = vrcp.f32 %v5082_v8  ;;  %v7158_v24 = vpop.f32.mrf.mxu0  ;;  %5220 = vmatmul.mubr.bf16.gmra.mxu0 %v5141_v61 }
 0x7bf   : > { %4738 = vst.msk [vmem:[%s10625_s15] sm:$0xff] %vm3843_vm1, %v4722_v18  ;;  %v4707_v57 = vmul.f32 %v7157_v46, %v10609_v41  ;;  %5227 = vmatprep.mubr.bf16.mxu0 %v5144_v12  ;;  %v5143_v44 = vpack.c.bf16 %v5125_v14, %v5123_v56 }
 0x7c0   : > { %v7159_v19 = vpop.f32.mrf.mxu0 }
 0x7c1   : > { %v4723_v27 = vadd.f32 %v4707_v57, %v11219_v22  ;;  %v7160_v30 = vadd.f32 %v7159_v19, %v7158_v24  ;;  %7392 = vmatmul.mubr.msk.bf16.gmra.mxu1 %vm3843_vm1, %v11260_v60 }
 0x7c2   : > { %v7161_v26 = vpop.f32.mrf.mxu0  ;;  %7395 = vmatprep.mubr.msk.bf16.mxu1 %vm3843_vm1, %v11261_v28 }
 0x7c3   : > { %4739 = vst.msk [vmem:[%s10625_s15 + $0x8] sm:$0xff] %vm3843_vm1, %v4723_v27  ;;  %v4708_v47 = vmul.f32 %v7160_v30, %v10609_v41 }
 0x7c4   : > { %v7162_v38 = vpop.f32.mrf.mxu0 }
 0x7c5   : > { %v4724_v22 = vadd.f32 %v4708_v47, %v11215_v23  ;;  %v7163_v45 = vadd.f32 %v7162_v38, %v7161_v26 }
 0x7c6   : > { %v7164_v54 = vpop.f32.mrf.mxu0  ;;  %5228 = vmatmul.mubr.bf16.gmra.mxu0 %v5143_v44 }
 0x7c7   : > { %4740 = vst.msk [vmem:[%s10625_s15 + $0x10] sm:$0xff] %vm3843_vm1, %v4724_v22  ;;  %v4709_v49 = vmul.f32 %v7163_v45, %v10609_v41  ;;  %v8086_v55 = vpop.eup %8085 }
 0x7c8   : > { %v7165_v15 = vpop.f32.mrf.mxu0  ;;  %v5128_v25 = vmul.f32 %v8086_v55, %v10477_v0 }
 0x7c9   : > { %v4725_v40 = vadd.f32 %v4709_v49, %v11218_v35  ;;  %v7166_v16 = vadd.f32 %v7165_v15, %v7164_v54  ;;  %7396 = vmatmul.mubr.msk.bf16.gmra.mxu1 %vm3843_vm1, %v11262_v32  ;;  %v5127_v35 = vmul.f32 %v8086_v55, %v10475_v4 }
 0x7ca   : > { %v7167_v39 = vpop.f32.mrf.mxu0  ;;  %7399 = vmatprep.mubr.msk.bf16.mxu1 %vm3843_vm1, %v11263_v5 }
 0x7cb   : > { %v8088_v36 = vpop.eup %8087  ;;  %4741 = vst.msk [vmem:[%s10625_s15 + $0x18] sm:$0xff] %vm3843_vm1, %v4725_v40  ;;  %v4710_v23 = vmul.f32 %v7166_v16, %v10609_v41 }
 0x7cc   : > { %v7168_v1 = vpop.f32.mrf.mxu0  ;;  %v5130_v52 = vmul.f32 %v8088_v36, %v10483_v7  ;;  %v5129_v31 = vmul.f32 %v8088_v36, %v10481_v6  ;;  %v11264_v6 = vld [vmem:[#allocation50_spill] sm:$0xff] }
 0x7cd   : > { %v4726_v50 = vadd.f32 %v4710_v23, %v11223_v63  ;;  %v7169_v59 = vadd.f32 %v7168_v1, %v7167_v39 }
 0x7ce   : > { %v7170_v51 = vpop.f32.mrf.mxu0  ;;  %v5146_v42 = vpack.c.bf16 %v5130_v52, %v5128_v25  ;;  %v5145_v17 = vpack.c.bf16 %v5129_v31, %v5127_v35  ;;  %v5739_v52 = vpop.permute.xlu1 %5738 }
 0x7cf   : > { %4742 = vst.msk [vmem:[%s10625_s15 + $0x20] sm:$0xff] %vm3843_vm1, %v4726_v50  ;;  %v4711_v62 = vmul.f32 %v7169_v59, %v10609_v41  ;;  %v5741_v35 = vpop.permute.xlu0 %5740 }
 0x7d0   : > { %v7171_v0 = vpop.f32.mrf.mxu0  ;;  %5235 = vmatprep.mubr.bf16.mxu0 %v5146_v42 }
 0x7d1   : > { %v4727_v7 = vadd.f32 %v4711_v62, %v11221_v13  ;;  %v7172_v4 = vadd.f32 %v7171_v0, %v7170_v51  ;;  %5236 = vmatmul.mubr.bf16.gmra.mxu0 %v5145_v17  ;;  %7400 = vmatmul.mubr.msk.bf16.gmra.mxu1 %vm3843_vm1, %v11264_v6 }
 0x7d2   : > { %v7173_v33 = vpop.f32.mrf.mxu0 }
 0x7d3   : > { %4743 = vst.msk [vmem:[%s10625_s15 + $0x28] sm:$0xff] %vm3843_vm1, %v4727_v7  ;;  %v4712_v63 = vmul.f32 %v7172_v4, %v10609_v41  ;;  %v5747_v50 = vpop.permute.xlu0 %5746 }
 0x7d4   : > { %v7174_v10 = vpop.f32.mrf.mxu0 }
 0x7d5   : > { %v4728_v2 = vadd.f32 %v4712_v63, %v11225_v58  ;;  %v7175_v11 = vadd.f32 %v7174_v10, %v7173_v33 }
 0x7d7   : > { %4744 = vst.msk [vmem:[%s10625_s15 + $0x30] sm:$0xff] %vm3843_vm1, %v4728_v2  ;;  %v4713_v9 = vmul.f32 %v7175_v11, %v10609_v41  ;;  %v5751_v51 = vpop.permute.xlu0 %5750 }
 0x7d9   : > { %v4729_v13 = vadd.f32 %v4713_v9, %v11224_v53 }
 0x7db   : > { %4745 = vst.msk [vmem:[%s10625_s15 + $0x38] sm:$0xff] %vm3843_vm1, %v4729_v13 }
 0x7f9   : > { %v7176_v18 = vpop.f32.mrf.mxu0 }
 0x7fb   : > { %v7177_v46 = vpop.f32.mrf.mxu0 }
 0x7fc   : > { %v7178_v8 = vadd.f32 %v7177_v46, %v7176_v18 }
 0x7fd   : > { %v7179_v61 = vpop.f32.mrf.mxu0 }
 0x7fe   : > { %v4714_v24 = vmul.f32 %v7178_v8, %v10609_v41  ;;  %v11265_v8 = vld [vmem:[#allocation10_spill] sm:$0xff] }
 0x7ff   : > { %v7180_v12 = vpop.f32.mrf.mxu0 }
 0x800   : > { %v4730_v58 = vadd.f32 %v4714_v24, %v11227_v48  ;;  %v7181_v57 = vadd.f32 %v7180_v12, %v7179_v61 }
 0x801   : > { %v7182_v19 = vpop.f32.mrf.mxu0 }
 0x802   : > { %4746 = vst.msk [vmem:[%s10625_s15 + $0x40] sm:$0xff] %vm3843_vm1, %v4730_v58  ;;  %v4715_v27 = vmul.f32 %v7181_v57, %v10609_v41 }
 0x803   : > { %v7183_v53 = vpop.f32.mrf.mxu0 }
 0x804   : > { %v4731_v30 = vadd.f32 %v4715_v27, %v11226_v29  ;;  %v7184_v14 = vadd.f32 %v7183_v53, %v7182_v19 }
 0x805   : > { %v7185_v26 = vpop.f32.mrf.mxu0 }
 0x806   : > { %4747 = vst.msk [vmem:[%s10625_s15 + $0x48] sm:$0xff] %vm3843_vm1, %v4731_v30  ;;  %v4716_v60 = vmul.f32 %v7184_v14, %v10609_v41 }
 0x807   : > { %v7186_v47 = vpop.f32.mrf.mxu0 }
 0x808   : > { %v4732_v48 = vadd.f32 %v4716_v60, %v11229_v43  ;;  %v7187_v28 = vadd.f32 %v7186_v47, %v7185_v26  ;;  %v11266_v47 = vld [vmem:[#allocation11_spill] sm:$0xff] }
 0x809   : > { %v7188_v56 = vpop.f32.mrf.mxu0 }
 0x80a   : > { %4748 = vst.msk [vmem:[%s10625_s15 + $0x50] sm:$0xff] %vm3843_vm1, %v4732_v48  ;;  %v4717_v38 = vmul.f32 %v7187_v28, %v10609_v41 }
 0x80b   : > { %v7189_v22 = vpop.f32.mrf.mxu0 }
 0x80c   : > { %v4733_v29 = vadd.f32 %v4717_v38, %v11228_v37  ;;  %v7190_v45 = vadd.f32 %v7189_v22, %v7188_v56 }
 0x80d   : > { %v7191_v44 = vpop.f32.mrf.mxu0 }
 0x80e   : > { %4749 = vst.msk [vmem:[%s10625_s15 + $0x58] sm:$0xff] %vm3843_vm1, %v4733_v29  ;;  %v4718_v54 = vmul.f32 %v7190_v45, %v10609_v41 }
 0x80f   : > { %v7192_v49 = vpop.f32.mrf.mxu0 }
 0x810   : > { %v4734_v43 = vadd.f32 %v4718_v54, %v11231_v21  ;;  %v7193_v15 = vadd.f32 %v7192_v49, %v7191_v44 }
 0x811   : > { %v7194_v55 = vpop.f32.mrf.mxu0 }
 0x812   : > { %4750 = vst.msk [vmem:[%s10625_s15 + $0x60] sm:$0xff] %vm3843_vm1, %v4734_v43  ;;  %v4719_v40 = vmul.f32 %v7193_v15, %v10609_v41 }
 0x813   : > { %v7195_v16 = vpop.f32.mrf.mxu0 }
 0x814   : > { %v4735_v37 = vadd.f32 %v4719_v40, %v11230_v3  ;;  %v7196_v39 = vadd.f32 %v7195_v16, %v7194_v55  ;;  %v5743_v3 = vpop.permute.xlu1 %5742  ;;  %v11267_v55 = vld [vmem:[#allocation12_spill] sm:$0xff] }
 0x815   : > { %v7197_v32 = vpop.f32.mrf.mxu0 }
 0x816   : > { %4751 = vst.msk [vmem:[%s10625_s15 + $0x68] sm:$0xff] %vm3843_vm1, %v4735_v37  ;;  %v4720_v36 = vmul.f32 %v7196_v39, %v10609_v41 }
 0x817   : > { %v7198_v23 = vpop.f32.mrf.mxu0 }
 0x818   : > { %v4736_v5 = vadd.f32 %v4720_v36, %v11233_v34  ;;  %v7199_v21 = vadd.f32 %v7198_v23, %v7197_v32  ;;  %v5745_v31 = vpop.permute.xlu1 %5744  ;;  %v10709_v34 = vpop.permute.xlu0 %5754 }
 0x81a   : > { %4752 = vst.msk [vmem:[%s10625_s15 + $0x70] sm:$0xff] %vm3843_vm1, %v4736_v5  ;;  %v4721_v1 = vmul.f32 %v7199_v21, %v10609_v41 }
 0x81c   : > { %v4737_v25 = vadd.f32 %v4721_v1, %v11232_v20  ;;  %v10707_v59 = vpop.permute.xlu1 %5748  ;;  %v10713_v0 = vpop.permute.xlu0 %5758  ;;  %v10715_v20 = vstv %s6410_s17 }
 0x81e   : > { %4753 = vst.msk [vmem:[%s10625_s15 + $0x78] sm:$0xff] %vm3843_vm1, %v4737_v25 }
 0x820   : > { %v5753_v42 = vpop.permute.xlu1 %5752  ;;  %v10729_v46 = vpop.permute.xlu0 %5762 }
 0x824   : > { %v10711_v17 = vpop.permute.xlu1 %5756  ;;  %v10747_v45 = vpop.permute.xlu0 %5766 }
 0x828   : > { %v10718_v10 = vpop.permute.xlu1 %5760 }
 0x82c   : > { %v10741_v60 = vpop.permute.xlu1 %5764 }
 0x830   : > { %v10759_v23 = vpop.permute.xlu1 %5768 }
 0x856   : > { %v7248_v62 = vpop.f32.mrf.mxu0 }
 0x858   : > { %v7249_v7 = vpop.f32.mrf.mxu0 }
 0x859   : > { %v7250_v4 = vadd.f32 %v7249_v7, %v7248_v62  ;;  %v7373_v33 = vpop.f32.mrf.mxu1 }
 0x85a   : > { %v5676_v6 = vmul.f32 %v7373_v33, %v10715_v20  ;;  %v7251_v63 = vpop.f32.mrf.mxu0 }
 0x85b   : > { %v5244_v2 = vmul.f32 %v7250_v4, %v10609_v41  ;;  %v5545_v11 = vpop.f32.mrf.mxu1 }
 0x85c   : > { %v5836_v9 = vadd.f32 %v5743_v3, %v5676_v6  ;;  %v5674_v13 = vmul.f32 %v10715_v20, %v5545_v11  ;;  %v7252_v18 = vpop.f32.mrf.mxu0  ;;  %v10767_v3 = vpop.permute.xlu0 %5770 }
 0x85d   : > { %v5260_v61 = vadd.f32 %v5244_v2, %v11265_v8  ;;  %v7253_v24 = vadd.f32 %v7252_v18, %v7251_v63  ;;  %v7374_v12 = vpop.f32.mrf.mxu1  ;;  %v10781_v11 = vpop.permute.xlu1 %5772 }
 0x85e   : > { %5868 = vst.msk [vmem:[%s10726_s20 + $0x10] sm:$0xff] %vm3843_vm1, %v5836_v9  ;;  %v5834_v58 = vadd.f32 %v5739_v52, %v5674_v13  ;;  %v5677_v57 = vmul.f32 %v7374_v12, %v10715_v20  ;;  %v7254_v19 = vpop.f32.mrf.mxu0 }
 0x85f   : > { %5276 = vst.msk [vmem:[%s10625_s15 + $0x80] sm:$0xff] %vm3843_vm1, %v5260_v61  ;;  %v5245_v27 = vmul.f32 %v7253_v24, %v10609_v41  ;;  %v5548_v53 = vpop.f32.mrf.mxu1 }
 0x860   : > { %5866 = vst.msk [vmem:[%s10726_s20] sm:$0xff] %vm3843_vm1, %v5834_v58  ;;  %v5837_v30 = vadd.f32 %v5745_v31, %v5677_v57  ;;  %v5675_v14 = vmul.f32 %v10715_v20, %v5548_v53  ;;  %v7255_v26 = vpop.f32.mrf.mxu0  ;;  %v5775_v12 = vpop.permute.xlu0 %5774  ;;  %v11270_v53 = vld [vmem:[#allocation15_spill] sm:$0xff] }
 0x861   : > { %v5261_v48 = vadd.f32 %v5245_v27, %v11266_v47  ;;  %v7256_v28 = vadd.f32 %v7255_v26, %v7254_v19  ;;  %v7377_v56 = vpop.f32.mrf.mxu1 }
 0x862   : > { %5869 = vst.msk [vmem:[%s10726_s20 + $0x18] sm:$0xff] %vm3843_vm1, %v5837_v30  ;;  %v5835_v38 = vadd.f32 %v5741_v35, %v5675_v14  ;;  %v5680_v22 = vmul.f32 %v7377_v56, %v10715_v20  ;;  %v7257_v29 = vpop.f32.mrf.mxu0  ;;  %v11268_v35 = vld [vmem:[#allocation13_spill] sm:$0xff] }
 0x863   : > { %5277 = vst.msk [vmem:[%s10625_s15 + $0x88] sm:$0xff] %vm3843_vm1, %v5261_v48  ;;  %v5246_v44 = vmul.f32 %v7256_v28, %v10609_v41  ;;  %v5561_v54 = vpop.f32.mrf.mxu1  ;;  %v5777_v28 = vpop.permute.xlu1 %5776 }
 0x864   : > { %5867 = vst.msk [vmem:[%s10726_s20 + $0x8] sm:$0xff] %vm3843_vm1, %v5835_v38  ;;  %v5840_v49 = vadd.f32 %v5751_v51, %v5680_v22  ;;  %v5678_v43 = vmul.f32 %v10715_v20, %v5561_v54  ;;  %v7258_v15 = vpop.f32.mrf.mxu0 }
 0x865   : > { %v5262_v40 = vadd.f32 %v5246_v44, %v11267_v55  ;;  %v7259_v16 = vadd.f32 %v7258_v15, %v7257_v29  ;;  %v7378_v37 = vpop.f32.mrf.mxu1  ;;  %v10807_v44 = vpop.permute.xlu0 %5778 }
 0x866   : > { %5872 = vst.msk [vmem:[%s10726_s20 + $0x30] sm:$0xff] %vm3843_vm1, %v5840_v49  ;;  %v5838_v39 = vadd.f32 %v5747_v50, %v5678_v43  ;;  %v5681_v32 = vmul.f32 %v7378_v37, %v10715_v20  ;;  %v7260_v36 = vpop.f32.mrf.mxu0 }
 0x867   : > { %5278 = vst.msk [vmem:[%s10625_s15 + $0x90] sm:$0xff] %vm3843_vm1, %v5262_v40  ;;  %v5247_v5 = vmul.f32 %v7259_v16, %v10609_v41  ;;  %v5564_v21 = vpop.f32.mrf.mxu1 }
 0x868   : > { %5870 = vst.msk [vmem:[%s10726_s20 + $0x20] sm:$0xff] %vm3843_vm1, %v5838_v39  ;;  %v5841_v1 = vadd.f32 %v5753_v42, %v5681_v32  ;;  %v5679_v25 = vmul.f32 %v10715_v20, %v5564_v21  ;;  %v7261_v52 = vpop.f32.mrf.mxu0 }
 0x869   : > { %v5263_v31 = vadd.f32 %v5247_v5, %v11268_v35  ;;  %v7262_v50 = vadd.f32 %v7261_v52, %v7260_v36  ;;  %v7381_v51 = vpop.f32.mrf.mxu1  ;;  %v10821_v36 = vpop.permute.xlu1 %5780 }
 0x86a   : > { %5873 = vst.msk [vmem:[%s10726_s20 + $0x38] sm:$0xff] %vm3843_vm1, %v5841_v1  ;;  %v5839_v62 = vadd.f32 %v10707_v59, %v5679_v25  ;;  %v5684_v7 = vmul.f32 %v7381_v51, %v10715_v20  ;;  %v7263_v4 = vpop.f32.mrf.mxu0  ;;  %v11269_v59 = vld [vmem:[#allocation14_spill] sm:$0xff] }
 0x86b   : > { %5279 = vst.msk [vmem:[%s10625_s15 + $0x98] sm:$0xff] %vm3843_vm1, %v5263_v31  ;;  %v5248_v42 = vmul.f32 %v7262_v50, %v10609_v41  ;;  %v5577_v33 = vpop.f32.mrf.mxu1  ;;  %v5783_v31 = vpop.permute.xlu0 %5782 }
 0x86c   : > { %5871 = vst.msk [vmem:[%s10726_s20 + $0x28] sm:$0xff] %vm3843_vm1, %v5839_v62  ;;  %v5844_v6 = vadd.f32 %v10713_v0, %v5684_v7  ;;  %v5682_v63 = vmul.f32 %v10715_v20, %v5577_v33  ;;  %v7264_v2 = vpop.f32.mrf.mxu0 }
 0x86d   : > { %v5264_v9 = vadd.f32 %v5248_v42, %v11269_v59  ;;  %v7265_v13 = vadd.f32 %v7264_v2, %v7263_v4  ;;  %v7382_v18 = vpop.f32.mrf.mxu1  ;;  %v11273_v4 = vld [vmem:[#allocation18_spill] sm:$0xff]  ;;  %v5785_v59 = vpop.permute.xlu1 %5784 }
 0x86e   : > { %5876 = vst.msk [vmem:[%s10726_s20 + $0x50] sm:$0xff] %vm3843_vm1, %v5844_v6  ;;  %v5842_v8 = vadd.f32 %v10709_v34, %v5682_v63  ;;  %v5685_v61 = vmul.f32 %v7382_v18, %v10715_v20  ;;  %v7266_v24 = vpop.f32.mrf.mxu0 }
 0x86f   : > { %5280 = vst.msk [vmem:[%s10625_s15 + $0xa0] sm:$0xff] %vm3843_vm1, %v5264_v9  ;;  %v5249_v0 = vmul.f32 %v7265_v13, %v10609_v41  ;;  %v5580_v58 = vpop.f32.mrf.mxu1 }
 0x870   : > { %5874 = vst.msk [vmem:[%s10726_s20 + $0x40] sm:$0xff] %vm3843_vm1, %v5842_v8  ;;  %v5845_v57 = vadd.f32 %v10718_v10, %v5685_v61  ;;  %v5683_v19 = vmul.f32 %v10715_v20, %v5580_v58  ;;  %v7267_v27 = vpop.f32.mrf.mxu0 }
 0x871   : > { %v5265_v34 = vadd.f32 %v5249_v0, %v11270_v53  ;;  %v7268_v30 = vadd.f32 %v7267_v27, %v7266_v24  ;;  %v7385_v14 = vpop.f32.mrf.mxu1  ;;  %v5787_v24 = vpop.permute.xlu0 %5786 }
 0x872   : > { %5877 = vst.msk [vmem:[%s10726_s20 + $0x58] sm:$0xff] %vm3843_vm1, %v5845_v57  ;;  %v5843_v26 = vadd.f32 %v10711_v17, %v5683_v19  ;;  %v5688_v47 = vmul.f32 %v7385_v14, %v10715_v20  ;;  %v7269_v48 = vpop.f32.mrf.mxu0  ;;  %v11271_v17 = vld [vmem:[#allocation16_spill] sm:$0xff] }
 0x873   : > { %5281 = vst.msk [vmem:[%s10625_s15 + $0xa8] sm:$0xff] %vm3843_vm1, %v5265_v34  ;;  %v5250_v10 = vmul.f32 %v7268_v30, %v10609_v41  ;;  %v5593_v56 = vpop.f32.mrf.mxu1 }
 0x874   : > { %5875 = vst.msk [vmem:[%s10726_s20 + $0x48] sm:$0xff] %vm3843_vm1, %v5843_v26  ;;  %v5848_v38 = vadd.f32 %v10747_v45, %v5688_v47  ;;  %v5686_v22 = vmul.f32 %v10715_v20, %v5593_v56  ;;  %v7270_v29 = vpop.f32.mrf.mxu0  ;;  %v5789_v47 = vpop.permute.xlu1 %5788 }
 0x875   : > { %v5266_v54 = vadd.f32 %v5250_v10, %v11271_v17  ;;  %v7271_v49 = vadd.f32 %v7270_v29, %v7269_v48  ;;  %v7386_v43 = vpop.f32.mrf.mxu1  ;;  %v11275_v48 = vld [vmem:[#allocation31_spill] sm:$0xff]  ;;  %v5791_v29 = vpop.permute.xlu0 %5790 }
 0x876   : > { %5880 = vst.msk [vmem:[%s10726_s20 + $0x70] sm:$0xff] %vm3843_vm1, %v5848_v38  ;;  %v5846_v15 = vadd.f32 %v10729_v46, %v5686_v22  ;;  %v5689_v55 = vmul.f32 %v7386_v43, %v10715_v20  ;;  %v7272_v40 = vpop.f32.mrf.mxu0  ;;  %v11272_v46 = vld [vmem:[#allocation17_spill] sm:$0xff] }
 0x877   : > { %5282 = vst.msk [vmem:[%s10625_s15 + $0xb0] sm:$0xff] %vm3843_vm1, %v5266_v54  ;;  %v5251_v45 = vmul.f32 %v7271_v49, %v10609_v41  ;;  %v5596_v16 = vpop.f32.mrf.mxu1 }
 0x878   : > { %5878 = vst.msk [vmem:[%s10726_s20 + $0x60] sm:$0xff] %vm3843_vm1, %v5846_v15  ;;  %v5849_v37 = vadd.f32 %v10759_v23, %v5689_v55  ;;  %v5687_v39 = vmul.f32 %v10715_v20, %v5596_v16  ;;  %v7273_v32 = vpop.f32.mrf.mxu0  ;;  %v11276_v55 = vld [vmem:[#allocation32_spill] sm:$0xff] }
 0x879   : > { %v5267_v5 = vadd.f32 %v5251_v45, %v11272_v46  ;;  %v7274_v21 = vadd.f32 %v7273_v32, %v7272_v40  ;;  %v7389_v1 = vpop.f32.mrf.mxu1  ;;  %v5793_v32 = vpop.permute.xlu1 %5792 }
 0x87a   : > { %5881 = vst.msk [vmem:[%s10726_s20 + $0x78] sm:$0xff] %vm3843_vm1, %v5849_v37  ;;  %v5847_v25 = vadd.f32 %v10741_v60, %v5687_v39  ;;  %v5692_v52 = vmul.f32 %v7389_v1, %v10715_v20  ;;  %v7275_v35 = vpop.f32.mrf.mxu0 }
 0x87b   : > { %5283 = vst.msk [vmem:[%s10625_s15 + $0xb8] sm:$0xff] %vm3843_vm1, %v5267_v5  ;;  %v5252_v23 = vmul.f32 %v7274_v21, %v10609_v41  ;;  %v5609_v50 = vpop.f32.mrf.mxu1 }
 0x87c   : > { %5879 = vst.msk [vmem:[%s10726_s20 + $0x68] sm:$0xff] %vm3843_vm1, %v5847_v25  ;;  %v5852_v51 = vadd.f32 %v5775_v12, %v5692_v52  ;;  %v5690_v62 = vmul.f32 %v10715_v20, %v5609_v50  ;;  %v7276_v7 = vpop.f32.mrf.mxu0  ;;  %v11274_v12 = vld [vmem:[#allocation30_spill] sm:$0xff]  ;;  %v5795_v52 = vpop.permute.xlu0 %5794 }
 0x87d   : > { %v5268_v42 = vadd.f32 %v5252_v23, %v11273_v4  ;;  %v7277_v60 = vadd.f32 %v7276_v7, %v7275_v35  ;;  %v7390_v33 = vpop.f32.mrf.mxu1  ;;  %v11277_v35 = vld [vmem:[#allocation33_spill] sm:$0xff] }
 0x87e   : > { %5884 = vst.msk [vmem:[%s10726_s20 + $0x90] sm:$0xff] %vm3843_vm1, %v5852_v51  ;;  %v5850_v6 = vadd.f32 %v10767_v3, %v5690_v62  ;;  %v5693_v63 = vmul.f32 %v7390_v33, %v10715_v20  ;;  %v7278_v2 = vpop.f32.mrf.mxu0  ;;  %v5797_v33 = vpop.permute.xlu1 %5796 }
 0x87f   : > { %5284 = vst.msk [vmem:[%s10625_s15 + $0xc0] sm:$0xff] %vm3843_vm1, %v5268_v42  ;;  %v5253_v9 = vmul.f32 %v7277_v60, %v10609_v41  ;;  %v5612_v13 = vpop.f32.mrf.mxu1 }
 0x880   : > { %5882 = vst.msk [vmem:[%s10726_s20 + $0x80] sm:$0xff] %vm3843_vm1, %v5850_v6  ;;  %v5853_v18 = vadd.f32 %v5777_v28, %v5693_v63  ;;  %v5691_v8 = vmul.f32 %v10715_v20, %v5612_v13  ;;  %v7279_v61 = vpop.f32.mrf.mxu0  ;;  %v11278_v6 = vld [vmem:[#allocation34_spill] sm:$0xff] }
 0x881   : > { %v5269_v3 = vadd.f32 %v5253_v9, %v11274_v12  ;;  %v7280_v0 = vadd.f32 %v7279_v61, %v7278_v2  ;;  %v7393_v58 = vpop.f32.mrf.mxu1 }
 0x882   : > { %5885 = vst.msk [vmem:[%s10726_s20 + $0x98] sm:$0xff] %vm3843_vm1, %v5853_v18  ;;  %v5851_v57 = vadd.f32 %v10781_v11, %v5691_v8  ;;  %v5696_v19 = vmul.f32 %v7393_v58, %v10715_v20  ;;  %v7281_v27 = vpop.f32.mrf.mxu0  ;;  %v5799_v18 = vpop.permute.xlu0 %5798 }
 0x883   : > { %5285 = vst.msk [vmem:[%s10625_s15 + $0xc8] sm:$0xff] %vm3843_vm1, %v5269_v3  ;;  %v5254_v53 = vmul.f32 %v7280_v0, %v10609_v41  ;;  %v5625_v34 = vpop.f32.mrf.mxu1 }
 0x884   : > { %5883 = vst.msk [vmem:[%s10726_s20 + $0x88] sm:$0xff] %vm3843_vm1, %v5851_v57  ;;  %v5856_v30 = vadd.f32 %v5783_v31, %v5696_v19  ;;  %v5694_v14 = vmul.f32 %v10715_v20, %v5625_v34  ;;  %v7282_v26 = vpop.f32.mrf.mxu0  ;;  %v11279_v34 = vld [vmem:[#allocation35_spill] sm:$0xff] }
 0x885   : > { %v5270_v28 = vadd.f32 %v5254_v53, %v11275_v48  ;;  %v7283_v11 = vadd.f32 %v7282_v26, %v7281_v27  ;;  %v7394_v10 = vpop.f32.mrf.mxu1  ;;  %v5801_v53 = vpop.permute.xlu1 %5800 }
 0x886   : > { %5888 = vst.msk [vmem:[%s10726_s20 + $0xb0] sm:$0xff] %vm3843_vm1, %v5856_v30  ;;  %v5854_v56 = vadd.f32 %v10807_v44, %v5694_v14  ;;  %v5697_v38 = vmul.f32 %v7394_v10, %v10715_v20  ;;  %v7284_v22 = vpop.f32.mrf.mxu0  ;;  %v11280_v10 = vld [vmem:[#allocation36_spill] sm:$0xff] }
 0x887   : > { %5286 = vst.msk [vmem:[%s10625_s15 + $0xd0] sm:$0xff] %vm3843_vm1, %v5270_v28  ;;  %v5255_v17 = vmul.f32 %v7283_v11, %v10609_v41  ;;  %v5628_v54 = vpop.f32.mrf.mxu1 }
 0x888   : > { %5886 = vst.msk [vmem:[%s10726_s20 + $0xa0] sm:$0xff] %vm3843_vm1, %v5854_v56  ;;  %v5857_v49 = vadd.f32 %v5785_v59, %v5697_v38  ;;  %v5695_v43 = vmul.f32 %v10715_v20, %v5628_v54  ;;  %v7285_v15 = vpop.f32.mrf.mxu0 }
 0x889   : > { %v5271_v40 = vadd.f32 %v5255_v17, %v11276_v55  ;;  %v7286_v44 = vadd.f32 %v7285_v15, %v7284_v22  ;;  %v7397_v45 = vpop.f32.mrf.mxu1 }
 0x88a   : > { %5889 = vst.msk [vmem:[%s10726_s20 + $0xb8] sm:$0xff] %vm3843_vm1, %v5857_v49  ;;  %v5855_v16 = vadd.f32 %v10821_v36, %v5695_v43  ;;  %v5700_v37 = vmul.f32 %v7397_v45, %v10715_v20  ;;  %v7287_v39 = vpop.f32.mrf.mxu0 }
 0x88b   : > { %5287 = vst.msk [vmem:[%s10625_s15 + $0xd8] sm:$0xff] %vm3843_vm1, %v5271_v40  ;;  %v5256_v46 = vmul.f32 %v7286_v44, %v10609_v41  ;;  %v5641_v5 = vpop.f32.mrf.mxu1 }
 0x88c   : > { %5887 = vst.msk [vmem:[%s10726_s20 + $0xa8] sm:$0xff] %vm3843_vm1, %v5855_v16  ;;  %v5860_v21 = vadd.f32 %v5791_v29, %v5700_v37  ;;  %v5698_v1 = vmul.f32 %v10715_v20, %v5641_v5  ;;  %v7288_v25 = vpop.f32.mrf.mxu0 }
 0x88d   : > { %v5272_v36 = vadd.f32 %v5256_v46, %v11277_v35  ;;  %v7289_v31 = vadd.f32 %v7288_v25, %v7287_v39  ;;  %v7398_v23 = vpop.f32.mrf.mxu1 }
 0x88e   : > { %5892 = vst.msk [vmem:[%s10726_s20 + $0xd0] sm:$0xff] %vm3843_vm1, %v5860_v21  ;;  %v5858_v50 = vadd.f32 %v5787_v24, %v5698_v1  ;;  %v5701_v51 = vmul.f32 %v7398_v23, %v10715_v20 }
 0x88f   : > { %5288 = vst.msk [vmem:[%s10625_s15 + $0xe0] sm:$0xff] %vm3843_vm1, %v5272_v36  ;;  %v5257_v62 = vmul.f32 %v7289_v31, %v10609_v41  ;;  %v5644_v7 = vpop.f32.mrf.mxu1 }
 0x890   : > { %5890 = vst.msk [vmem:[%s10726_s20 + $0xc0] sm:$0xff] %vm3843_vm1, %v5858_v50  ;;  %v5861_v4 = vadd.f32 %v5793_v32, %v5701_v51  ;;  %v5699_v42 = vmul.f32 %v10715_v20, %v5644_v7 }
 0x891   : > { %v7290_v60 = vpop.f32.mrf.mxu0  ;;  %v5273_v63 = vadd.f32 %v5257_v62, %v11278_v6  ;;  %v7401_v2 = vpop.f32.mrf.mxu1 }
 0x892   : > { %5893 = vst.msk [vmem:[%s10726_s20 + $0xd8] sm:$0xff] %vm3843_vm1, %v5861_v4  ;;  %v5859_v59 = vadd.f32 %v5789_v47, %v5699_v42  ;;  %v5704_v9 = vmul.f32 %v7401_v2, %v10715_v20 }
 0x893   : > { %v7291_v13 = vpop.f32.mrf.mxu0  ;;  %5289 = vst.msk [vmem:[%s10625_s15 + $0xe8] sm:$0xff] %vm3843_vm1, %v5273_v63  ;;  %v5657_v61 = vpop.f32.mrf.mxu1 }
 0x894   : > { %v7292_v8 = vadd.f32 %v7291_v13, %v7290_v60  ;;  %5891 = vst.msk [vmem:[%s10726_s20 + $0xc8] sm:$0xff] %vm3843_vm1, %v5859_v59  ;;  %v5864_v24 = vadd.f32 %v5799_v18, %v5704_v9  ;;  %v5702_v12 = vmul.f32 %v10715_v20, %v5657_v61 }
 0x895   : > { %v7293_v3 = vpop.f32.mrf.mxu0  ;;  %v7402_v58 = vpop.f32.mrf.mxu1 }
 0x896   : > { %v5258_v0 = vmul.f32 %v7292_v8, %v10609_v41  ;;  %5896 = vst.msk [vmem:[%s10726_s20 + $0xf0] sm:$0xff] %vm3843_vm1, %v5864_v24  ;;  %v5862_v57 = vadd.f32 %v5795_v52, %v5702_v12  ;;  %v5705_v19 = vmul.f32 %v7402_v58, %v10715_v20 }
 0x897   : > { %v7294_v27 = vpop.f32.mrf.mxu0  ;;  %v5660_v26 = vpop.f32.mrf.mxu1 }
 0x898   : > { %v5274_v30 = vadd.f32 %v5258_v0, %v11279_v34  ;;  %v7295_v14 = vadd.f32 %v7294_v27, %v7293_v3  ;;  %5894 = vst.msk [vmem:[%s10726_s20 + $0xe0] sm:$0xff] %vm3843_vm1, %v5862_v57  ;;  %v5865_v47 = vadd.f32 %v5801_v53, %v5705_v19  ;;  %v5703_v48 = vmul.f32 %v10715_v20, %v5660_v26 }
 0x89a   : > { %5290 = vst.msk [vmem:[%s10625_s15 + $0xf0] sm:$0xff] %vm3843_vm1, %v5274_v30  ;;  %v5259_v28 = vmul.f32 %v7295_v14, %v10609_v41  ;;  %5897 = vst.msk [vmem:[%s10726_s20 + $0xf8] sm:$0xff] %vm3843_vm1, %v5865_v47  ;;  %v5863_v11 = vadd.f32 %v5797_v33, %v5703_v48 }
 0x89c   : > { %v5275_v56 = vadd.f32 %v5259_v28, %v11280_v10  ;;  %5895 = vst.msk [vmem:[%s10726_s20 + $0xe8] sm:$0xff] %vm3843_vm1, %v5863_v11 }
 0x89e   : > { %5291 = vst.msk [vmem:[%s10625_s15 + $0xf8] sm:$0xff] %vm3843_vm1, %v5275_v56 }
 0x89f PF: > { %s20_s27 = sadd.s32 1, %s8114_s27  }
 0x8a0   : > { %p17_p1 = scmp.ge.s32.totalorder %s20_s27, 4  }
 0x8a2   :  { %19 = sbr.rel (!%p17_p1) target bundleno = 1 (0x1), region = 95 }
 0x8a7   :  { %5935 = vsyncpa [#allocation3], 1 }
 0x8a8   :  { %5937 = vsyncpa [#allocation3 + $0x1], 1 }

// kernel: danet_head_forward.3
= control target key start
LH: loop header
LB: loop body
LE: loop exit
PB: predicated region body
PF: predicated region fallthrough
CT: control target
= control target key end

     0   :  { %v5308_v0 = vmov 0   ;;  %vm988_vm0 = vcmask 392192   ;;  %vm3812_vm1 = vcmask 130048   ;;  %vm4262_vm2 = vcmask 31744   ;;  %s7699_s2 = inlined_call_operand.vmem [shape: bf16[432,16], index: 2, kind: input, shape index: {}]   ;;  %s7700_s0 = inlined_call_operand.vmem [shape: bf16[512,432], index: 0, kind: input, shape index: {}]   ;;  %s7701_s5 = inlined_call_operand.vmem [shape: bf16[432,16], index: 5, kind: input, shape index: {}]   ;;  %s7702_s1 = inlined_call_operand.vmem [shape: bf16[512,432], index: 1, kind: input, shape index: {}]   ;;  %s7703_s8 = inlined_call_operand.vmem [shape: bf16[16,4], index: 8, kind: input, shape index: {}]   ;;  %s7704_s6 = inlined_call_operand.vmem [shape: f32[1,16], index: 6, kind: input, shape index: {}]   ;;  %s7705_s3 = inlined_call_operand.vmem [shape: f32[1,16], index: 3, kind: input, shape index: {}]   ;;  %s7706_s7 = inlined_call_operand.vmem [shape: f32[1,16], index: 7, kind: input, shape index: {}]   ;;  %s7707_s4 = inlined_call_operand.vmem [shape: f32[1,16], index: 4, kind: input, shape index: {}]   ;;  %s7708_s9 = inlined_call_operand.vmem [shape: f32[1,4], index: 9, kind: input, shape index: {}]   ;;  %s7709_s10 = inlined_call_operand.vmem [shape: f32[512,4], index: 10, kind: output, shape index: {}]  }
   0x1   :  { %1085 = vmatprep.subr.bf16.mxu0 %v5308_v0  ;;  %v4865_v1 = vld [vmem:[%s7699_s2 + $0x38] sm:$0xff]   ;;  %4842 = vmatprep.subr.bf16.mxu1 %v5308_v0  ;;  %v4866_v2 = vld [vmem:[%s7699_s2 + $0x30] sm:$0xff]   ;;  %v4867_v3 = vld [vmem:[%s7699_s2 + $0x28] sm:$0xff]  }
   0x2   :  { %1086 = vmatpush1.bf16.msra.mxu0 %v4865_v1  ;;  %v4868_v4 = vld [vmem:[%s7699_s2 + $0x20] sm:$0xff]   ;;  %v4869_v5 = vld [vmem:[%s7699_s2 + $0x18] sm:$0xff]   ;;  %v4870_v6 = vld [vmem:[%s7699_s2 + $0x10] sm:$0xff]  }
   0x3   :  { %1087 = vmatprep.subr.bf16.mxu0 %v5308_v0  ;;  %v4883_v7 = vld [vmem:[%s7700_s0 + $0x4] ss:$16 sps:$4 sm:$0xff]   ;;  %v5394_v8 = vld [vmem:[%s7699_s2 + $0xb8] sm:$0xff]   ;;  %v4871_v10 = vld [vmem:[%s7699_s2 + $0x8] sm:$0xff]  }
   0x4   :  { %1117 = vmatprep.mubr.bf16.mxu0 %v4883_v7  ;;  %4853 = vmatpush1.bf16.msra.mxu1 %v5394_v8  ;;  %v5401_v9 = vld [vmem:[%s7699_s2 + $0xb0] sm:$0xff]   ;;  %v5412_v11 = vld [vmem:[%s7699_s2 + $0xa8] sm:$0xff]   ;;  %v4872_v12 = vld [vmem:[%s7699_s2] sm:$0xff]  }
   0x5   :  { %4843 = vmatprep.subr.bf16.mxu1 %v5308_v0  ;;  %v5423_v13 = vld [vmem:[%s7699_s2 + $0xa0] sm:$0xff]   ;;  %v4873_v14 = vld [vmem:[%s7699_s2 + $0x78] sm:$0xff]   ;;  %v4874_v16 = vld [vmem:[%s7699_s2 + $0x70] sm:$0xff]  }
   0x6   :  { %1088 = vmatpush1.bf16.msra.mxu0 %v4866_v2  ;;  %v5434_v15 = vld [vmem:[%s7699_s2 + $0x98] sm:$0xff]   ;;  %v5445_v17 = vld [vmem:[%s7699_s2 + $0x90] sm:$0xff]   ;;  %v4875_v19 = vld [vmem:[%s7699_s2 + $0x68] sm:$0xff]  }
   0x7   :  { %1089 = vmatprep.subr.bf16.mxu0 %v5308_v0  ;;  %v4914_v18 = vld [vmem:[%s7700_s0 + $0xcc] ss:$16 sps:$4 sm:$0xff]   ;;  %v4876_v21 = vld [vmem:[%s7699_s2 + $0x60] sm:$0xff]   ;;  %v5482_v24 = vld [vmem:[%s7699_s2 + $0xd0] sm:$0xff]  }
   0x8   :  { %4854 = vmatpush1.bf16.msra.mxu1 %v5401_v9  ;;  %4492 = vmatprep.mubr.msk.bf16.mxu1 %vm988_vm0, %v4914_v18  ;;  %v5460_v20 = vld [vmem:[%s7699_s2 + $0x88] sm:$0xff]   ;;  %v5471_v22 = vld [vmem:[%s7699_s2 + $0x80] sm:$0xff]   ;;  %v4877_v23 = vld [vmem:[%s7699_s2 + $0x58] sm:$0xff]  }
   0x9   :  { %4844 = vmatprep.subr.bf16.mxu1 %v5308_v0  ;;  %v4878_v25 = vld [vmem:[%s7699_s2 + $0x50] sm:$0xff]   ;;  %v5493_v26 = vld [vmem:[%s7699_s2 + $0xc8] sm:$0xff]   ;;  %v5504_v28 = vld [vmem:[%s7699_s2 + $0xc0] sm:$0xff]  }
   0xa   :  { %1090 = vmatpush1.bf16.msra.mxu0 %v4867_v3  ;;  %v4879_v27 = vld [vmem:[%s7699_s2 + $0x48] sm:$0xff]   ;;  %v4880_v29 = vld [vmem:[%s7699_s2 + $0x40] sm:$0xff]   ;;  %v4952_v32 = vld [vmem:[%s7701_s5 + $0x38] sm:$0xff]  }
   0xb   :  { %1091 = vmatprep.subr.bf16.mxu0 %v5308_v0  ;;  %v4912_v30 = vld [vmem:[%s7700_s0 + $0xc8] ss:$16 sps:$4 sm:$0xff]   ;;  %v4918_v31 = vld [vmem:[%s7700_s0 + $0xec] ss:$16 sps:$4 sm:$0xff]   ;;  %v4881_v33 = vld [vmem:[%s7700_s0] ss:$16 sps:$4 sm:$0xff]  }
   0xc   :  { %4855 = vmatpush1.bf16.msra.mxu1 %v5412_v11  ;;  %v4885_v34 = vld [vmem:[%s7700_s0 + $0x24] ss:$16 sps:$4 sm:$0xff]   ;;  %v4921_v36 = vld [vmem:[%s7700_s0 + $0xe8] ss:$16 sps:$4 sm:$0xff]   ;;  %v4924_v37 = vld [vmem:[%s7700_s0 + $0x10c] ss:$16 sps:$4 sm:$0xff]  }
   0xd   :  { %4845 = vmatprep.subr.bf16.mxu1 %v5308_v0  ;;  %v4959_v35 = vld [vmem:[%s7701_s5 + $0x30] sm:$0xff]   ;;  %v4972_v38 = vld [vmem:[%s7701_s5 + $0x28] sm:$0xff]   ;;  %v4985_v41 = vld [vmem:[%s7701_s5 + $0x20] sm:$0xff]  }
   0xe   :  { %1092 = vmatpush1.bf16.msra.mxu0 %v4868_v4  ;;  %v4887_v39 = vld [vmem:[%s7700_s0 + $0x20] ss:$16 sps:$4 sm:$0xff]   ;;  %v4890_v40 = vld [vmem:[%s7700_s0 + $0x44] ss:$16 sps:$4 sm:$0xff]   ;;  %v4927_v42 = vld [vmem:[%s7700_s0 + $0x108] ss:$16 sps:$4 sm:$0xff]  }
   0xf   :  { %1093 = vmatprep.subr.bf16.mxu0 %v5308_v0  ;;  %v4930_v43 = vld [vmem:[%s7700_s0 + $0x12c] ss:$16 sps:$4 sm:$0xff]   ;;  %v4892_v44 = vld [vmem:[%s7700_s0 + $0x40] ss:$16 sps:$4 sm:$0xff]   ;;  %v4895_v45 = vld [vmem:[%s7700_s0 + $0x64] ss:$16 sps:$4 sm:$0xff]  }
  0x10   :  { %4856 = vmatpush1.bf16.msra.mxu1 %v5423_v13  ;;  %v4992_v46 = vld [vmem:[%s7701_s5 + $0x18] sm:$0xff]   ;;  %v4897_v49 = vld [vmem:[%s7700_s0 + $0x60] ss:$16 sps:$4 sm:$0xff]   ;;  %v4900_v50 = vld [vmem:[%s7700_s0 + $0x84] ss:$16 sps:$4 sm:$0xff]  }
  0x11   :  { %4846 = vmatprep.subr.bf16.mxu1 %v5308_v0  ;;  %v4933_v47 = vld [vmem:[%s7700_s0 + $0x128] ss:$16 sps:$4 sm:$0xff]   ;;  %v4936_v48 = vld [vmem:[%s7700_s0 + $0x14c] ss:$16 sps:$4 sm:$0xff]   ;;  %v4902_v53 = vld [vmem:[%s7700_s0 + $0x80] ss:$16 sps:$4 sm:$0xff]  }
  0x12   :  { %1094 = vmatpush1.bf16.msra.mxu0 %v4869_v5  ;;  %v4939_v51 = vld [vmem:[%s7700_s0 + $0x148] ss:$16 sps:$4 sm:$0xff]   ;;  %v4942_v52 = vld [vmem:[%s7700_s0 + $0x16c] ss:$16 sps:$4 sm:$0xff]   ;;  %v4905_v54 = vld [vmem:[%s7700_s0 + $0xa4] ss:$16 sps:$4 sm:$0xff]  }
  0x13   :  { %1095 = vmatprep.subr.bf16.mxu0 %v5308_v0  ;;  %v5005_v55 = vld [vmem:[%s7701_s5 + $0x10] sm:$0xff]   ;;  %v4945_v56 = vld [vmem:[%s7700_s0 + $0x168] ss:$16 sps:$4 sm:$0xff]   ;;  %v4948_v57 = vld [vmem:[%s7700_s0 + $0x18c] ss:$16 sps:$4 sm:$0xff]  }
  0x14   :  { %4857 = vmatpush1.bf16.msra.mxu1 %v5434_v15  ;;  %v4907_v58 = vld [vmem:[%s7700_s0 + $0xa0] ss:$16 sps:$4 sm:$0xff]   ;;  %v4910_v59 = vld [vmem:[%s7700_s0 + $0xc4] ss:$16 sps:$4 sm:$0xff]   ;;  %v4951_v60 = vld [vmem:[%s7700_s0 + $0x188] ss:$16 sps:$4 sm:$0xff]  }
  0x15   :  { %4847 = vmatprep.subr.bf16.mxu1 %v5308_v0  ;;  %v4955_v61 = vld [vmem:[%s7700_s0 + $0x1ac] ss:$16 sps:$4 sm:$0xff]   ;;  %v4915_v63 = vld [vmem:[%s7700_s0 + $0xc0] ss:$16 sps:$4 sm:$0xff]   ;;  %v4916_v1 = vld [vmem:[%s7700_s0 + $0xe4] ss:$16 sps:$4 sm:$0xff]  }
  0x16   :  { %1096 = vmatpush1.bf16.msra.mxu0 %v4870_v6  ;;  %v5016_v62 = vld [vmem:[%s7701_s5 + $0x8] sm:$0xff]   ;;  %v4920_v4 = vld [vmem:[%s7700_s0 + $0xe0] ss:$16 sps:$4 sm:$0xff]   ;;  %v4922_v5 = vld [vmem:[%s7700_s0 + $0x104] ss:$16 sps:$4 sm:$0xff]  }
  0x17   :  { %1097 = vmatprep.subr.bf16.mxu0 %v5308_v0  ;;  %v4958_v2 = vld [vmem:[%s7700_s0 + $0x1a8] ss:$16 sps:$4 sm:$0xff]   ;;  %v4962_v3 = vld [vmem:[%s7700_s0 + $0x1cc] ss:$16 sps:$4 sm:$0xff]   ;;  %v5025_v6 = vld [vmem:[%s7701_s5] sm:$0xff]  }
  0x18   :  { %4858 = vmatpush1.bf16.msra.mxu1 %v5445_v17  ;;  %v4965_v7 = vld [vmem:[%s7700_s0 + $0x1c8] ss:$16 sps:$4 sm:$0xff]   ;;  %v4938_v18 = vld [vmem:[%s7700_s0 + $0x140] ss:$16 sps:$4 sm:$0xff]  }
  0x19   :  { %4848 = vmatprep.subr.bf16.mxu1 %v5308_v0 }
  0x1a   :  { %1098 = vmatpush1.bf16.msra.mxu0 %v4871_v10  ;;  %v4928_v10 = vld [vmem:[%s7700_s0 + $0x124] ss:$16 sps:$4 sm:$0xff]  }
  0x1b   :  { %1099 = vmatprep.subr.bf16.mxu0 %v5308_v0 }
  0x1c   :  { %4859 = vmatpush1.bf16.msra.mxu1 %v5460_v20 }
  0x1d   :  { %4849 = vmatprep.subr.bf16.mxu1 %v5308_v0 }
  0x1e   :  { %1100 = vmatpush1.bf16.msra.mxu0 %v4872_v12  ;;  %v4975_v12 = vld [vmem:[%s7700_s0 + $0x20c] ss:$16 sps:$4 sm:$0xff]  }
  0x1f   :  { %1101 = vmatprep.subr.bf16.mxu0 %v5308_v0 }
  0x20   :  { %4860 = vmatpush1.bf16.msra.mxu1 %v5471_v22 }
  0x21   :  { %4850 = vmatprep.subr.bf16.mxu1 %v5308_v0 }
  0x22   :  { %1102 = vmatpush2.bf16.msra.mxu0 %v4873_v14  ;;  %v4934_v14 = vld [vmem:[%s7700_s0 + $0x144] ss:$16 sps:$4 sm:$0xff]  }
  0x23   :  { %1103 = vmatprep.subr.bf16.mxu0 %v5308_v0 }
  0x24   :  { %4861 = vmatpush2.bf16.msra.mxu1 %v5482_v24 }
  0x25   :  { %4851 = vmatprep.subr.bf16.mxu1 %v5308_v0 }
  0x26   :  { %1104 = vmatpush2.bf16.msra.mxu0 %v4874_v16  ;;  %v4978_v16 = vld [vmem:[%s7700_s0 + $0x208] ss:$16 sps:$4 sm:$0xff]  }
  0x27   :  { %1105 = vmatprep.subr.bf16.mxu0 %v5308_v0 }
  0x28   :  { %4862 = vmatpush2.bf16.msra.mxu1 %v5493_v26 }
  0x29   :  { %4852 = vmatprep.subr.bf16.mxu1 %v5308_v0 }
  0x2a   :  { %1106 = vmatpush2.bf16.msra.mxu0 %v4875_v19  ;;  %v4940_v19 = vld [vmem:[%s7700_s0 + $0x164] ss:$16 sps:$4 sm:$0xff]  }
  0x2b   :  { %1107 = vmatprep.subr.bf16.mxu0 %v5308_v0 }
  0x2c   :  { %4863 = vmatpush2.bf16.msra.mxu1 %v5504_v28 }
  0x2d   :  { %2917 = vmatprep.subr.bf16.mxu1 %v5308_v0 }
  0x2e   :  { %1108 = vmatpush2.bf16.msra.mxu0 %v4876_v21  ;;  %v4988_v21 = vld [vmem:[%s7700_s0 + $0x24c] ss:$16 sps:$4 sm:$0xff]  }
  0x2f   :  { %1109 = vmatprep.subr.bf16.mxu0 %v5308_v0  ;;  %1455 = vmatmul.mubr.bf16.vlgmr.msra.gmra.mxu1 %v4912_v30  ;;  %v5058_v30 = vld [vmem:[%s7701_s5 + $0x68] sm:$0xff]  }
  0x30   :  { %4493 = vmatprep.mubr.msk.bf16.mxu1 %vm988_vm0, %v4918_v31  ;;  %2918 = vmatpush1.bf16.msra.mxu1 %v4952_v32  ;;  %v5001_v31 = vld [vmem:[%s7700_s0 + $0x28c] ss:$16 sps:$4 sm:$0xff]   ;;  %v4957_v32 = vld [vmem:[%s7700_s0 + $0x1a0] ss:$16 sps:$4 sm:$0xff]  }
  0x31   :  { %2919 = vmatprep.subr.bf16.mxu1 %v5308_v0 }
  0x32   :  { %1110 = vmatpush2.bf16.msra.mxu0 %v4877_v23  ;;  %v4946_v23 = vld [vmem:[%s7700_s0 + $0x184] ss:$16 sps:$4 sm:$0xff]  }
  0x33   :  { %1111 = vmatprep.subr.bf16.mxu0 %v5308_v0 }
  0x34   :  { %2920 = vmatpush1.bf16.msra.mxu1 %v4959_v35  ;;  %v5008_v35 = vld [vmem:[%s7700_s0 + $0x2ac] ss:$16 sps:$4 sm:$0xff]  }
  0x35   :  { %2921 = vmatprep.subr.bf16.mxu1 %v5308_v0 }
  0x36   :  { %1112 = vmatpush2.bf16.msra.mxu0 %v4878_v25  ;;  %v4991_v25 = vld [vmem:[%s7700_s0 + $0x248] ss:$16 sps:$4 sm:$0xff]  }
  0x37   :  { %1113 = vmatprep.subr.bf16.mxu0 %v5308_v0  ;;  %1463 = vmatmul.mubr.bf16.gmra.mxu1 %v4921_v36  ;;  %v4964_v36 = vld [vmem:[%s7700_s0 + $0x1c0] ss:$16 sps:$4 sm:$0xff]  }
  0x38   :  { %4494 = vmatprep.mubr.msk.bf16.mxu1 %vm988_vm0, %v4924_v37  ;;  %2922 = vmatpush1.bf16.msra.mxu1 %v4972_v38  ;;  %v4966_v37 = vld [vmem:[%s7700_s0 + $0x1e4] ss:$16 sps:$4 sm:$0xff]   ;;  %v5011_v38 = vld [vmem:[%s7700_s0 + $0x2a8] ss:$16 sps:$4 sm:$0xff]  }
  0x39   :  { %2923 = vmatprep.subr.bf16.mxu1 %v5308_v0 }
  0x3a   :  { %1114 = vmatpush2.bf16.msra.mxu0 %v4879_v27  ;;  %v4950_v27 = vld [vmem:[%s7700_s0 + $0x180] ss:$16 sps:$4 sm:$0xff]  }
  0x3b   :  { %1115 = vmatprep.subr.bf16.mxu0 %v5308_v0 }
  0x3c   :  { %2924 = vmatpush1.bf16.msra.mxu1 %v4985_v41  ;;  %v4970_v41 = vld [vmem:[%s7700_s0 + $0x1e0] ss:$16 sps:$4 sm:$0xff]  }
  0x3d   :  { %2925 = vmatprep.subr.bf16.mxu1 %v5308_v0 }
  0x3e   :  { %1116 = vmatpush2.bf16.msra.mxu0 %v4880_v29  ;;  %v4998_v29 = vld [vmem:[%s7700_s0 + $0x268] ss:$16 sps:$4 sm:$0xff]  }
  0x3f   :  { %1374 = vmatprep.subr.bf16.mxu0 %v5308_v0  ;;  %1471 = vmatmul.mubr.bf16.gmra.mxu1 %v4927_v42  ;;  %v4973_v42 = vld [vmem:[%s7700_s0 + $0x204] ss:$16 sps:$4 sm:$0xff]  }
  0x40   :  { %4495 = vmatprep.mubr.msk.bf16.mxu1 %vm988_vm0, %v4930_v43  ;;  %2926 = vmatpush1.bf16.msra.mxu1 %v4992_v46  ;;  %v5078_v43 = vld [vmem:[%s7701_s5 + $0x58] sm:$0xff]   ;;  %v5079_v46 = vld [vmem:[%s7701_s5 + $0x50] sm:$0xff]  }
  0x41   :  { %1118 = vmatmul.mubr.bf16.vlgmr.msra.gmra.mxu0 %v4881_v33  ;;  %2927 = vmatprep.subr.bf16.mxu1 %v5308_v0  ;;  %v4960_v33 = vld [vmem:[%s7700_s0 + $0x1c4] ss:$16 sps:$4 sm:$0xff]  }
  0x42   :  { %1375 = vmatpush1.bf16.msra.mxu0 %v5394_v8  ;;  %1125 = vmatprep.mubr.bf16.mxu0 %v4885_v34  ;;  %v4968_v8 = vld [vmem:[%s7700_s0 + $0x1ec] ss:$16 sps:$4 sm:$0xff]   ;;  %v5004_v34 = vld [vmem:[%s7700_s0 + $0x288] ss:$16 sps:$4 sm:$0xff]  }
  0x43   :  { %1376 = vmatprep.subr.bf16.mxu0 %v5308_v0 }
  0x44   :  { %2928 = vmatpush1.bf16.msra.mxu1 %v5005_v55  ;;  %v5031_v55 = vld [vmem:[%s7700_s0 + $0x308] ss:$16 sps:$4 sm:$0xff]  }
  0x45   :  { %2929 = vmatprep.subr.bf16.mxu1 %v5308_v0 }
  0x46   :  { %1377 = vmatpush1.bf16.msra.mxu0 %v5401_v9  ;;  %v4926_v9 = vld [vmem:[%s7700_s0 + $0x100] ss:$16 sps:$4 sm:$0xff]  }
  0x47   :  { %1378 = vmatprep.subr.bf16.mxu0 %v5308_v0  ;;  %1479 = vmatmul.mubr.bf16.gmra.mxu1 %v4933_v47  ;;  %v4977_v47 = vld [vmem:[%s7700_s0 + $0x200] ss:$16 sps:$4 sm:$0xff]  }
  0x48   :  { %4496 = vmatprep.mubr.msk.bf16.mxu1 %vm988_vm0, %v4936_v48  ;;  %2930 = vmatpush1.bf16.msra.mxu1 %v5016_v62  ;;  %v4979_v48 = vld [vmem:[%s7700_s0 + $0x224] ss:$16 sps:$4 sm:$0xff]  }
  0x49   :  { %1126 = vmatmul.mubr.bf16.gmra.mxu0 %v4887_v39  ;;  %2931 = vmatprep.subr.bf16.mxu1 %v5308_v0  ;;  %v5014_v39 = vld [vmem:[%s7700_s0 + $0x2cc] ss:$16 sps:$4 sm:$0xff]   ;;  %v4999_v62 = vld [vmem:[%s7700_s0 + $0x284] ss:$16 sps:$4 sm:$0xff]  }
  0x4a   :  { %1133 = vmatprep.mubr.bf16.mxu0 %v4890_v40  ;;  %1379 = vmatpush1.bf16.msra.mxu0 %v5412_v11  ;;  %v4971_v11 = vld [vmem:[%s7700_s0 + $0x1e8] ss:$16 sps:$4 sm:$0xff]   ;;  %v5071_v40 = vld [vmem:[%s7701_s5 + $0x60] sm:$0xff]  }
  0x4b   :  { %1380 = vmatprep.subr.bf16.mxu0 %v5308_v0 }
  0x4c   :  { %2932 = vmatpush1.bf16.msra.mxu1 %v5025_v6  ;;  %v5055_v6 = vld [vmem:[%s7700_s0 + $0x38c] ss:$16 sps:$4 sm:$0xff]  }
  0x4d   :  { %2933 = vmatprep.subr.bf16.mxu1 %v5308_v0 }
  0x4e   :  { %1381 = vmatpush1.bf16.msra.mxu0 %v5423_v13  ;;  %v4932_v13 = vld [vmem:[%s7700_s0 + $0x120] ss:$16 sps:$4 sm:$0xff]  }
  0x4f   :  { %1382 = vmatprep.subr.bf16.mxu0 %v5308_v0  ;;  %1487 = vmatmul.mubr.bf16.gmra.mxu1 %v4939_v51  ;;  %v5028_v51 = vld [vmem:[%s7700_s0 + $0x30c] ss:$16 sps:$4 sm:$0xff]  }
  0x50   :  { %4497 = vmatprep.mubr.msk.bf16.mxu1 %vm988_vm0, %v4942_v52  ;;  %v5085_v52 = vld [vmem:[%s7701_s5 + $0x40] sm:$0xff]  }
  0x51   :  { %1134 = vmatmul.mubr.bf16.gmra.mxu0 %v4892_v44  ;;  %v5018_v44 = vld [vmem:[%s7700_s0 + $0x2c8] ss:$16 sps:$4 sm:$0xff]  }
  0x52   :  { %1141 = vmatprep.mubr.bf16.mxu0 %v4895_v45  ;;  %1383 = vmatpush1.bf16.msra.mxu0 %v5434_v15  ;;  %v5038_v15 = vld [vmem:[%s7701_s5 + $0x78] sm:$0xff]  }
  0x53   :  { %1384 = vmatprep.subr.bf16.mxu0 %v5308_v0  ;;  %2934 = vmatpush2.bf16.msra.mxu1 %v5038_v15  ;;  %v5021_v45 = vld [vmem:[%s7700_s0 + $0x2ec] ss:$16 sps:$4 sm:$0xff]   ;;  %v5026_v15 = vld [vmem:[%s7700_s0 + $0x304] ss:$16 sps:$4 sm:$0xff]  }
  0x54   :  { %2935 = vmatprep.subr.bf16.mxu1 %v5308_v0 }
  0x56   :  { %1385 = vmatpush1.bf16.msra.mxu0 %v5445_v17  ;;  %v4981_v17 = vld [vmem:[%s7700_s0 + $0x22c] ss:$16 sps:$4 sm:$0xff]  }
  0x57   :  { %1386 = vmatprep.subr.bf16.mxu0 %v5308_v0  ;;  %1495 = vmatmul.mubr.bf16.gmra.mxu1 %v4945_v56  ;;  %v4990_v56 = vld [vmem:[%s7700_s0 + $0x240] ss:$16 sps:$4 sm:$0xff]  }
  0x58   :  { %4498 = vmatprep.mubr.msk.bf16.mxu1 %vm988_vm0, %v4948_v57  ;;  %v5034_v57 = vld [vmem:[%s7700_s0 + $0x32c] ss:$16 sps:$4 sm:$0xff]  }
  0x59   :  { %1142 = vmatmul.mubr.bf16.gmra.mxu0 %v4897_v49  ;;  %v5083_v49 = vld [vmem:[%s7701_s5 + $0x48] sm:$0xff]  }
  0x5a   :  { %1149 = vmatprep.mubr.bf16.mxu0 %v4900_v50  ;;  %1387 = vmatpush1.bf16.msra.mxu0 %v5460_v20  ;;  %v4984_v20 = vld [vmem:[%s7700_s0 + $0x228] ss:$16 sps:$4 sm:$0xff]  }
  0x5b   :  { %1388 = vmatprep.subr.bf16.mxu0 %v5308_v0  ;;  %v5024_v50 = vld [vmem:[%s7700_s0 + $0x2e8] ss:$16 sps:$4 sm:$0xff]  }
  0x5e   :  { %1389 = vmatpush1.bf16.msra.mxu0 %v5471_v22  ;;  %v4944_v22 = vld [vmem:[%s7700_s0 + $0x160] ss:$16 sps:$4 sm:$0xff]  }
  0x5f   :  { %1400 = vmatprep.subr.bf16.mxu0 %v5308_v0  ;;  %1503 = vmatmul.mubr.bf16.gmra.mxu1 %v4951_v60  ;;  %v4997_v60 = vld [vmem:[%s7700_s0 + $0x260] ss:$16 sps:$4 sm:$0xff]  }
  0x60   :  { %4499 = vmatprep.mubr.msk.bf16.mxu1 %vm988_vm0, %v4955_v61  ;;  %v5041_v61 = vld [vmem:[%s7700_s0 + $0x34c] ss:$16 sps:$4 sm:$0xff]  }
  0x61   :  { %1150 = vmatmul.mubr.bf16.gmra.mxu0 %v4902_v53  ;;  %v4983_v53 = vld [vmem:[%s7700_s0 + $0x220] ss:$16 sps:$4 sm:$0xff]  }
  0x62   :  { %1157 = vmatprep.mubr.bf16.mxu0 %v4905_v54  ;;  %1401 = vmatpush2.bf16.msra.mxu0 %v5482_v24  ;;  %v5045_v24 = vld [vmem:[%s7701_s5 + $0x70] sm:$0xff]  }
  0x63   :  { %1402 = vmatprep.subr.bf16.mxu0 %v5308_v0  ;;  %2936 = vmatpush2.bf16.msra.mxu1 %v5045_v24  ;;  %v4986_v54 = vld [vmem:[%s7700_s0 + $0x244] ss:$16 sps:$4 sm:$0xff]  }
  0x64   :  { %2937 = vmatprep.subr.bf16.mxu1 %v5308_v0 }
  0x66   :  { %1403 = vmatpush2.bf16.msra.mxu0 %v5493_v26  ;;  %v4995_v26 = vld [vmem:[%s7700_s0 + $0x26c] ss:$16 sps:$4 sm:$0xff]  }
  0x67   :  { %1404 = vmatprep.subr.bf16.mxu0 %v5308_v0  ;;  %1511 = vmatmul.mubr.bf16.gmra.mxu1 %v4958_v2  ;;  %v5048_v2 = vld [vmem:[%s7700_s0 + $0x36c] ss:$16 sps:$4 sm:$0xff]  }
  0x68   :  { %4500 = vmatprep.mubr.msk.bf16.mxu1 %vm988_vm0, %v4962_v3  ;;  %2938 = vmatpush2.bf16.msra.mxu1 %v5058_v30  ;;  %v5006_v3 = vld [vmem:[%s7700_s0 + $0x2a4] ss:$16 sps:$4 sm:$0xff]  }
  0x69   :  { %1158 = vmatmul.mubr.bf16.gmra.mxu0 %v4907_v58  ;;  %2939 = vmatprep.subr.bf16.mxu1 %v5308_v0  ;;  %v4993_v58 = vld [vmem:[%s7700_s0 + $0x264] ss:$16 sps:$4 sm:$0xff]  }
  0x6a   :  { %1165 = vmatprep.mubr.bf16.mxu0 %v4910_v59  ;;  %1405 = vmatpush2.bf16.msra.mxu0 %v5504_v28  ;;  %v4953_v28 = vld [vmem:[%s7700_s0 + $0x1a4] ss:$16 sps:$4 sm:$0xff]   ;;  %v5037_v59 = vld [vmem:[%s7700_s0 + $0x328] ss:$16 sps:$4 sm:$0xff]  }
  0x6b   :  { %3206 = vmatprep.subr.bf16.mxu0 %v5308_v0  ;;  %v5039_v30 = vld [vmem:[%s7700_s0 + $0x344] ss:$16 sps:$4 sm:$0xff]  }
  0x6c   :  { %2940 = vmatpush2.bf16.msra.mxu1 %v5071_v40  ;;  %v5043_v40 = vld [vmem:[%s7700_s0 + $0x340] ss:$16 sps:$4 sm:$0xff]  }
  0x6d   :  { %2941 = vmatprep.subr.bf16.mxu1 %v5308_v0 }
  0x6f   :  { %1519 = vmatmul.mubr.bf16.gmra.mxu1 %v4965_v7  ;;  %v5012_v7 = vld [vmem:[%s7700_s0 + $0x2c4] ss:$16 sps:$4 sm:$0xff]  }
  0x70   :  { %4501 = vmatprep.mubr.msk.bf16.mxu1 %vm988_vm0, %v4968_v8  ;;  %2942 = vmatpush2.bf16.msra.mxu1 %v5078_v43  ;;  %v5057_v8 = vld [vmem:[%s7700_s0 + $0x388] ss:$16 sps:$4 sm:$0xff]  }
  0x71   :  { %1166 = vmatmul.mubr.bf16.gmra.mxu0 %v4915_v63  ;;  %2943 = vmatprep.subr.bf16.mxu1 %v5308_v0  ;;  %v5044_v63 = vld [vmem:[%s7700_s0 + $0x348] ss:$16 sps:$4 sm:$0xff]  }
  0x72   :  { %1173 = vmatprep.mubr.bf16.mxu0 %v4916_v1  ;;  %v5003_v1 = vld [vmem:[%s7700_s0 + $0x280] ss:$16 sps:$4 sm:$0xff]  }
  0x74   :  { %2944 = vmatpush2.bf16.msra.mxu1 %v5079_v46 }
  0x75   :  { %2945 = vmatprep.subr.bf16.mxu1 %v5308_v0 }
  0x77   :  { %1527 = vmatmul.mubr.bf16.gmra.mxu1 %v4971_v11  ;;  %v5019_v11 = vld [vmem:[%s7700_s0 + $0x2e4] ss:$16 sps:$4 sm:$0xff]  }
  0x78   :  { %4502 = vmatprep.mubr.msk.bf16.mxu1 %vm988_vm0, %v4975_v12  ;;  %2946 = vmatpush2.bf16.msra.mxu1 %v5083_v49  ;;  %v5064_v12 = vld [vmem:[%s7700_s0 + $0x3a8] ss:$16 sps:$4 sm:$0xff]   ;;  %v5100_v49 = vld [vmem:[%s7702_s1 + $0x20] ss:$16 sps:$4 sm:$0xff]  }
  0x79   :  { %1174 = vmatmul.mubr.bf16.gmra.mxu0 %v4920_v4  ;;  %2947 = vmatprep.subr.bf16.mxu1 %v5308_v0  ;;  %v5051_v4 = vld [vmem:[%s7700_s0 + $0x368] ss:$16 sps:$4 sm:$0xff]  }
  0x7a   :  { %1181 = vmatprep.mubr.bf16.mxu0 %v4922_v5  ;;  %v5010_v5 = vld [vmem:[%s7700_s0 + $0x2a0] ss:$16 sps:$4 sm:$0xff]  }
  0x7c   :  { %2948 = vmatpush2.bf16.msra.mxu1 %v5085_v52  ;;  %v5050_v52 = vld [vmem:[%s7700_s0 + $0x360] ss:$16 sps:$4 sm:$0xff]  }
  0x7f   :  { %1535 = vmatmul.mubr.bf16.gmra.mxu1 %v4978_v16  ;;  %v5070_v16 = vld [vmem:[%s7700_s0 + $0x3c8] ss:$16 sps:$4 sm:$0xff]  }
  0x80   :  { %4503 = vmatprep.mubr.msk.bf16.mxu1 %vm988_vm0, %v4981_v17  ;;  %v5075_v17 = vld [vmem:[%s7700_s0 + $0x3ec] ss:$16 sps:$4 sm:$0xff]  }
  0x81   :  { %1182 = vmatmul.mubr.bf16.gmra.mxu0 %v4926_v9  ;;  %v5017_v9 = vld [vmem:[%s7700_s0 + $0x2c0] ss:$16 sps:$4 sm:$0xff]  }
  0x82   :  { %1189 = vmatprep.mubr.bf16.mxu0 %v4928_v10  ;;  %v5062_v10 = vld [vmem:[%s7700_s0 + $0x3ac] ss:$16 sps:$4 sm:$0xff]  }
  0x87   :  { %1543 = vmatmul.mubr.bf16.gmra.mxu1 %v4984_v20 }
  0x88   :  { %4504 = vmatprep.mubr.msk.bf16.mxu1 %vm988_vm0, %v4988_v21 }
  0x89   :  { %1190 = vmatmul.mubr.bf16.gmra.mxu0 %v4932_v13  ;;  %v5068_v13 = vld [vmem:[%s7700_s0 + $0x3cc] ss:$16 sps:$4 sm:$0xff]  }
  0x8a   :  { %1197 = vmatprep.mubr.bf16.mxu0 %v4934_v14  ;;  %v5023_v14 = vld [vmem:[%s7700_s0 + $0x2e0] ss:$16 sps:$4 sm:$0xff]  }
  0x8f   :  { %1551 = vmatmul.mubr.bf16.gmra.mxu1 %v4991_v25  ;;  %v5077_v25 = vld [vmem:[%s7700_s0 + $0x3e8] ss:$16 sps:$4 sm:$0xff]  }
  0x90   :  { %4505 = vmatprep.mubr.msk.bf16.mxu1 %vm988_vm0, %v4995_v26  ;;  %v5091_v26 = vld [vmem:[%s7702_s1 + $0x4] ss:$16 sps:$4 sm:$0xff]  }
  0x91   :  { %1198 = vmatmul.mubr.bf16.gmra.mxu0 %v4938_v18  ;;  %v5030_v18 = vld [vmem:[%s7700_s0 + $0x300] ss:$16 sps:$4 sm:$0xff]  }
  0x92   :  { %1205 = vmatprep.mubr.bf16.mxu0 %v4940_v19  ;;  %v5032_v19 = vld [vmem:[%s7700_s0 + $0x324] ss:$16 sps:$4 sm:$0xff]  }
  0x97   :  { %1559 = vmatmul.mubr.bf16.gmra.mxu1 %v4998_v29 }
  0x98   :  { %4506 = vmatprep.mubr.msk.bf16.mxu1 %vm988_vm0, %v5001_v31 }
  0x99   :  { %1206 = vmatmul.mubr.bf16.gmra.mxu0 %v4944_v22 }
  0x9a   :  { %1213 = vmatprep.mubr.bf16.mxu0 %v4946_v23 }
  0x9f   :  { %1567 = vmatmul.mubr.bf16.gmra.mxu1 %v5004_v34 }
  0xa0   :  { %4507 = vmatprep.mubr.msk.bf16.mxu1 %vm988_vm0, %v5008_v35 }
  0xa1   :  { %1214 = vmatmul.mubr.bf16.gmra.mxu0 %v4950_v27 }
  0xa2   :  { %1221 = vmatprep.mubr.bf16.mxu0 %v4953_v28  ;;  %v5036_v28 = vld [vmem:[%s7700_s0 + $0x320] ss:$16 sps:$4 sm:$0xff]  }
  0xa7   :  { %1575 = vmatmul.mubr.bf16.gmra.mxu1 %v5011_v38  ;;  %v5096_v38 = vld [vmem:[%s7702_s1 + $0x24] ss:$16 sps:$4 sm:$0xff]  }
  0xa8   :  { %4508 = vmatprep.mubr.msk.bf16.mxu1 %vm988_vm0, %v5014_v39 }
  0xa9   :  { %1222 = vmatmul.mubr.bf16.gmra.mxu0 %v4957_v32 }
  0xaa   :  { %1229 = vmatprep.mubr.bf16.mxu0 %v4960_v33 }
  0xaf   :  { %1583 = vmatmul.mubr.bf16.gmra.mxu1 %v5018_v44 }
  0xb0   :  { %4509 = vmatprep.mubr.msk.bf16.mxu1 %vm988_vm0, %v5021_v45 }
  0xb1   :  { %1230 = vmatmul.mubr.bf16.gmra.mxu0 %v4964_v36 }
  0xb2   :  { %1237 = vmatprep.mubr.bf16.mxu0 %v4966_v37  ;;  %v5089_v37 = vld [vmem:[%s7702_s1] ss:$16 sps:$4 sm:$0xff]  }
  0xb7   :  { %1591 = vmatmul.mubr.bf16.gmra.mxu1 %v5024_v50  ;;  %v5106_v50 = vld [vmem:[%s7702_s1 + $0x44] ss:$16 sps:$4 sm:$0xff]  }
  0xb8   :  { %4510 = vmatprep.mubr.msk.bf16.mxu1 %vm988_vm0, %v5028_v51 }
  0xb9   :  { %1238 = vmatmul.mubr.bf16.gmra.mxu0 %v4970_v41 }
  0xba   :  { %1245 = vmatprep.mubr.bf16.mxu0 %v4973_v42  ;;  %v5046_v42 = vld [vmem:[%s7700_s0 + $0x364] ss:$16 sps:$4 sm:$0xff]  }
  0xbf   :  { %1599 = vmatmul.mubr.bf16.gmra.mxu1 %v5031_v55 }
  0xc0   :  { %4511 = vmatprep.mubr.msk.bf16.mxu1 %vm988_vm0, %v5034_v57 }
  0xc1   :  { %1246 = vmatmul.mubr.bf16.gmra.mxu0 %v4977_v47 }
  0xc2   :  { %1253 = vmatprep.mubr.bf16.mxu0 %v4979_v48 }
  0xc7   :  { %1607 = vmatmul.mubr.bf16.gmra.mxu1 %v5037_v59 }
  0xc8   :  { %4512 = vmatprep.mubr.msk.bf16.mxu1 %vm988_vm0, %v5041_v61  ;;  %v5104_v61 = vld [vmem:[%s7702_s1 + $0x40] ss:$16 sps:$4 sm:$0xff]  }
  0xc9   :  { %1254 = vmatmul.mubr.bf16.gmra.mxu0 %v4983_v53 }
  0xca   :  { %1261 = vmatprep.mubr.bf16.mxu0 %v4986_v54  ;;  %v5054_v54 = vld [vmem:[%s7700_s0 + $0x384] ss:$16 sps:$4 sm:$0xff]  }
  0xcf   :  { %1615 = vmatmul.mubr.bf16.gmra.mxu1 %v5044_v63 }
  0xd0   :  { %4513 = vmatprep.mubr.msk.bf16.mxu1 %vm988_vm0, %v5048_v2 }
  0xd1   :  { %1262 = vmatmul.mubr.bf16.gmra.mxu0 %v4990_v56 }
  0xd2   :  { %1269 = vmatprep.mubr.bf16.mxu0 %v4993_v58 }
  0xd7   :  { %1623 = vmatmul.mubr.bf16.gmra.mxu1 %v5051_v4 }
  0xd8   :  { %4514 = vmatprep.mubr.msk.bf16.mxu1 %vm988_vm0, %v5055_v6 }
  0xd9   :  { %1270 = vmatmul.mubr.bf16.gmra.mxu0 %v4997_v60 }
  0xda   :  { %1277 = vmatprep.mubr.bf16.mxu0 %v4999_v62  ;;  %v5114_v62 = vld [vmem:[%s7702_s1 + $0x64] ss:$16 sps:$4 sm:$0xff]  }
  0xdf   :  { %1631 = vmatmul.mubr.bf16.gmra.mxu1 %v5057_v8 }
  0xe0   :  { %4515 = vmatprep.mubr.msk.bf16.mxu1 %vm988_vm0, %v5062_v10  ;;  %v5112_v10 = vld [vmem:[%s7702_s1 + $0x60] ss:$16 sps:$4 sm:$0xff]  }
  0xe1   :  { %1278 = vmatmul.mubr.bf16.gmra.mxu0 %v5003_v1  ;;  %v5052_v1 = vld [vmem:[%s7700_s0 + $0x380] ss:$16 sps:$4 sm:$0xff]  }
  0xe2   :  { %1285 = vmatprep.mubr.bf16.mxu0 %v5006_v3  ;;  %v5061_v3 = vld [vmem:[%s7700_s0 + $0x3a4] ss:$16 sps:$4 sm:$0xff]  }
  0xe7   :  { %1639 = vmatmul.mubr.bf16.gmra.mxu1 %v5064_v12 }
  0xe8   :  { %4516 = vmatprep.mubr.msk.bf16.mxu1 %vm988_vm0, %v5068_v13  ;;  %v5059_v13 = vld [vmem:[%s7700_s0 + $0x3a0] ss:$16 sps:$4 sm:$0xff]  }
  0xe9   :  { %1286 = vmatmul.mubr.bf16.gmra.mxu0 %v5010_v5 }
  0xea   :  { %1293 = vmatprep.mubr.bf16.mxu0 %v5012_v7 }
  0xef   :  { %v5923_v20 = vpop.f32.mrf.mxu1  ;;  %1647 = vmatmul.mubr.bf16.gmra.mxu1 %v5070_v16 }
  0xf0   :  { %4517 = vmatprep.mubr.msk.bf16.mxu1 %vm988_vm0, %v5075_v17 }
  0xf1   :  { %1294 = vmatmul.mubr.bf16.gmra.mxu0 %v5017_v9  ;;  %v1458_v22 = vpop.f32.mrf.mxu1 }
  0xf2   :  { %1301 = vmatprep.mubr.bf16.mxu0 %v5019_v11  ;;  %v5122_v11 = vld [vmem:[%s7702_s1 + $0x84] ss:$16 sps:$4 sm:$0xff]  }
  0xf3   :  { %v5928_v24 = vpop.f32.mrf.mxu1 }
  0xf5   :  { %v1461_v29 = vpop.f32.mrf.mxu1 }
  0xf6   :  { %v5065_v29 = vld [vmem:[%s7700_s0 + $0x3c0] ss:$16 sps:$4 sm:$0xff]  }
  0xf7   :  { %v5944_v32 = vpop.f32.mrf.mxu1  ;;  %1655 = vmatmul.mubr.bf16.gmra.mxu1 %v5077_v25  ;;  %v5120_v25 = vld [vmem:[%s7702_s1 + $0x80] ss:$16 sps:$4 sm:$0xff]  }
  0xf8   :  { %2949 = vmatprep.mubr.bf16.mxu1 %v5091_v26  ;;  %v5128_v26 = vld [vmem:[%s7702_s1 + $0xa4] ss:$16 sps:$4 sm:$0xff]  }
  0xf9   :  { %1302 = vmatmul.mubr.bf16.gmra.mxu0 %v5023_v14  ;;  %v1466_v34 = vpop.f32.mrf.mxu1 }
  0xfa   :  { %1309 = vmatprep.mubr.bf16.mxu0 %v5026_v15  ;;  %v5067_v15 = vld [vmem:[%s7700_s0 + $0x3c4] ss:$16 sps:$4 sm:$0xff]  }
  0xfb   :  { %v5948_v36 = vpop.f32.mrf.mxu1 }
  0xfd   :  { %v1469_v41 = vpop.f32.mrf.mxu1 }
  0xff   :  { %v5964_v44 = vpop.f32.mrf.mxu1  ;;  %2950 = vmatmul.mubr.bf16.vlgmr.msra.gmra.mxu1 %v5089_v37 }
 0x100   :  { %2957 = vmatprep.mubr.bf16.mxu1 %v5096_v38 }
 0x101   :  { %v5926_v21 = vpop.f32.mrf.mxu0  ;;  %1310 = vmatmul.mubr.bf16.gmra.mxu0 %v5030_v18  ;;  %v1474_v46 = vpop.f32.mrf.mxu1 }
 0x102   :  { %1317 = vmatprep.mubr.bf16.mxu0 %v5032_v19  ;;  %v5134_v46 = vld [vmem:[%s7702_s1 + $0xc4] ss:$16 sps:$4 sm:$0xff]  }
 0x103   :  { %v1121_v23 = vpop.f32.mrf.mxu0  ;;  %v5968_v48 = vpop.f32.mrf.mxu1 }
 0x105   :  { %v5936_v27 = vpop.f32.mrf.mxu0  ;;  %v1477_v53 = vpop.f32.mrf.mxu1 }
 0x107   :  { %v1124_v31 = vpop.f32.mrf.mxu0  ;;  %v5984_v56 = vpop.f32.mrf.mxu1  ;;  %2958 = vmatmul.mubr.bf16.gmra.mxu1 %v5100_v49  ;;  %v5072_v49 = vld [vmem:[%s7700_s0 + $0x3e0] ss:$16 sps:$4 sm:$0xff]  }
 0x108   :  { %2965 = vmatprep.mubr.bf16.mxu1 %v5106_v50  ;;  %v5074_v31 = vld [vmem:[%s7700_s0 + $0x3e4] ss:$16 sps:$4 sm:$0xff]  }
 0x109   :  { %v5946_v33 = vpop.f32.mrf.mxu0  ;;  %1318 = vmatmul.mubr.bf16.gmra.mxu0 %v5036_v28  ;;  %v1482_v58 = vpop.f32.mrf.mxu1 }
 0x10a   :  { %1325 = vmatprep.mubr.bf16.mxu0 %v5039_v30 }
 0x10b   :  { %v1129_v35 = vpop.f32.mrf.mxu0  ;;  %v5988_v60 = vpop.f32.mrf.mxu1 }
 0x10d   :  { %v5956_v39 = vpop.f32.mrf.mxu0  ;;  %v1485_v2 = vpop.f32.mrf.mxu1 }
 0x10f   :  { %v1132_v43 = vpop.f32.mrf.mxu0  ;;  %v6004_v5 = vpop.f32.mrf.mxu1  ;;  %2966 = vmatmul.mubr.bf16.gmra.mxu1 %v5104_v61 }
 0x110   :  { %2973 = vmatprep.mubr.bf16.mxu1 %v5114_v62  ;;  %v5126_v43 = vld [vmem:[%s7702_s1 + $0xa0] ss:$16 sps:$4 sm:$0xff]  }
 0x111   :  { %v5966_v45 = vpop.f32.mrf.mxu0  ;;  %1326 = vmatmul.mubr.bf16.gmra.mxu0 %v5043_v40  ;;  %v1490_v7 = vpop.f32.mrf.mxu1  ;;  %v5132_v62 = vld [vmem:[%s7702_s1 + $0xc0] ss:$16 sps:$4 sm:$0xff]  }
 0x112   :  { %1333 = vmatprep.mubr.bf16.mxu0 %v5046_v42  ;;  %v5084_v7 = vld [vmem:[%s7701_s5 + $0xb8] sm:$0xff]  }
 0x113   :  { %v1137_v47 = vpop.f32.mrf.mxu0  ;;  %v6008_v9 = vpop.f32.mrf.mxu1 }
 0x115   :  { %v5976_v51 = vpop.f32.mrf.mxu0  ;;  %v1493_v14 = vpop.f32.mrf.mxu1 }
 0x117   :  { %v1140_v55 = vpop.f32.mrf.mxu0  ;;  %v6024_v17 = vpop.f32.mrf.mxu1  ;;  %2974 = vmatmul.mubr.bf16.gmra.mxu1 %v5112_v10 }
 0x118   :  { %2981 = vmatprep.mubr.bf16.mxu1 %v5122_v11 }
 0x119   :  { %v5986_v57 = vpop.f32.mrf.mxu0  ;;  %1334 = vmatmul.mubr.bf16.gmra.mxu0 %v5050_v52  ;;  %v1498_v19 = vpop.f32.mrf.mxu1  ;;  %v5082_v52 = vld [vmem:[%s7700_s0 + $0xc] ss:$16 sps:$4 sm:$0xff]  }
 0x11a   :  { %1341 = vmatprep.mubr.bf16.mxu0 %v5054_v54 }
 0x11b   :  { %v1145_v59 = vpop.f32.mrf.mxu0  ;;  %v6028_v23 = vpop.f32.mrf.mxu1 }
 0x11d   :  { %v5996_v63 = vpop.f32.mrf.mxu0  ;;  %v1501_v30 = vpop.f32.mrf.mxu1 }
 0x11f   :  { %v1148_v4 = vpop.f32.mrf.mxu0  ;;  %v6044_v35 = vpop.f32.mrf.mxu1  ;;  %2982 = vmatmul.mubr.bf16.gmra.mxu1 %v5120_v25 }
 0x120   :  { %2989 = vmatprep.mubr.bf16.mxu1 %v5128_v26  ;;  %v5092_v26 = vld [vmem:[%s7700_s0 + $0x28] ss:$16 sps:$4 sm:$0xff]  }
 0x121   :  { %v6006_v6 = vpop.f32.mrf.mxu0  ;;  %1342 = vmatmul.mubr.bf16.gmra.mxu0 %v5052_v1  ;;  %v1506_v38 = vpop.f32.mrf.mxu1  ;;  %v5140_v1 = vld [vmem:[%s7702_s1 + $0xe4] ss:$16 sps:$4 sm:$0xff]  }
 0x122   :  { %1349 = vmatprep.mubr.bf16.mxu0 %v5061_v3  ;;  %v5080_v3 = vld [vmem:[%s7700_s0 + $0x8] ss:$16 sps:$4 sm:$0xff]  }
 0x123   :  { %v1153_v8 = vpop.f32.mrf.mxu0  ;;  %v6049_v42 = vpop.f32.mrf.mxu1 }
 0x124   :  { %v5087_v8 = vld [vmem:[%s7700_s0 + $0x2c] ss:$16 sps:$4 sm:$0xff]  }
 0x125   :  { %v6016_v12 = vpop.f32.mrf.mxu0  ;;  %v1509_v50 = vpop.f32.mrf.mxu1 }
 0x127   :  { %v1156_v16 = vpop.f32.mrf.mxu0  ;;  %v6066_v54 = vpop.f32.mrf.mxu1  ;;  %2990 = vmatmul.mubr.bf16.gmra.mxu1 %v5126_v43  ;;  %v5192_v43 = vld [vmem:[%s7703_s8] sm:$0xff]  }
 0x128   :  { %2997 = vmatprep.mubr.bf16.mxu1 %v5134_v46  ;;  %4776 = vmatprep.subr.bf16.mxu1 %v5192_v43 }
 0x129   :  { %v6026_v18 = vpop.f32.mrf.mxu0  ;;  %1350 = vmatmul.mubr.bf16.gmra.mxu0 %v5059_v13  ;;  %v1514_v58 = vpop.f32.mrf.mxu1  ;;  %4777 = vmatpush3.bf16.msra.mxu1 %v5192_v43 }
 0x12a   :  { %1357 = vmatprep.mubr.bf16.mxu0 %v5067_v15 }
 0x12b   :  { %v1161_v22 = vpop.f32.mrf.mxu0 }
 0x12c   :  { %v5138_v22 = vld [vmem:[%s7702_s1 + $0xe0] ss:$16 sps:$4 sm:$0xff]  }
 0x12d   :  { %v6036_v28 = vpop.f32.mrf.mxu0 }
 0x12f   :  { %v1164_v34 = vpop.f32.mrf.mxu0  ;;  %2998 = vmatmul.mubr.bf16.gmra.mxu1 %v5132_v62  ;;  %v5101_v62 = vld [vmem:[%s7701_s5 + $0x98] sm:$0xff]  }
 0x130   :  { %3005 = vmatprep.mubr.bf16.mxu1 %v5140_v1  ;;  %v5094_v34 = vld [vmem:[%s7700_s0 + $0x4c] ss:$16 sps:$4 sm:$0xff]  }
 0x131   :  { %v1167_v37 = vpop.f32.mrf.mxu0  ;;  %1358 = vmatmul.mubr.bf16.gmra.mxu0 %v5065_v29  ;;  %v5102_v1 = vld [vmem:[%s7700_s0 + $0x6c] ss:$16 sps:$4 sm:$0xff]  }
 0x132   :  { %v6047_v40 = vadd.f32 %v5923_v20, %v1167_v37  ;;  %1365 = vmatprep.mubr.bf16.mxu0 %v5074_v31  ;;  %v5093_v31 = vld [vmem:[%s7701_s5 + $0xa8] sm:$0xff]  }
 0x133   :  { %v1169_v41 = vpop.f32.mrf.mxu0 }
 0x135   :  { %v1170_v47 = vpop.f32.mrf.mxu0 }
 0x136   :  { %v6061_v20 = vadd.f32 %v5928_v24, %v1170_v47  ;;  %v6072_v24 = vpop.f32.mrf.mxu1  ;;  %v5098_v47 = vld [vmem:[%s7701_s5 + $0xa0] sm:$0xff]  }
 0x137   :  { %v1172_v53 = vpop.f32.mrf.mxu0  ;;  %3006 = vmatmul.mubr.bf16.gmra.mxu1 %v5138_v22 }
 0x139   :  { %v1175_v55 = vpop.f32.mrf.mxu0  ;;  %1366 = vmatmul.mubr.bf16.gmra.mxu0 %v5072_v49 }
 0x13a   :  { %v6069_v59 = vadd.f32 %v5944_v32, %v1175_v55  ;;  %4486 = vmatprep.mubr.msk.bf16.mxu0 %vm988_vm0, %v5082_v52  ;;  %v1517_v32 = vpop.f32.mrf.mxu1  ;;  %v5144_v52 = vld [vmem:[%s7702_s1 + $0x100] ss:$16 sps:$4 sm:$0xff]   ;;  %v5099_v55 = vld [vmem:[%s7700_s0 + $0x48] ss:$16 sps:$4 sm:$0xff]  }
 0x13b   :  { %v1177_v61 = vpop.f32.mrf.mxu0 }
 0x13c   :  { %v6092_v11 = vpop.f32.mrf.mxu1 }
 0x13d   :  { %v1178_v2 = vpop.f32.mrf.mxu0 }
 0x13e   :  { %v6084_v4 = vadd.f32 %v5948_v36, %v1178_v2  ;;  %v1522_v14 = vpop.f32.mrf.mxu1  ;;  %v5086_v36 = vld [vmem:[%s7701_s5 + $0xb0] sm:$0xff]  }
 0x13f   :  { %v1180_v10 = vpop.f32.mrf.mxu0  ;;  %v5150_v14 = vld [vmem:[%s7702_s1 + $0x120] ss:$16 sps:$4 sm:$0xff]  }
 0x140   :  { %v6102_v19 = vpop.f32.mrf.mxu1 }
 0x141   :  { %v1183_v13 = vpop.f32.mrf.mxu0  ;;  %1407 = vmatmul.mubr.bf16.vlgmr.msra.gmra.mxu0 %v5080_v3 }
 0x142   :  { %v6095_v15 = vadd.f32 %v5964_v44, %v1183_v13  ;;  %3207 = vmatpush1.bf16.msra.mxu0 %v5084_v7  ;;  %4487 = vmatprep.mubr.msk.bf16.mxu0 %vm988_vm0, %v5087_v8  ;;  %v5146_v44 = vld [vmem:[%s7702_s1 + $0x104] ss:$16 sps:$4 sm:$0xff]   ;;  %v1525_v29 = vpop.f32.mrf.mxu1 }
 0x143   :  { %v1185_v16 = vpop.f32.mrf.mxu0  ;;  %3208 = vmatprep.subr.bf16.mxu0 %v5308_v0  ;;  %3013 = vmatprep.mubr.bf16.mxu1 %v5146_v44  ;;  %v5107_v8 = vld [vmem:[%s7701_s5 + $0x90] sm:$0xff]  }
 0x144   :  { %v6123_v38 = vpop.f32.mrf.mxu1  ;;  %3014 = vmatmul.mubr.bf16.gmra.mxu1 %v5144_v52  ;;  %v5108_v16 = vld [vmem:[%s7700_s0 + $0x68] ss:$16 sps:$4 sm:$0xff]  }
 0x145   :  { %v1186_v25 = vpop.f32.mrf.mxu0  ;;  %v5115_v52 = vld [vmem:[%s7700_s0 + $0x88] ss:$16 sps:$4 sm:$0xff]  }
 0x146   :  { %v6114_v30 = vadd.f32 %v5968_v48, %v1186_v25  ;;  %3209 = vmatpush1.bf16.msra.mxu0 %v5086_v36  ;;  %v1530_v48 = vpop.f32.mrf.mxu1  ;;  %v5109_v25 = vld [vmem:[%s7701_s5 + $0x88] sm:$0xff]  }
 0x147   :  { %v1188_v37 = vpop.f32.mrf.mxu0  ;;  %3210 = vmatprep.subr.bf16.mxu0 %v5308_v0 }
 0x148   :  { %v6136_v50 = vpop.f32.mrf.mxu1 }
 0x149   :  { %v1191_v41 = vpop.f32.mrf.mxu0  ;;  %1415 = vmatmul.mubr.bf16.gmra.mxu0 %v5092_v26  ;;  %v5110_v26 = vld [vmem:[%s7700_s0 + $0x8c] ss:$16 sps:$4 sm:$0xff]  }
 0x14a   :  { %v6129_v46 = vadd.f32 %v5984_v56, %v1191_v41  ;;  %3211 = vmatpush1.bf16.msra.mxu0 %v5093_v31  ;;  %4488 = vmatprep.mubr.msk.bf16.mxu0 %vm988_vm0, %v5094_v34  ;;  %v5152_v56 = vld [vmem:[%s7702_s1 + $0x124] ss:$16 sps:$4 sm:$0xff]   ;;  %v1533_v58 = vpop.f32.mrf.mxu1 }
 0x14b   :  { %v1193_v49 = vpop.f32.mrf.mxu0  ;;  %3212 = vmatprep.subr.bf16.mxu0 %v5308_v0  ;;  %3021 = vmatprep.mubr.bf16.mxu1 %v5152_v56  ;;  %v5116_v41 = vld [vmem:[%s7701_s5 + $0x80] sm:$0xff]   ;;  %v5118_v58 = vld [vmem:[%s7700_s0 + $0xac] ss:$16 sps:$4 sm:$0xff]  }
 0x14c   :  { %7710 = vst [vmem:[#allocation2_spill] sm:$0xff] %v6129_v46  ;;  %v6157_v3 = vpop.f32.mrf.mxu1  ;;  %3022 = vmatmul.mubr.bf16.gmra.mxu1 %v5150_v14  ;;  %v5162_v14 = vld [vmem:[%s7702_s1 + $0x160] ss:$16 sps:$4 sm:$0xff]  }
 0x14d   :  { %v1194_v53 = vpop.f32.mrf.mxu0 }
 0x14e   :  { %v6148_v61 = vadd.f32 %v5988_v60, %v1194_v53  ;;  %3213 = vmatpush1.bf16.msra.mxu0 %v5098_v47  ;;  %v1538_v60 = vpop.f32.mrf.mxu1  ;;  %v5156_v47 = vld [vmem:[%s7702_s1 + $0x140] ss:$16 sps:$4 sm:$0xff]  }
 0x14f   :  { %v1196_v2 = vpop.f32.mrf.mxu0  ;;  %3214 = vmatprep.subr.bf16.mxu0 %v5308_v0  ;;  %v5124_v60 = vld [vmem:[%s7701_s5 + $0xc8] sm:$0xff]  }
 0x150   :  { %7711 = vst [vmem:[#allocation3_spill] sm:$0xff] %v6148_v61  ;;  %v6167_v13 = vpop.f32.mrf.mxu1 }
 0x151   :  { %v1199_v32 = vpop.f32.mrf.mxu0  ;;  %1423 = vmatmul.mubr.bf16.gmra.mxu0 %v5099_v55  ;;  %v5117_v55 = vld [vmem:[%s7701_s5 + $0xd0] sm:$0xff]  }
 0x152   :  { %v6160_v7 = vadd.f32 %v6004_v5, %v1199_v32  ;;  %3215 = vmatpush1.bf16.msra.mxu0 %v5101_v62  ;;  %4489 = vmatprep.mubr.msk.bf16.mxu0 %vm988_vm0, %v5102_v1  ;;  %v5158_v5 = vld [vmem:[%s7702_s1 + $0x144] ss:$16 sps:$4 sm:$0xff]   ;;  %v1541_v22 = vpop.f32.mrf.mxu1 }
 0x153   :  { %v1201_v10 = vpop.f32.mrf.mxu0  ;;  %3216 = vmatprep.subr.bf16.mxu0 %v5308_v0  ;;  %3029 = vmatprep.mubr.bf16.mxu1 %v5158_v5 }
 0x154   :  { %7712 = vst [vmem:[#allocation4_spill] sm:$0xff] %v6160_v7  ;;  %v6188_v31 = vpop.f32.mrf.mxu1  ;;  %3030 = vmatmul.mubr.bf16.gmra.mxu1 %v5156_v47 }
 0x155   :  { %v1202_v36 = vpop.f32.mrf.mxu0 }
 0x156   :  { %v6179_v44 = vadd.f32 %v6008_v9, %v1202_v36  ;;  %3217 = vmatpush1.bf16.msra.mxu0 %v5107_v8  ;;  %v1546_v9 = vpop.f32.mrf.mxu1  ;;  %v5123_v36 = vld [vmem:[%s7700_s0 + $0xa8] ss:$16 sps:$4 sm:$0xff]  }
 0x157   :  { %v1204_v29 = vpop.f32.mrf.mxu0  ;;  %3218 = vmatprep.subr.bf16.mxu0 %v5308_v0 }
 0x158   :  { %7713 = vst [vmem:[#allocation5_spill] sm:$0xff] %v6179_v44  ;;  %v6198_v43 = vpop.f32.mrf.mxu1  ;;  %v6794_v44 = vld [vmem:[%s7705_s3] ss:$0 sm:$0xff] }
 0x159   :  { %v1207_v34 = vpop.f32.mrf.mxu0  ;;  %1431 = vmatmul.mubr.bf16.gmra.mxu0 %v5108_v16 }
 0x15a   :  { %v6191_v37 = vadd.f32 %v6024_v17, %v1207_v34  ;;  %3219 = vmatpush1.bf16.msra.mxu0 %v5109_v25  ;;  %4490 = vmatprep.mubr.msk.bf16.mxu0 %vm988_vm0, %v5110_v26  ;;  %v5164_v17 = vld [vmem:[%s7702_s1 + $0x164] ss:$16 sps:$4 sm:$0xff]   ;;  %v1549_v56 = vpop.f32.mrf.mxu1  ;;  %v5131_v26 = vld [vmem:[%s7702_s1 + $0xc] ss:$16 sps:$4 sm:$0xff]  }
 0x15b   :  { %v1209_v48 = vpop.f32.mrf.mxu0  ;;  %3220 = vmatprep.subr.bf16.mxu0 %v5308_v0  ;;  %3037 = vmatprep.mubr.bf16.mxu1 %v5164_v17  ;;  %v5125_v25 = vld [vmem:[%s7701_s5 + $0xc0] sm:$0xff]  }
 0x15c   :  { %7714 = vst [vmem:[#allocation6_spill] sm:$0xff] %v6191_v37  ;;  %v6219_v1 = vpop.f32.mrf.mxu1  ;;  %3038 = vmatmul.mubr.bf16.gmra.mxu1 %v5162_v14  ;;  %v5176_v17 = vld [vmem:[%s7702_s1 + $0x1a4] ss:$16 sps:$4 sm:$0xff]   ;;  %v5174_v14 = vld [vmem:[%s7702_s1 + $0x1a0] ss:$16 sps:$4 sm:$0xff]  }
 0x15d   :  { %v1210_v49 = vpop.f32.mrf.mxu0 }
 0x15e   :  { %v6210_v53 = vadd.f32 %v6028_v23, %v1210_v49  ;;  %3221 = vmatpush1.bf16.msra.mxu0 %v5116_v41  ;;  %v1554_v23 = vpop.f32.mrf.mxu1 }
 0x15f   :  { %v1212_v62 = vpop.f32.mrf.mxu0  ;;  %3232 = vmatprep.subr.bf16.mxu0 %v5308_v0 }
 0x160   :  { %7715 = vst [vmem:[#allocation7_spill] sm:$0xff] %v6210_v53  ;;  %v6229_v10 = vpop.f32.mrf.mxu1 }
 0x161   :  { %v1215_v2 = vpop.f32.mrf.mxu0  ;;  %1439 = vmatmul.mubr.bf16.gmra.mxu0 %v5115_v52 }
 0x162   :  { %v6222_v32 = vadd.f32 %v6044_v35, %v1215_v2  ;;  %3233 = vmatpush2.bf16.msra.mxu0 %v5117_v55  ;;  %4491 = vmatprep.mubr.msk.bf16.mxu0 %vm988_vm0, %v5118_v58  ;;  %v5170_v35 = vld [vmem:[%s7702_s1 + $0x184] ss:$16 sps:$4 sm:$0xff]   ;;  %v1557_v16 = vpop.f32.mrf.mxu1  ;;  %v5135_v55 = vld [vmem:[%s7702_s1 + $0x2c] ss:$16 sps:$4 sm:$0xff]  }
 0x163   :  { %v1217_v8 = vpop.f32.mrf.mxu0  ;;  %3234 = vmatprep.subr.bf16.mxu0 %v5308_v0  ;;  %3045 = vmatprep.mubr.bf16.mxu1 %v5170_v35  ;;  %v5182_v35 = vld [vmem:[%s7702_s1 + $0x1c4] ss:$16 sps:$4 sm:$0xff]  }
 0x164   :  { %7716 = vst [vmem:[#allocation8_spill] sm:$0xff] %v6222_v32  ;;  %v6250_v34 = vpop.f32.mrf.mxu1 }
 0x165   :  { %v1218_v5 = vpop.f32.mrf.mxu0 }
 0x166   :  { %v6241_v22 = vadd.f32 %v6049_v42, %v1218_v5  ;;  %3235 = vmatpush2.bf16.msra.mxu0 %v5124_v60  ;;  %v1562_v42 = vpop.f32.mrf.mxu1 }
 0x167   :  { %v1220_v29 = vpop.f32.mrf.mxu0  ;;  %3236 = vmatprep.subr.bf16.mxu0 %v5308_v0  ;;  %v5168_v0 = vld [vmem:[%s7702_s1 + $0x180] ss:$16 sps:$4 sm:$0xff]  }
 0x168   :  { %7717 = vst [vmem:[#allocation9_spill] sm:$0xff] %v6241_v22  ;;  %v6256_v47 = vpop.f32.mrf.mxu1  ;;  %3046 = vmatmul.mubr.bf16.gmra.mxu1 %v5168_v0 }
 0x169   :  { %v1223_v9 = vpop.f32.mrf.mxu0  ;;  %1447 = vmatmul.mubr.bf16.gmra.mxu0 %v5123_v36  ;;  %3053 = vmatprep.mubr.bf16.mxu1 %v5176_v17  ;;  %v5137_v36 = vld [vmem:[%s7702_s1 + $0x28] ss:$16 sps:$4 sm:$0xff]   ;;  %v5180_v17 = vld [vmem:[%s7702_s1 + $0x1c0] ss:$16 sps:$4 sm:$0xff]  }
 0x16a   :  { %v6253_v41 = vadd.f32 %v6066_v54, %v1223_v9  ;;  %3237 = vmatpush2.bf16.msra.mxu0 %v5125_v25  ;;  %4675 = vmatprep.mubr.msk.bf16.mxu0 %vm988_vm0, %v5131_v26  ;;  %v5129_v54 = vld [vmem:[%s7702_s1 + $0x8] ss:$16 sps:$4 sm:$0xff]   ;;  %v1565_v52 = vpop.f32.mrf.mxu1  ;;  %v5141_v25 = vld [vmem:[%s7702_s1 + $0x4c] ss:$16 sps:$4 sm:$0xff]  }
 0x16b   :  { %v1225_v48 = vpop.f32.mrf.mxu0  ;;  %v5143_v52 = vld [vmem:[%s7702_s1 + $0x48] ss:$16 sps:$4 sm:$0xff]  }
 0x16c   :  { %7718 = vst [vmem:[#allocation10_spill] sm:$0xff] %v6253_v41  ;;  %v6273_v62 = vpop.f32.mrf.mxu1 }
 0x16d   :  { %v1226_v49 = vpop.f32.mrf.mxu0 }
 0x16e   :  { %v6268_v56 = vadd.f32 %v6072_v24, %v1226_v49  ;;  %v1570_v23 = vpop.f32.mrf.mxu1  ;;  %v5188_v49 = vld [vmem:[%s7702_s1 + $0x1e4] ss:$16 sps:$4 sm:$0xff]  }
 0x16f   :  { %v1228_v58 = vpop.f32.mrf.mxu0 }
 0x170   :  { %7719 = vst [vmem:[#allocation11_spill] sm:$0xff] %v6268_v56  ;;  %v6279_v24 = vpop.f32.mrf.mxu1  ;;  %3054 = vmatmul.mubr.bf16.gmra.mxu1 %v5174_v14  ;;  %v5147_v58 = vld [vmem:[%s7702_s1 + $0x6c] ss:$16 sps:$4 sm:$0xff]  }
 0x171   :  { %v1231_v2 = vpop.f32.mrf.mxu0  ;;  %3239 = vmatmul.mubr.bf16.vlgmr.msra.gmra.mxu0 %v5129_v54  ;;  %3061 = vmatprep.mubr.bf16.mxu1 %v5182_v35 }
 0x172   :  { %v6276_v60 = vadd.f32 %v6092_v11, %v1231_v2  ;;  %4676 = vmatprep.mubr.msk.bf16.mxu0 %vm988_vm0, %v5135_v55  ;;  %v1573_v11 = vpop.f32.mrf.mxu1 }
 0x173   :  { %v1233_v8 = vpop.f32.mrf.mxu0  ;;  %v5195_v11 = vld [vmem:[%s7702_s1 + $0x204] ss:$16 sps:$4 sm:$0xff]  }
 0x174   :  { %7720 = vst [vmem:[#allocation12_spill] sm:$0xff] %v6276_v60  ;;  %v6296_v29 = vpop.f32.mrf.mxu1 }
 0x175   :  { %v1234_v5 = vpop.f32.mrf.mxu0 }
 0x176   :  { %v6291_v16 = vadd.f32 %v6102_v19, %v1234_v5  ;;  %v1578_v42 = vpop.f32.mrf.mxu1 }
 0x177   :  { %v1236_v26 = vpop.f32.mrf.mxu0  ;;  %v5153_v42 = vld [vmem:[%s7702_s1 + $0x8c] ss:$16 sps:$4 sm:$0xff]  }
 0x178   :  { %7721 = vst [vmem:[#allocation13_spill] sm:$0xff] %v6291_v16  ;;  %v6302_v19 = vpop.f32.mrf.mxu1  ;;  %3062 = vmatmul.mubr.bf16.gmra.mxu1 %v5180_v17  ;;  %v5149_v26 = vld [vmem:[%s7702_s1 + $0x68] ss:$16 sps:$4 sm:$0xff]  }
 0x179   :  { %v1239_v9 = vpop.f32.mrf.mxu0  ;;  %3247 = vmatmul.mubr.bf16.gmra.mxu0 %v5137_v36  ;;  %3069 = vmatprep.mubr.bf16.mxu1 %v5188_v49  ;;  %v5186_v36 = vld [vmem:[%s7702_s1 + $0x1e0] ss:$16 sps:$4 sm:$0xff]  }
 0x17a   :  { %v6299_v48 = vadd.f32 %v6123_v38, %v1239_v9  ;;  %4677 = vmatprep.mubr.msk.bf16.mxu0 %vm988_vm0, %v5141_v25  ;;  %v1581_v38 = vpop.f32.mrf.mxu1 }
 0x17b   :  { %v1241_v0 = vpop.f32.mrf.mxu0 }
 0x17c   :  { %7722 = vst [vmem:[#allocation14_spill] sm:$0xff] %v6299_v48  ;;  %v6319_v23 = vpop.f32.mrf.mxu1 }
 0x17d   :  { %v1242_v54 = vpop.f32.mrf.mxu0 }
 0x17e   :  { %v6314_v55 = vadd.f32 %v6136_v50, %v1242_v54  ;;  %v1586_v14 = vpop.f32.mrf.mxu1 }
 0x17f   :  { %v1244_v2 = vpop.f32.mrf.mxu0  ;;  %v5155_v14 = vld [vmem:[%s7702_s1 + $0x88] ss:$16 sps:$4 sm:$0xff]  }
 0x180   :  { %7723 = vst [vmem:[#allocation15_spill] sm:$0xff] %v6314_v55  ;;  %v6325_v50 = vpop.f32.mrf.mxu1  ;;  %3070 = vmatmul.mubr.bf16.gmra.mxu1 %v5186_v36  ;;  %v5201_v2 = vld [vmem:[%s7702_s1 + $0x224] ss:$16 sps:$4 sm:$0xff]   ;;  %v5159_v36 = vld [vmem:[%s7702_s1 + $0xac] ss:$16 sps:$4 sm:$0xff]  }
 0x181   :  { %v1247_v8 = vpop.f32.mrf.mxu0  ;;  %3255 = vmatmul.mubr.bf16.gmra.mxu0 %v5143_v52  ;;  %3077 = vmatprep.mubr.bf16.mxu1 %v5195_v11 }
 0x182   :  { %v6322_v35 = vadd.f32 %v6157_v3, %v1247_v8  ;;  %4678 = vmatprep.mubr.msk.bf16.mxu0 %vm988_vm0, %v5147_v58  ;;  %v1589_v3 = vpop.f32.mrf.mxu1  ;;  %v5193_v58 = vld [vmem:[%s7702_s1 + $0x200] ss:$16 sps:$4 sm:$0xff]  }
 0x183   :  { %v1249_v5 = vpop.f32.mrf.mxu0 }
 0x184   :  { %7724 = vst [vmem:[#allocation16_spill] sm:$0xff] %v6322_v35  ;;  %v6342_v17 = vpop.f32.mrf.mxu1 }
 0x185   :  { %v1250_v25 = vpop.f32.mrf.mxu0 }
 0x186   :  { %v6337_v9 = vadd.f32 %v6167_v13, %v1250_v25  ;;  %v1594_v54 = vpop.f32.mrf.mxu1 }
 0x187   :  { %v1252_v0 = vpop.f32.mrf.mxu0  ;;  %v5207_v54 = vld [vmem:[%s7702_s1 + $0x244] ss:$16 sps:$4 sm:$0xff]  }
 0x188   :  { %7725 = vst [vmem:[#allocation17_spill] sm:$0xff] %v6337_v9  ;;  %v6348_v13 = vpop.f32.mrf.mxu1  ;;  %3078 = vmatmul.mubr.bf16.gmra.mxu1 %v5193_v58  ;;  %v5161_v58 = vld [vmem:[%s7702_s1 + $0xa8] ss:$16 sps:$4 sm:$0xff]  }
 0x189   :  { %v1255_v49 = vpop.f32.mrf.mxu0  ;;  %3263 = vmatmul.mubr.bf16.gmra.mxu0 %v5149_v26  ;;  %3085 = vmatprep.mubr.bf16.mxu1 %v5201_v2 }
 0x18a   :  { %v6345_v52 = vadd.f32 %v6188_v31, %v1255_v49  ;;  %4679 = vmatprep.mubr.msk.bf16.mxu0 %vm988_vm0, %v5153_v42  ;;  %v1597_v31 = vpop.f32.mrf.mxu1  ;;  %v5199_v49 = vld [vmem:[%s7702_s1 + $0x220] ss:$16 sps:$4 sm:$0xff]  }
 0x18b   :  { %v1257_v38 = vpop.f32.mrf.mxu0 }
 0x18c   :  { %7726 = vst [vmem:[#allocation18_spill] sm:$0xff] %v6345_v52  ;;  %v6365_v25 = vpop.f32.mrf.mxu1 }
 0x18d   :  { %v1258_v8 = vpop.f32.mrf.mxu0 }
 0x18e   :  { %v6360_v5 = vadd.f32 %v6198_v43, %v1258_v8  ;;  %v1602_v3 = vpop.f32.mrf.mxu1  ;;  %v5165_v8 = vld [vmem:[%s7702_s1 + $0xcc] ss:$16 sps:$4 sm:$0xff]  }
 0x18f   :  { %v1260_v11 = vpop.f32.mrf.mxu0 }
 0x190   :  { %7727 = vst [vmem:[#allocation19_spill] sm:$0xff] %v6360_v5  ;;  %v6371_v43 = vpop.f32.mrf.mxu1  ;;  %3086 = vmatmul.mubr.bf16.gmra.mxu1 %v5199_v49  ;;  %v5213_v49 = vld [vmem:[%s7702_s1 + $0x264] ss:$16 sps:$4 sm:$0xff]  }
 0x191   :  { %v1263_v26 = vpop.f32.mrf.mxu0  ;;  %3271 = vmatmul.mubr.bf16.gmra.mxu0 %v5155_v14  ;;  %3093 = vmatprep.mubr.bf16.mxu1 %v5207_v54 }
 0x192   :  { %v6368_v42 = vadd.f32 %v6219_v1, %v1263_v26  ;;  %4680 = vmatprep.mubr.msk.bf16.mxu0 %vm988_vm0, %v5159_v36  ;;  %v1605_v1 = vpop.f32.mrf.mxu1 }
 0x193   :  { %v1265_v0 = vpop.f32.mrf.mxu0  ;;  %v5171_v1 = vld [vmem:[%s7702_s1 + $0xec] ss:$16 sps:$4 sm:$0xff]  }
 0x194   :  { %7728 = vst [vmem:[#allocation20_spill] sm:$0xff] %v6368_v42  ;;  %v6388_v31 = vpop.f32.mrf.mxu1  ;;  %v5205_v0 = vld [vmem:[%s7702_s1 + $0x240] ss:$16 sps:$4 sm:$0xff]  }
 0x195   :  { %v1266_v38 = vpop.f32.mrf.mxu0 }
 0x196   :  { %v6383_v2 = vadd.f32 %v6229_v10, %v1266_v38  ;;  %v1610_v11 = vpop.f32.mrf.mxu1  ;;  %v5167_v38 = vld [vmem:[%s7702_s1 + $0xc8] ss:$16 sps:$4 sm:$0xff]  }
 0x197   :  { %v1268_v14 = vpop.f32.mrf.mxu0 }
 0x198   :  { %7729 = vst [vmem:[#allocation21_spill] sm:$0xff] %v6383_v2  ;;  %v6394_v10 = vpop.f32.mrf.mxu1  ;;  %3094 = vmatmul.mubr.bf16.gmra.mxu1 %v5205_v0  ;;  %v5219_v0 = vld [vmem:[%s7702_s1 + $0x284] ss:$16 sps:$4 sm:$0xff]  }
 0x199   :  { %v1271_v36 = vpop.f32.mrf.mxu0  ;;  %3279 = vmatmul.mubr.bf16.gmra.mxu0 %v5161_v58  ;;  %3101 = vmatprep.mubr.bf16.mxu1 %v5213_v49 }
 0x19a   :  { %v6391_v26 = vadd.f32 %v6250_v34, %v1271_v36  ;;  %4681 = vmatprep.mubr.msk.bf16.mxu0 %vm988_vm0, %v5165_v8  ;;  %v1613_v34 = vpop.f32.mrf.mxu1 }
 0x19b   :  { %v1273_v3 = vpop.f32.mrf.mxu0 }
 0x19c   :  { %7730 = vst [vmem:[#allocation22_spill] sm:$0xff] %v6391_v26  ;;  %v6411_v14 = vpop.f32.mrf.mxu1 }
 0x19d   :  { %v1274_v54 = vpop.f32.mrf.mxu0 }
 0x19e   :  { %v6406_v58 = vadd.f32 %v6256_v47, %v1274_v54  ;;  %v1618_v11 = vpop.f32.mrf.mxu1  ;;  %v5211_v54 = vld [vmem:[%s7702_s1 + $0x260] ss:$16 sps:$4 sm:$0xff]  }
 0x19f   :  { %v1276_v8 = vpop.f32.mrf.mxu0 }
 0x1a0   :  { %7731 = vst [vmem:[#allocation23_spill] sm:$0xff] %v6406_v58  ;;  %v6417_v47 = vpop.f32.mrf.mxu1  ;;  %3102 = vmatmul.mubr.bf16.gmra.mxu1 %v5211_v54  ;;  %v5225_v54 = vld [vmem:[%s7702_s1 + $0x2a4] ss:$16 sps:$4 sm:$0xff]  }
 0x1a1   :  { %v1279_v36 = vpop.f32.mrf.mxu0  ;;  %3287 = vmatmul.mubr.bf16.gmra.mxu0 %v5167_v38  ;;  %v5173_v38 = vld [vmem:[%s7702_s1 + $0xe8] ss:$16 sps:$4 sm:$0xff]   ;;  %3109 = vmatprep.mubr.bf16.mxu1 %v5219_v0 }
 0x1a2   :  { %v6414_v3 = vadd.f32 %v6273_v62, %v1279_v36  ;;  %4682 = vmatprep.mubr.msk.bf16.mxu0 %vm988_vm0, %v5171_v1  ;;  %v1621_v62 = vpop.f32.mrf.mxu1  ;;  %v5177_v1 = vld [vmem:[%s7702_s1 + $0x10c] ss:$16 sps:$4 sm:$0xff]  }
 0x1a3   :  { %v1281_v34 = vpop.f32.mrf.mxu0 }
 0x1a4   :  { %7732 = vst [vmem:[#allocation24_spill] sm:$0xff] %v6414_v3  ;;  %v6434_v11 = vpop.f32.mrf.mxu1 }
 0x1a5   :  { %v1282_v49 = vpop.f32.mrf.mxu0 }
 0x1a6   :  { %v6429_v8 = vadd.f32 %v6279_v24, %v1282_v49  ;;  %v1626_v3 = vpop.f32.mrf.mxu1  ;;  %v5217_v49 = vld [vmem:[%s7702_s1 + $0x280] ss:$16 sps:$4 sm:$0xff]  }
 0x1a7   :  { %v1284_v36 = vpop.f32.mrf.mxu0  ;;  %v5179_v3 = vld [vmem:[%s7702_s1 + $0x108] ss:$16 sps:$4 sm:$0xff]  }
 0x1a8   :  { %7733 = vst [vmem:[#allocation25_spill] sm:$0xff] %v6429_v8  ;;  %v6440_v24 = vpop.f32.mrf.mxu1  ;;  %3110 = vmatmul.mubr.bf16.gmra.mxu1 %v5217_v49  ;;  %v5231_v49 = vld [vmem:[%s7702_s1 + $0x2c4] ss:$16 sps:$4 sm:$0xff]  }
 0x1a9   :  { %v1287_v34 = vpop.f32.mrf.mxu0  ;;  %3295 = vmatmul.mubr.bf16.gmra.mxu0 %v5173_v38  ;;  %3117 = vmatprep.mubr.bf16.mxu1 %v5225_v54 }
 0x1aa   :  { %v6437_v58 = vadd.f32 %v6296_v29, %v1287_v34  ;;  %4683 = vmatprep.mubr.msk.bf16.mxu0 %vm988_vm0, %v5177_v1  ;;  %v1629_v29 = vpop.f32.mrf.mxu1  ;;  %v5183_v1 = vld [vmem:[%s7702_s1 + $0x12c] ss:$16 sps:$4 sm:$0xff]  }
 0x1ab   :  { %v1289_v62 = vpop.f32.mrf.mxu0 }
 0x1ac   :  { %7734 = vst [vmem:[#allocation26_spill] sm:$0xff] %v6437_v58  ;;  %v6457_v34 = vpop.f32.mrf.mxu1 }
 0x1ad   :  { %v1290_v0 = vpop.f32.mrf.mxu0 }
 0x1ae   :  { %v6452_v38 = vadd.f32 %v6302_v19, %v1290_v0  ;;  %v1634_v58 = vpop.f32.mrf.mxu1  ;;  %v5223_v0 = vld [vmem:[%s7702_s1 + $0x2a0] ss:$16 sps:$4 sm:$0xff]  }
 0x1af   :  { %v1292_v36 = vpop.f32.mrf.mxu0  ;;  %v5185_v58 = vld [vmem:[%s7702_s1 + $0x128] ss:$16 sps:$4 sm:$0xff]  }
 0x1b0   :  { %7735 = vst [vmem:[#allocation27_spill] sm:$0xff] %v6452_v38  ;;  %v6463_v19 = vpop.f32.mrf.mxu1  ;;  %3118 = vmatmul.mubr.bf16.gmra.mxu1 %v5223_v0  ;;  %v5237_v0 = vld [vmem:[%s7702_s1 + $0x2e4] ss:$16 sps:$4 sm:$0xff]  }
 0x1b1   :  { %v1295_v62 = vpop.f32.mrf.mxu0  ;;  %3303 = vmatmul.mubr.bf16.gmra.mxu0 %v5179_v3  ;;  %3125 = vmatprep.mubr.bf16.mxu1 %v5231_v49 }
 0x1b2   :  { %v6460_v8 = vadd.f32 %v6319_v23, %v1295_v62  ;;  %4684 = vmatprep.mubr.msk.bf16.mxu0 %vm988_vm0, %v5183_v1  ;;  %v1637_v23 = vpop.f32.mrf.mxu1  ;;  %v5189_v1 = vld [vmem:[%s7702_s1 + $0x14c] ss:$16 sps:$4 sm:$0xff]  }
 0x1b3   :  { %v1297_v29 = vpop.f32.mrf.mxu0 }
 0x1b4   :  { %7736 = vst [vmem:[#allocation28_spill] sm:$0xff] %v6460_v8  ;;  %v6480_v62 = vpop.f32.mrf.mxu1 }
 0x1b5   :  { %v1298_v54 = vpop.f32.mrf.mxu0 }
 0x1b6   :  { %v6475_v3 = vadd.f32 %v6325_v50, %v1298_v54  ;;  %v1642_v8 = vpop.f32.mrf.mxu1  ;;  %v5229_v54 = vld [vmem:[%s7702_s1 + $0x2c0] ss:$16 sps:$4 sm:$0xff]  }
 0x1b7   :  { %v1300_v36 = vpop.f32.mrf.mxu0  ;;  %v5191_v8 = vld [vmem:[%s7702_s1 + $0x148] ss:$16 sps:$4 sm:$0xff]  }
 0x1b8   :  { %7737 = vst [vmem:[#allocation29_spill] sm:$0xff] %v6475_v3  ;;  %v6486_v50 = vpop.f32.mrf.mxu1  ;;  %3126 = vmatmul.mubr.bf16.gmra.mxu1 %v5229_v54  ;;  %v5243_v54 = vld [vmem:[%s7702_s1 + $0x304] ss:$16 sps:$4 sm:$0xff]  }
 0x1b9   :  { %v1303_v29 = vpop.f32.mrf.mxu0  ;;  %3311 = vmatmul.mubr.bf16.gmra.mxu0 %v5185_v58  ;;  %3133 = vmatprep.mubr.bf16.mxu1 %v5237_v0 }
 0x1ba   :  { %v6483_v38 = vadd.f32 %v6342_v17, %v1303_v29  ;;  %4685 = vmatprep.mubr.msk.bf16.mxu0 %vm988_vm0, %v5189_v1  ;;  %v1645_v17 = vpop.f32.mrf.mxu1  ;;  %v5196_v1 = vld [vmem:[%s7702_s1 + $0x16c] ss:$16 sps:$4 sm:$0xff]  }
 0x1bb   :  { %v1305_v23 = vpop.f32.mrf.mxu0 }
 0x1bc   :  { %7738 = vst [vmem:[#allocation30_spill] sm:$0xff] %v6483_v38  ;;  %v6503_v29 = vpop.f32.mrf.mxu1 }
 0x1bd   :  { %v1306_v49 = vpop.f32.mrf.mxu0 }
 0x1be   :  { %v6498_v58 = vadd.f32 %v6348_v13, %v1306_v49  ;;  %v1650_v38 = vpop.f32.mrf.mxu1  ;;  %v5235_v49 = vld [vmem:[%s7702_s1 + $0x2e0] ss:$16 sps:$4 sm:$0xff]  }
 0x1bf   :  { %v1308_v36 = vpop.f32.mrf.mxu0  ;;  %v5198_v38 = vld [vmem:[%s7702_s1 + $0x168] ss:$16 sps:$4 sm:$0xff]  }
 0x1c0   :  { %7739 = vst [vmem:[#allocation31_spill] sm:$0xff] %v6498_v58  ;;  %v6509_v13 = vpop.f32.mrf.mxu1  ;;  %3134 = vmatmul.mubr.bf16.gmra.mxu1 %v5235_v49  ;;  %v5249_v49 = vld [vmem:[%s7702_s1 + $0x324] ss:$16 sps:$4 sm:$0xff]  }
 0x1c1   :  { %v1311_v23 = vpop.f32.mrf.mxu0  ;;  %3319 = vmatmul.mubr.bf16.gmra.mxu0 %v5191_v8  ;;  %3141 = vmatprep.mubr.bf16.mxu1 %v5243_v54 }
 0x1c2   :  { %v6506_v3 = vadd.f32 %v6365_v25, %v1311_v23  ;;  %4686 = vmatprep.mubr.msk.bf16.mxu0 %vm988_vm0, %v5196_v1  ;;  %v1653_v25 = vpop.f32.mrf.mxu1  ;;  %v5202_v1 = vld [vmem:[%s7702_s1 + $0x18c] ss:$16 sps:$4 sm:$0xff]  }
 0x1c3   :  { %v1313_v17 = vpop.f32.mrf.mxu0 }
 0x1c4   :  { %7740 = vst [vmem:[#allocation32_spill] sm:$0xff] %v6506_v3  ;;  %v6526_v23 = vpop.f32.mrf.mxu1 }
 0x1c5   :  { %v1314_v0 = vpop.f32.mrf.mxu0 }
 0x1c6   :  { %v6521_v8 = vadd.f32 %v6371_v43, %v1314_v0  ;;  %v1658_v3 = vpop.f32.mrf.mxu1  ;;  %v5241_v0 = vld [vmem:[%s7702_s1 + $0x300] ss:$16 sps:$4 sm:$0xff]  }
 0x1c7   :  { %v1316_v36 = vpop.f32.mrf.mxu0  ;;  %v5204_v3 = vld [vmem:[%s7702_s1 + $0x188] ss:$16 sps:$4 sm:$0xff]  }
 0x1c8   :  { %7741 = vst [vmem:[#allocation33_spill] sm:$0xff] %v6521_v8  ;;  %v6532_v43 = vpop.f32.mrf.mxu1  ;;  %3142 = vmatmul.mubr.bf16.gmra.mxu1 %v5241_v0  ;;  %v5255_v0 = vld [vmem:[%s7702_s1 + $0x344] ss:$16 sps:$4 sm:$0xff]  }
 0x1c9   :  { %v1319_v17 = vpop.f32.mrf.mxu0  ;;  %3327 = vmatmul.mubr.bf16.gmra.mxu0 %v5198_v38  ;;  %3149 = vmatprep.mubr.bf16.mxu1 %v5249_v49 }
 0x1ca   :  { %v6529_v58 = vadd.f32 %v6388_v31, %v1319_v17  ;;  %4687 = vmatprep.mubr.msk.bf16.mxu0 %vm988_vm0, %v5202_v1  ;;  %v1661_v31 = vpop.f32.mrf.mxu1  ;;  %v5208_v1 = vld [vmem:[%s7702_s1 + $0x1ac] ss:$16 sps:$4 sm:$0xff]  }
 0x1cb   :  { %v1321_v25 = vpop.f32.mrf.mxu0 }
 0x1cc   :  { %7742 = vst [vmem:[#allocation34_spill] sm:$0xff] %v6529_v58  ;;  %v6549_v17 = vpop.f32.mrf.mxu1 }
 0x1cd   :  { %v1322_v54 = vpop.f32.mrf.mxu0 }
 0x1ce   :  { %v6544_v38 = vadd.f32 %v6394_v10, %v1322_v54  ;;  %v2953_v58 = vpop.f32.mrf.mxu1  ;;  %v5247_v54 = vld [vmem:[%s7702_s1 + $0x320] ss:$16 sps:$4 sm:$0xff]  }
 0x1cf   :  { %v1324_v36 = vpop.f32.mrf.mxu0  ;;  %v5210_v58 = vld [vmem:[%s7702_s1 + $0x1a8] ss:$16 sps:$4 sm:$0xff]  }
 0x1d0   :  { %7743 = vst [vmem:[#allocation35_spill] sm:$0xff] %v6544_v38  ;;  %v6555_v10 = vpop.f32.mrf.mxu1  ;;  %3150 = vmatmul.mubr.bf16.gmra.mxu1 %v5247_v54  ;;  %v5261_v54 = vld [vmem:[%s7702_s1 + $0x364] ss:$16 sps:$4 sm:$0xff]  }
 0x1d1   :  { %v1327_v25 = vpop.f32.mrf.mxu0  ;;  %3335 = vmatmul.mubr.bf16.gmra.mxu0 %v5204_v3  ;;  %3157 = vmatprep.mubr.bf16.mxu1 %v5255_v0 }
 0x1d2   :  { %v6552_v8 = vadd.f32 %v6411_v14, %v1327_v25  ;;  %4688 = vmatprep.mubr.msk.bf16.mxu0 %vm988_vm0, %v5208_v1  ;;  %v2956_v14 = vpop.f32.mrf.mxu1  ;;  %v5214_v1 = vld [vmem:[%s7702_s1 + $0x1cc] ss:$16 sps:$4 sm:$0xff]  }
 0x1d3   :  { %v1329_v31 = vpop.f32.mrf.mxu0 }
 0x1d4   :  { %7744 = vst [vmem:[#allocation36_spill] sm:$0xff] %v6552_v8  ;;  %v6572_v25 = vpop.f32.mrf.mxu1 }
 0x1d5   :  { %v1330_v49 = vpop.f32.mrf.mxu0 }
 0x1d6   :  { %v6567_v3 = vadd.f32 %v6417_v47, %v1330_v49  ;;  %v2961_v8 = vpop.f32.mrf.mxu1  ;;  %v5253_v49 = vld [vmem:[%s7702_s1 + $0x340] ss:$16 sps:$4 sm:$0xff]  }
 0x1d7   :  { %v1332_v36 = vpop.f32.mrf.mxu0  ;;  %v5216_v8 = vld [vmem:[%s7702_s1 + $0x1c8] ss:$16 sps:$4 sm:$0xff]  }
 0x1d8   :  { %7745 = vst [vmem:[#allocation37_spill] sm:$0xff] %v6567_v3  ;;  %v6578_v47 = vpop.f32.mrf.mxu1  ;;  %3158 = vmatmul.mubr.bf16.gmra.mxu1 %v5253_v49  ;;  %v5267_v49 = vld [vmem:[%s7702_s1 + $0x384] ss:$16 sps:$4 sm:$0xff]  }
 0x1d9   :  { %v1335_v31 = vpop.f32.mrf.mxu0  ;;  %3343 = vmatmul.mubr.bf16.gmra.mxu0 %v5210_v58  ;;  %3165 = vmatprep.mubr.bf16.mxu1 %v5261_v54 }
 0x1da   :  { %v6575_v38 = vadd.f32 %v6434_v11, %v1335_v31  ;;  %4689 = vmatprep.mubr.msk.bf16.mxu0 %vm988_vm0, %v5214_v1  ;;  %v2964_v11 = vpop.f32.mrf.mxu1  ;;  %v5220_v1 = vld [vmem:[%s7702_s1 + $0x1ec] ss:$16 sps:$4 sm:$0xff]  }
 0x1db   :  { %v1337_v14 = vpop.f32.mrf.mxu0 }
 0x1dc   :  { %7746 = vst [vmem:[#allocation38_spill] sm:$0xff] %v6575_v38  ;;  %v6595_v31 = vpop.f32.mrf.mxu1 }
 0x1dd   :  { %v1338_v0 = vpop.f32.mrf.mxu0 }
 0x1de   :  { %v6590_v58 = vadd.f32 %v6440_v24, %v1338_v0  ;;  %v2969_v38 = vpop.f32.mrf.mxu1  ;;  %v5259_v0 = vld [vmem:[%s7702_s1 + $0x360] ss:$16 sps:$4 sm:$0xff]  }
 0x1df   :  { %v1340_v36 = vpop.f32.mrf.mxu0  ;;  %v5222_v38 = vld [vmem:[%s7702_s1 + $0x1e8] ss:$16 sps:$4 sm:$0xff]  }
 0x1e0   :  { %7747 = vst [vmem:[#allocation39_spill] sm:$0xff] %v6590_v58  ;;  %v6601_v24 = vpop.f32.mrf.mxu1  ;;  %3166 = vmatmul.mubr.bf16.gmra.mxu1 %v5259_v0  ;;  %v5273_v0 = vld [vmem:[%s7702_s1 + $0x3a4] ss:$16 sps:$4 sm:$0xff]  }
 0x1e1   :  { %v1343_v14 = vpop.f32.mrf.mxu0  ;;  %3351 = vmatmul.mubr.bf16.gmra.mxu0 %v5216_v8  ;;  %3173 = vmatprep.mubr.bf16.mxu1 %v5267_v49 }
 0x1e2   :  { %v6598_v3 = vadd.f32 %v6457_v34, %v1343_v14  ;;  %4690 = vmatprep.mubr.msk.bf16.mxu0 %vm988_vm0, %v5220_v1  ;;  %v2972_v34 = vpop.f32.mrf.mxu1  ;;  %v5226_v1 = vld [vmem:[%s7702_s1 + $0x20c] ss:$16 sps:$4 sm:$0xff]  }
 0x1e3   :  { %v1345_v11 = vpop.f32.mrf.mxu0 }
 0x1e4   :  { %7748 = vst [vmem:[#allocation40_spill] sm:$0xff] %v6598_v3  ;;  %v6618_v14 = vpop.f32.mrf.mxu1 }
 0x1e5   :  { %v1346_v54 = vpop.f32.mrf.mxu0 }
 0x1e6   :  { %v6613_v8 = vadd.f32 %v6463_v19, %v1346_v54  ;;  %v2977_v3 = vpop.f32.mrf.mxu1  ;;  %v5265_v54 = vld [vmem:[%s7702_s1 + $0x380] ss:$16 sps:$4 sm:$0xff]  }
 0x1e7   :  { %v1348_v36 = vpop.f32.mrf.mxu0  ;;  %v5228_v3 = vld [vmem:[%s7702_s1 + $0x208] ss:$16 sps:$4 sm:$0xff]  }
 0x1e8   :  { %7749 = vst [vmem:[#allocation41_spill] sm:$0xff] %v6613_v8  ;;  %v6624_v19 = vpop.f32.mrf.mxu1  ;;  %3174 = vmatmul.mubr.bf16.gmra.mxu1 %v5265_v54  ;;  %v5279_v54 = vld [vmem:[%s7702_s1 + $0x3c4] ss:$16 sps:$4 sm:$0xff]  }
 0x1e9   :  { %v1351_v11 = vpop.f32.mrf.mxu0  ;;  %3359 = vmatmul.mubr.bf16.gmra.mxu0 %v5222_v38  ;;  %3181 = vmatprep.mubr.bf16.mxu1 %v5273_v0 }
 0x1ea   :  { %v6621_v58 = vadd.f32 %v6480_v62, %v1351_v11  ;;  %4691 = vmatprep.mubr.msk.bf16.mxu0 %vm988_vm0, %v5226_v1  ;;  %v2980_v62 = vpop.f32.mrf.mxu1  ;;  %v5232_v1 = vld [vmem:[%s7702_s1 + $0x22c] ss:$16 sps:$4 sm:$0xff]  }
 0x1eb   :  { %v1353_v34 = vpop.f32.mrf.mxu0 }
 0x1ec   :  { %7750 = vst [vmem:[#allocation42_spill] sm:$0xff] %v6621_v58  ;;  %v6641_v11 = vpop.f32.mrf.mxu1 }
 0x1ed   :  { %v1354_v49 = vpop.f32.mrf.mxu0 }
 0x1ee   :  { %v6636_v38 = vadd.f32 %v6486_v50, %v1354_v49  ;;  %v2985_v58 = vpop.f32.mrf.mxu1  ;;  %v5271_v49 = vld [vmem:[%s7702_s1 + $0x3a0] ss:$16 sps:$4 sm:$0xff]  }
 0x1ef   :  { %v1356_v36 = vpop.f32.mrf.mxu0  ;;  %v5234_v58 = vld [vmem:[%s7702_s1 + $0x228] ss:$16 sps:$4 sm:$0xff]  }
 0x1f0   :  { %7751 = vst [vmem:[#allocation43_spill] sm:$0xff] %v6636_v38  ;;  %v6647_v50 = vpop.f32.mrf.mxu1  ;;  %3182 = vmatmul.mubr.bf16.gmra.mxu1 %v5271_v49  ;;  %v5285_v49 = vld [vmem:[%s7702_s1 + $0x3e4] ss:$16 sps:$4 sm:$0xff]  }
 0x1f1   :  { %v1359_v34 = vpop.f32.mrf.mxu0  ;;  %3367 = vmatmul.mubr.bf16.gmra.mxu0 %v5228_v3  ;;  %3189 = vmatprep.mubr.bf16.mxu1 %v5279_v54 }
 0x1f2   :  { %v6644_v8 = vadd.f32 %v6503_v29, %v1359_v34  ;;  %4692 = vmatprep.mubr.msk.bf16.mxu0 %vm988_vm0, %v5232_v1  ;;  %v2988_v29 = vpop.f32.mrf.mxu1  ;;  %v5238_v1 = vld [vmem:[%s7702_s1 + $0x24c] ss:$16 sps:$4 sm:$0xff]  }
 0x1f3   :  { %v1361_v62 = vpop.f32.mrf.mxu0 }
 0x1f4   :  { %7752 = vst [vmem:[#allocation44_spill] sm:$0xff] %v6644_v8  ;;  %v6664_v34 = vpop.f32.mrf.mxu1 }
 0x1f5   :  { %v1362_v0 = vpop.f32.mrf.mxu0 }
 0x1f6   :  { %v6659_v3 = vadd.f32 %v6509_v13, %v1362_v0  ;;  %v2993_v8 = vpop.f32.mrf.mxu1  ;;  %v5277_v0 = vld [vmem:[%s7702_s1 + $0x3c0] ss:$16 sps:$4 sm:$0xff]  }
 0x1f7   :  { %v1364_v36 = vpop.f32.mrf.mxu0  ;;  %v5240_v8 = vld [vmem:[%s7702_s1 + $0x248] ss:$16 sps:$4 sm:$0xff]  }
 0x1f8   :  { %7753 = vst [vmem:[#allocation45_spill] sm:$0xff] %v6659_v3  ;;  %v6670_v13 = vpop.f32.mrf.mxu1  ;;  %3190 = vmatmul.mubr.bf16.gmra.mxu1 %v5277_v0  ;;  %v5246_v0 = vld [vmem:[%s7702_s1 + $0x268] ss:$16 sps:$4 sm:$0xff]  }
 0x1f9   :  { %v1367_v62 = vpop.f32.mrf.mxu0  ;;  %3375 = vmatmul.mubr.bf16.gmra.mxu0 %v5234_v58  ;;  %3197 = vmatprep.mubr.bf16.mxu1 %v5285_v49 }
 0x1fa   :  { %v6667_v38 = vadd.f32 %v6526_v23, %v1367_v62  ;;  %4693 = vmatprep.mubr.msk.bf16.mxu0 %vm988_vm0, %v5238_v1  ;;  %v2996_v23 = vpop.f32.mrf.mxu1  ;;  %v5244_v1 = vld [vmem:[%s7702_s1 + $0x26c] ss:$16 sps:$4 sm:$0xff]  }
 0x1fb   :  { %v1369_v29 = vpop.f32.mrf.mxu0 }
 0x1fc   :  { %7754 = vst [vmem:[#allocation46_spill] sm:$0xff] %v6667_v38  ;;  %v6687_v62 = vpop.f32.mrf.mxu1 }
 0x1fd   :  { %v1370_v54 = vpop.f32.mrf.mxu0 }
 0x1fe   :  { %v6682_v58 = vadd.f32 %v6532_v43, %v1370_v54  ;;  %v3001_v38 = vpop.f32.mrf.mxu1  ;;  %v5283_v43 = vld [vmem:[%s7702_s1 + $0x3e0] ss:$16 sps:$4 sm:$0xff]  }
 0x1ff   :  { %v1372_v36 = vpop.f32.mrf.mxu0  ;;  %v5250_v38 = vld [vmem:[%s7702_s1 + $0x28c] ss:$16 sps:$4 sm:$0xff]  }
 0x200   :  { %7755 = vst [vmem:[#allocation47_spill] sm:$0xff] %v6682_v58  ;;  %v6692_v23 = vpop.f32.mrf.mxu1  ;;  %3198 = vmatmul.mubr.bf16.gmra.mxu1 %v5283_v43  ;;  %v5256_v43 = vld [vmem:[%s7702_s1 + $0x2ac] ss:$16 sps:$4 sm:$0xff]  }
 0x201   :  { %v6689_v29 = vpop.f32.mrf.mxu0  ;;  %3383 = vmatmul.mubr.bf16.gmra.mxu0 %v5240_v8 }
 0x202   :  { %4694 = vmatprep.mubr.msk.bf16.mxu0 %vm988_vm0, %v5244_v1  ;;  %v3004_v49 = vpop.f32.mrf.mxu1 }
 0x203   :  { %v1410_v3 = vpop.f32.mrf.mxu0  ;;  %v5252_v49 = vld [vmem:[%s7702_s1 + $0x288] ss:$16 sps:$4 sm:$0xff]  }
 0x204   :  { %v6705_v3 = vpop.f32.mrf.mxu1 }
 0x205   :  { %v6697_v54 = vpop.f32.mrf.mxu0 }
 0x206   :  { %v3009_v36 = vpop.f32.mrf.mxu1 }
 0x207   :  { %v1413_v8 = vpop.f32.mrf.mxu0 }
 0x208   :  { %v6710_v26 = vpop.f32.mrf.mxu1 }
 0x209   :  { %v6707_v1 = vpop.f32.mrf.mxu0  ;;  %3391 = vmatmul.mubr.bf16.gmra.mxu0 %v5246_v0 }
 0x20a   :  { %4695 = vmatprep.mubr.msk.bf16.mxu0 %vm988_vm0, %v5250_v38  ;;  %v3012_v42 = vpop.f32.mrf.mxu1 }
 0x20b   :  { %v1418_v58 = vpop.f32.mrf.mxu0  ;;  %v5258_v42 = vld [vmem:[%s7702_s1 + $0x2a8] ss:$16 sps:$4 sm:$0xff]  }
 0x20c   :  { %v6720_v5 = vpop.f32.mrf.mxu1 }
 0x20d   :  { %v6712_v2 = vpop.f32.mrf.mxu0 }
 0x20e   :  { %v3017_v58 = vpop.f32.mrf.mxu1 }
 0x20f   :  { %v1421_v8 = vpop.f32.mrf.mxu0 }
 0x210   :  { %v6725_v36 = vpop.f32.mrf.mxu1  ;;  %v5262_v8 = vld [vmem:[%s7702_s1 + $0x2cc] ss:$16 sps:$4 sm:$0xff]  }
 0x211   :  { %v6722_v0 = vpop.f32.mrf.mxu0  ;;  %3399 = vmatmul.mubr.bf16.gmra.mxu0 %v5252_v49 }
 0x212   :  { %4696 = vmatprep.mubr.msk.bf16.mxu0 %vm988_vm0, %v5256_v43  ;;  %v3020_v9 = vpop.f32.mrf.mxu1 }
 0x213   :  { %v1426_v38 = vpop.f32.mrf.mxu0  ;;  %v5264_v9 = vld [vmem:[%s7702_s1 + $0x2c8] ss:$16 sps:$4 sm:$0xff]  }
 0x214   :  { %v6735_v55 = vpop.f32.mrf.mxu1 }
 0x215   :  { %v6727_v52 = vpop.f32.mrf.mxu0  ;;  %7756 = vst [vmem:[#allocation48_spill] sm:$0xff] %v6735_v55 }
 0x216   :  { %v3025_v43 = vpop.f32.mrf.mxu1 }
 0x217   :  { %v1429_v35 = vpop.f32.mrf.mxu0 }
 0x218   :  { %v6740_v38 = vpop.f32.mrf.mxu1  ;;  %v5268_v35 = vld [vmem:[%s7702_s1 + $0x2ec] ss:$16 sps:$4 sm:$0xff]  }
 0x219   :  { %v6737_v49 = vpop.f32.mrf.mxu0  ;;  %3407 = vmatmul.mubr.bf16.gmra.mxu0 %v5258_v42  ;;  %7757 = vst [vmem:[#allocation49_spill] sm:$0xff] %v6740_v38  ;;  %v1420_v38 = vadd.f32 %v6712_v2, %v5956_v39 }
 0x21a   :  { %4697 = vmatprep.mubr.msk.bf16.mxu0 %vm988_vm0, %v5262_v8  ;;  %v3028_v16 = vpop.f32.mrf.mxu1 }
 0x21b   :  { %v1434_v58 = vpop.f32.mrf.mxu0  ;;  %v5270_v16 = vld [vmem:[%s7702_s1 + $0x2e8] ss:$16 sps:$4 sm:$0xff]   ;;  %v1674_v39 = vmul.f32 %v6794_v44, %v1420_v38  ;;  %v1428_v38 = vadd.f32 %v6727_v52, %v5976_v51 }
 0x21c   :  { %v6750_v56 = vpop.f32.mrf.mxu1 }
 0x21d   :  { %v6742_v48 = vpop.f32.mrf.mxu0  ;;  %7758 = vst [vmem:[#allocation50_spill] sm:$0xff] %v6750_v56  ;;  %v1676_v52 = vmul.f32 %v6794_v44, %v1428_v38 }
 0x21e   :  { %v3033_v8 = vpop.f32.mrf.mxu1 }
 0x21f   :  { %v1437_v60 = vpop.f32.mrf.mxu0 }
 0x220   :  { %v6755_v58 = vpop.f32.mrf.mxu1  ;;  %v5274_v60 = vld [vmem:[%s7702_s1 + $0x30c] ss:$16 sps:$4 sm:$0xff]  }
 0x221   :  { %v6752_v42 = vpop.f32.mrf.mxu0  ;;  %3415 = vmatmul.mubr.bf16.gmra.mxu0 %v5264_v9  ;;  %7759 = vst [vmem:[#allocation51_spill] sm:$0xff] %v6755_v58 }
 0x222   :  { %4698 = vmatprep.mubr.msk.bf16.mxu0 %vm988_vm0, %v5268_v35  ;;  %v3036_v22 = vpop.f32.mrf.mxu1 }
 0x223   :  { %v1442_v43 = vpop.f32.mrf.mxu0  ;;  %v5276_v22 = vld [vmem:[%s7702_s1 + $0x308] ss:$16 sps:$4 sm:$0xff]  }
 0x224   :  { %v6765_v53 = vpop.f32.mrf.mxu1 }
 0x225   :  { %v6757_v41 = vpop.f32.mrf.mxu0  ;;  %7760 = vst [vmem:[#allocation52_spill] sm:$0xff] %v6765_v53  ;;  %v6789_v53 = vld [vmem:[%s7704_s6] ss:$0 sm:$0xff] }
 0x226   :  { %v3041_v35 = vpop.f32.mrf.mxu1 }
 0x227   :  { %v1445_v32 = vpop.f32.mrf.mxu0 }
 0x228   :  { %v6770_v43 = vpop.f32.mrf.mxu1  ;;  %v5280_v32 = vld [vmem:[%s7702_s1 + $0x32c] ss:$16 sps:$4 sm:$0xff]  }
 0x229   :  { %v6767_v9 = vpop.f32.mrf.mxu0  ;;  %3423 = vmatmul.mubr.bf16.gmra.mxu0 %v5270_v16  ;;  %7761 = vst [vmem:[#allocation53_spill] sm:$0xff] %v6770_v43  ;;  %v1409_v16 = vadd.f32 %v6689_v29, %v5926_v21 }
 0x22a   :  { %4699 = vmatprep.mubr.msk.bf16.mxu0 %vm988_vm0, %v5274_v60  ;;  %v3044_v58 = vpop.f32.mrf.mxu1  ;;  %v1412_v60 = vadd.f32 %v6697_v54, %v5936_v27  ;;  %v6803_v54 = vld [vmem:[%s7706_s7] ss:$0 sm:$0xff] }
 0x22b   :  { %v1450_v8 = vpop.f32.mrf.mxu0  ;;  %v1671_v27 = vmul.f32 %v6794_v44, %v1409_v16 }
 0x22c   :  { %v6784_v8 = vpop.f32.mrf.mxu1  ;;  %v1672_v29 = vmul.f32 %v6794_v44, %v1412_v60 }
 0x22d   :  { %v6772_v37 = vpop.f32.mrf.mxu0  ;;  %7762 = vst [vmem:[#allocation54_spill] sm:$0xff] %v6784_v8 }
 0x22e   :  { %v3049_v58 = vpop.f32.mrf.mxu1 }
 0x22f   :  { %v1453_v35 = vpop.f32.mrf.mxu0 }
 0x230   :  { %v6805_v35 = vpop.f32.mrf.mxu1 }
 0x231   :  { %v3240_v43 = vpop.f32.mrf.mxu0  ;;  %3431 = vmatmul.mubr.bf16.gmra.mxu0 %v5276_v22  ;;  %7763 = vst [vmem:[#allocation55_spill] sm:$0xff] %v6805_v35 }
 0x232   :  { %v3241_v21 = vadd.f32 %v3240_v43, %v6549_v17  ;;  %4700 = vmatprep.mubr.msk.bf16.mxu0 %vm988_vm0, %v5280_v32  ;;  %v5282_v17 = vld [vmem:[%s7702_s1 + $0x328] ss:$16 sps:$4 sm:$0xff]   ;;  %v3052_v43 = vpop.f32.mrf.mxu1  ;;  %v6814_v32 = vld [vmem:[%s7707_s4] ss:$0 sm:$0xff] }
 0x233   :  { %v3242_v22 = vpop.f32.mrf.mxu0  ;;  %v1742_v35 = vadd.f32 %v6814_v32, %v1672_v29  ;;  %v1417_v43 = vadd.f32 %v6707_v1, %v5946_v33 }
 0x234   :  { %v3503_v58 = vmul.f32 %v6789_v53, %v3241_v21  ;;  %v5286_v22 = vld [vmem:[%s7702_s1 + $0x34c] ss:$16 sps:$4 sm:$0xff]   ;;  %v1741_v21 = vadd.f32 %v6814_v32, %v1671_v27  ;;  %v6823_v56 = vpop.f32.mrf.mxu1 }
 0x235   :  { %v3243_v8 = vpop.f32.mrf.mxu0  ;;  %7764 = vst [vmem:[#allocation56_spill] sm:$0xff] %v6823_v56  ;;  %v1806_v29 = vmax.f32 %v1742_v35, 0.0  ;;  %v1673_v33 = vmul.f32 %v6794_v44, %v1417_v43 }
 0x236   :  { %v3573_v16 = vadd.f32 %v6803_v54, %v3503_v58  ;;  %v3244_v60 = vadd.f32 %v3243_v8, %v6555_v10  ;;  %v3057_v8 = vpop.f32.mrf.mxu1 }
 0x237   :  { %v3245_v7 = vpop.f32.mrf.mxu0 }
 0x238   :  { %v3504_v58 = vmul.f32 %v6789_v53, %v3244_v60  ;;  %v3637_v61 = vmax.f32 %v3573_v16, 0.0  ;;  %v1805_v7 = vmax.f32 %v1741_v21, 0.0  ;;  %v6833_v55 = vpop.f32.mrf.mxu1  ;;  %v5288_v16 = vld [vmem:[%s7702_s1 + $0x348] ss:$16 sps:$4 sm:$0xff]   ;;  %v5289_v21 = vld [vmem:[%s7702_s1 + $0x36c] ss:$16 sps:$4 sm:$0xff]  }
 0x239   :  { %v3248_v10 = vpop.f32.mrf.mxu0  ;;  %3439 = vmatmul.mubr.bf16.gmra.mxu0 %v5282_v17 }
 0x23a   :  { %v3574_v46 = vadd.f32 %v6803_v54, %v3504_v58  ;;  %v3249_v27 = vadd.f32 %v3248_v10, %v6572_v25  ;;  %4701 = vmatprep.mubr.msk.bf16.mxu0 %vm988_vm0, %v5286_v22  ;;  %v3060_v25 = vpop.f32.mrf.mxu1  ;;  %v3701_v60 = vadd.f32 %v3637_v61, %v1805_v7  ;;  %v1743_v61 = vadd.f32 %v6814_v32, %v1673_v33 }
 0x23b   :  { %v3250_v56 = vpop.f32.mrf.mxu0  ;;  %v1744_v10 = vadd.f32 %v6814_v32, %v1674_v39 }
 0x23c   :  { %v3638_v2 = vmax.f32 %v3574_v46, 0.0  ;;  %v3505_v1 = vmul.f32 %v6789_v53, %v3249_v27  ;;  %v1425_v46 = vadd.f32 %v6722_v0, %v5966_v45  ;;  %v6850_v58 = vpop.f32.mrf.mxu1 }
 0x23d   :  { %v3251_v17 = vpop.f32.mrf.mxu0 }
 0x23e   :  { %v3702_v22 = vadd.f32 %v3638_v2, %v1806_v29  ;;  %v3575_v35 = vadd.f32 %v6803_v54, %v3505_v1  ;;  %v3252_v56 = vadd.f32 %v3251_v17, %v6578_v47  ;;  %v3065_v7 = vpop.f32.mrf.mxu1  ;;  %v1675_v51 = vmul.f32 %v6794_v44, %v1425_v46  ;;  %v5292_v46 = vld [vmem:[%s7702_s1 + $0x38c] ss:$16 sps:$4 sm:$0xff]  }
 0x23f   :  { %v3253_v43 = vpop.f32.mrf.mxu0  ;;  %v1807_v2 = vmax.f32 %v1743_v61, 0.0  ;;  %v1808_v1 = vmax.f32 %v1744_v10, 0.0 }
 0x240   :  { %v3506_v47 = vmul.f32 %v6789_v53, %v3252_v56  ;;  %v3765_v8 = vpack.c.bf16 %v3702_v22, %v3701_v60  ;;  %v3639_v29 = vmax.f32 %v3575_v35, 0.0  ;;  %v6861_v39 = vpop.f32.mrf.mxu1  ;;  %v1745_v38 = vadd.f32 %v6814_v32, %v1675_v51 }
 0x241   :  { %v3256_v27 = vpop.f32.mrf.mxu0  ;;  %3447 = vmatmul.mubr.bf16.gmra.mxu0 %v5288_v16  ;;  %v1746_v43 = vadd.f32 %v6814_v32, %v1676_v52 }
 0x242   :  { %v3576_v45 = vadd.f32 %v6803_v54, %v3506_v47  ;;  %v3257_v0 = vadd.f32 %v3256_v27, %v6595_v31  ;;  %4778 = vmatprep.mubr.msk.bf16.mxu1 %vm3812_vm1, %v3765_v8  ;;  %4702 = vmatprep.mubr.msk.bf16.mxu0 %vm988_vm0, %v5289_v21  ;;  %v5291_v31 = vld [vmem:[%s7702_s1 + $0x368] ss:$16 sps:$4 sm:$0xff]   ;;  %v3068_v60 = vpop.f32.mrf.mxu1  ;;  %v3703_v22 = vadd.f32 %v3639_v29, %v1807_v2  ;;  %v1809_v52 = vmax.f32 %v1745_v38, 0.0 }
 0x243   :  { %v3258_v33 = vpop.f32.mrf.mxu0  ;;  %v1433_v47 = vadd.f32 %v6737_v49, %v5986_v57  ;;  %v1436_v8 = vadd.f32 %v6742_v48, %v5996_v63  ;;  %v1810_v57 = vmax.f32 %v1746_v43, 0.0 }
 0x244   :  { %v3640_v17 = vmax.f32 %v3576_v45, 0.0  ;;  %v3507_v16 = vmul.f32 %v6789_v53, %v3257_v0  ;;  %v6874_v10 = vpop.f32.mrf.mxu1 }
 0x245   :  { %v3259_v25 = vpop.f32.mrf.mxu0  ;;  %v1677_v63 = vmul.f32 %v6794_v44, %v1433_v47  ;;  %v1678_v48 = vmul.f32 %v6794_v44, %v1436_v8 }
 0x246   :  { %v3704_v35 = vadd.f32 %v3640_v17, %v1808_v1  ;;  %v3577_v56 = vadd.f32 %v6803_v54, %v3507_v16  ;;  %v3260_v21 = vadd.f32 %v3259_v25, %v6601_v24  ;;  %v3073_v29 = vpop.f32.mrf.mxu1 }
 0x247   :  { %v3261_v61 = vpop.f32.mrf.mxu0  ;;  %v1747_v43 = vadd.f32 %v6814_v32, %v1677_v63 }
 0x248   :  { %v3766_v27 = vpack.c.bf16 %v3704_v35, %v3703_v22  ;;  %v3508_v24 = vmul.f32 %v6789_v53, %v3260_v21  ;;  %v3641_v45 = vmax.f32 %v3577_v56, 0.0  ;;  %v6885_v33 = vpop.f32.mrf.mxu1  ;;  %v5295_v35 = vld [vmem:[%s7702_s1 + $0x3ac] ss:$16 sps:$4 sm:$0xff]   ;;  %v1441_v56 = vadd.f32 %v6752_v42, %v6006_v6 }
 0x249   :  { %v3264_v7 = vpop.f32.mrf.mxu0  ;;  %3455 = vmatmul.mubr.bf16.gmra.mxu0 %v5291_v31  ;;  %v1444_v21 = vadd.f32 %v6757_v41, %v6016_v12  ;;  %v1748_v61 = vadd.f32 %v6814_v32, %v1678_v48 }
 0x24a   :  { %v3578_v0 = vadd.f32 %v6803_v54, %v3508_v24  ;;  %v3265_v51 = vadd.f32 %v3264_v7, %v6618_v14  ;;  %4779 = vmatmul.mubr.msk.bf16.vlgmr.msra.gmra.mxu1 %vm3812_vm1, %v3766_v27  ;;  %4703 = vmatprep.mubr.msk.bf16.mxu0 %vm988_vm0, %v5292_v46  ;;  %v5294_v14 = vld [vmem:[%s7702_s1 + $0x388] ss:$16 sps:$4 sm:$0xff]   ;;  %v3076_v16 = vpop.f32.mrf.mxu1  ;;  %v3705_v25 = vadd.f32 %v3641_v45, %v1809_v52  ;;  %v1811_v45 = vmax.f32 %v1747_v43, 0.0 }
 0x24b   :  { %v3266_v49 = vpop.f32.mrf.mxu0  ;;  %v1679_v12 = vmul.f32 %v6794_v44, %v1441_v56  ;;  %v1680_v41 = vmul.f32 %v6794_v44, %v1444_v21 }
 0x24c   :  { %v3642_v2 = vmax.f32 %v3578_v0, 0.0  ;;  %v3509_v1 = vmul.f32 %v6789_v53, %v3265_v51  ;;  %v6902_v38 = vpop.f32.mrf.mxu1  ;;  %v1812_v0 = vmax.f32 %v1748_v61, 0.0 }
 0x24d   :  { %v3267_v17 = vpop.f32.mrf.mxu0  ;;  %v1750_v16 = vadd.f32 %v6814_v32, %v1680_v41 }
 0x24e   :  { %v3706_v31 = vadd.f32 %v3642_v2, %v1810_v57  ;;  %v3579_v60 = vadd.f32 %v6803_v54, %v3509_v1  ;;  %v3268_v22 = vadd.f32 %v3267_v17, %v6624_v19  ;;  %v3081_v27 = vpop.f32.mrf.mxu1  ;;  %v5298_v17 = vld [vmem:[%s7702_s1 + $0x3cc] ss:$16 sps:$4 sm:$0xff]  }
 0x24f   :  { %v3269_v46 = vpop.f32.mrf.mxu0 }
 0x250   :  { %v3510_v47 = vmul.f32 %v6789_v53, %v3268_v22  ;;  %v3767_v19 = vpack.c.bf16 %v3706_v31, %v3705_v25  ;;  %v3643_v24 = vmax.f32 %v3579_v60, 0.0  ;;  %v6913_v29 = vpop.f32.mrf.mxu1  ;;  %v1449_v60 = vadd.f32 %v6767_v9, %v6026_v18 }
 0x251   :  { %v3272_v8 = vpop.f32.mrf.mxu0  ;;  %3463 = vmatmul.mubr.bf16.gmra.mxu0 %v5294_v14  ;;  %v1749_v14 = vadd.f32 %v6814_v32, %v1679_v12  ;;  %v1452_v22 = vadd.f32 %v6772_v37, %v6036_v28  ;;  %v1814_v18 = vmax.f32 %v1750_v16, 0.0 }
 0x252   :  { %v3580_v7 = vadd.f32 %v6803_v54, %v3510_v47  ;;  %v3273_v6 = vadd.f32 %v3272_v8, %v6641_v11  ;;  %4782 = vmatprep.mubr.msk.bf16.mxu1 %vm3812_vm1, %v3767_v19  ;;  %4704 = vmatprep.mubr.msk.bf16.mxu0 %vm988_vm0, %v5295_v35  ;;  %v5297_v11 = vld [vmem:[%s7702_s1 + $0x3a8] ss:$16 sps:$4 sm:$0xff]   ;;  %v3084_v49 = vpop.f32.mrf.mxu1  ;;  %v3707_v63 = vadd.f32 %v3643_v24, %v1811_v45  ;;  %v5301_v45 = vld [vmem:[%s7702_s1 + $0x3ec] ss:$16 sps:$4 sm:$0xff]  }
 0x253   :  { %v3274_v42 = vpop.f32.mrf.mxu0  ;;  %v1813_v47 = vmax.f32 %v1749_v14, 0.0  ;;  %v1681_v28 = vmul.f32 %v6794_v44, %v1449_v60  ;;  %v1682_v37 = vmul.f32 %v6794_v44, %v1452_v22  ;;  %v1684_v14 = vmul.f32 %v6794_v44, %v6061_v20 }
 0x254   :  { %v3644_v51 = vmax.f32 %v3580_v7, 0.0  ;;  %v3511_v52 = vmul.f32 %v6789_v53, %v3273_v6  ;;  %v6926_v31 = vpop.f32.mrf.mxu1 }
 0x255   :  { %v3275_v57 = vpop.f32.mrf.mxu0 }
 0x256   :  { %v3708_v48 = vadd.f32 %v3644_v51, %v1812_v0  ;;  %v3581_v2 = vadd.f32 %v6803_v54, %v3511_v52  ;;  %v3276_v1 = vadd.f32 %v3275_v57, %v6647_v50  ;;  %v3089_v21 = vpop.f32.mrf.mxu1  ;;  %v1751_v52 = vadd.f32 %v6814_v32, %v1681_v28 }
 0x257   :  { %v3277_v25 = vpop.f32.mrf.mxu0  ;;  %v1752_v57 = vadd.f32 %v6814_v32, %v1682_v37 }
 0x258   :  { %v3768_v35 = vpack.c.bf16 %v3708_v48, %v3707_v63  ;;  %v3512_v50 = vmul.f32 %v6789_v53, %v3276_v1  ;;  %v3645_v46 = vmax.f32 %v3581_v2, 0.0  ;;  %v6937_v19 = vpop.f32.mrf.mxu1  ;;  %v1815_v60 = vmax.f32 %v1751_v52, 0.0 }
 0x259   :  { %v3280_v56 = vpop.f32.mrf.mxu0  ;;  %3471 = vmatmul.mubr.bf16.gmra.mxu0 %v5297_v11  ;;  %v1816_v22 = vmax.f32 %v1752_v57, 0.0 }
 0x25a   :  { %v3582_v43 = vadd.f32 %v6803_v54, %v3512_v50  ;;  %v3281_v61 = vadd.f32 %v3280_v56, %v6664_v34  ;;  %4783 = vmatmul.mubr.msk.bf16.gmra.mxu1 %vm3812_vm1, %v3768_v35  ;;  %4705 = vmatprep.mubr.msk.bf16.mxu0 %vm988_vm0, %v5298_v17  ;;  %v5300_v34 = vld [vmem:[%s7702_s1 + $0x3c8] ss:$16 sps:$4 sm:$0xff]   ;;  %v3092_v7 = vpop.f32.mrf.mxu1  ;;  %v3709_v6 = vadd.f32 %v3645_v46, %v1813_v47 }
 0x25b   :  { %v3282_v9 = vpop.f32.mrf.mxu0  ;;  %v1683_v17 = vmul.f32 %v6794_v44, %v6047_v40  ;;  %v1754_v47 = vadd.f32 %v6814_v32, %v1684_v14 }
 0x25c   :  { %v3646_v8 = vmax.f32 %v3582_v43, 0.0  ;;  %v3513_v27 = vmul.f32 %v6789_v53, %v3281_v61  ;;  %v6950_v51 = vpop.f32.mrf.mxu1 }
 0x25d   :  { %v3283_v24 = vpop.f32.mrf.mxu0  ;;  %v1753_v61 = vadd.f32 %v6814_v32, %v1683_v17 }
 0x25e   :  { %v3710_v12 = vadd.f32 %v3646_v8, %v1814_v18  ;;  %v3583_v41 = vadd.f32 %v6803_v54, %v3513_v27  ;;  %v3284_v42 = vadd.f32 %v3283_v24, %v6670_v13  ;;  %v3097_v48 = vpop.f32.mrf.mxu1 }
 0x25f   :  { %v3285_v0 = vpop.f32.mrf.mxu0 }
 0x260   :  { %v3514_v11 = vmul.f32 %v6789_v53, %v3284_v42  ;;  %v3769_v49 = vpack.c.bf16 %v3710_v12, %v3709_v6  ;;  %v3647_v2 = vmax.f32 %v3583_v41, 0.0  ;;  %v6963_v25 = vpop.f32.mrf.mxu1  ;;  %v1818_v6 = vmax.f32 %v1754_v47, 0.0 }
 0x261   :  { %v3288_v63 = vpop.f32.mrf.mxu0  ;;  %3479 = vmatmul.mubr.bf16.gmra.mxu0 %v5300_v34  ;;  %v1685_v42 = vmul.f32 %v6794_v44, %v6069_v59 }
 0x262   :  { %v3584_v13 = vadd.f32 %v6803_v54, %v3514_v11  ;;  %v3289_v1 = vadd.f32 %v3288_v63, %v6687_v62  ;;  %4786 = vmatprep.mubr.msk.bf16.mxu1 %vm3812_vm1, %v3769_v49  ;;  %4706 = vmatprep.mubr.msk.bf16.mxu0 %vm988_vm0, %v5301_v45  ;;  %v5303_v62 = vld [vmem:[%s7702_s1 + $0x3e8] ss:$16 sps:$4 sm:$0xff]   ;;  %v3100_v21 = vpop.f32.mrf.mxu1  ;;  %v3711_v46 = vadd.f32 %v3647_v2, %v1815_v60 }
 0x263   :  { %v3290_v16 = vpop.f32.mrf.mxu0  ;;  %v1686_v45 = vmul.f32 %v6794_v44, %v6084_v4 }
 0x264   :  { %v3648_v35 = vmax.f32 %v3584_v13, 0.0  ;;  %v3515_v50 = vmul.f32 %v6789_v53, %v3289_v1  ;;  %v6973_v9 = vpop.f32.mrf.mxu1  ;;  %v1755_v1 = vadd.f32 %v6814_v32, %v1685_v42 }
 0x265   :  { %v3291_v56 = vpop.f32.mrf.mxu0  ;;  %v1756_v59 = vadd.f32 %v6814_v32, %v1686_v45 }
 0x266   :  { %v3712_v43 = vadd.f32 %v3648_v35, %v1816_v22  ;;  %v3585_v40 = vadd.f32 %v6803_v54, %v3515_v50  ;;  %v3292_v20 = vadd.f32 %v3291_v56, %v6692_v23  ;;  %v3105_v27 = vpop.f32.mrf.mxu1  ;;  %v1817_v23 = vmax.f32 %v1753_v61, 0.0 }
 0x267   :  { %v3293_v18 = vpop.f32.mrf.mxu0  ;;  %v1688_v50 = vmul.f32 %v6794_v44, %v6114_v30  ;;  %v1819_v21 = vmax.f32 %v1755_v1, 0.0 }
 0x268   :  { %v3770_v28 = vpack.c.bf16 %v3712_v43, %v3711_v46  ;;  %v3516_v37 = vmul.f32 %v6789_v53, %v3292_v20  ;;  %v3649_v24 = vmax.f32 %v3585_v40, 0.0  ;;  %v6979_v41 = vpop.f32.mrf.mxu1  ;;  %v1820_v46 = vmax.f32 %v1756_v59, 0.0 }
 0x269   :  { %v3296_v8 = vpop.f32.mrf.mxu0  ;;  %3487 = vmatmul.mubr.bf16.gmra.mxu0 %v5303_v62  ;;  %v1758_v30 = vadd.f32 %v6814_v32, %v1688_v50 }
 0x26a   :  { %v3586_v34 = vadd.f32 %v6803_v54, %v3516_v37  ;;  %v3297_v7 = vadd.f32 %v3296_v8, %v6705_v3  ;;  %4787 = vmatmul.mubr.msk.bf16.gmra.mxu1 %vm3812_vm1, %v3770_v28  ;;  %v3108_v11 = vpop.f32.mrf.mxu1  ;;  %v3713_v49 = vadd.f32 %v3649_v24, %v1817_v23 }
 0x26b   :  { %v3298_v12 = vpop.f32.mrf.mxu0  ;;  %v1822_v45 = vmax.f32 %v1758_v30, 0.0 }
 0x26c   :  { %v3650_v0 = vmax.f32 %v3586_v34, 0.0  ;;  %v3517_v52 = vmul.f32 %v6789_v53, %v3297_v7  ;;  %v6988_v13 = vpop.f32.mrf.mxu1  ;;  %v7765_v12 = vld [vmem:[#allocation48_spill] sm:$0xff] }
 0x26d   :  { %v3299_v57 = vpop.f32.mrf.mxu0 }
 0x26e   :  { %v3714_v3 = vadd.f32 %v3650_v0, %v1818_v6  ;;  %v3587_v63 = vadd.f32 %v6803_v54, %v3517_v52  ;;  %v3300_v48 = vadd.f32 %v3299_v57, %v6710_v26  ;;  %v3113_v16 = vpop.f32.mrf.mxu1  ;;  %v1687_v26 = vmul.f32 %v6794_v44, %v6095_v15  ;;  %v7766_v57 = vld [vmem:[#allocation2_spill] sm:$0xff] }
 0x26f   :  { %v3301_v2 = vpop.f32.mrf.mxu0  ;;  %v1689_v11 = vmul.f32 %v6794_v44, %v7766_v57 }
 0x270   :  { %v3518_v4 = vmul.f32 %v6789_v53, %v3300_v48  ;;  %v3771_v17 = vpack.c.bf16 %v3714_v3, %v3713_v49  ;;  %v3651_v60 = vmax.f32 %v3587_v63, 0.0  ;;  %v7000_v62 = vpop.f32.mrf.mxu1  ;;  %v1757_v15 = vadd.f32 %v6814_v32, %v1687_v26  ;;  %v7767_v49 = vld [vmem:[#allocation3_spill] sm:$0xff] }
 0x271   :  { %v3304_v14 = vpop.f32.mrf.mxu0  ;;  %v1690_v3 = vmul.f32 %v6794_v44, %v7767_v49 }
 0x272   :  { %v3588_v22 = vadd.f32 %v6803_v54, %v3518_v4  ;;  %v3305_v35 = vadd.f32 %v3304_v14, %v6720_v5  ;;  %4790 = vmatprep.mubr.msk.bf16.mxu1 %vm3812_vm1, %v3771_v17  ;;  %v3116_v61 = vpop.f32.mrf.mxu1  ;;  %v3715_v47 = vadd.f32 %v3651_v60, %v1819_v21  ;;  %v7768_v14 = vld [vmem:[#allocation49_spill] sm:$0xff] }
 0x273   :  { %v3306_v56 = vpop.f32.mrf.mxu0  ;;  %v1760_v26 = vadd.f32 %v6814_v32, %v1690_v3 }
 0x274   :  { %v3652_v43 = vmax.f32 %v3588_v22, 0.0  ;;  %v3519_v40 = vmul.f32 %v6789_v53, %v3305_v35  ;;  %v7007_v8 = vpop.f32.mrf.mxu1  ;;  %v1759_v35 = vadd.f32 %v6814_v32, %v1689_v11 }
 0x275   :  { %v3307_v20 = vpop.f32.mrf.mxu0 }
 0x276   :  { %v3716_v5 = vadd.f32 %v3652_v43, %v1820_v46  ;;  %v3589_v18 = vadd.f32 %v6803_v54, %v3519_v40  ;;  %v3308_v28 = vadd.f32 %v3307_v20, %v6725_v36  ;;  %v3121_v7 = vpop.f32.mrf.mxu1  ;;  %v1821_v36 = vmax.f32 %v1757_v15, 0.0  ;;  %v7769_v20 = vld [vmem:[#allocation50_spill] sm:$0xff] }
 0x277   :  { %v3309_v37 = vpop.f32.mrf.mxu0 }
 0x278   :  { %v3772_v27 = vpack.c.bf16 %v3716_v5, %v3715_v47  ;;  %v3520_v24 = vmul.f32 %v6789_v53, %v3308_v28  ;;  %v3653_v23 = vmax.f32 %v3589_v18, 0.0  ;;  %v7013_v52 = vpop.f32.mrf.mxu1  ;;  %v7770_v47 = vld [vmem:[#allocation4_spill] sm:$0xff]  ;;  %v7771_v18 = vld [vmem:[#allocation5_spill] sm:$0xff]  ;;  %v1823_v37 = vmax.f32 %v1759_v35, 0.0 }
 0x279   :  { %v3312_v34 = vpop.f32.mrf.mxu0  ;;  %v1691_v5 = vmul.f32 %v6794_v44, %v7770_v47  ;;  %v1692_v28 = vmul.f32 %v6794_v44, %v7771_v18  ;;  %v7776_v18 = vld [vmem:[#allocation53_spill] sm:$0xff] }
 0x27a   :  { %v3590_v6 = vadd.f32 %v6803_v54, %v3520_v24  ;;  %v3313_v42 = vadd.f32 %v3312_v34, %v7765_v12  ;;  %4791 = vmatmul.mubr.msk.bf16.gmra.mxu1 %vm3812_vm1, %v3772_v27  ;;  %v3124_v1 = vpop.f32.mrf.mxu1  ;;  %v3717_v59 = vadd.f32 %v3653_v23, %v1821_v36  ;;  %v1824_v27 = vmax.f32 %v1760_v26, 0.0  ;;  %v7772_v36 = vld [vmem:[#allocation51_spill] sm:$0xff]  ;;  %v7774_v26 = vld [vmem:[#allocation6_spill] sm:$0xff] }
 0x27b   :  { %v3314_v0 = vpop.f32.mrf.mxu0  ;;  %v1762_v57 = vadd.f32 %v6814_v32, %v1692_v28 }
 0x27c   :  { %v3654_v63 = vmax.f32 %v3590_v6, 0.0  ;;  %v3521_v48 = vmul.f32 %v6789_v53, %v3313_v42  ;;  %v7022_v22 = vpop.f32.mrf.mxu1  ;;  %v1761_v0 = vadd.f32 %v6814_v32, %v1691_v5 }
 0x27d   :  { %v3315_v2 = vpop.f32.mrf.mxu0 }
 0x27e   :  { %v3718_v4 = vadd.f32 %v3654_v63, %v1822_v45  ;;  %v3591_v17 = vadd.f32 %v6803_v54, %v3521_v48  ;;  %v3316_v16 = vadd.f32 %v3315_v2, %v7768_v14  ;;  %v3129_v46 = vpop.f32.mrf.mxu1  ;;  %v1825_v14 = vmax.f32 %v1761_v0, 0.0  ;;  %v7778_v0 = vld [vmem:[#allocation8_spill] sm:$0xff] }
 0x27f   :  { %v3317_v60 = vpop.f32.mrf.mxu0 }
 0x280   :  { %v3522_v50 = vmul.f32 %v6789_v53, %v3316_v16  ;;  %v3773_v56 = vpack.c.bf16 %v3718_v4, %v3717_v59  ;;  %v3655_v43 = vmax.f32 %v3591_v17, 0.0  ;;  %v7034_v30 = vpop.f32.mrf.mxu1  ;;  %v7773_v4 = vld [vmem:[#allocation52_spill] sm:$0xff]  ;;  %v1826_v16 = vmax.f32 %v1762_v57, 0.0 }
 0x281   :  { %v3320_v21 = vpop.f32.mrf.mxu0  ;;  %v1695_v57 = vmul.f32 %v6794_v44, %v7778_v0 }
 0x282   :  { %v3592_v40 = vadd.f32 %v6803_v54, %v3522_v50  ;;  %v3321_v61 = vadd.f32 %v3320_v21, %v7769_v20  ;;  %4794 = vmatprep.mubr.msk.bf16.mxu1 %vm3812_vm1, %v3773_v56  ;;  %v3132_v23 = vpop.f32.mrf.mxu1  ;;  %v3719_v6 = vadd.f32 %v3655_v43, %v1823_v37  ;;  %v1693_v50 = vmul.f32 %v6794_v44, %v7774_v26  ;;  %v7775_v56 = vld [vmem:[#allocation7_spill] sm:$0xff] }
 0x283   :  { %v3322_v15 = vpop.f32.mrf.mxu0  ;;  %v1694_v21 = vmul.f32 %v6794_v44, %v7775_v56 }
 0x284   :  { %v3656_v24 = vmax.f32 %v3592_v40, 0.0  ;;  %v3523_v34 = vmul.f32 %v6789_v53, %v3321_v61  ;;  %v7041_v49 = vpop.f32.mrf.mxu1 }
 0x285   :  { %v3323_v7 = vpop.f32.mrf.mxu0 }
 0x286   :  { %v3720_v12 = vadd.f32 %v3656_v24, %v1824_v27  ;;  %v3593_v42 = vadd.f32 %v6803_v54, %v3523_v34  ;;  %v3324_v45 = vadd.f32 %v3323_v7, %v7772_v36  ;;  %v3137_v2 = vpop.f32.mrf.mxu1  ;;  %v1763_v27 = vadd.f32 %v6814_v32, %v1693_v50  ;;  %v7777_v36 = vld [vmem:[#allocation54_spill] sm:$0xff]  ;;  %v7780_v50 = vld [vmem:[#allocation55_spill] sm:$0xff] }
 0x287   :  { %v3325_v11 = vpop.f32.mrf.mxu0  ;;  %v1764_v24 = vadd.f32 %v6814_v32, %v1694_v21  ;;  %v1765_v21 = vadd.f32 %v6814_v32, %v1695_v57 }
 0x288   :  { %v3774_v3 = vpack.c.bf16 %v3720_v12, %v3719_v6  ;;  %v3524_v63 = vmul.f32 %v6789_v53, %v3324_v45  ;;  %v3657_v1 = vmax.f32 %v3593_v42, 0.0  ;;  %v7047_v35 = vpop.f32.mrf.mxu1  ;;  %v7779_v11 = vld [vmem:[#allocation9_spill] sm:$0xff]  ;;  %v1827_v2 = vmax.f32 %v1763_v27, 0.0 }
 0x289   :  { %v3328_v48 = vpop.f32.mrf.mxu0 }
 0x28a   :  { %v3594_v59 = vadd.f32 %v6803_v54, %v3524_v63  ;;  %v3329_v17 = vadd.f32 %v3328_v48, %v7773_v4  ;;  %4795 = vmatmul.mubr.msk.bf16.gmra.mxu1 %vm3812_vm1, %v3774_v3  ;;  %v3140_v20 = vpop.f32.mrf.mxu1  ;;  %v3721_v61 = vadd.f32 %v3657_v1, %v1825_v14  ;;  %v1696_v3 = vmul.f32 %v6794_v44, %v7779_v11 }
 0x28b   :  { %v3330_v60 = vpop.f32.mrf.mxu0  ;;  %v1828_v1 = vmax.f32 %v1764_v24, 0.0  ;;  %v1829_v24 = vmax.f32 %v1765_v21, 0.0 }
 0x28c   :  { %v3658_v46 = vmax.f32 %v3594_v59, 0.0  ;;  %v3525_v43 = vmul.f32 %v6789_v53, %v3329_v17  ;;  %v7056_v37 = vpop.f32.mrf.mxu1 }
 0x28d   :  { %v3331_v40 = vpop.f32.mrf.mxu0 }
 0x28e   :  { %v3722_v47 = vadd.f32 %v3658_v46, %v1826_v16  ;;  %v3595_v5 = vadd.f32 %v6803_v54, %v3525_v43  ;;  %v3332_v28 = vadd.f32 %v3331_v40, %v7776_v18  ;;  %v3145_v6 = vpop.f32.mrf.mxu1  ;;  %v1766_v46 = vadd.f32 %v6814_v32, %v1696_v3 }
 0x28f   :  { %v3333_v15 = vpop.f32.mrf.mxu0  ;;  %v7782_v6 = vld [vmem:[#allocation10_spill] sm:$0xff] }
 0x290   :  { %v3526_v34 = vmul.f32 %v6789_v53, %v3332_v28  ;;  %v3775_v7 = vpack.c.bf16 %v3722_v47, %v3721_v61  ;;  %v3659_v12 = vmax.f32 %v3595_v5, 0.0  ;;  %v7068_v48 = vpop.f32.mrf.mxu1  ;;  %v7781_v15 = vld [vmem:[#allocation56_spill] sm:$0xff] }
 0x291   :  { %v3336_v23 = vpop.f32.mrf.mxu0 }
 0x292   :  { %v3596_v42 = vadd.f32 %v6803_v54, %v3526_v34  ;;  %v3337_v45 = vadd.f32 %v3336_v23, %v7777_v36  ;;  %4798 = vmatprep.mubr.msk.bf16.mxu1 %vm3812_vm1, %v3775_v7  ;;  %v3148_v14 = vpop.f32.mrf.mxu1  ;;  %v3723_v16 = vadd.f32 %v3659_v12, %v1827_v2  ;;  %v1830_v34 = vmax.f32 %v1766_v46, 0.0 }
 0x293   :  { %v3338_v63 = vpop.f32.mrf.mxu0  ;;  %v1697_v12 = vmul.f32 %v6794_v44, %v7782_v6 }
 0x294   :  { %v3660_v59 = vmax.f32 %v3596_v42, 0.0  ;;  %v3527_v4 = vmul.f32 %v6789_v53, %v3337_v45  ;;  %v7075_v40 = vpop.f32.mrf.mxu1  ;;  %v7783_v42 = vld [vmem:[#allocation11_spill] sm:$0xff] }
 0x295   :  { %v3339_v17 = vpop.f32.mrf.mxu0  ;;  %v1698_v36 = vmul.f32 %v6794_v44, %v7783_v42 }
 0x296   :  { %v3724_v60 = vadd.f32 %v3660_v59, %v1828_v1  ;;  %v3597_v26 = vadd.f32 %v6803_v54, %v3527_v4  ;;  %v3340_v56 = vadd.f32 %v3339_v17, %v7780_v50  ;;  %v3153_v5 = vpop.f32.mrf.mxu1  ;;  %v1767_v17 = vadd.f32 %v6814_v32, %v1697_v12 }
 0x297   :  { %v3341_v43 = vpop.f32.mrf.mxu0  ;;  %v1768_v14 = vadd.f32 %v6814_v32, %v1698_v36 }
 0x298   :  { %v3776_v20 = vpack.c.bf16 %v3724_v60, %v3723_v16  ;;  %v3528_v61 = vmul.f32 %v6789_v53, %v3340_v56  ;;  %v3661_v18 = vmax.f32 %v3597_v26, 0.0  ;;  %v7081_v23 = vpop.f32.mrf.mxu1 }
 0x299   :  { %v3344_v47 = vpop.f32.mrf.mxu0 }
 0x29a   :  { %v3598_v28 = vadd.f32 %v6803_v54, %v3528_v61  ;;  %v3345_v27 = vadd.f32 %v3344_v47, %v7781_v15  ;;  %4799 = vmatmul.mubr.msk.bf16.gmra.mxu1 %vm3812_vm1, %v3776_v20  ;;  %v3156_v11 = vpop.f32.mrf.mxu1  ;;  %v3725_v3 = vadd.f32 %v3661_v18, %v1829_v24  ;;  %v7785_v20 = vld [vmem:[#allocation13_spill] sm:$0xff]  ;;  %v1831_v18 = vmax.f32 %v1767_v17, 0.0 }
 0x29b   :  { %v3346_v7 = vpop.f32.mrf.mxu0  ;;  %v1700_v61 = vmul.f32 %v6794_v44, %v7785_v20 }
 0x29c   :  { %v3662_v45 = vmax.f32 %v3598_v28, 0.0  ;;  %v3529_v0 = vmul.f32 %v6789_v53, %v3345_v27  ;;  %v7090_v4 = vpop.f32.mrf.mxu1  ;;  %v1832_v28 = vmax.f32 %v1768_v14, 0.0 }
 0x29d   :  { %v3347_v57 = vpop.f32.mrf.mxu0  ;;  %v1770_v36 = vadd.f32 %v6814_v32, %v1700_v61 }
 0x29e   :  { %v3726_v63 = vadd.f32 %v3662_v45, %v1830_v34  ;;  %v3599_v2 = vadd.f32 %v6803_v54, %v3529_v0  ;;  %v3348_v1 = vadd.f32 %v3347_v57, %v6833_v55  ;;  %v3161_v50 = vpop.f32.mrf.mxu1  ;;  %v7784_v55 = vld [vmem:[#allocation12_spill] sm:$0xff] }
 0x29f   :  { %v3349_v59 = vpop.f32.mrf.mxu0  ;;  %v1699_v43 = vmul.f32 %v6794_v44, %v7784_v55  ;;  %v1834_v17 = vmax.f32 %v1770_v36, 0.0  ;;  %v7787_v50 = vld [vmem:[#allocation15_spill] sm:$0xff] }
 0x2a0   :  { %v3530_v16 = vmul.f32 %v6789_v53, %v3348_v1  ;;  %v3777_v60 = vpack.c.bf16 %v3726_v63, %v3725_v3  ;;  %v3663_v56 = vmax.f32 %v3599_v2, 0.0  ;;  %v7102_v5 = vpop.f32.mrf.mxu1 }
 0x2a1   :  { %v3352_v26 = vpop.f32.mrf.mxu0  ;;  %v1769_v42 = vadd.f32 %v6814_v32, %v1699_v43 }
 0x2a2   :  { %v3600_v21 = vadd.f32 %v6803_v54, %v3530_v16  ;;  %v3353_v46 = vadd.f32 %v3352_v26, %v6850_v58  ;;  %4802 = vmatprep.mubr.msk.bf16.mxu1 %vm3812_vm1, %v3777_v60  ;;  %v3164_v34 = vpop.f32.mrf.mxu1  ;;  %v3727_v7 = vadd.f32 %v3663_v56, %v1831_v18  ;;  %v7786_v60 = vld [vmem:[#allocation14_spill] sm:$0xff]  ;;  %v1702_v56 = vmul.f32 %v6794_v44, %v7787_v50 }
 0x2a3   :  { %v3354_v47 = vpop.f32.mrf.mxu0  ;;  %v1701_v26 = vmul.f32 %v6794_v44, %v7786_v60 }
 0x2a4   :  { %v3664_v15 = vmax.f32 %v3600_v21, 0.0  ;;  %v3531_v27 = vmul.f32 %v6789_v53, %v3353_v46  ;;  %v7109_v0 = vpop.f32.mrf.mxu1 }
 0x2a5   :  { %v3355_v24 = vpop.f32.mrf.mxu0 }
 0x2a6   :  { %v3728_v58 = vadd.f32 %v3664_v15, %v1832_v28  ;;  %v3601_v6 = vadd.f32 %v6803_v54, %v3531_v27  ;;  %v3356_v12 = vadd.f32 %v3355_v24, %v6861_v39  ;;  %v3169_v63 = vpop.f32.mrf.mxu1  ;;  %v1833_v39 = vmax.f32 %v1769_v42, 0.0 }
 0x2a7   :  { %v3357_v45 = vpop.f32.mrf.mxu0  ;;  %v1771_v15 = vadd.f32 %v6814_v32, %v1701_v26  ;;  %v1772_v27 = vadd.f32 %v6814_v32, %v1702_v56 }
 0x2a8   :  { %v3778_v57 = vpack.c.bf16 %v3728_v58, %v3727_v7  ;;  %v3532_v11 = vmul.f32 %v6789_v53, %v3356_v12  ;;  %v3665_v2 = vmax.f32 %v3601_v6, 0.0  ;;  %v7115_v16 = vpop.f32.mrf.mxu1  ;;  %v7789_v45 = vld [vmem:[#allocation17_spill] sm:$0xff] }
 0x2a9   :  { %v3360_v3 = vpop.f32.mrf.mxu0  ;;  %v1835_v63 = vmax.f32 %v1771_v15, 0.0 }
 0x2aa   :  { %v3602_v1 = vadd.f32 %v6803_v54, %v3532_v11  ;;  %v3361_v59 = vadd.f32 %v3360_v3, %v6874_v10  ;;  %4803 = vmatmul.mubr.msk.bf16.gmra.mxu1 %vm3812_vm1, %v3778_v57  ;;  %v3172_v43 = vpop.f32.mrf.mxu1  ;;  %v3729_v20 = vadd.f32 %v3665_v2, %v1833_v39  ;;  %v1704_v57 = vmul.f32 %v6794_v44, %v7789_v45 }
 0x2ab   :  { %v3362_v14 = vpop.f32.mrf.mxu0  ;;  %v1836_v2 = vmax.f32 %v1772_v27, 0.0 }
 0x2ac   :  { %v3666_v21 = vmax.f32 %v3602_v1, 0.0  ;;  %v3533_v46 = vmul.f32 %v6789_v53, %v3361_v59  ;;  %v7124_v28 = vpop.f32.mrf.mxu1  ;;  %v1774_v56 = vadd.f32 %v6814_v32, %v1704_v57 }
 0x2ad   :  { %v3363_v55 = vpop.f32.mrf.mxu0 }
 0x2ae   :  { %v3730_v10 = vadd.f32 %v3666_v21, %v1834_v17  ;;  %v3603_v61 = vadd.f32 %v6803_v54, %v3533_v46  ;;  %v3364_v47 = vadd.f32 %v3363_v55, %v6885_v33  ;;  %v3177_v58 = vpop.f32.mrf.mxu1  ;;  %v7788_v33 = vld [vmem:[#allocation16_spill] sm:$0xff]  ;;  %v1838_v15 = vmax.f32 %v1774_v56, 0.0 }
 0x2af   :  { %v3365_v18 = vpop.f32.mrf.mxu0  ;;  %v1703_v36 = vmul.f32 %v6794_v44, %v7788_v33  ;;  %v7791_v58 = vld [vmem:[#allocation19_spill] sm:$0xff] }
 0x2b0   :  { %v3534_v24 = vmul.f32 %v6789_v53, %v3364_v47  ;;  %v3779_v34 = vpack.c.bf16 %v3730_v10, %v3729_v20  ;;  %v3667_v6 = vmax.f32 %v3603_v61, 0.0  ;;  %v7136_v3 = vpop.f32.mrf.mxu1 }
 0x2b1   :  { %v3368_v7 = vpop.f32.mrf.mxu0  ;;  %v1773_v50 = vadd.f32 %v6814_v32, %v1703_v36 }
 0x2b2   :  { %v3604_v12 = vadd.f32 %v6803_v54, %v3534_v24  ;;  %v3369_v42 = vadd.f32 %v3368_v7, %v6902_v38  ;;  %4806 = vmatprep.mubr.msk.bf16.mxu1 %vm3812_vm1, %v3779_v34  ;;  %v3180_v17 = vpop.f32.mrf.mxu1  ;;  %v3731_v14 = vadd.f32 %v3667_v6, %v1835_v63  ;;  %v7790_v34 = vld [vmem:[#allocation18_spill] sm:$0xff]  ;;  %v1706_v6 = vmul.f32 %v6794_v44, %v7791_v58 }
 0x2b3   :  { %v3370_v11 = vpop.f32.mrf.mxu0  ;;  %v1705_v7 = vmul.f32 %v6794_v44, %v7790_v34 }
 0x2b4   :  { %v3668_v1 = vmax.f32 %v3604_v12, 0.0  ;;  %v3535_v59 = vmul.f32 %v6789_v53, %v3369_v42  ;;  %v7143_v46 = vpop.f32.mrf.mxu1 }
 0x2b5   :  { %v3371_v39 = vpop.f32.mrf.mxu0 }
 0x2b6   :  { %v3732_v38 = vadd.f32 %v3668_v1, %v1836_v2  ;;  %v3605_v60 = vadd.f32 %v6803_v54, %v3535_v59  ;;  %v3372_v26 = vadd.f32 %v3371_v39, %v6913_v29  ;;  %v3185_v10 = vpop.f32.mrf.mxu1  ;;  %v1837_v29 = vmax.f32 %v1773_v50, 0.0 }
 0x2b7   :  { %v3373_v21 = vpop.f32.mrf.mxu0  ;;  %v1775_v1 = vadd.f32 %v6814_v32, %v1705_v7  ;;  %v1776_v59 = vadd.f32 %v6814_v32, %v1706_v6 }
 0x2b8   :  { %v3780_v55 = vpack.c.bf16 %v3732_v38, %v3731_v14  ;;  %v3536_v43 = vmul.f32 %v6789_v53, %v3372_v26  ;;  %v3669_v61 = vmax.f32 %v3605_v60, 0.0  ;;  %v7149_v24 = vpop.f32.mrf.mxu1  ;;  %v7793_v21 = vld [vmem:[#allocation21_spill] sm:$0xff] }
 0x2b9   :  { %v3376_v20 = vpop.f32.mrf.mxu0  ;;  %v1840_v10 = vmax.f32 %v1776_v59, 0.0  ;;  %v7198_v59 = vld [vmem:[%s7705_s3] ss:$0 sm:$0xff] }
 0x2ba   :  { %v3606_v47 = vadd.f32 %v6803_v54, %v3536_v43  ;;  %v3377_v18 = vadd.f32 %v3376_v20, %v6926_v31  ;;  %4807 = vmatmul.mubr.msk.bf16.gmra.mxu1 %vm3812_vm1, %v3780_v55  ;;  %v3188_v36 = vpop.f32.mrf.mxu1  ;;  %v3733_v45 = vadd.f32 %v3669_v61, %v1837_v29  ;;  %v1708_v55 = vmul.f32 %v6794_v44, %v7793_v21 }
 0x2bb   :  { %v3378_v27 = vpop.f32.mrf.mxu0 }
 0x2bc   :  { %v3670_v12 = vmax.f32 %v3606_v47, 0.0  ;;  %v3537_v42 = vmul.f32 %v6789_v53, %v3377_v18  ;;  %v7158_v2 = vpop.f32.mrf.mxu1  ;;  %v7175_v47 = vld [vmem:[%s7704_s6] ss:$0 sm:$0xff]  ;;  %v1778_v58 = vadd.f32 %v6814_v32, %v1708_v55 }
 0x2bd   :  { %v3379_v33 = vpop.f32.mrf.mxu0 }
 0x2be   :  { %v3734_v31 = vadd.f32 %v3670_v12, %v1838_v15  ;;  %v3607_v57 = vadd.f32 %v6803_v54, %v3537_v42  ;;  %v3380_v11 = vadd.f32 %v3379_v33, %v6937_v19  ;;  %v3193_v38 = vpop.f32.mrf.mxu1  ;;  %v7792_v19 = vld [vmem:[#allocation20_spill] sm:$0xff] }
 0x2bf   :  { %v3381_v63 = vpop.f32.mrf.mxu0  ;;  %v1707_v56 = vmul.f32 %v6794_v44, %v7792_v19 }
 0x2c0   :  { %v3538_v39 = vmul.f32 %v6789_v53, %v3380_v11  ;;  %v3781_v17 = vpack.c.bf16 %v3734_v31, %v3733_v45  ;;  %v3671_v60 = vmax.f32 %v3607_v57, 0.0  ;;  %v7170_v20 = vpop.f32.mrf.mxu1  ;;  %v1839_v53 = vmax.f32 %v1775_v1, 0.0  ;;  %v7188_v57 = vld [vmem:[%s7706_s7] ss:$0 sm:$0xff] }
 0x2c1   :  { %v3384_v14 = vpop.f32.mrf.mxu0  ;;  %v1777_v7 = vadd.f32 %v6814_v32, %v1707_v56  ;;  %v1842_v11 = vmax.f32 %v1778_v58, 0.0 }
 0x2c2   :  { %v3608_v26 = vadd.f32 %v6803_v54, %v3538_v39  ;;  %v3385_v50 = vadd.f32 %v3384_v14, %v6950_v51  ;;  %4810 = vmatprep.mubr.msk.bf16.mxu1 %vm3812_vm1, %v3781_v17  ;;  %v3196_v29 = vpop.f32.mrf.mxu1  ;;  %v3735_v15 = vadd.f32 %v3671_v60, %v1839_v53  ;;  %v7794_v39 = vld [vmem:[#allocation22_spill] sm:$0xff]  ;;  %v7795_v14 = vld [vmem:[#allocation23_spill] sm:$0xff] }
 0x2c3   :  { %v3386_v43 = vpop.f32.mrf.mxu0  ;;  %v1841_v32 = vmax.f32 %v1777_v7, 0.0  ;;  %v1709_v17 = vmul.f32 %v7198_v59, %v7794_v39  ;;  %v1710_v38 = vmul.f32 %v7198_v59, %v7795_v14  ;;  %v7210_v53 = vld [vmem:[%s7707_s4] ss:$0 sm:$0xff]  ;;  %v7797_v7 = vld [vmem:[#allocation25_spill] sm:$0xff] }
 0x2c4   :  { %v3672_v61 = vmax.f32 %v3608_v26, 0.0  ;;  %v3539_v51 = vmul.f32 %v7175_v47, %v3385_v50  ;;  %v7182_v12 = vpop.f32.mrf.mxu1  ;;  %v1712_v58 = vmul.f32 %v7198_v59, %v7797_v7 }
 0x2c5   :  { %v3387_v18 = vpop.f32.mrf.mxu0 }
 0x2c6   :  { %v3736_v27 = vadd.f32 %v3672_v61, %v1840_v10  ;;  %v3609_v34 = vadd.f32 %v6803_v54, %v3539_v51  ;;  %v3388_v44 = vadd.f32 %v3387_v18, %v6963_v25  ;;  %v3201_v45 = vpop.f32.mrf.mxu1  ;;  %v1779_v10 = vadd.f32 %v7210_v53, %v1709_v17 }
 0x2c7   :  { %v3389_v6 = vpop.f32.mrf.mxu0  ;;  %v1780_v61 = vadd.f32 %v7210_v53, %v1710_v38 }
 0x2c8   :  { %v3782_v42 = vpack.c.bf16 %v3736_v27, %v3735_v15  ;;  %v3540_v33 = vmul.f32 %v7175_v47, %v3388_v44  ;;  %v3673_v31 = vmax.f32 %v3609_v34, 0.0  ;;  %v7193_v1 = vpop.f32.mrf.mxu1 }
 0x2c9   :  { %v3392_v36 = vpop.f32.mrf.mxu0 }
 0x2ca   :  { %v3610_v54 = vadd.f32 %v7188_v57, %v3540_v33  ;;  %v3393_v25 = vadd.f32 %v3392_v36, %v6973_v9  ;;  %4811 = vmatmul.mubr.msk.bf16.gmra.mxu1 %vm3812_vm1, %v3782_v42  ;;  %v3204_v50 = vpop.f32.mrf.mxu1  ;;  %v3737_v19 = vadd.f32 %v3673_v31, %v1841_v32  ;;  %v1843_v42 = vmax.f32 %v1779_v10, 0.0 }
 0x2cb   :  { %v3394_v63 = vpop.f32.mrf.mxu0  ;;  %v1844_v33 = vmax.f32 %v1780_v61, 0.0 }
 0x2cc   :  { %v3674_v60 = vmax.f32 %v3610_v54, 0.0  ;;  %v3541_v9 = vmul.f32 %v7175_v47, %v3393_v25  ;;  %v1782_v63 = vadd.f32 %v7210_v53, %v1712_v58 }
 0x2cd   :  { %v3395_v26 = vpop.f32.mrf.mxu0 }
 0x2ce   :  { %v3738_v56 = vadd.f32 %v3674_v60, %v1842_v11  ;;  %v3611_v21 = vadd.f32 %v7188_v57, %v3541_v9  ;;  %v3396_v55 = vadd.f32 %v3395_v26, %v6979_v41  ;;  %v7796_v41 = vld [vmem:[#allocation24_spill] sm:$0xff] }
 0x2cf   :  { %v3397_v43 = vpop.f32.mrf.mxu0  ;;  %v1711_v44 = vmul.f32 %v7198_v59, %v7796_v41 }
 0x2d0   :  { %v3542_v51 = vmul.f32 %v7175_v47, %v3396_v55  ;;  %v3783_v18 = vpack.c.bf16 %v3738_v56, %v3737_v19  ;;  %v3675_v15 = vmax.f32 %v3611_v21, 0.0  ;;  %v1846_v19 = vmax.f32 %v1782_v63, 0.0  ;;  %v7799_v55 = vld [vmem:[#allocation27_spill] sm:$0xff] }
 0x2d1   :  { %v3400_v29 = vpop.f32.mrf.mxu0  ;;  %v1781_v11 = vadd.f32 %v7210_v53, %v1711_v44  ;;  %v1714_v43 = vmul.f32 %v7198_v59, %v7799_v55 }
 0x2d2   :  { %v3612_v27 = vadd.f32 %v7188_v57, %v3542_v51  ;;  %v3401_v34 = vadd.f32 %v3400_v29, %v6988_v13  ;;  %4814 = vmatprep.mubr.msk.bf16.mxu1 %vm3812_vm1, %v3783_v18  ;;  %v3739_v54 = vadd.f32 %v3675_v15, %v1843_v42 }
 0x2d3   :  { %v3402_v6 = vpop.f32.mrf.mxu0  ;;  %v1845_v50 = vmax.f32 %v1781_v11, 0.0  ;;  %v1784_v41 = vadd.f32 %v7210_v53, %v1714_v43 }
 0x2d4   :  { %v3676_v36 = vmax.f32 %v3612_v27, 0.0  ;;  %v3543_v45 = vmul.f32 %v7175_v47, %v3401_v34 }
 0x2d5   :  { %v3403_v31 = vpop.f32.mrf.mxu0 }
 0x2d6   :  { %v3740_v25 = vadd.f32 %v3676_v36, %v1844_v33  ;;  %v3613_v32 = vadd.f32 %v7188_v57, %v3543_v45  ;;  %v3404_v13 = vadd.f32 %v3403_v31, %v7000_v62  ;;  %v7798_v62 = vld [vmem:[#allocation26_spill] sm:$0xff]  ;;  %v7800_v36 = vld [vmem:[#allocation28_spill] sm:$0xff] }
 0x2d7   :  { %v3405_v39 = vpop.f32.mrf.mxu0  ;;  %v1713_v21 = vmul.f32 %v7198_v59, %v7798_v62  ;;  %v1715_v45 = vmul.f32 %v7198_v59, %v7800_v36 }
 0x2d8   :  { %v3784_v17 = vpack.c.bf16 %v3740_v25, %v3739_v54  ;;  %v3544_v14 = vmul.f32 %v7175_v47, %v3404_v13  ;;  %v3677_v60 = vmax.f32 %v3613_v32, 0.0  ;;  %v1848_v32 = vmax.f32 %v1784_v41, 0.0 }
 0x2d9   :  { %v3408_v38 = vpop.f32.mrf.mxu0  ;;  %v1783_v34 = vadd.f32 %v7210_v53, %v1713_v21 }
 0x2da   :  { %v3614_v9 = vadd.f32 %v7188_v57, %v3544_v14  ;;  %v3409_v26 = vadd.f32 %v3408_v38, %v7007_v8  ;;  %4815 = vmatmul.mubr.msk.bf16.gmra.mxu1 %vm3812_vm1, %v3784_v17  ;;  %v3741_v18 = vadd.f32 %v3677_v60, %v1845_v50  ;;  %v1785_v38 = vadd.f32 %v7210_v53, %v1715_v45 }
 0x2db   :  { %v3410_v56 = vpop.f32.mrf.mxu0  ;;  %v1847_v25 = vmax.f32 %v1783_v34, 0.0 }
 0x2dc   :  { %v3678_v10 = vmax.f32 %v3614_v9, 0.0  ;;  %v3545_v61 = vmul.f32 %v7175_v47, %v3409_v26  ;;  %v1849_v55 = vmax.f32 %v1785_v38, 0.0 }
 0x2dd   :  { %v3411_v51 = vpop.f32.mrf.mxu0 }
 0x2de   :  { %v3742_v29 = vadd.f32 %v3678_v10, %v1846_v19  ;;  %v3615_v15 = vadd.f32 %v7188_v57, %v3545_v61  ;;  %v3412_v8 = vadd.f32 %v3411_v51, %v7013_v52  ;;  %v7801_v52 = vld [vmem:[#allocation29_spill] sm:$0xff]  ;;  %v7803_v51 = vld [vmem:[#allocation31_spill] sm:$0xff] }
 0x2df   :  { %v3413_v27 = vpop.f32.mrf.mxu0  ;;  %v1716_v31 = vmul.f32 %v7198_v59, %v7801_v52 }
 0x2e0   :  { %v3546_v44 = vmul.f32 %v7175_v47, %v3412_v8  ;;  %v3785_v7 = vpack.c.bf16 %v3742_v29, %v3741_v18  ;;  %v3679_v6 = vmax.f32 %v3615_v15, 0.0  ;;  %v1718_v18 = vmul.f32 %v7198_v59, %v7803_v51  ;;  %v7807_v51 = vld [vmem:[#allocation35_spill] sm:$0xff] }
 0x2e1   :  { %v3416_v58 = vpop.f32.mrf.mxu0  ;;  %v1786_v60 = vadd.f32 %v7210_v53, %v1716_v31  ;;  %v7804_v31 = vld [vmem:[#allocation32_spill] sm:$0xff] }
 0x2e2   :  { %v3616_v42 = vadd.f32 %v7188_v57, %v3546_v44  ;;  %v3417_v33 = vadd.f32 %v3416_v58, %v7022_v22  ;;  %4818 = vmatprep.mubr.msk.bf16.mxu1 %vm3812_vm1, %v3785_v7  ;;  %v3743_v39 = vadd.f32 %v3679_v6, %v1847_v25  ;;  %v1788_v58 = vadd.f32 %v7210_v53, %v1718_v18 }
 0x2e3   :  { %v3418_v54 = vpop.f32.mrf.mxu0  ;;  %v1850_v43 = vmax.f32 %v1786_v60, 0.0  ;;  %v1722_v18 = vmul.f32 %v7198_v59, %v7807_v51 }
 0x2e4   :  { %v3680_v13 = vmax.f32 %v3616_v42, 0.0  ;;  %v3547_v11 = vmul.f32 %v7175_v47, %v3417_v33  ;;  %v1719_v54 = vmul.f32 %v7198_v59, %v7804_v31 }
 0x2e5   :  { %v3419_v63 = vpop.f32.mrf.mxu0 }
 0x2e6   :  { %v3744_v17 = vadd.f32 %v3680_v13, %v1848_v32  ;;  %v3617_v14 = vadd.f32 %v7188_v57, %v3547_v11  ;;  %v3420_v22 = vadd.f32 %v3419_v63, %v7034_v30  ;;  %v7802_v30 = vld [vmem:[#allocation30_spill] sm:$0xff]  ;;  %v1852_v11 = vmax.f32 %v1788_v58, 0.0 }
 0x2e7   :  { %v3421_v9 = vpop.f32.mrf.mxu0  ;;  %v1717_v61 = vmul.f32 %v7198_v59, %v7802_v30  ;;  %v1789_v60 = vadd.f32 %v7210_v53, %v1719_v54 }
 0x2e8   :  { %v3786_v26 = vpack.c.bf16 %v3744_v17, %v3743_v39  ;;  %v3548_v50 = vmul.f32 %v7175_v47, %v3420_v22  ;;  %v3681_v56 = vmax.f32 %v3617_v14, 0.0 }
 0x2e9   :  { %v3424_v19 = vpop.f32.mrf.mxu0  ;;  %v1787_v7 = vadd.f32 %v7210_v53, %v1717_v61 }
 0x2ea   :  { %v3618_v62 = vadd.f32 %v7188_v57, %v3548_v50  ;;  %v3425_v21 = vadd.f32 %v3424_v19, %v7041_v49  ;;  %4819 = vmatmul.mubr.msk.bf16.gmra.mxu1 %vm3812_vm1, %v3786_v26  ;;  %v3745_v27 = vadd.f32 %v3681_v56, %v1849_v55 }
 0x2eb   :  { %v3426_v10 = vpop.f32.mrf.mxu0  ;;  %v1851_v13 = vmax.f32 %v1787_v7, 0.0  ;;  %v1792_v7 = vadd.f32 %v7210_v53, %v1722_v18 }
 0x2ec   :  { %v3682_v29 = vmax.f32 %v3618_v62, 0.0  ;;  %v3549_v15 = vmul.f32 %v7175_v47, %v3425_v21 }
 0x2ed   :  { %v3427_v8 = vpop.f32.mrf.mxu0 }
 0x2ee   :  { %v3746_v34 = vadd.f32 %v3682_v29, %v1850_v43  ;;  %v3619_v41 = vadd.f32 %v7188_v57, %v3549_v15  ;;  %v3428_v49 = vadd.f32 %v3427_v8, %v7047_v35  ;;  %v7805_v35 = vld [vmem:[#allocation33_spill] sm:$0xff]  ;;  %v1853_v43 = vmax.f32 %v1789_v60, 0.0 }
 0x2ef   :  { %v3429_v44 = vpop.f32.mrf.mxu0  ;;  %v1720_v25 = vmul.f32 %v7198_v59, %v7805_v35 }
 0x2f0   :  { %v3550_v6 = vmul.f32 %v7175_v47, %v3428_v49  ;;  %v3787_v42 = vpack.c.bf16 %v3746_v34, %v3745_v27  ;;  %v3683_v36 = vmax.f32 %v3619_v41, 0.0 }
 0x2f1   :  { %v3432_v33 = vpop.f32.mrf.mxu0  ;;  %v1790_v9 = vadd.f32 %v7210_v53, %v1720_v25 }
 0x2f2   :  { %v3620_v45 = vadd.f32 %v7188_v57, %v3550_v6  ;;  %v3433_v52 = vadd.f32 %v3432_v33, %v7056_v37  ;;  %4822 = vmatprep.mubr.msk.bf16.mxu1 %vm3812_vm1, %v3787_v42  ;;  %v3747_v14 = vadd.f32 %v3683_v36, %v1851_v13 }
 0x2f3   :  { %v3434_v32 = vpop.f32.mrf.mxu0  ;;  %v1854_v10 = vmax.f32 %v1790_v9, 0.0 }
 0x2f4   :  { %v3684_v63 = vmax.f32 %v3620_v45, 0.0  ;;  %v3551_v39 = vmul.f32 %v7175_v47, %v3433_v52  ;;  %v7808_v52 = vld [vmem:[#allocation36_spill] sm:$0xff]  ;;  %v1856_v32 = vmax.f32 %v1792_v7, 0.0 }
 0x2f5   :  { %v3435_v17 = vpop.f32.mrf.mxu0  ;;  %v1723_v31 = vmul.f32 %v7198_v59, %v7808_v52 }
 0x2f6   :  { %v3748_v22 = vadd.f32 %v3684_v63, %v1852_v11  ;;  %v3621_v38 = vadd.f32 %v7188_v57, %v3551_v39  ;;  %v3436_v37 = vadd.f32 %v3435_v17, %v7068_v48  ;;  %v7806_v48 = vld [vmem:[#allocation34_spill] sm:$0xff] }
 0x2f7   :  { %v3437_v26 = vpop.f32.mrf.mxu0  ;;  %v1721_v61 = vmul.f32 %v7198_v59, %v7806_v48 }
 0x2f8   :  { %v3788_v50 = vpack.c.bf16 %v3748_v22, %v3747_v14  ;;  %v3552_v19 = vmul.f32 %v7175_v47, %v3436_v37  ;;  %v3685_v62 = vmax.f32 %v3621_v38, 0.0  ;;  %v1793_v22 = vadd.f32 %v7210_v53, %v1723_v31  ;;  %v7309_v26 = vld [vmem:[%s7708_s9] ss:$0 sm:$0xff] }
 0x2f9   :  { %v3440_v56 = vpop.f32.mrf.mxu0  ;;  %v1791_v44 = vadd.f32 %v7210_v53, %v1721_v61  ;;  %v7811_v61 = vld [vmem:[#allocation39_spill] sm:$0xff] }
 0x2fa   :  { %v3622_v21 = vadd.f32 %v7188_v57, %v3552_v19  ;;  %v3441_v55 = vadd.f32 %v3440_v56, %v7075_v40  ;;  %4823 = vmatmul.mubr.msk.bf16.gmra.mxu1 %vm3812_vm1, %v3788_v50  ;;  %v3749_v27 = vadd.f32 %v3685_v62, %v1853_v43  ;;  %v7810_v43 = vld [vmem:[#allocation38_spill] sm:$0xff]  ;;  %v1726_v51 = vmul.f32 %v7198_v59, %v7811_v61 }
 0x2fb   :  { %v3442_v30 = vpop.f32.mrf.mxu0  ;;  %v1855_v25 = vmax.f32 %v1791_v44, 0.0 }
 0x2fc   :  { %v3686_v29 = vmax.f32 %v3622_v21, 0.0  ;;  %v3553_v15 = vmul.f32 %v7175_v47, %v3441_v55  ;;  %v1857_v21 = vmax.f32 %v1793_v22, 0.0 }
 0x2fd   :  { %v3443_v8 = vpop.f32.mrf.mxu0 }
 0x2fe   :  { %v3750_v34 = vadd.f32 %v3686_v29, %v1854_v10  ;;  %v3623_v41 = vadd.f32 %v7188_v57, %v3553_v15  ;;  %v3444_v40 = vadd.f32 %v3443_v8, %v7081_v23  ;;  %v7809_v23 = vld [vmem:[#allocation37_spill] sm:$0xff]  ;;  %v1725_v10 = vmul.f32 %v7198_v59, %v7810_v43 }
 0x2ff   :  { %v3445_v49 = vpop.f32.mrf.mxu0  ;;  %v1724_v54 = vmul.f32 %v7198_v59, %v7809_v23 }
 0x300   :  { %v3554_v58 = vmul.f32 %v7175_v47, %v3444_v40  ;;  %v3789_v6 = vpack.c.bf16 %v3750_v34, %v3749_v27  ;;  %v3687_v33 = vmax.f32 %v3623_v41, 0.0 }
 0x301   :  { %v3448_v42 = vpop.f32.mrf.mxu0  ;;  %v1794_v38 = vadd.f32 %v7210_v53, %v1724_v54 }
 0x302   :  { %v3624_v36 = vadd.f32 %v7188_v57, %v3554_v58  ;;  %v3449_v45 = vadd.f32 %v3448_v42, %v7090_v4  ;;  %4826 = vmatprep.mubr.msk.bf16.mxu1 %vm3812_vm1, %v3789_v6  ;;  %v3751_v39 = vadd.f32 %v3687_v33, %v1855_v25  ;;  %v1795_v42 = vadd.f32 %v7210_v53, %v1725_v10 }
 0x303   :  { %v3450_v35 = vpop.f32.mrf.mxu0  ;;  %v1858_v55 = vmax.f32 %v1794_v38, 0.0  ;;  %v1796_v33 = vadd.f32 %v7210_v53, %v1726_v51 }
 0x304   :  { %v3688_v13 = vmax.f32 %v3624_v36, 0.0  ;;  %v3555_v11 = vmul.f32 %v7175_v47, %v3449_v45 }
 0x305   :  { %v3451_v63 = vpop.f32.mrf.mxu0 }
 0x306   :  { %v3752_v17 = vadd.f32 %v3688_v13, %v1856_v32  ;;  %v3625_v14 = vadd.f32 %v7188_v57, %v3555_v11  ;;  %v3452_v4 = vadd.f32 %v3451_v63, %v7102_v5  ;;  %v7812_v32 = vld [vmem:[#allocation40_spill] sm:$0xff]  ;;  %v7813_v11 = vld [vmem:[#allocation41_spill] sm:$0xff] }
 0x307   :  { %v3453_v37 = vpop.f32.mrf.mxu0  ;;  %v1727_v13 = vmul.f32 %v7198_v59, %v7812_v32  ;;  %v1728_v63 = vmul.f32 %v7198_v59, %v7813_v11 }
 0x308   :  { %v3790_v60 = vpack.c.bf16 %v3752_v17, %v3751_v39  ;;  %v3556_v9 = vmul.f32 %v7175_v47, %v3452_v4  ;;  %v3689_v19 = vmax.f32 %v3625_v14, 0.0  ;;  %v1859_v14 = vmax.f32 %v1795_v42, 0.0 }
 0x309   :  { %v3456_v50 = vpop.f32.mrf.mxu0  ;;  %v1860_v4 = vmax.f32 %v1796_v33, 0.0 }
 0x30a   :  { %v3626_v56 = vadd.f32 %v7188_v57, %v3556_v9  ;;  %v3457_v62 = vadd.f32 %v3456_v50, %v7109_v0  ;;  %v4780_v5 = vpop.f32.mrf.mxu1  ;;  %4827 = vmatmul.mubr.msk.bf16.gmra.mxu1 %vm3812_vm1, %v3790_v60  ;;  %v3753_v34 = vadd.f32 %v3689_v19, %v1857_v21  ;;  %v1797_v19 = vadd.f32 %v7210_v53, %v1727_v13 }
 0x30b   :  { %v3952_v30 = vadd.f32 %v4780_v5, %v7309_v26  ;;  %v3458_v48 = vpop.f32.mrf.mxu0 }
 0x30c   :  { %v3690_v18 = vmax.f32 %v3626_v56, 0.0  ;;  %v3557_v29 = vmul.f32 %v7175_v47, %v3457_v62  ;;  %v3943_v15 = vpop.f32.mrf.mxu1  ;;  %v1798_v56 = vadd.f32 %v7210_v53, %v1728_v63  ;;  %v1861_v61 = vmax.f32 %v1797_v19, 0.0  ;;  %v7816_v63 = vld [vmem:[#allocation44_spill] sm:$0xff] }
 0x30d   :  { %v4200_v0 = vmax.f32 %v3952_v30, 0.0  ;;  %v3944_v8 = vadd.f32 %v7309_v26, %v3943_v15  ;;  %v3459_v27 = vpop.f32.mrf.mxu0 }
 0x30e   :  { %v3754_v41 = vadd.f32 %v3690_v18, %v1858_v55  ;;  %v3627_v40 = vadd.f32 %v7188_v57, %v3557_v29  ;;  %v3460_v49 = vadd.f32 %v3459_v27, %v7115_v16  ;;  %v4781_v44 = vpop.f32.mrf.mxu1  ;;  %v1862_v51 = vmax.f32 %v1798_v56, 0.0  ;;  %v7814_v29 = vld [vmem:[#allocation42_spill] sm:$0xff] }
 0x30f   :  { %4265 = vst.msk [vmem:[%s7709_s10 + $0x10] sm:$0xff] %vm4262_vm2, %v4200_v0  ;;  %v4198_v7 = vmax.f32 %v3944_v8, 0.0  ;;  %v3955_v58 = vadd.f32 %v4781_v44, %v7309_v26  ;;  %v3461_v6 = vpop.f32.mrf.mxu0  ;;  %v1729_v15 = vmul.f32 %v7198_v59, %v7814_v29  ;;  %v7815_v0 = vld [vmem:[#allocation43_spill] sm:$0xff] }
 0x310   :  { %v3558_v36 = vmul.f32 %v7175_v47, %v3460_v49  ;;  %v3946_v45 = vpop.f32.mrf.mxu1  ;;  %v3791_v52 = vpack.c.bf16 %v3754_v41, %v3753_v34  ;;  %v3691_v54 = vmax.f32 %v3627_v40, 0.0  ;;  %v1730_v8 = vmul.f32 %v7198_v59, %v7815_v0 }
 0x311   :  { %4263 = vst.msk [vmem:[%s7709_s10] sm:$0xff] %vm4262_vm2, %v4198_v7  ;;  %v4201_v16 = vmax.f32 %v3955_v58, 0.0  ;;  %v3947_v31 = vadd.f32 %v7309_v26, %v3946_v45  ;;  %v3464_v23 = vpop.f32.mrf.mxu0 }
 0x312   :  { %v3628_v35 = vadd.f32 %v7188_v57, %v3558_v36  ;;  %v3465_v25 = vadd.f32 %v3464_v23, %v7124_v28  ;;  %4830 = vmatprep.mubr.msk.bf16.mxu1 %vm3812_vm1, %v3791_v52  ;;  %v3755_v37 = vadd.f32 %v3691_v54, %v1859_v14  ;;  %v1799_v52 = vadd.f32 %v7210_v53, %v1729_v15  ;;  %v7818_v15 = vld [vmem:[#allocation46_spill] sm:$0xff] }
 0x313   :  { %4266 = vst.msk [vmem:[%s7709_s10 + $0x18] sm:$0xff] %vm4262_vm2, %v4201_v16  ;;  %v4199_v39 = vmax.f32 %v3947_v31, 0.0  ;;  %v3466_v17 = vpop.f32.mrf.mxu0  ;;  %v1800_v16 = vadd.f32 %v7210_v53, %v1730_v8  ;;  %v1733_v0 = vmul.f32 %v7198_v59, %v7818_v15  ;;  %v7819_v8 = vld [vmem:[#allocation47_spill] sm:$0xff] }
 0x314   :  { %v3692_v22 = vmax.f32 %v3628_v35, 0.0  ;;  %v3559_v28 = vmul.f32 %v7175_v47, %v3465_v25  ;;  %v7817_v17 = vld [vmem:[#allocation45_spill] sm:$0xff] }
 0x315   :  { %4264 = vst.msk [vmem:[%s7709_s10 + $0x8] sm:$0xff] %vm4262_vm2, %v4199_v39  ;;  %v3467_v38 = vpop.f32.mrf.mxu0  ;;  %v1731_v39 = vmul.f32 %v7198_v59, %v7816_v63  ;;  %v1732_v14 = vmul.f32 %v7198_v59, %v7817_v17 }
 0x316   :  { %v3756_v60 = vadd.f32 %v3692_v22, %v1860_v4  ;;  %v3629_v9 = vadd.f32 %v7188_v57, %v3559_v28  ;;  %v3468_v50 = vadd.f32 %v3467_v38, %v7136_v3  ;;  %v1863_v28 = vmax.f32 %v1799_v52, 0.0 }
 0x317   :  { %v3469_v62 = vpop.f32.mrf.mxu0  ;;  %v1864_v38 = vmax.f32 %v1800_v16, 0.0 }
 0x318   :  { %v3792_v5 = vpack.c.bf16 %v3756_v60, %v3755_v37  ;;  %v3560_v21 = vmul.f32 %v7175_v47, %v3468_v50  ;;  %v3693_v43 = vmax.f32 %v3629_v9, 0.0  ;;  %v1801_v62 = vadd.f32 %v7210_v53, %v1731_v39 }
 0x319   :  { %v3472_v55 = vpop.f32.mrf.mxu0 }
 0x31a   :  { %v3630_v10 = vadd.f32 %v7188_v57, %v3560_v21  ;;  %v3473_v30 = vadd.f32 %v3472_v55, %v7143_v46  ;;  %v4784_v48 = vpop.f32.mrf.mxu1  ;;  %4831 = vmatmul.mubr.msk.bf16.gmra.mxu1 %vm3812_vm1, %v3792_v5  ;;  %v3757_v44 = vadd.f32 %v3693_v43, %v1861_v61  ;;  %v1802_v5 = vadd.f32 %v7210_v53, %v1732_v14 }
 0x31b   :  { %v3968_v3 = vadd.f32 %v4784_v48, %v7309_v26  ;;  %v3474_v18 = vpop.f32.mrf.mxu0 }
 0x31c   :  { %v3694_v27 = vmax.f32 %v3630_v10, 0.0  ;;  %v3561_v34 = vmul.f32 %v7175_v47, %v3473_v30  ;;  %v3959_v41 = vpop.f32.mrf.mxu1  ;;  %v1866_v18 = vmax.f32 %v1802_v5, 0.0 }
 0x31d   :  { %v4204_v40 = vmax.f32 %v3968_v3, 0.0  ;;  %v3960_v46 = vadd.f32 %v7309_v26, %v3959_v41  ;;  %v3475_v49 = vpop.f32.mrf.mxu0  ;;  %v1865_v3 = vmax.f32 %v1801_v62, 0.0 }
 0x31e   :  { %v3758_v7 = vadd.f32 %v3694_v27, %v1862_v51  ;;  %v3631_v58 = vadd.f32 %v7188_v57, %v3561_v34  ;;  %v3476_v6 = vadd.f32 %v3475_v49, %v7149_v24  ;;  %v4785_v42 = vpop.f32.mrf.mxu1  ;;  %v1734_v27 = vmul.f32 %v7198_v59, %v7819_v8 }
 0x31f   :  { %4269 = vst.msk [vmem:[%s7709_s10 + $0x30] sm:$0xff] %vm4262_vm2, %v4204_v40  ;;  %v4202_v33 = vmax.f32 %v3960_v46, 0.0  ;;  %v3971_v36 = vadd.f32 %v4785_v42, %v7309_v26  ;;  %v3477_v45 = vpop.f32.mrf.mxu0 }
 0x320   :  { %v3562_v31 = vmul.f32 %v7175_v47, %v3476_v6  ;;  %v3962_v23 = vpop.f32.mrf.mxu1  ;;  %v3793_v54 = vpack.c.bf16 %v3758_v7, %v3757_v44  ;;  %v3695_v32 = vmax.f32 %v3631_v58, 0.0  ;;  %v1803_v45 = vadd.f32 %v7210_v53, %v1733_v0 }
 0x321   :  { %4267 = vst.msk [vmem:[%s7709_s10 + $0x20] sm:$0xff] %vm4262_vm2, %v4202_v33  ;;  %v4205_v24 = vmax.f32 %v3971_v36, 0.0  ;;  %v3963_v35 = vadd.f32 %v7309_v26, %v3962_v23  ;;  %v3480_v25 = vpop.f32.mrf.mxu0  ;;  %v1804_v52 = vadd.f32 %v7210_v53, %v1734_v27 }
 0x322   :  { %v3632_v13 = vadd.f32 %v7188_v57, %v3562_v31  ;;  %v3481_v11 = vadd.f32 %v3480_v25, %v7158_v2  ;;  %4834 = vmatprep.mubr.msk.bf16.mxu1 %vm3812_vm1, %v3793_v54  ;;  %v3759_v9 = vadd.f32 %v3695_v32, %v1863_v28  ;;  %v1867_v53 = vmax.f32 %v1803_v45, 0.0 }
 0x323   :  { %4270 = vst.msk [vmem:[%s7709_s10 + $0x38] sm:$0xff] %vm4262_vm2, %v4205_v24  ;;  %v4203_v4 = vmax.f32 %v3963_v35, 0.0  ;;  %v3482_v22 = vpop.f32.mrf.mxu0  ;;  %v1868_v25 = vmax.f32 %v1804_v52, 0.0 }
 0x324   :  { %v3696_v37 = vmax.f32 %v3632_v13, 0.0  ;;  %v3563_v2 = vmul.f32 %v7175_v47, %v3481_v11 }
 0x325   :  { %4268 = vst.msk [vmem:[%s7709_s10 + $0x28] sm:$0xff] %vm4262_vm2, %v4203_v4  ;;  %v3483_v60 = vpop.f32.mrf.mxu0 }
 0x326   :  { %v3760_v50 = vadd.f32 %v3696_v37, %v1864_v38  ;;  %v3633_v19 = vadd.f32 %v7188_v57, %v3563_v2  ;;  %v3484_v56 = vadd.f32 %v3483_v60, %v7170_v20 }
 0x327   :  { %v3485_v21 = vpop.f32.mrf.mxu0 }
 0x328   :  { %v3794_v55 = vpack.c.bf16 %v3760_v50, %v3759_v9  ;;  %v3564_v43 = vmul.f32 %v7175_v47, %v3484_v56  ;;  %v3697_v30 = vmax.f32 %v3633_v19, 0.0 }
 0x329   :  { %v3488_v10 = vpop.f32.mrf.mxu0 }
 0x32a   :  { %v3634_v48 = vadd.f32 %v7188_v57, %v3564_v43  ;;  %v3489_v61 = vadd.f32 %v3488_v10, %v7182_v12  ;;  %v4788_v51 = vpop.f32.mrf.mxu1  ;;  %4835 = vmatmul.mubr.msk.bf16.gmra.mxu1 %vm3812_vm1, %v3794_v55  ;;  %v3761_v44 = vadd.f32 %v3697_v30, %v1865_v3 }
 0x32b   :  { %v3984_v20 = vadd.f32 %v4788_v51, %v7309_v26  ;;  %v3490_v29 = vpop.f32.mrf.mxu0 }
 0x32c   :  { %v3698_v34 = vmax.f32 %v3634_v48, 0.0  ;;  %v3565_v41 = vmul.f32 %v7175_v47, %v3489_v61  ;;  %v3975_v40 = vpop.f32.mrf.mxu1 }
 0x32d   :  { %v4208_v46 = vmax.f32 %v3984_v20, 0.0  ;;  %v3976_v12 = vadd.f32 %v7309_v26, %v3975_v40  ;;  %v3491_v49 = vpop.f32.mrf.mxu0 }
 0x32e   :  { %v3762_v7 = vadd.f32 %v3698_v34, %v1866_v18  ;;  %v3635_v58 = vadd.f32 %v7188_v57, %v3565_v41  ;;  %v3492_v6 = vadd.f32 %v3491_v49, %v7193_v1  ;;  %v4789_v42 = vpop.f32.mrf.mxu1 }
 0x32f   :  { %4273 = vst.msk [vmem:[%s7709_s10 + $0x50] sm:$0xff] %vm4262_vm2, %v4208_v46  ;;  %v4206_v59 = vmax.f32 %v3976_v12, 0.0  ;;  %v3987_v33 = vadd.f32 %v4789_v42, %v7309_v26  ;;  %v3493_v36 = vpop.f32.mrf.mxu0 }
 0x330   :  { %v3566_v16 = vmul.f32 %v7175_v47, %v3492_v6  ;;  %v3978_v31 = vpop.f32.mrf.mxu1  ;;  %v3795_v23 = vpack.c.bf16 %v3762_v7, %v3761_v44  ;;  %v3699_v24 = vmax.f32 %v3635_v58, 0.0 }
 0x331   :  { %4271 = vst.msk [vmem:[%s7709_s10 + $0x40] sm:$0xff] %vm4262_vm2, %v4206_v59  ;;  %v4209_v1 = vmax.f32 %v3987_v33, 0.0  ;;  %v3979_v54 = vadd.f32 %v7309_v26, %v3978_v31 }
 0x332   :  { %v3636_v35 = vadd.f32 %v7188_v57, %v3566_v16  ;;  %4838 = vmatprep.mubr.msk.bf16.mxu1 %vm3812_vm1, %v3795_v23  ;;  %v3763_v13 = vadd.f32 %v3699_v24, %v1867_v53 }
 0x333   :  { %4274 = vst.msk [vmem:[%s7709_s10 + $0x58] sm:$0xff] %vm4262_vm2, %v4209_v1  ;;  %v4207_v47 = vmax.f32 %v3979_v54, 0.0 }
 0x334   :  { %v3700_v32 = vmax.f32 %v3636_v35, 0.0 }
 0x335   :  { %4272 = vst.msk [vmem:[%s7709_s10 + $0x48] sm:$0xff] %vm4262_vm2, %v4207_v47 }
 0x336   :  { %v3764_v11 = vadd.f32 %v3700_v32, %v1868_v25 }
 0x338   :  { %v3796_v63 = vpack.c.bf16 %v3764_v11, %v3763_v13 }
 0x33a   :  { %v4792_v57 = vpop.f32.mrf.mxu1  ;;  %4839 = vmatmul.mubr.msk.bf16.gmra.mxu1 %vm3812_vm1, %v3796_v63 }
 0x33b   :  { %v4000_v39 = vadd.f32 %v4792_v57, %v7309_v26 }
 0x33c   :  { %v3991_v17 = vpop.f32.mrf.mxu1 }
 0x33d   :  { %v4212_v14 = vmax.f32 %v4000_v39, 0.0  ;;  %v3992_v4 = vadd.f32 %v7309_v26, %v3991_v17 }
 0x33e   :  { %v4793_v22 = vpop.f32.mrf.mxu1 }
 0x33f   :  { %4277 = vst.msk [vmem:[%s7709_s10 + $0x70] sm:$0xff] %vm4262_vm2, %v4212_v14  ;;  %v4210_v28 = vmax.f32 %v3992_v4, 0.0  ;;  %v4003_v38 = vadd.f32 %v4793_v22, %v7309_v26 }
 0x340   :  { %v3994_v37 = vpop.f32.mrf.mxu1 }
 0x341   :  { %4275 = vst.msk [vmem:[%s7709_s10 + $0x60] sm:$0xff] %vm4262_vm2, %v4210_v28  ;;  %v4213_v2 = vmax.f32 %v4003_v38, 0.0  ;;  %v3995_v60 = vadd.f32 %v7309_v26, %v3994_v37 }
 0x343   :  { %4278 = vst.msk [vmem:[%s7709_s10 + $0x78] sm:$0xff] %vm4262_vm2, %v4213_v2  ;;  %v4211_v9 = vmax.f32 %v3995_v60, 0.0 }
 0x345   :  { %4276 = vst.msk [vmem:[%s7709_s10 + $0x68] sm:$0xff] %vm4262_vm2, %v4211_v9 }
 0x34a   :  { %v4796_v50 = vpop.f32.mrf.mxu1 }
 0x34b   :  { %v4016_v19 = vadd.f32 %v4796_v50, %v7309_v26 }
 0x34c   :  { %v4007_v56 = vpop.f32.mrf.mxu1 }
 0x34d   :  { %v4216_v62 = vmax.f32 %v4016_v19, 0.0  ;;  %v4008_v5 = vadd.f32 %v7309_v26, %v4007_v56 }
 0x34e   :  { %v4797_v21 = vpop.f32.mrf.mxu1 }
 0x34f   :  { %4281 = vst.msk [vmem:[%s7709_s10 + $0x90] sm:$0xff] %vm4262_vm2, %v4216_v62  ;;  %v4214_v55 = vmax.f32 %v4008_v5, 0.0  ;;  %v4019_v43 = vadd.f32 %v4797_v21, %v7309_v26 }
 0x350   :  { %v4010_v10 = vpop.f32.mrf.mxu1 }
 0x351   :  { %4279 = vst.msk [vmem:[%s7709_s10 + $0x80] sm:$0xff] %vm4262_vm2, %v4214_v55  ;;  %v4217_v30 = vmax.f32 %v4019_v43, 0.0  ;;  %v4011_v48 = vadd.f32 %v7309_v26, %v4010_v10 }
 0x353   :  { %4282 = vst.msk [vmem:[%s7709_s10 + $0x98] sm:$0xff] %vm4262_vm2, %v4217_v30  ;;  %v4215_v61 = vmax.f32 %v4011_v48, 0.0 }
 0x355   :  { %4280 = vst.msk [vmem:[%s7709_s10 + $0x88] sm:$0xff] %vm4262_vm2, %v4215_v61 }
 0x35a   :  { %v4800_v51 = vpop.f32.mrf.mxu1 }
 0x35b   :  { %v4032_v3 = vadd.f32 %v4800_v51, %v7309_v26 }
 0x35c   :  { %v4023_v18 = vpop.f32.mrf.mxu1 }
 0x35d   :  { %v4220_v20 = vmax.f32 %v4032_v3, 0.0  ;;  %v4024_v29 = vadd.f32 %v7309_v26, %v4023_v18 }
 0x35e   :  { %v4801_v15 = vpop.f32.mrf.mxu1 }
 0x35f   :  { %4285 = vst.msk [vmem:[%s7709_s10 + $0xb0] sm:$0xff] %vm4262_vm2, %v4220_v20  ;;  %v4218_v0 = vmax.f32 %v4024_v29, 0.0  ;;  %v4035_v8 = vadd.f32 %v4801_v15, %v7309_v26 }
 0x360   :  { %v4026_v27 = vpop.f32.mrf.mxu1 }
 0x361   :  { %4283 = vst.msk [vmem:[%s7709_s10 + $0xa0] sm:$0xff] %vm4262_vm2, %v4218_v0  ;;  %v4221_v34 = vmax.f32 %v4035_v8, 0.0  ;;  %v4027_v41 = vadd.f32 %v7309_v26, %v4026_v27 }
 0x363   :  { %4286 = vst.msk [vmem:[%s7709_s10 + $0xb8] sm:$0xff] %vm4262_vm2, %v4221_v34  ;;  %v4219_v40 = vmax.f32 %v4027_v41, 0.0 }
 0x365   :  { %4284 = vst.msk [vmem:[%s7709_s10 + $0xa8] sm:$0xff] %vm4262_vm2, %v4219_v40 }
 0x36a   :  { %v4804_v46 = vpop.f32.mrf.mxu1 }
 0x36b   :  { %v4048_v12 = vadd.f32 %v4804_v46, %v7309_v26 }
 0x36c   :  { %v4039_v49 = vpop.f32.mrf.mxu1 }
 0x36d   :  { %v4224_v44 = vmax.f32 %v4048_v12, 0.0  ;;  %v4040_v7 = vadd.f32 %v7309_v26, %v4039_v49 }
 0x36e   :  { %v4805_v58 = vpop.f32.mrf.mxu1 }
 0x36f   :  { %4289 = vst.msk [vmem:[%s7709_s10 + $0xd0] sm:$0xff] %vm4262_vm2, %v4224_v44  ;;  %v4222_v6 = vmax.f32 %v4040_v7, 0.0  ;;  %v4051_v42 = vadd.f32 %v4805_v58, %v7309_v26 }
 0x370   :  { %v4042_v59 = vpop.f32.mrf.mxu1 }
 0x371   :  { %4287 = vst.msk [vmem:[%s7709_s10 + $0xc0] sm:$0xff] %vm4262_vm2, %v4222_v6  ;;  %v4225_v33 = vmax.f32 %v4051_v42, 0.0  ;;  %v4043_v36 = vadd.f32 %v7309_v26, %v4042_v59 }
 0x373   :  { %4290 = vst.msk [vmem:[%s7709_s10 + $0xd8] sm:$0xff] %vm4262_vm2, %v4225_v33  ;;  %v4223_v45 = vmax.f32 %v4043_v36, 0.0 }
 0x375   :  { %4288 = vst.msk [vmem:[%s7709_s10 + $0xc8] sm:$0xff] %vm4262_vm2, %v4223_v45 }
 0x37a   :  { %v4808_v52 = vpop.f32.mrf.mxu1 }
 0x37b   :  { %v4064_v16 = vadd.f32 %v4808_v52, %v7309_v26 }
 0x37c   :  { %v4055_v31 = vpop.f32.mrf.mxu1 }
 0x37d   :  { %v4228_v23 = vmax.f32 %v4064_v16, 0.0  ;;  %v4056_v1 = vadd.f32 %v7309_v26, %v4055_v31 }
 0x37e   :  { %v4809_v54 = vpop.f32.mrf.mxu1 }
 0x37f   :  { %4293 = vst.msk [vmem:[%s7709_s10 + $0xf0] sm:$0xff] %vm4262_vm2, %v4228_v23  ;;  %v4226_v24 = vmax.f32 %v4056_v1, 0.0  ;;  %v4067_v35 = vadd.f32 %v4809_v54, %v7309_v26 }
 0x380   :  { %v4058_v47 = vpop.f32.mrf.mxu1 }
 0x381   :  { %4291 = vst.msk [vmem:[%s7709_s10 + $0xe0] sm:$0xff] %vm4262_vm2, %v4226_v24  ;;  %v4229_v53 = vmax.f32 %v4067_v35, 0.0  ;;  %v4059_v25 = vadd.f32 %v7309_v26, %v4058_v47 }
 0x383   :  { %4294 = vst.msk [vmem:[%s7709_s10 + $0xf8] sm:$0xff] %vm4262_vm2, %v4229_v53  ;;  %v4227_v32 = vmax.f32 %v4059_v25, 0.0 }
 0x385   :  { %4292 = vst.msk [vmem:[%s7709_s10 + $0xe8] sm:$0xff] %vm4262_vm2, %v4227_v32 }
 0x38a   :  { %v4812_v13 = vpop.f32.mrf.mxu1 }
 0x38b   :  { %v4080_v11 = vadd.f32 %v4812_v13, %v7309_v26 }
 0x38c   :  { %v4071_v63 = vpop.f32.mrf.mxu1 }
 0x38d   :  { %v4232_v57 = vmax.f32 %v4080_v11, 0.0  ;;  %v4072_v39 = vadd.f32 %v7309_v26, %v4071_v63 }
 0x38e   :  { %v4813_v17 = vpop.f32.mrf.mxu1 }
 0x38f   :  { %4297 = vst.msk [vmem:[%s7709_s10 + $0x110] sm:$0xff] %vm4262_vm2, %v4232_v57  ;;  %v4230_v14 = vmax.f32 %v4072_v39, 0.0  ;;  %v4083_v4 = vadd.f32 %v4813_v17, %v7309_v26 }
 0x390   :  { %v4074_v22 = vpop.f32.mrf.mxu1 }
 0x391   :  { %4295 = vst.msk [vmem:[%s7709_s10 + $0x100] sm:$0xff] %vm4262_vm2, %v4230_v14  ;;  %v4233_v28 = vmax.f32 %v4083_v4, 0.0  ;;  %v4075_v38 = vadd.f32 %v7309_v26, %v4074_v22 }
 0x393   :  { %4298 = vst.msk [vmem:[%s7709_s10 + $0x118] sm:$0xff] %vm4262_vm2, %v4233_v28  ;;  %v4231_v37 = vmax.f32 %v4075_v38, 0.0 }
 0x395   :  { %4296 = vst.msk [vmem:[%s7709_s10 + $0x108] sm:$0xff] %vm4262_vm2, %v4231_v37 }
 0x39a   :  { %v4816_v2 = vpop.f32.mrf.mxu1 }
 0x39b   :  { %v4096_v60 = vadd.f32 %v4816_v2, %v7309_v26 }
 0x39c   :  { %v4087_v9 = vpop.f32.mrf.mxu1 }
 0x39d   :  { %v4236_v50 = vmax.f32 %v4096_v60, 0.0  ;;  %v4088_v19 = vadd.f32 %v7309_v26, %v4087_v9 }
 0x39e   :  { %v4817_v56 = vpop.f32.mrf.mxu1 }
 0x39f   :  { %4301 = vst.msk [vmem:[%s7709_s10 + $0x130] sm:$0xff] %vm4262_vm2, %v4236_v50  ;;  %v4234_v62 = vmax.f32 %v4088_v19, 0.0  ;;  %v4099_v5 = vadd.f32 %v4817_v56, %v7309_v26 }
 0x3a0   :  { %v4090_v21 = vpop.f32.mrf.mxu1 }
 0x3a1   :  { %4299 = vst.msk [vmem:[%s7709_s10 + $0x120] sm:$0xff] %vm4262_vm2, %v4234_v62  ;;  %v4237_v55 = vmax.f32 %v4099_v5, 0.0  ;;  %v4091_v43 = vadd.f32 %v7309_v26, %v4090_v21 }
 0x3a3   :  { %4302 = vst.msk [vmem:[%s7709_s10 + $0x138] sm:$0xff] %vm4262_vm2, %v4237_v55  ;;  %v4235_v10 = vmax.f32 %v4091_v43, 0.0 }
 0x3a5   :  { %4300 = vst.msk [vmem:[%s7709_s10 + $0x128] sm:$0xff] %vm4262_vm2, %v4235_v10 }
 0x3aa   :  { %v4820_v30 = vpop.f32.mrf.mxu1 }
 0x3ab   :  { %v4112_v48 = vadd.f32 %v4820_v30, %v7309_v26 }
 0x3ac   :  { %v4103_v61 = vpop.f32.mrf.mxu1 }
 0x3ad   :  { %v4240_v51 = vmax.f32 %v4112_v48, 0.0  ;;  %v4104_v3 = vadd.f32 %v7309_v26, %v4103_v61 }
 0x3ae   :  { %v4821_v18 = vpop.f32.mrf.mxu1 }
 0x3af   :  { %4305 = vst.msk [vmem:[%s7709_s10 + $0x150] sm:$0xff] %vm4262_vm2, %v4240_v51  ;;  %v4238_v20 = vmax.f32 %v4104_v3, 0.0  ;;  %v4115_v29 = vadd.f32 %v4821_v18, %v7309_v26 }
 0x3b0   :  { %v4106_v15 = vpop.f32.mrf.mxu1 }
 0x3b1   :  { %4303 = vst.msk [vmem:[%s7709_s10 + $0x140] sm:$0xff] %vm4262_vm2, %v4238_v20  ;;  %v4241_v0 = vmax.f32 %v4115_v29, 0.0  ;;  %v4107_v8 = vadd.f32 %v7309_v26, %v4106_v15 }
 0x3b3   :  { %4306 = vst.msk [vmem:[%s7709_s10 + $0x158] sm:$0xff] %vm4262_vm2, %v4241_v0  ;;  %v4239_v27 = vmax.f32 %v4107_v8, 0.0 }
 0x3b5   :  { %4304 = vst.msk [vmem:[%s7709_s10 + $0x148] sm:$0xff] %vm4262_vm2, %v4239_v27 }
 0x3ba   :  { %v4824_v34 = vpop.f32.mrf.mxu1 }
 0x3bb   :  { %v4128_v41 = vadd.f32 %v4824_v34, %v7309_v26 }
 0x3bc   :  { %v4119_v40 = vpop.f32.mrf.mxu1 }
 0x3bd   :  { %v4244_v46 = vmax.f32 %v4128_v41, 0.0  ;;  %v4120_v12 = vadd.f32 %v7309_v26, %v4119_v40 }
 0x3be   :  { %v4825_v49 = vpop.f32.mrf.mxu1 }
 0x3bf   :  { %4309 = vst.msk [vmem:[%s7709_s10 + $0x170] sm:$0xff] %vm4262_vm2, %v4244_v46  ;;  %v4242_v44 = vmax.f32 %v4120_v12, 0.0  ;;  %v4131_v7 = vadd.f32 %v4825_v49, %v7309_v26 }
 0x3c0   :  { %v4122_v58 = vpop.f32.mrf.mxu1 }
 0x3c1   :  { %4307 = vst.msk [vmem:[%s7709_s10 + $0x160] sm:$0xff] %vm4262_vm2, %v4242_v44  ;;  %v4245_v6 = vmax.f32 %v4131_v7, 0.0  ;;  %v4123_v42 = vadd.f32 %v7309_v26, %v4122_v58 }
 0x3c3   :  { %4310 = vst.msk [vmem:[%s7709_s10 + $0x178] sm:$0xff] %vm4262_vm2, %v4245_v6  ;;  %v4243_v59 = vmax.f32 %v4123_v42, 0.0 }
 0x3c5   :  { %4308 = vst.msk [vmem:[%s7709_s10 + $0x168] sm:$0xff] %vm4262_vm2, %v4243_v59 }
 0x3ca   :  { %v4828_v33 = vpop.f32.mrf.mxu1 }
 0x3cb   :  { %v4144_v36 = vadd.f32 %v4828_v33, %v7309_v26 }
 0x3cc   :  { %v4135_v45 = vpop.f32.mrf.mxu1 }
 0x3cd   :  { %v4248_v52 = vmax.f32 %v4144_v36, 0.0  ;;  %v4136_v16 = vadd.f32 %v7309_v26, %v4135_v45 }
 0x3ce   :  { %v4829_v31 = vpop.f32.mrf.mxu1 }
 0x3cf   :  { %4313 = vst.msk [vmem:[%s7709_s10 + $0x190] sm:$0xff] %vm4262_vm2, %v4248_v52  ;;  %v4246_v23 = vmax.f32 %v4136_v16, 0.0  ;;  %v4147_v1 = vadd.f32 %v4829_v31, %v7309_v26 }
 0x3d0   :  { %v4138_v54 = vpop.f32.mrf.mxu1 }
 0x3d1   :  { %4311 = vst.msk [vmem:[%s7709_s10 + $0x180] sm:$0xff] %vm4262_vm2, %v4246_v23  ;;  %v4249_v24 = vmax.f32 %v4147_v1, 0.0  ;;  %v4139_v35 = vadd.f32 %v7309_v26, %v4138_v54 }
 0x3d3   :  { %4314 = vst.msk [vmem:[%s7709_s10 + $0x198] sm:$0xff] %vm4262_vm2, %v4249_v24  ;;  %v4247_v47 = vmax.f32 %v4139_v35, 0.0 }
 0x3d5   :  { %4312 = vst.msk [vmem:[%s7709_s10 + $0x188] sm:$0xff] %vm4262_vm2, %v4247_v47 }
 0x3da   :  { %v4832_v53 = vpop.f32.mrf.mxu1 }
 0x3db   :  { %v4160_v25 = vadd.f32 %v4832_v53, %v7309_v26 }
 0x3dc   :  { %v4151_v32 = vpop.f32.mrf.mxu1 }
 0x3dd   :  { %v4252_v13 = vmax.f32 %v4160_v25, 0.0  ;;  %v4152_v11 = vadd.f32 %v7309_v26, %v4151_v32 }
 0x3de   :  { %v4833_v63 = vpop.f32.mrf.mxu1 }
 0x3df   :  { %4317 = vst.msk [vmem:[%s7709_s10 + $0x1b0] sm:$0xff] %vm4262_vm2, %v4252_v13  ;;  %v4250_v57 = vmax.f32 %v4152_v11, 0.0  ;;  %v4163_v39 = vadd.f32 %v4833_v63, %v7309_v26 }
 0x3e0   :  { %v4154_v17 = vpop.f32.mrf.mxu1 }
 0x3e1   :  { %4315 = vst.msk [vmem:[%s7709_s10 + $0x1a0] sm:$0xff] %vm4262_vm2, %v4250_v57  ;;  %v4253_v14 = vmax.f32 %v4163_v39, 0.0  ;;  %v4155_v4 = vadd.f32 %v7309_v26, %v4154_v17 }
 0x3e3   :  { %4318 = vst.msk [vmem:[%s7709_s10 + $0x1b8] sm:$0xff] %vm4262_vm2, %v4253_v14  ;;  %v4251_v22 = vmax.f32 %v4155_v4, 0.0 }
 0x3e5   :  { %4316 = vst.msk [vmem:[%s7709_s10 + $0x1a8] sm:$0xff] %vm4262_vm2, %v4251_v22 }
 0x3ea   :  { %v4836_v28 = vpop.f32.mrf.mxu1 }
 0x3eb   :  { %v4176_v38 = vadd.f32 %v4836_v28, %v7309_v26 }
 0x3ec   :  { %v4167_v37 = vpop.f32.mrf.mxu1 }
 0x3ed   :  { %v4256_v2 = vmax.f32 %v4176_v38, 0.0  ;;  %v4168_v60 = vadd.f32 %v7309_v26, %v4167_v37 }
 0x3ee   :  { %v4837_v9 = vpop.f32.mrf.mxu1 }
 0x3ef   :  { %4321 = vst.msk [vmem:[%s7709_s10 + $0x1d0] sm:$0xff] %vm4262_vm2, %v4256_v2  ;;  %v4254_v50 = vmax.f32 %v4168_v60, 0.0  ;;  %v4179_v19 = vadd.f32 %v4837_v9, %v7309_v26 }
 0x3f0   :  { %v4170_v56 = vpop.f32.mrf.mxu1 }
 0x3f1   :  { %4319 = vst.msk [vmem:[%s7709_s10 + $0x1c0] sm:$0xff] %vm4262_vm2, %v4254_v50  ;;  %v4257_v62 = vmax.f32 %v4179_v19, 0.0  ;;  %v4171_v5 = vadd.f32 %v7309_v26, %v4170_v56 }
 0x3f3   :  { %4322 = vst.msk [vmem:[%s7709_s10 + $0x1d8] sm:$0xff] %vm4262_vm2, %v4257_v62  ;;  %v4255_v21 = vmax.f32 %v4171_v5, 0.0 }
 0x3f5   :  { %4320 = vst.msk [vmem:[%s7709_s10 + $0x1c8] sm:$0xff] %vm4262_vm2, %v4255_v21 }
 0x3fa   :  { %v4840_v55 = vpop.f32.mrf.mxu1 }
 0x3fb   :  { %v4192_v43 = vadd.f32 %v4840_v55, %v7309_v26 }
 0x3fc   :  { %v4183_v10 = vpop.f32.mrf.mxu1 }
 0x3fd   :  { %v4260_v30 = vmax.f32 %v4192_v43, 0.0  ;;  %v4184_v48 = vadd.f32 %v7309_v26, %v4183_v10 }
 0x3fe   :  { %v4841_v61 = vpop.f32.mrf.mxu1 }
 0x3ff   :  { %4325 = vst.msk [vmem:[%s7709_s10 + $0x1f0] sm:$0xff] %vm4262_vm2, %v4260_v30  ;;  %v4258_v51 = vmax.f32 %v4184_v48, 0.0  ;;  %v4195_v3 = vadd.f32 %v4841_v61, %v7309_v26 }
 0x400   :  { %v4186_v18 = vpop.f32.mrf.mxu1 }
 0x401   :  { %4323 = vst.msk [vmem:[%s7709_s10 + $0x1e0] sm:$0xff] %vm4262_vm2, %v4258_v51  ;;  %v4261_v20 = vmax.f32 %v4195_v3, 0.0  ;;  %v4187_v29 = vadd.f32 %v7309_v26, %v4186_v18 }
 0x403   :  { %4326 = vst.msk [vmem:[%s7709_s10 + $0x1f8] sm:$0xff] %vm4262_vm2, %v4261_v20  ;;  %v4259_v15 = vmax.f32 %v4187_v29, 0.0 }
 0x405   :  { %4324 = vst.msk [vmem:[%s7709_s10 + $0x1e8] sm:$0xff] %vm4262_vm2, %v4259_v15 }

</bundles_post_ra>
